<compile_context>
chip_gen: v5e
topology: v5e:2x2
jax: 0.10.0
libtpu: 0.0.40
codegen_flags: <defaults>
</compile_context>

<pallas_src>
import jax
import jax.numpy as jnp
from jax import lax
from jax.experimental import pallas as pl
from jax.experimental.pallas import tpu as pltpu

TB = 8  # images per grid block: 8 images x 16 ch = 128 lanes (one full vreg row)


# ------------------------------ fused kernel ------------------------------

def _fused_cnn_kernel(p1_ref, w1_ref, b1_ref, w2_ref, b2_ref,
                      wf1_ref, bf1_ref, wf2_ref, bf2_ref,
                      o_ref, pool1_ref, feat_ref):
    """Whole SimpleCNN forward for a block of TB=8 images; all intermediates
    stay in VMEM.

    Layouts (t = image index inside the block):
      p1_ref : (4, 144, 200) bf16   corner q, row = h*12+w, lane = (kh*5+kw)*8+t
      w1_ref : (200, 128)    bf16   block-diag conv1: [(k,t), (t',c)]
      b1_ref : (1, 128)      f32    lane = t*16+c
      w2_ref : (25, 128, 256)bf16   per-tap block-diag conv2: [(t,ci),(t',co)]
      b2_ref : (1, 256)      f32    lane = t*32+co
      wf1_ref: (512, 128)    bf16   rows ordered (hp*4+wp)*32+co
      bf1_ref: (1, 128)      f32
      wf2_ref: (128, 10)     bf16
      bf2_ref: (1, 10)       f32
      o_ref  : (8, 10)       f32    row = t
      pool1_ref: VMEM (160, 128) bf16  pooled conv1, row = h*12+w, lane = t*16+c
      feat_ref : VMEM (8, 512)   f32   fc1 input, row = t, lane = (hp*4+wp)*32+co
    """
    # ---- conv1: one (576,200)x(200,128) dot; 2x2 max-pool fused as a max
    #      over the 4 pool-corner row-quarters; bias+ReLU applied post-max.
    y1 = jnp.dot(p1_ref[...].reshape(576, 200), w1_ref[...],
                 preferred_element_type=jnp.float32)              # (576, 128)
    m1 = jnp.maximum(jnp.maximum(y1[0:144], y1[144:288]),
                     jnp.maximum(y1[288:432], y1[432:576]))       # (144, 128)
    pooled1 = jnp.maximum(m1 + b1_ref[...], 0.0)                  # f32

    # Stage pooled1 (+ zero tail) in VMEM so every conv2 shifted window below
    # is a single contiguous, fully lane-packed row-slice.
    pool1_ref[...] = jnp.concatenate(
        [pooled1, jnp.zeros((16, 128), jnp.float32)], axis=0
    ).astype(jnp.bfloat16)                                        # (160, 128)

    # ---- conv2: 25 taps, each (96,128)x(128,256) bf16 dot with f32 acc.
    # Rows are "wide" (12 output cols/row); cols 8..11 are junk never read.
    acc2 = None
    for kh in range(5):
        for kw in range(5):
            s = kh * 12 + kw
            a = pool1_ref[s:s + 96, :]                            # (96, 128) bf16
            d = jnp.dot(a, w2_ref[kh * 5 + kw],
                        preferred_element_type=jnp.float32)       # (96, 256) f32
            acc2 = d if acc2 is None else acc2 + d
    # row = ho*12 + wo, lane = t*32 + co (bias/ReLU folded into pool2 below)

    # ---- 2x2 max-pool on conv2 + flatten bridge into the fc1 feature layout.
    for hp in range(4):
        for wp in range(4):
            r0 = 24 * hp + 2 * wp
            z = jnp.maximum(
                jnp.maximum(acc2[r0:r0 + 1, :], acc2[r0 + 1:r0 + 2, :]),
                jnp.maximum(acc2[r0 + 12:r0 + 13, :], acc2[r0 + 13:r0 + 14, :]))
            v = jnp.maximum(z + b2_ref[...], 0.0)                 # (1, 256) f32
            p = hp * 4 + wp
            for t in range(TB):                                   # lanes(t,c) -> row t
                feat_ref[t:t + 1, p * 32:(p + 1) * 32] = v[:, t * 32:(t + 1) * 32]

    # ---- fc1 + ReLU + fc2, each a single batched dot (M = TB = 8).
    h1 = jnp.dot(feat_ref[...].astype(jnp.bfloat16), wf1_ref[...],
                 preferred_element_type=jnp.float32)              # (8, 128)
    h1 = jnp.maximum(h1 + bf1_ref[...], 0.0)
    out = jnp.dot(h1.astype(jnp.bfloat16), wf2_ref[...],
                  preferred_element_type=jnp.float32)             # (8, 10)
    o_ref[...] = (out + bf2_ref[...]).astype(o_ref.dtype)


# --------------------------- wrapper / forward ----------------------------

def prepare_params(params):
    """One-time weight layout prep (block-diagonal batch expansion, fc1
    K-permutation, bias lane-tiling, bf16 casts)."""
    eye8 = jnp.eye(TB, dtype=jnp.float32)

    # conv1: (O,1,5,5) -> (25,16) -> block-diag (200,128): [(k,t),(t',c)]
    w1r = jnp.transpose(params["w1"], (2, 3, 1, 0)).reshape(25, 16)
    w1bd = jnp.einsum("kc,tu->ktuc", w1r, eye8).reshape(200, 128).astype(jnp.bfloat16)
    b1t = jnp.tile(params["b1"].reshape(1, 16), (1, TB)).astype(jnp.float32)

    # conv2: (O,I,5,5) -> (25,16,32) -> per-tap block-diag (25,128,256)
    w2r = jnp.transpose(params["w2"], (2, 3, 1, 0)).reshape(25, 16, 32)
    w2bd = jnp.einsum("kio,tu->ktiuo", w2r, eye8).reshape(25, 128, 256).astype(jnp.bfloat16)
    b2t = jnp.tile(params["b2"].reshape(1, 32), (1, TB)).astype(jnp.float32)

    # fc1: PyTorch flattens (C,H,W); kernel features are (hp,wp,c) -> permute K.
    wf1 = params["wf1"].reshape(128, 32, 4, 4)                    # (N, C, H, W)
    wf1p = jnp.transpose(wf1, (2, 3, 1, 0)).reshape(512, 128).astype(jnp.bfloat16)
    bf1 = params["bf1"].reshape(1, 128).astype(jnp.float32)
    wf2p = params["wf2"].T.astype(jnp.bfloat16)                   # (128, 10)
    bf2 = params["bf2"].reshape(1, 10).astype(jnp.float32)
    return {"w1": w1bd, "b1": b1t, "w2": w2bd, "b2": b2t,
            "wf1": wf1p, "bf1": bf1, "wf2": wf2p, "bf2": bf2}


@jax.jit
def simple_cnn_forward(prepped, x_nchw):
    B = x_nchw.shape[0]
    assert x_nchw.shape[1:] == (1, 28, 28)
    nblk = -(-B // TB)
    Bp = nblk * TB
    x = x_nchw[:, 0, :, :]
    if Bp != B:                                   # pad batch to a multiple of 8
        x = jnp.pad(x, ((0, Bp - B), (0, 0), (0, 0)))

    # conv1 im2col on the network INPUT only, split by 2x2-pool corner, with
    # the 8 images of each block folded into the lane/K dimension (k major,
    # t minor).  Cheap XLA glue at these sizes (bf16, ~29 KB/image).
    pat = jnp.stack([x[:, i:i + 24, j:j + 24]
                     for i in range(5) for j in range(5)], axis=-1)   # (Bp,24,24,25)
    pat = pat.reshape(nblk, TB, 12, 2, 12, 2, 25)                     # (blk,t,h,a,w,b,k)
    pat = jnp.transpose(pat, (0, 3, 5, 2, 4, 6, 1))                   # (blk,a,b,h,w,k,t)
    p1 = pat.reshape(nblk, 4, 144, 200).astype(jnp.bfloat16)

    out = pl.pallas_call(
        _fused_cnn_kernel,
        grid=(nblk,),
        in_specs=[
            pl.BlockSpec((None, 4, 144, 200), lambda b: (b, 0, 0, 0)),
            pl.BlockSpec((200, 128), lambda b: (0, 0)),
            pl.BlockSpec((1, 128), lambda b: (0, 0)),
            pl.BlockSpec((25, 128, 256), lambda b: (0, 0, 0)),
            pl.BlockSpec((1, 256), lambda b: (0, 0)),
            pl.BlockSpec((512, 128), lambda b: (0, 0)),
            pl.BlockSpec((1, 128), lambda b: (0, 0)),
            pl.BlockSpec((128, 10), lambda b: (0, 0)),
            pl.BlockSpec((1, 10), lambda b: (0, 0)),
        ],
        out_specs=pl.BlockSpec((None, TB, 10), lambda b: (b, 0, 0)),
        out_shape=jax.ShapeDtypeStruct((nblk, TB, 10), jnp.float32),
        scratch_shapes=[pltpu.VMEM((160, 128), jnp.bfloat16),
                        pltpu.VMEM((TB, 512), jnp.float32)],
        compiler_params=pltpu.CompilerParams(
            dimension_semantics=("parallel",)),    # batch blocks -> both TCs on v7x
    )(p1, prepped["w1"], prepped["b1"], prepped["w2"], prepped["b2"],
      prepped["wf1"], prepped["bf1"], prepped["wf2"], prepped["bf2"])
    return out.reshape(Bp, 10)[:B]


# -------------------------- params / reference ---------------------------

def init_params(key):
    ks = jax.random.split(key, 8)

    def u(k, shape, fan_in):
        bound = 1.0 / jnp.sqrt(jnp.float32(fan_in))
        return jax.random.uniform(k, shape, jnp.float32, -bound, bound)

    return {
        "w1": u(ks[0], (16, 1, 5, 5), 1 * 5 * 5),
        "b1": u(ks[1], (16,), 1 * 5 * 5),
        "w2": u(ks[2], (32, 16, 5, 5), 16 * 5 * 5),
        "b2": u(ks[3], (32,), 16 * 5 * 5),
        "wf1": u(ks[4], (128, 512), 512),
        "bf1": u(ks[5], (128,), 512),
        "wf2": u(ks[6], (10, 128), 128),
        "bf2": u(ks[7], (10,), 128),
    }


def reference_forward(params, x_nchw):
    """Pure-JAX f32 reference mirroring the PyTorch module exactly."""
    dn = ("NCHW", "OIHW", "NCHW")
    y = lax.conv_general_dilated(x_nchw, params["w1"], (1, 1), "VALID",
                                 dimension_numbers=dn)
    y = jax.nn.relu(y + params["b1"][None, :, None, None])
    y = lax.reduce_window(y, -jnp.inf, lax.max, (1, 1, 2, 2), (1, 1, 2, 2), "VALID")
    y = lax.conv_general_dilated(y, params["w2"], (1, 1), "VALID",
                                 dimension_numbers=dn)
    y = jax.nn.relu(y + params["b2"][None, :, None, None])
    y = lax.reduce_window(y, -jnp.inf, lax.max, (1, 1, 2, 2), (1, 1, 2, 2), "VALID")
    y = y.reshape(y.shape[0], -1)
    y = jax.nn.relu(y @ params["wf1"].T + params["bf1"])
    y = y @ params["wf2"].T + params["bf2"]
    return y


# --------------------------------- main ----------------------------------

if __name__ == "__main__":
    key = jax.random.PRNGKey(0)
    k_params, k_x = jax.random.split(key)
    params = init_params(k_params)
    prepped = prepare_params(params)             # hoisted, runs once

    # forward implies 1x28x28 inputs (32*4*4 flatten); B=12 exercises batch
    # padding (12 -> 16) and gives 2 grid blocks (both v7x TensorCores busy).
    x = jax.random.normal(k_x, (12, 1, 28, 28), dtype=jnp.float32)

    out = jax.block_until_ready(simple_cnn_forward(prepped, x))
    ref = jax.block_until_ready(reference_forward(params, x))

    assert out.shape == (12, 10)
    # bf16 matmul operands with f32 accumulation vs. the pure-f32 reference:
    # observed error is O(1e-2) absolute at these activation scales.
    assert jnp.allclose(out, ref, rtol=3e-2, atol=3e-2), (
        "mismatch vs reference, max abs diff = %r"
        % float(jnp.max(jnp.abs(out - ref))))

    print("KERNEL_OK")
</pallas_src>

<mosaic_0001>
module attributes {stable_mosaic.version = 11 : i64} {
  func.func @_fused_cnn_kernel(%arg0: i32, %arg1: memref<1x4x144x200xbf16, #tpu.memory_space<vmem>>, %arg2: memref<200x128xbf16, #tpu.memory_space<vmem>>, %arg3: memref<1x128xf32, #tpu.memory_space<vmem>>, %arg4: memref<25x128x256xbf16, #tpu.memory_space<vmem>>, %arg5: memref<1x256xf32, #tpu.memory_space<vmem>>, %arg6: memref<512x128xbf16, #tpu.memory_space<vmem>>, %arg7: memref<1x128xf32, #tpu.memory_space<vmem>>, %arg8: memref<128x10xbf16, #tpu.memory_space<vmem>>, %arg9: memref<1x10xf32, #tpu.memory_space<vmem>>, %arg10: memref<1x8x10xf32, #tpu.memory_space<vmem>>, %arg11: memref<160x128xbf16, #tpu.memory_space<vmem>>, %arg12: memref<8x512xf32, #tpu.memory_space<vmem>>) attributes {dimension_semantics = [#tpu.dimension_semantics<parallel>], iteration_bounds = array<i64: 2>, scalar_prefetch = 0 : i64, scratch_operands = 2 : i64, tpu.core_type = #tpu.core_type<tc>, window_params = [{transform_indices = @transform_0, window_bounds = array<i64: 1, 4, 144, 200>}, {pipeline_mode = #tpu.pipeline_mode<synchronous>, transform_indices = @transform_1, window_bounds = array<i64: 200, 128>}, {pipeline_mode = #tpu.pipeline_mode<synchronous>, transform_indices = @transform_2, window_bounds = array<i64: 1, 128>}, {pipeline_mode = #tpu.pipeline_mode<synchronous>, transform_indices = @transform_3, window_bounds = array<i64: 25, 128, 256>}, {pipeline_mode = #tpu.pipeline_mode<synchronous>, transform_indices = @transform_4, window_bounds = array<i64: 1, 256>}, {pipeline_mode = #tpu.pipeline_mode<synchronous>, transform_indices = @transform_5, window_bounds = array<i64: 512, 128>}, {pipeline_mode = #tpu.pipeline_mode<synchronous>, transform_indices = @transform_6, window_bounds = array<i64: 1, 128>}, {pipeline_mode = #tpu.pipeline_mode<synchronous>, transform_indices = @transform_7, window_bounds = array<i64: 128, 10>}, {pipeline_mode = #tpu.pipeline_mode<synchronous>, transform_indices = @transform_8, window_bounds = array<i64: 1, 10>}, {transform_indices = @transform_9, window_bounds = array<i64: 1, 8, 10>}]} {
    %c0 = arith.constant 0 : index
    %c0_0 = arith.constant 0 : index
    %c0_1 = arith.constant 0 : index
    %c0_2 = arith.constant 0 : index
    %0 = vector.load %arg1[%c0, %c0_0, %c0_1, %c0_2] : memref<1x4x144x200xbf16, #tpu.memory_space<vmem>>, vector<1x4x144x200xbf16>
    %1 = vector.shape_cast %0 : vector<1x4x144x200xbf16> to vector<4x144x200xbf16>
    %2 = vector.shape_cast %1 : vector<4x144x200xbf16> to vector<576x200xbf16>
    %c0_3 = arith.constant 0 : index
    %c0_4 = arith.constant 0 : index
    %3 = vector.load %arg2[%c0_3, %c0_4] : memref<200x128xbf16, #tpu.memory_space<vmem>>, vector<200x128xbf16>
    %cst = arith.constant dense<0.000000e+00> : vector<576x128xf32>
    %4 = tpu.matmul %2, %3, %cst {dimension_numbers = #tpu.dot_dimension_numbers<[1], [0], [0], [1], [0, 0, 1, 1], [], []>} : vector<576x200xbf16>, vector<200x128xbf16>, vector<576x128xf32> -> vector<576x128xf32>
    %5 = vector.extract_strided_slice %4 {offsets = [0, 0], sizes = [144, 128], strides = [1, 1]} : vector<576x128xf32> to vector<144x128xf32>
    %6 = vector.extract_strided_slice %4 {offsets = [144, 0], sizes = [144, 128], strides = [1, 1]} : vector<576x128xf32> to vector<144x128xf32>
    %7 = arith.maximumf %5, %6 : vector<144x128xf32>
    %8 = vector.extract_strided_slice %4 {offsets = [288, 0], sizes = [144, 128], strides = [1, 1]} : vector<576x128xf32> to vector<144x128xf32>
    %9 = vector.extract_strided_slice %4 {offsets = [432, 0], sizes = [144, 128], strides = [1, 1]} : vector<576x128xf32> to vector<144x128xf32>
    %10 = arith.maximumf %8, %9 : vector<144x128xf32>
    %11 = arith.maximumf %7, %10 : vector<144x128xf32>
    %c0_5 = arith.constant 0 : index
    %c0_6 = arith.constant 0 : index
    %12 = vector.load %arg3[%c0_5, %c0_6] : memref<1x128xf32, #tpu.memory_space<vmem>>, vector<1x128xf32>
    %13 = vector.broadcast %12 : vector<1x128xf32> to vector<144x128xf32>
    %14 = arith.addf %11, %13 : vector<144x128xf32>
    %cst_7 = arith.constant 0.000000e+00 : f32
    %15 = vector.broadcast %cst_7 : f32 to vector<144x128xf32>
    %16 = arith.maximumf %14, %15 : vector<144x128xf32>
    %cst_8 = arith.constant 0.000000e+00 : f32
    %17 = vector.broadcast %cst_8 : f32 to vector<16x128xf32>
    %18 = tpu.concatenate %16, %17 in 0 : vector<144x128xf32>, vector<16x128xf32> -> vector<160x128xf32>
    %19 = arith.truncf %18 : vector<160x128xf32> to vector<160x128xbf16>
    %c0_9 = arith.constant 0 : index
    %c0_10 = arith.constant 0 : index
    %20 = vector.load %arg11[%c0_9, %c0_10] : memref<160x128xbf16, #tpu.memory_space<vmem>>, vector<160x128xbf16>
    tpu.vector_store %arg11[%c0_9, %c0_10], %19 {strides = array<i32>} : memref<160x128xbf16, #tpu.memory_space<vmem>>, vector<160x128xbf16>,
    %c0_11 = arith.constant 0 : index
    %c0_12 = arith.constant 0 : index
    %21 = vector.load %arg11[%c0_11, %c0_12] : memref<160x128xbf16, #tpu.memory_space<vmem>>, vector<96x128xbf16>
    %c0_13 = arith.constant 0 : index
    %c0_14 = arith.constant 0 : index
    %c0_15 = arith.constant 0 : index
    %22 = vector.load %arg4[%c0_13, %c0_14, %c0_15] : memref<25x128x256xbf16, #tpu.memory_space<vmem>>, vector<1x128x256xbf16>
    %23 = vector.shape_cast %22 : vector<1x128x256xbf16> to vector<128x256xbf16>
    %cst_16 = arith.constant dense<0.000000e+00> : vector<96x256xf32>
    %24 = tpu.matmul %21, %23, %cst_16 {dimension_numbers = #tpu.dot_dimension_numbers<[1], [0], [0], [1], [0, 0, 1, 1], [], []>} : vector<96x128xbf16>, vector<128x256xbf16>, vector<96x256xf32> -> vector<96x256xf32>
    %c1 = arith.constant 1 : index
    %c0_17 = arith.constant 0 : index
    %25 = vector.load %arg11[%c1, %c0_17] : memref<160x128xbf16, #tpu.memory_space<vmem>>, vector<96x128xbf16>
    %c1_18 = arith.constant 1 : index
    %c0_19 = arith.constant 0 : index
    %c0_20 = arith.constant 0 : index
    %26 = vector.load %arg4[%c1_18, %c0_19, %c0_20] : memref<25x128x256xbf16, #tpu.memory_space<vmem>>, vector<1x128x256xbf16>
    %27 = vector.shape_cast %26 : vector<1x128x256xbf16> to vector<128x256xbf16>
    %cst_21 = arith.constant dense<0.000000e+00> : vector<96x256xf32>
    %28 = tpu.matmul %25, %27, %cst_21 {dimension_numbers = #tpu.dot_dimension_numbers<[1], [0], [0], [1], [0, 0, 1, 1], [], []>} : vector<96x128xbf16>, vector<128x256xbf16>, vector<96x256xf32> -> vector<96x256xf32>
    %29 = arith.addf %24, %28 : vector<96x256xf32>
    %c2 = arith.constant 2 : index
    %c0_22 = arith.constant 0 : index
    %30 = vector.load %arg11[%c2, %c0_22] : memref<160x128xbf16, #tpu.memory_space<vmem>>, vector<96x128xbf16>
    %c2_23 = arith.constant 2 : index
    %c0_24 = arith.constant 0 : index
    %c0_25 = arith.constant 0 : index
    %31 = vector.load %arg4[%c2_23, %c0_24, %c0_25] : memref<25x128x256xbf16, #tpu.memory_space<vmem>>, vector<1x128x256xbf16>
    %32 = vector.shape_cast %31 : vector<1x128x256xbf16> to vector<128x256xbf16>
    %cst_26 = arith.constant dense<0.000000e+00> : vector<96x256xf32>
    %33 = tpu.matmul %30, %32, %cst_26 {dimension_numbers = #tpu.dot_dimension_numbers<[1], [0], [0], [1], [0, 0, 1, 1], [], []>} : vector<96x128xbf16>, vector<128x256xbf16>, vector<96x256xf32> -> vector<96x256xf32>
    %34 = arith.addf %29, %33 : vector<96x256xf32>
    %c3 = arith.constant 3 : index
    %c0_27 = arith.constant 0 : index
    %35 = vector.load %arg11[%c3, %c0_27] : memref<160x128xbf16, #tpu.memory_space<vmem>>, vector<96x128xbf16>
    %c3_28 = arith.constant 3 : index
    %c0_29 = arith.constant 0 : index
    %c0_30 = arith.constant 0 : index
    %36 = vector.load %arg4[%c3_28, %c0_29, %c0_30] : memref<25x128x256xbf16, #tpu.memory_space<vmem>>, vector<1x128x256xbf16>
    %37 = vector.shape_cast %36 : vector<1x128x256xbf16> to vector<128x256xbf16>
    %cst_31 = arith.constant dense<0.000000e+00> : vector<96x256xf32>
    %38 = tpu.matmul %35, %37, %cst_31 {dimension_numbers = #tpu.dot_dimension_numbers<[1], [0], [0], [1], [0, 0, 1, 1], [], []>} : vector<96x128xbf16>, vector<128x256xbf16>, vector<96x256xf32> -> vector<96x256xf32>
    %39 = arith.addf %34, %38 : vector<96x256xf32>
    %c4 = arith.constant 4 : index
    %c0_32 = arith.constant 0 : index
    %40 = vector.load %arg11[%c4, %c0_32] : memref<160x128xbf16, #tpu.memory_space<vmem>>, vector<96x128xbf16>
    %c4_33 = arith.constant 4 : index
    %c0_34 = arith.constant 0 : index
    %c0_35 = arith.constant 0 : index
    %41 = vector.load %arg4[%c4_33, %c0_34, %c0_35] : memref<25x128x256xbf16, #tpu.memory_space<vmem>>, vector<1x128x256xbf16>
    %42 = vector.shape_cast %41 : vector<1x128x256xbf16> to vector<128x256xbf16>
    %cst_36 = arith.constant dense<0.000000e+00> : vector<96x256xf32>
    %43 = tpu.matmul %40, %42, %cst_36 {dimension_numbers = #tpu.dot_dimension_numbers<[1], [0], [0], [1], [0, 0, 1, 1], [], []>} : vector<96x128xbf16>, vector<128x256xbf16>, vector<96x256xf32> -> vector<96x256xf32>
    %44 = arith.addf %39, %43 : vector<96x256xf32>
    %c12 = arith.constant 12 : index
    %c0_37 = arith.constant 0 : index
    %45 = vector.load %arg11[%c12, %c0_37] : memref<160x128xbf16, #tpu.memory_space<vmem>>, vector<96x128xbf16>
    %c5 = arith.constant 5 : index
    %c0_38 = arith.constant 0 : index
    %c0_39 = arith.constant 0 : index
    %46 = vector.load %arg4[%c5, %c0_38, %c0_39] : memref<25x128x256xbf16, #tpu.memory_space<vmem>>, vector<1x128x256xbf16>
    %47 = vector.shape_cast %46 : vector<1x128x256xbf16> to vector<128x256xbf16>
    %cst_40 = arith.constant dense<0.000000e+00> : vector<96x256xf32>
    %48 = tpu.matmul %45, %47, %cst_40 {dimension_numbers = #tpu.dot_dimension_numbers<[1], [0], [0], [1], [0, 0, 1, 1], [], []>} : vector<96x128xbf16>, vector<128x256xbf16>, vector<96x256xf32> -> vector<96x256xf32>
    %49 = arith.addf %44, %48 : vector<96x256xf32>
    %c13 = arith.constant 13 : index
    %c0_41 = arith.constant 0 : index
    %50 = vector.load %arg11[%c13, %c0_41] : memref<160x128xbf16, #tpu.memory_space<vmem>>, vector<96x128xbf16>
    %c6 = arith.constant 6 : index
    %c0_42 = arith.constant 0 : index
    %c0_43 = arith.constant 0 : index
    %51 = vector.load %arg4[%c6, %c0_42, %c0_43] : memref<25x128x256xbf16, #tpu.memory_space<vmem>>, vector<1x128x256xbf16>
    %52 = vector.shape_cast %51 : vector<1x128x256xbf16> to vector<128x256xbf16>
    %cst_44 = arith.constant dense<0.000000e+00> : vector<96x256xf32>
    %53 = tpu.matmul %50, %52, %cst_44 {dimension_numbers = #tpu.dot_dimension_numbers<[1], [0], [0], [1], [0, 0, 1, 1], [], []>} : vector<96x128xbf16>, vector<128x256xbf16>, vector<96x256xf32> -> vector<96x256xf32>
    %54 = arith.addf %49, %53 : vector<96x256xf32>
    %c14 = arith.constant 14 : index
    %c0_45 = arith.constant 0 : index
    %55 = vector.load %arg11[%c14, %c0_45] : memref<160x128xbf16, #tpu.memory_space<vmem>>, vector<96x128xbf16>
    %c7 = arith.constant 7 : index
    %c0_46 = arith.constant 0 : index
    %c0_47 = arith.constant 0 : index
    %56 = vector.load %arg4[%c7, %c0_46, %c0_47] : memref<25x128x256xbf16, #tpu.memory_space<vmem>>, vector<1x128x256xbf16>
    %57 = vector.shape_cast %56 : vector<1x128x256xbf16> to vector<128x256xbf16>
    %cst_48 = arith.constant dense<0.000000e+00> : vector<96x256xf32>
    %58 = tpu.matmul %55, %57, %cst_48 {dimension_numbers = #tpu.dot_dimension_numbers<[1], [0], [0], [1], [0, 0, 1, 1], [], []>} : vector<96x128xbf16>, vector<128x256xbf16>, vector<96x256xf32> -> vector<96x256xf32>
    %59 = arith.addf %54, %58 : vector<96x256xf32>
    %c15 = arith.constant 15 : index
    %c0_49 = arith.constant 0 : index
    %60 = vector.load %arg11[%c15, %c0_49] : memref<160x128xbf16, #tpu.memory_space<vmem>>, vector<96x128xbf16>
    %c8 = arith.constant 8 : index
    %c0_50 = arith.constant 0 : index
    %c0_51 = arith.constant 0 : index
    %61 = vector.load %arg4[%c8, %c0_50, %c0_51] : memref<25x128x256xbf16, #tpu.memory_space<vmem>>, vector<1x128x256xbf16>
    %62 = vector.shape_cast %61 : vector<1x128x256xbf16> to vector<128x256xbf16>
    %cst_52 = arith.constant dense<0.000000e+00> : vector<96x256xf32>
    %63 = tpu.matmul %60, %62, %cst_52 {dimension_numbers = #tpu.dot_dimension_numbers<[1], [0], [0], [1], [0, 0, 1, 1], [], []>} : vector<96x128xbf16>, vector<128x256xbf16>, vector<96x256xf32> -> vector<96x256xf32>
    %64 = arith.addf %59, %63 : vector<96x256xf32>
    %c16 = arith.constant 16 : index
    %c0_53 = arith.constant 0 : index
    %65 = vector.load %arg11[%c16, %c0_53] : memref<160x128xbf16, #tpu.memory_space<vmem>>, vector<96x128xbf16>
    %c9 = arith.constant 9 : index
    %c0_54 = arith.constant 0 : index
    %c0_55 = arith.constant 0 : index
    %66 = vector.load %arg4[%c9, %c0_54, %c0_55] : memref<25x128x256xbf16, #tpu.memory_space<vmem>>, vector<1x128x256xbf16>
    %67 = vector.shape_cast %66 : vector<1x128x256xbf16> to vector<128x256xbf16>
    %cst_56 = arith.constant dense<0.000000e+00> : vector<96x256xf32>
    %68 = tpu.matmul %65, %67, %cst_56 {dimension_numbers = #tpu.dot_dimension_numbers<[1], [0], [0], [1], [0, 0, 1, 1], [], []>} : vector<96x128xbf16>, vector<128x256xbf16>, vector<96x256xf32> -> vector<96x256xf32>
    %69 = arith.addf %64, %68 : vector<96x256xf32>
    %c24 = arith.constant 24 : index
    %c0_57 = arith.constant 0 : index
    %70 = vector.load %arg11[%c24, %c0_57] : memref<160x128xbf16, #tpu.memory_space<vmem>>, vector<96x128xbf16>
    %c10 = arith.constant 10 : index
    %c0_58 = arith.constant 0 : index
    %c0_59 = arith.constant 0 : index
    %71 = vector.load %arg4[%c10, %c0_58, %c0_59] : memref<25x128x256xbf16, #tpu.memory_space<vmem>>, vector<1x128x256xbf16>
    %72 = vector.shape_cast %71 : vector<1x128x256xbf16> to vector<128x256xbf16>
    %cst_60 = arith.constant dense<0.000000e+00> : vector<96x256xf32>
    %73 = tpu.matmul %70, %72, %cst_60 {dimension_numbers = #tpu.dot_dimension_numbers<[1], [0], [0], [1], [0, 0, 1, 1], [], []>} : vector<96x128xbf16>, vector<128x256xbf16>, vector<96x256xf32> -> vector<96x256xf32>
    %74 = arith.addf %69, %73 : vector<96x256xf32>
    %c25 = arith.constant 25 : index
    %c0_61 = arith.constant 0 : index
    %75 = vector.load %arg11[%c25, %c0_61] : memref<160x128xbf16, #tpu.memory_space<vmem>>, vector<96x128xbf16>
    %c11 = arith.constant 11 : index
    %c0_62 = arith.constant 0 : index
    %c0_63 = arith.constant 0 : index
    %76 = vector.load %arg4[%c11, %c0_62, %c0_63] : memref<25x128x256xbf16, #tpu.memory_space<vmem>>, vector<1x128x256xbf16>
    %77 = vector.shape_cast %76 : vector<1x128x256xbf16> to vector<128x256xbf16>
    %cst_64 = arith.constant dense<0.000000e+00> : vector<96x256xf32>
    %78 = tpu.matmul %75, %77, %cst_64 {dimension_numbers = #tpu.dot_dimension_numbers<[1], [0], [0], [1], [0, 0, 1, 1], [], []>} : vector<96x128xbf16>, vector<128x256xbf16>, vector<96x256xf32> -> vector<96x256xf32>
    %79 = arith.addf %74, %78 : vector<96x256xf32>
    %c26 = arith.constant 26 : index
    %c0_65 = arith.constant 0 : index
    %80 = vector.load %arg11[%c26, %c0_65] : memref<160x128xbf16, #tpu.memory_space<vmem>>, vector<96x128xbf16>
    %c12_66 = arith.constant 12 : index
    %c0_67 = arith.constant 0 : index
    %c0_68 = arith.constant 0 : index
    %81 = vector.load %arg4[%c12_66, %c0_67, %c0_68] : memref<25x128x256xbf16, #tpu.memory_space<vmem>>, vector<1x128x256xbf16>
    %82 = vector.shape_cast %81 : vector<1x128x256xbf16> to vector<128x256xbf16>
    %cst_69 = arith.constant dense<0.000000e+00> : vector<96x256xf32>
    %83 = tpu.matmul %80, %82, %cst_69 {dimension_numbers = #tpu.dot_dimension_numbers<[1], [0], [0], [1], [0, 0, 1, 1], [], []>} : vector<96x128xbf16>, vector<128x256xbf16>, vector<96x256xf32> -> vector<96x256xf32>
    %84 = arith.addf %79, %83 : vector<96x256xf32>
    %c27 = arith.constant 27 : index
    %c0_70 = arith.constant 0 : index
    %85 = vector.load %arg11[%c27, %c0_70] : memref<160x128xbf16, #tpu.memory_space<vmem>>, vector<96x128xbf16>
    %c13_71 = arith.constant 13 : index
    %c0_72 = arith.constant 0 : index
    %c0_73 = arith.constant 0 : index
    %86 = vector.load %arg4[%c13_71, %c0_72, %c0_73] : memref<25x128x256xbf16, #tpu.memory_space<vmem>>, vector<1x128x256xbf16>
    %87 = vector.shape_cast %86 : vector<1x128x256xbf16> to vector<128x256xbf16>
    %cst_74 = arith.constant dense<0.000000e+00> : vector<96x256xf32>
    %88 = tpu.matmul %85, %87, %cst_74 {dimension_numbers = #tpu.dot_dimension_numbers<[1], [0], [0], [1], [0, 0, 1, 1], [], []>} : vector<96x128xbf16>, vector<128x256xbf16>, vector<96x256xf32> -> vector<96x256xf32>
    %89 = arith.addf %84, %88 : vector<96x256xf32>
    %c28 = arith.constant 28 : index
    %c0_75 = arith.constant 0 : index
    %90 = vector.load %arg11[%c28, %c0_75] : memref<160x128xbf16, #tpu.memory_space<vmem>>, vector<96x128xbf16>
    %c14_76 = arith.constant 14 : index
    %c0_77 = arith.constant 0 : index
    %c0_78 = arith.constant 0 : index
    %91 = vector.load %arg4[%c14_76, %c0_77, %c0_78] : memref<25x128x256xbf16, #tpu.memory_space<vmem>>, vector<1x128x256xbf16>
    %92 = vector.shape_cast %91 : vector<1x128x256xbf16> to vector<128x256xbf16>
    %cst_79 = arith.constant dense<0.000000e+00> : vector<96x256xf32>
    %93 = tpu.matmul %90, %92, %cst_79 {dimension_numbers = #tpu.dot_dimension_numbers<[1], [0], [0], [1], [0, 0, 1, 1], [], []>} : vector<96x128xbf16>, vector<128x256xbf16>, vector<96x256xf32> -> vector<96x256xf32>
    %94 = arith.addf %89, %93 : vector<96x256xf32>
    %c36 = arith.constant 36 : index
    %c0_80 = arith.constant 0 : index
    %95 = vector.load %arg11[%c36, %c0_80] : memref<160x128xbf16, #tpu.memory_space<vmem>>, vector<96x128xbf16>
    %c15_81 = arith.constant 15 : index
    %c0_82 = arith.constant 0 : index
    %c0_83 = arith.constant 0 : index
    %96 = vector.load %arg4[%c15_81, %c0_82, %c0_83] : memref<25x128x256xbf16, #tpu.memory_space<vmem>>, vector<1x128x256xbf16>
    %97 = vector.shape_cast %96 : vector<1x128x256xbf16> to vector<128x256xbf16>
    %cst_84 = arith.constant dense<0.000000e+00> : vector<96x256xf32>
    %98 = tpu.matmul %95, %97, %cst_84 {dimension_numbers = #tpu.dot_dimension_numbers<[1], [0], [0], [1], [0, 0, 1, 1], [], []>} : vector<96x128xbf16>, vector<128x256xbf16>, vector<96x256xf32> -> vector<96x256xf32>
    %99 = arith.addf %94, %98 : vector<96x256xf32>
    %c37 = arith.constant 37 : index
    %c0_85 = arith.constant 0 : index
    %100 = vector.load %arg11[%c37, %c0_85] : memref<160x128xbf16, #tpu.memory_space<vmem>>, vector<96x128xbf16>
    %c16_86 = arith.constant 16 : index
    %c0_87 = arith.constant 0 : index
    %c0_88 = arith.constant 0 : index
    %101 = vector.load %arg4[%c16_86, %c0_87, %c0_88] : memref<25x128x256xbf16, #tpu.memory_space<vmem>>, vector<1x128x256xbf16>
    %102 = vector.shape_cast %101 : vector<1x128x256xbf16> to vector<128x256xbf16>
    %cst_89 = arith.constant dense<0.000000e+00> : vector<96x256xf32>
    %103 = tpu.matmul %100, %102, %cst_89 {dimension_numbers = #tpu.dot_dimension_numbers<[1], [0], [0], [1], [0, 0, 1, 1], [], []>} : vector<96x128xbf16>, vector<128x256xbf16>, vector<96x256xf32> -> vector<96x256xf32>
    %104 = arith.addf %99, %103 : vector<96x256xf32>
    %c38 = arith.constant 38 : index
    %c0_90 = arith.constant 0 : index
    %105 = vector.load %arg11[%c38, %c0_90] : memref<160x128xbf16, #tpu.memory_space<vmem>>, vector<96x128xbf16>
    %c17 = arith.constant 17 : index
    %c0_91 = arith.constant 0 : index
    %c0_92 = arith.constant 0 : index
    %106 = vector.load %arg4[%c17, %c0_91, %c0_92] : memref<25x128x256xbf16, #tpu.memory_space<vmem>>, vector<1x128x256xbf16>
    %107 = vector.shape_cast %106 : vector<1x128x256xbf16> to vector<128x256xbf16>
    %cst_93 = arith.constant dense<0.000000e+00> : vector<96x256xf32>
    %108 = tpu.matmul %105, %107, %cst_93 {dimension_numbers = #tpu.dot_dimension_numbers<[1], [0], [0], [1], [0, 0, 1, 1], [], []>} : vector<96x128xbf16>, vector<128x256xbf16>, vector<96x256xf32> -> vector<96x256xf32>
    %109 = arith.addf %104, %108 : vector<96x256xf32>
    %c39 = arith.constant 39 : index
    %c0_94 = arith.constant 0 : index
    %110 = vector.load %arg11[%c39, %c0_94] : memref<160x128xbf16, #tpu.memory_space<vmem>>, vector<96x128xbf16>
    %c18 = arith.constant 18 : index
    %c0_95 = arith.constant 0 : index
    %c0_96 = arith.constant 0 : index
    %111 = vector.load %arg4[%c18, %c0_95, %c0_96] : memref<25x128x256xbf16, #tpu.memory_space<vmem>>, vector<1x128x256xbf16>
    %112 = vector.shape_cast %111 : vector<1x128x256xbf16> to vector<128x256xbf16>
    %cst_97 = arith.constant dense<0.000000e+00> : vector<96x256xf32>
    %113 = tpu.matmul %110, %112, %cst_97 {dimension_numbers = #tpu.dot_dimension_numbers<[1], [0], [0], [1], [0, 0, 1, 1], [], []>} : vector<96x128xbf16>, vector<128x256xbf16>, vector<96x256xf32> -> vector<96x256xf32>
    %114 = arith.addf %109, %113 : vector<96x256xf32>
    %c40 = arith.constant 40 : index
    %c0_98 = arith.constant 0 : index
    %115 = vector.load %arg11[%c40, %c0_98] : memref<160x128xbf16, #tpu.memory_space<vmem>>, vector<96x128xbf16>
    %c19 = arith.constant 19 : index
    %c0_99 = arith.constant 0 : index
    %c0_100 = arith.constant 0 : index
    %116 = vector.load %arg4[%c19, %c0_99, %c0_100] : memref<25x128x256xbf16, #tpu.memory_space<vmem>>, vector<1x128x256xbf16>
    %117 = vector.shape_cast %116 : vector<1x128x256xbf16> to vector<128x256xbf16>
    %cst_101 = arith.constant dense<0.000000e+00> : vector<96x256xf32>
    %118 = tpu.matmul %115, %117, %cst_101 {dimension_numbers = #tpu.dot_dimension_numbers<[1], [0], [0], [1], [0, 0, 1, 1], [], []>} : vector<96x128xbf16>, vector<128x256xbf16>, vector<96x256xf32> -> vector<96x256xf32>
    %119 = arith.addf %114, %118 : vector<96x256xf32>
    %c48 = arith.constant 48 : index
    %c0_102 = arith.constant 0 : index
    %120 = vector.load %arg11[%c48, %c0_102] : memref<160x128xbf16, #tpu.memory_space<vmem>>, vector<96x128xbf16>
    %c20 = arith.constant 20 : index
    %c0_103 = arith.constant 0 : index
    %c0_104 = arith.constant 0 : index
    %121 = vector.load %arg4[%c20, %c0_103, %c0_104] : memref<25x128x256xbf16, #tpu.memory_space<vmem>>, vector<1x128x256xbf16>
    %122 = vector.shape_cast %121 : vector<1x128x256xbf16> to vector<128x256xbf16>
    %cst_105 = arith.constant dense<0.000000e+00> : vector<96x256xf32>
    %123 = tpu.matmul %120, %122, %cst_105 {dimension_numbers = #tpu.dot_dimension_numbers<[1], [0], [0], [1], [0, 0, 1, 1], [], []>} : vector<96x128xbf16>, vector<128x256xbf16>, vector<96x256xf32> -> vector<96x256xf32>
    %124 = arith.addf %119, %123 : vector<96x256xf32>
    %c49 = arith.constant 49 : index
    %c0_106 = arith.constant 0 : index
    %125 = vector.load %arg11[%c49, %c0_106] : memref<160x128xbf16, #tpu.memory_space<vmem>>, vector<96x128xbf16>
    %c21 = arith.constant 21 : index
    %c0_107 = arith.constant 0 : index
    %c0_108 = arith.constant 0 : index
    %126 = vector.load %arg4[%c21, %c0_107, %c0_108] : memref<25x128x256xbf16, #tpu.memory_space<vmem>>, vector<1x128x256xbf16>
    %127 = vector.shape_cast %126 : vector<1x128x256xbf16> to vector<128x256xbf16>
    %cst_109 = arith.constant dense<0.000000e+00> : vector<96x256xf32>
    %128 = tpu.matmul %125, %127, %cst_109 {dimension_numbers = #tpu.dot_dimension_numbers<[1], [0], [0], [1], [0, 0, 1, 1], [], []>} : vector<96x128xbf16>, vector<128x256xbf16>, vector<96x256xf32> -> vector<96x256xf32>
    %129 = arith.addf %124, %128 : vector<96x256xf32>
    %c50 = arith.constant 50 : index
    %c0_110 = arith.constant 0 : index
    %130 = vector.load %arg11[%c50, %c0_110] : memref<160x128xbf16, #tpu.memory_space<vmem>>, vector<96x128xbf16>
    %c22 = arith.constant 22 : index
    %c0_111 = arith.constant 0 : index
    %c0_112 = arith.constant 0 : index
    %131 = vector.load %arg4[%c22, %c0_111, %c0_112] : memref<25x128x256xbf16, #tpu.memory_space<vmem>>, vector<1x128x256xbf16>
    %132 = vector.shape_cast %131 : vector<1x128x256xbf16> to vector<128x256xbf16>
    %cst_113 = arith.constant dense<0.000000e+00> : vector<96x256xf32>
    %133 = tpu.matmul %130, %132, %cst_113 {dimension_numbers = #tpu.dot_dimension_numbers<[1], [0], [0], [1], [0, 0, 1, 1], [], []>} : vector<96x128xbf16>, vector<128x256xbf16>, vector<96x256xf32> -> vector<96x256xf32>
    %134 = arith.addf %129, %133 : vector<96x256xf32>
    %c51 = arith.constant 51 : index
    %c0_114 = arith.constant 0 : index
    %135 = vector.load %arg11[%c51, %c0_114] : memref<160x128xbf16, #tpu.memory_space<vmem>>, vector<96x128xbf16>
    %c23 = arith.constant 23 : index
    %c0_115 = arith.constant 0 : index
    %c0_116 = arith.constant 0 : index
    %136 = vector.load %arg4[%c23, %c0_115, %c0_116] : memref<25x128x256xbf16, #tpu.memory_space<vmem>>, vector<1x128x256xbf16>
    %137 = vector.shape_cast %136 : vector<1x128x256xbf16> to vector<128x256xbf16>
    %cst_117 = arith.constant dense<0.000000e+00> : vector<96x256xf32>
    %138 = tpu.matmul %135, %137, %cst_117 {dimension_numbers = #tpu.dot_dimension_numbers<[1], [0], [0], [1], [0, 0, 1, 1], [], []>} : vector<96x128xbf16>, vector<128x256xbf16>, vector<96x256xf32> -> vector<96x256xf32>
    %139 = arith.addf %134, %138 : vector<96x256xf32>
    %c52 = arith.constant 52 : index
    %c0_118 = arith.constant 0 : index
    %140 = vector.load %arg11[%c52, %c0_118] : memref<160x128xbf16, #tpu.memory_space<vmem>>, vector<96x128xbf16>
    %c24_119 = arith.constant 24 : index
    %c0_120 = arith.constant 0 : index
    %c0_121 = arith.constant 0 : index
    %141 = vector.load %arg4[%c24_119, %c0_120, %c0_121] : memref<25x128x256xbf16, #tpu.memory_space<vmem>>, vector<1x128x256xbf16>
    %142 = vector.shape_cast %141 : vector<1x128x256xbf16> to vector<128x256xbf16>
    %cst_122 = arith.constant dense<0.000000e+00> : vector<96x256xf32>
    %143 = tpu.matmul %140, %142, %cst_122 {dimension_numbers = #tpu.dot_dimension_numbers<[1], [0], [0], [1], [0, 0, 1, 1], [], []>} : vector<96x128xbf16>, vector<128x256xbf16>, vector<96x256xf32> -> vector<96x256xf32>
    %144 = arith.addf %139, %143 : vector<96x256xf32>
    %145 = vector.extract_strided_slice %144 {offsets = [0, 0], sizes = [1, 256], strides = [1, 1]} : vector<96x256xf32> to vector<1x256xf32>
    %146 = vector.extract_strided_slice %144 {offsets = [1, 0], sizes = [1, 256], strides = [1, 1]} : vector<96x256xf32> to vector<1x256xf32>
    %147 = arith.maximumf %145, %146 : vector<1x256xf32>
    %148 = vector.extract_strided_slice %144 {offsets = [12, 0], sizes = [1, 256], strides = [1, 1]} : vector<96x256xf32> to vector<1x256xf32>
    %149 = vector.extract_strided_slice %144 {offsets = [13, 0], sizes = [1, 256], strides = [1, 1]} : vector<96x256xf32> to vector<1x256xf32>
    %150 = arith.maximumf %148, %149 : vector<1x256xf32>
    %151 = arith.maximumf %147, %150 : vector<1x256xf32>
    %c0_123 = arith.constant 0 : index
    %c0_124 = arith.constant 0 : index
    %152 = vector.load %arg5[%c0_123, %c0_124] : memref<1x256xf32, #tpu.memory_space<vmem>>, vector<1x256xf32>
    %153 = arith.addf %151, %152 : vector<1x256xf32>
    %cst_125 = arith.constant 0.000000e+00 : f32
    %154 = vector.broadcast %cst_125 : f32 to vector<1x256xf32>
    %155 = arith.maximumf %153, %154 : vector<1x256xf32>
    %156 = vector.extract_strided_slice %155 {offsets = [0, 0], sizes = [1, 32], strides = [1, 1]} : vector<1x256xf32> to vector<1x32xf32>
    %c0_126 = arith.constant 0 : index
    %c0_127 = arith.constant 0 : index
    %157 = vector.load %arg12[%c0_126, %c0_127] : memref<8x512xf32, #tpu.memory_space<vmem>>, vector<1x32xf32>
    tpu.vector_store %arg12[%c0_126, %c0_127], %156 {strides = array<i32>} : memref<8x512xf32, #tpu.memory_space<vmem>>, vector<1x32xf32>,
    %158 = vector.extract_strided_slice %155 {offsets = [0, 32], sizes = [1, 32], strides = [1, 1]} : vector<1x256xf32> to vector<1x32xf32>
    %c1_128 = arith.constant 1 : index
    %c0_129 = arith.constant 0 : index
    %159 = vector.load %arg12[%c1_128, %c0_129] : memref<8x512xf32, #tpu.memory_space<vmem>>, vector<1x32xf32>
    tpu.vector_store %arg12[%c1_128, %c0_129], %158 {strides = array<i32>} : memref<8x512xf32, #tpu.memory_space<vmem>>, vector<1x32xf32>,
    %160 = vector.extract_strided_slice %155 {offsets = [0, 64], sizes = [1, 32], strides = [1, 1]} : vector<1x256xf32> to vector<1x32xf32>
    %c2_130 = arith.constant 2 : index
    %c0_131 = arith.constant 0 : index
    %161 = vector.load %arg12[%c2_130, %c0_131] : memref<8x512xf32, #tpu.memory_space<vmem>>, vector<1x32xf32>
    tpu.vector_store %arg12[%c2_130, %c0_131], %160 {strides = array<i32>} : memref<8x512xf32, #tpu.memory_space<vmem>>, vector<1x32xf32>,
    %162 = vector.extract_strided_slice %155 {offsets = [0, 96], sizes = [1, 32], strides = [1, 1]} : vector<1x256xf32> to vector<1x32xf32>
    %c3_132 = arith.constant 3 : index
    %c0_133 = arith.constant 0 : index
    %163 = vector.load %arg12[%c3_132, %c0_133] : memref<8x512xf32, #tpu.memory_space<vmem>>, vector<1x32xf32>
    tpu.vector_store %arg12[%c3_132, %c0_133], %162 {strides = array<i32>} : memref<8x512xf32, #tpu.memory_space<vmem>>, vector<1x32xf32>,
    %164 = vector.extract_strided_slice %155 {offsets = [0, 128], sizes = [1, 32], strides = [1, 1]} : vector<1x256xf32> to vector<1x32xf32>
    %c4_134 = arith.constant 4 : index
    %c0_135 = arith.constant 0 : index
    %165 = vector.load %arg12[%c4_134, %c0_135] : memref<8x512xf32, #tpu.memory_space<vmem>>, vector<1x32xf32>
    tpu.vector_store %arg12[%c4_134, %c0_135], %164 {strides = array<i32>} : memref<8x512xf32, #tpu.memory_space<vmem>>, vector<1x32xf32>,
    %166 = vector.extract_strided_slice %155 {offsets = [0, 160], sizes = [1, 32], strides = [1, 1]} : vector<1x256xf32> to vector<1x32xf32>
    %c5_136 = arith.constant 5 : index
    %c0_137 = arith.constant 0 : index
    %167 = vector.load %arg12[%c5_136, %c0_137] : memref<8x512xf32, #tpu.memory_space<vmem>>, vector<1x32xf32>
    tpu.vector_store %arg12[%c5_136, %c0_137], %166 {strides = array<i32>} : memref<8x512xf32, #tpu.memory_space<vmem>>, vector<1x32xf32>,
    %168 = vector.extract_strided_slice %155 {offsets = [0, 192], sizes = [1, 32], strides = [1, 1]} : vector<1x256xf32> to vector<1x32xf32>
    %c6_138 = arith.constant 6 : index
    %c0_139 = arith.constant 0 : index
    %169 = vector.load %arg12[%c6_138, %c0_139] : memref<8x512xf32, #tpu.memory_space<vmem>>, vector<1x32xf32>
    tpu.vector_store %arg12[%c6_138, %c0_139], %168 {strides = array<i32>} : memref<8x512xf32, #tpu.memory_space<vmem>>, vector<1x32xf32>,
    %170 = vector.extract_strided_slice %155 {offsets = [0, 224], sizes = [1, 32], strides = [1, 1]} : vector<1x256xf32> to vector<1x32xf32>
    %c7_140 = arith.constant 7 : index
    %c0_141 = arith.constant 0 : index
    %171 = vector.load %arg12[%c7_140, %c0_141] : memref<8x512xf32, #tpu.memory_space<vmem>>, vector<1x32xf32>
    tpu.vector_store %arg12[%c7_140, %c0_141], %170 {strides = array<i32>} : memref<8x512xf32, #tpu.memory_space<vmem>>, vector<1x32xf32>,
    %172 = vector.extract_strided_slice %144 {offsets = [2, 0], sizes = [1, 256], strides = [1, 1]} : vector<96x256xf32> to vector<1x256xf32>
    %173 = vector.extract_strided_slice %144 {offsets = [3, 0], sizes = [1, 256], strides = [1, 1]} : vector<96x256xf32> to vector<1x256xf32>
    %174 = arith.maximumf %172, %173 : vector<1x256xf32>
    %175 = vector.extract_strided_slice %144 {offsets = [14, 0], sizes = [1, 256], strides = [1, 1]} : vector<96x256xf32> to vector<1x256xf32>
    %176 = vector.extract_strided_slice %144 {offsets = [15, 0], sizes = [1, 256], strides = [1, 1]} : vector<96x256xf32> to vector<1x256xf32>
    %177 = arith.maximumf %175, %176 : vector<1x256xf32>
    %178 = arith.maximumf %174, %177 : vector<1x256xf32>
    %c0_142 = arith.constant 0 : index
    %c0_143 = arith.constant 0 : index
    %179 = vector.load %arg5[%c0_142, %c0_143] : memref<1x256xf32, #tpu.memory_space<vmem>>, vector<1x256xf32>
    %180 = arith.addf %178, %179 : vector<1x256xf32>
    %cst_144 = arith.constant 0.000000e+00 : f32
    %181 = vector.broadcast %cst_144 : f32 to vector<1x256xf32>
    %182 = arith.maximumf %180, %181 : vector<1x256xf32>
    %183 = vector.extract_strided_slice %182 {offsets = [0, 0], sizes = [1, 32], strides = [1, 1]} : vector<1x256xf32> to vector<1x32xf32>
    %c0_145 = arith.constant 0 : index
    %c32 = arith.constant 32 : index
    %184 = vector.load %arg12[%c0_145, %c32] : memref<8x512xf32, #tpu.memory_space<vmem>>, vector<1x32xf32>
    tpu.vector_store %arg12[%c0_145, %c32], %183 {strides = array<i32>} : memref<8x512xf32, #tpu.memory_space<vmem>>, vector<1x32xf32>,
    %185 = vector.extract_strided_slice %182 {offsets = [0, 32], sizes = [1, 32], strides = [1, 1]} : vector<1x256xf32> to vector<1x32xf32>
    %c1_146 = arith.constant 1 : index
    %c32_147 = arith.constant 32 : index
    %186 = vector.load %arg12[%c1_146, %c32_147] : memref<8x512xf32, #tpu.memory_space<vmem>>, vector<1x32xf32>
    tpu.vector_store %arg12[%c1_146, %c32_147], %185 {strides = array<i32>} : memref<8x512xf32, #tpu.memory_space<vmem>>, vector<1x32xf32>,
    %187 = vector.extract_strided_slice %182 {offsets = [0, 64], sizes = [1, 32], strides = [1, 1]} : vector<1x256xf32> to vector<1x32xf32>
    %c2_148 = arith.constant 2 : index
    %c32_149 = arith.constant 32 : index
    %188 = vector.load %arg12[%c2_148, %c32_149] : memref<8x512xf32, #tpu.memory_space<vmem>>, vector<1x32xf32>
    tpu.vector_store %arg12[%c2_148, %c32_149], %187 {strides = array<i32>} : memref<8x512xf32, #tpu.memory_space<vmem>>, vector<1x32xf32>,
    %189 = vector.extract_strided_slice %182 {offsets = [0, 96], sizes = [1, 32], strides = [1, 1]} : vector<1x256xf32> to vector<1x32xf32>
    %c3_150 = arith.constant 3 : index
    %c32_151 = arith.constant 32 : index
    %190 = vector.load %arg12[%c3_150, %c32_151] : memref<8x512xf32, #tpu.memory_space<vmem>>, vector<1x32xf32>
    tpu.vector_store %arg12[%c3_150, %c32_151], %189 {strides = array<i32>} : memref<8x512xf32, #tpu.memory_space<vmem>>, vector<1x32xf32>,
    %191 = vector.extract_strided_slice %182 {offsets = [0, 128], sizes = [1, 32], strides = [1, 1]} : vector<1x256xf32> to vector<1x32xf32>
    %c4_152 = arith.constant 4 : index
    %c32_153 = arith.constant 32 : index
    %192 = vector.load %arg12[%c4_152, %c32_153] : memref<8x512xf32, #tpu.memory_space<vmem>>, vector<1x32xf32>
    tpu.vector_store %arg12[%c4_152, %c32_153], %191 {strides = array<i32>} : memref<8x512xf32, #tpu.memory_space<vmem>>, vector<1x32xf32>,
    %193 = vector.extract_strided_slice %182 {offsets = [0, 160], sizes = [1, 32], strides = [1, 1]} : vector<1x256xf32> to vector<1x32xf32>
    %c5_154 = arith.constant 5 : index
    %c32_155 = arith.constant 32 : index
    %194 = vector.load %arg12[%c5_154, %c32_155] : memref<8x512xf32, #tpu.memory_space<vmem>>, vector<1x32xf32>
    tpu.vector_store %arg12[%c5_154, %c32_155], %193 {strides = array<i32>} : memref<8x512xf32, #tpu.memory_space<vmem>>, vector<1x32xf32>,
    %195 = vector.extract_strided_slice %182 {offsets = [0, 192], sizes = [1, 32], strides = [1, 1]} : vector<1x256xf32> to vector<1x32xf32>
    %c6_156 = arith.constant 6 : index
    %c32_157 = arith.constant 32 : index
    %196 = vector.load %arg12[%c6_156, %c32_157] : memref<8x512xf32, #tpu.memory_space<vmem>>, vector<1x32xf32>
    tpu.vector_store %arg12[%c6_156, %c32_157], %195 {strides = array<i32>} : memref<8x512xf32, #tpu.memory_space<vmem>>, vector<1x32xf32>,
    %197 = vector.extract_strided_slice %182 {offsets = [0, 224], sizes = [1, 32], strides = [1, 1]} : vector<1x256xf32> to vector<1x32xf32>
    %c7_158 = arith.constant 7 : index
    %c32_159 = arith.constant 32 : index
    %198 = vector.load %arg12[%c7_158, %c32_159] : memref<8x512xf32, #tpu.memory_space<vmem>>, vector<1x32xf32>
    tpu.vector_store %arg12[%c7_158, %c32_159], %197 {strides = array<i32>} : memref<8x512xf32, #tpu.memory_space<vmem>>, vector<1x32xf32>,
    %199 = vector.extract_strided_slice %144 {offsets = [4, 0], sizes = [1, 256], strides = [1, 1]} : vector<96x256xf32> to vector<1x256xf32>
    %200 = vector.extract_strided_slice %144 {offsets = [5, 0], sizes = [1, 256], strides = [1, 1]} : vector<96x256xf32> to vector<1x256xf32>
    %201 = arith.maximumf %199, %200 : vector<1x256xf32>
    %202 = vector.extract_strided_slice %144 {offsets = [16, 0], sizes = [1, 256], strides = [1, 1]} : vector<96x256xf32> to vector<1x256xf32>
    %203 = vector.extract_strided_slice %144 {offsets = [17, 0], sizes = [1, 256], strides = [1, 1]} : vector<96x256xf32> to vector<1x256xf32>
    %204 = arith.maximumf %202, %203 : vector<1x256xf32>
    %205 = arith.maximumf %201, %204 : vector<1x256xf32>
    %c0_160 = arith.constant 0 : index
    %c0_161 = arith.constant 0 : index
    %206 = vector.load %arg5[%c0_160, %c0_161] : memref<1x256xf32, #tpu.memory_space<vmem>>, vector<1x256xf32>
    %207 = arith.addf %205, %206 : vector<1x256xf32>
    %cst_162 = arith.constant 0.000000e+00 : f32
    %208 = vector.broadcast %cst_162 : f32 to vector<1x256xf32>
    %209 = arith.maximumf %207, %208 : vector<1x256xf32>
    %210 = vector.extract_strided_slice %209 {offsets = [0, 0], sizes = [1, 32], strides = [1, 1]} : vector<1x256xf32> to vector<1x32xf32>
    %c0_163 = arith.constant 0 : index
    %c64 = arith.constant 64 : index
    %211 = vector.load %arg12[%c0_163, %c64] : memref<8x512xf32, #tpu.memory_space<vmem>>, vector<1x32xf32>
    tpu.vector_store %arg12[%c0_163, %c64], %210 {strides = array<i32>} : memref<8x512xf32, #tpu.memory_space<vmem>>, vector<1x32xf32>,
    %212 = vector.extract_strided_slice %209 {offsets = [0, 32], sizes = [1, 32], strides = [1, 1]} : vector<1x256xf32> to vector<1x32xf32>
    %c1_164 = arith.constant 1 : index
    %c64_165 = arith.constant 64 : index
    %213 = vector.load %arg12[%c1_164, %c64_165] : memref<8x512xf32, #tpu.memory_space<vmem>>, vector<1x32xf32>
    tpu.vector_store %arg12[%c1_164, %c64_165], %212 {strides = array<i32>} : memref<8x512xf32, #tpu.memory_space<vmem>>, vector<1x32xf32>,
    %214 = vector.extract_strided_slice %209 {offsets = [0, 64], sizes = [1, 32], strides = [1, 1]} : vector<1x256xf32> to vector<1x32xf32>
    %c2_166 = arith.constant 2 : index
    %c64_167 = arith.constant 64 : index
    %215 = vector.load %arg12[%c2_166, %c64_167] : memref<8x512xf32, #tpu.memory_space<vmem>>, vector<1x32xf32>
    tpu.vector_store %arg12[%c2_166, %c64_167], %214 {strides = array<i32>} : memref<8x512xf32, #tpu.memory_space<vmem>>, vector<1x32xf32>,
    %216 = vector.extract_strided_slice %209 {offsets = [0, 96], sizes = [1, 32], strides = [1, 1]} : vector<1x256xf32> to vector<1x32xf32>
    %c3_168 = arith.constant 3 : index
    %c64_169 = arith.constant 64 : index
    %217 = vector.load %arg12[%c3_168, %c64_169] : memref<8x512xf32, #tpu.memory_space<vmem>>, vector<1x32xf32>
    tpu.vector_store %arg12[%c3_168, %c64_169], %216 {strides = array<i32>} : memref<8x512xf32, #tpu.memory_space<vmem>>, vector<1x32xf32>,
    %218 = vector.extract_strided_slice %209 {offsets = [0, 128], sizes = [1, 32], strides = [1, 1]} : vector<1x256xf32> to vector<1x32xf32>
    %c4_170 = arith.constant 4 : index
    %c64_171 = arith.constant 64 : index
    %219 = vector.load %arg12[%c4_170, %c64_171] : memref<8x512xf32, #tpu.memory_space<vmem>>, vector<1x32xf32>
    tpu.vector_store %arg12[%c4_170, %c64_171], %218 {strides = array<i32>} : memref<8x512xf32, #tpu.memory_space<vmem>>, vector<1x32xf32>,
    %220 = vector.extract_strided_slice %209 {offsets = [0, 160], sizes = [1, 32], strides = [1, 1]} : vector<1x256xf32> to vector<1x32xf32>
    %c5_172 = arith.constant 5 : index
    %c64_173 = arith.constant 64 : index
    %221 = vector.load %arg12[%c5_172, %c64_173] : memref<8x512xf32, #tpu.memory_space<vmem>>, vector<1x32xf32>
    tpu.vector_store %arg12[%c5_172, %c64_173], %220 {strides = array<i32>} : memref<8x512xf32, #tpu.memory_space<vmem>>, vector<1x32xf32>,
    %222 = vector.extract_strided_slice %209 {offsets = [0, 192], sizes = [1, 32], strides = [1, 1]} : vector<1x256xf32> to vector<1x32xf32>
    %c6_174 = arith.constant 6 : index
    %c64_175 = arith.constant 64 : index
    %223 = vector.load %arg12[%c6_174, %c64_175] : memref<8x512xf32, #tpu.memory_space<vmem>>, vector<1x32xf32>
    tpu.vector_store %arg12[%c6_174, %c64_175], %222 {strides = array<i32>} : memref<8x512xf32, #tpu.memory_space<vmem>>, vector<1x32xf32>,
    %224 = vector.extract_strided_slice %209 {offsets = [0, 224], sizes = [1, 32], strides = [1, 1]} : vector<1x256xf32> to vector<1x32xf32>
    %c7_176 = arith.constant 7 : index
    %c64_177 = arith.constant 64 : index
    %225 = vector.load %arg12[%c7_176, %c64_177] : memref<8x512xf32, #tpu.memory_space<vmem>>, vector<1x32xf32>
    tpu.vector_store %arg12[%c7_176, %c64_177], %224 {strides = array<i32>} : memref<8x512xf32, #tpu.memory_space<vmem>>, vector<1x32xf32>,
    %226 = vector.extract_strided_slice %144 {offsets = [6, 0], sizes = [1, 256], strides = [1, 1]} : vector<96x256xf32> to vector<1x256xf32>
    %227 = vector.extract_strided_slice %144 {offsets = [7, 0], sizes = [1, 256], strides = [1, 1]} : vector<96x256xf32> to vector<1x256xf32>
    %228 = arith.maximumf %226, %227 : vector<1x256xf32>
    %229 = vector.extract_strided_slice %144 {offsets = [18, 0], sizes = [1, 256], strides = [1, 1]} : vector<96x256xf32> to vector<1x256xf32>
    %230 = vector.extract_strided_slice %144 {offsets = [19, 0], sizes = [1, 256], strides = [1, 1]} : vector<96x256xf32> to vector<1x256xf32>
    %231 = arith.maximumf %229, %230 : vector<1x256xf32>
    %232 = arith.maximumf %228, %231 : vector<1x256xf32>
    %c0_178 = arith.constant 0 : index
    %c0_179 = arith.constant 0 : index
    %233 = vector.load %arg5[%c0_178, %c0_179] : memref<1x256xf32, #tpu.memory_space<vmem>>, vector<1x256xf32>
    %234 = arith.addf %232, %233 : vector<1x256xf32>
    %cst_180 = arith.constant 0.000000e+00 : f32
    %235 = vector.broadcast %cst_180 : f32 to vector<1x256xf32>
    %236 = arith.maximumf %234, %235 : vector<1x256xf32>
    %237 = vector.extract_strided_slice %236 {offsets = [0, 0], sizes = [1, 32], strides = [1, 1]} : vector<1x256xf32> to vector<1x32xf32>
    %c0_181 = arith.constant 0 : index
    %c96 = arith.constant 96 : index
    %238 = vector.load %arg12[%c0_181, %c96] : memref<8x512xf32, #tpu.memory_space<vmem>>, vector<1x32xf32>
    tpu.vector_store %arg12[%c0_181, %c96], %237 {strides = array<i32>} : memref<8x512xf32, #tpu.memory_space<vmem>>, vector<1x32xf32>,
    %239 = vector.extract_strided_slice %236 {offsets = [0, 32], sizes = [1, 32], strides = [1, 1]} : vector<1x256xf32> to vector<1x32xf32>
    %c1_182 = arith.constant 1 : index
    %c96_183 = arith.constant 96 : index
    %240 = vector.load %arg12[%c1_182, %c96_183] : memref<8x512xf32, #tpu.memory_space<vmem>>, vector<1x32xf32>
    tpu.vector_store %arg12[%c1_182, %c96_183], %239 {strides = array<i32>} : memref<8x512xf32, #tpu.memory_space<vmem>>, vector<1x32xf32>,
    %241 = vector.extract_strided_slice %236 {offsets = [0, 64], sizes = [1, 32], strides = [1, 1]} : vector<1x256xf32> to vector<1x32xf32>
    %c2_184 = arith.constant 2 : index
    %c96_185 = arith.constant 96 : index
    %242 = vector.load %arg12[%c2_184, %c96_185] : memref<8x512xf32, #tpu.memory_space<vmem>>, vector<1x32xf32>
    tpu.vector_store %arg12[%c2_184, %c96_185], %241 {strides = array<i32>} : memref<8x512xf32, #tpu.memory_space<vmem>>, vector<1x32xf32>,
    %243 = vector.extract_strided_slice %236 {offsets = [0, 96], sizes = [1, 32], strides = [1, 1]} : vector<1x256xf32> to vector<1x32xf32>
    %c3_186 = arith.constant 3 : index
    %c96_187 = arith.constant 96 : index
    %244 = vector.load %arg12[%c3_186, %c96_187] : memref<8x512xf32, #tpu.memory_space<vmem>>, vector<1x32xf32>
    tpu.vector_store %arg12[%c3_186, %c96_187], %243 {strides = array<i32>} : memref<8x512xf32, #tpu.memory_space<vmem>>, vector<1x32xf32>,
    %245 = vector.extract_strided_slice %236 {offsets = [0, 128], sizes = [1, 32], strides = [1, 1]} : vector<1x256xf32> to vector<1x32xf32>
    %c4_188 = arith.constant 4 : index
    %c96_189 = arith.constant 96 : index
    %246 = vector.load %arg12[%c4_188, %c96_189] : memref<8x512xf32, #tpu.memory_space<vmem>>, vector<1x32xf32>
    tpu.vector_store %arg12[%c4_188, %c96_189], %245 {strides = array<i32>} : memref<8x512xf32, #tpu.memory_space<vmem>>, vector<1x32xf32>,
    %247 = vector.extract_strided_slice %236 {offsets = [0, 160], sizes = [1, 32], strides = [1, 1]} : vector<1x256xf32> to vector<1x32xf32>
    %c5_190 = arith.constant 5 : index
    %c96_191 = arith.constant 96 : index
    %248 = vector.load %arg12[%c5_190, %c96_191] : memref<8x512xf32, #tpu.memory_space<vmem>>, vector<1x32xf32>
    tpu.vector_store %arg12[%c5_190, %c96_191], %247 {strides = array<i32>} : memref<8x512xf32, #tpu.memory_space<vmem>>, vector<1x32xf32>,
    %249 = vector.extract_strided_slice %236 {offsets = [0, 192], sizes = [1, 32], strides = [1, 1]} : vector<1x256xf32> to vector<1x32xf32>
    %c6_192 = arith.constant 6 : index
    %c96_193 = arith.constant 96 : index
    %250 = vector.load %arg12[%c6_192, %c96_193] : memref<8x512xf32, #tpu.memory_space<vmem>>, vector<1x32xf32>
    tpu.vector_store %arg12[%c6_192, %c96_193], %249 {strides = array<i32>} : memref<8x512xf32, #tpu.memory_space<vmem>>, vector<1x32xf32>,
    %251 = vector.extract_strided_slice %236 {offsets = [0, 224], sizes = [1, 32], strides = [1, 1]} : vector<1x256xf32> to vector<1x32xf32>
    %c7_194 = arith.constant 7 : index
    %c96_195 = arith.constant 96 : index
    %252 = vector.load %arg12[%c7_194, %c96_195] : memref<8x512xf32, #tpu.memory_space<vmem>>, vector<1x32xf32>
    tpu.vector_store %arg12[%c7_194, %c96_195], %251 {strides = array<i32>} : memref<8x512xf32, #tpu.memory_space<vmem>>, vector<1x32xf32>,
    %253 = vector.extract_strided_slice %144 {offsets = [24, 0], sizes = [1, 256], strides = [1, 1]} : vector<96x256xf32> to vector<1x256xf32>
    %254 = vector.extract_strided_slice %144 {offsets = [25, 0], sizes = [1, 256], strides = [1, 1]} : vector<96x256xf32> to vector<1x256xf32>
    %255 = arith.maximumf %253, %254 : vector<1x256xf32>
    %256 = vector.extract_strided_slice %144 {offsets = [36, 0], sizes = [1, 256], strides = [1, 1]} : vector<96x256xf32> to vector<1x256xf32>
    %257 = vector.extract_strided_slice %144 {offsets = [37, 0], sizes = [1, 256], strides = [1, 1]} : vector<96x256xf32> to vector<1x256xf32>
    %258 = arith.maximumf %256, %257 : vector<1x256xf32>
    %259 = arith.maximumf %255, %258 : vector<1x256xf32>
    %c0_196 = arith.constant 0 : index
    %c0_197 = arith.constant 0 : index
    %260 = vector.load %arg5[%c0_196, %c0_197] : memref<1x256xf32, #tpu.memory_space<vmem>>, vector<1x256xf32>
    %261 = arith.addf %259, %260 : vector<1x256xf32>
    %cst_198 = arith.constant 0.000000e+00 : f32
    %262 = vector.broadcast %cst_198 : f32 to vector<1x256xf32>
    %263 = arith.maximumf %261, %262 : vector<1x256xf32>
    %264 = vector.extract_strided_slice %263 {offsets = [0, 0], sizes = [1, 32], strides = [1, 1]} : vector<1x256xf32> to vector<1x32xf32>
    %c0_199 = arith.constant 0 : index
    %c128 = arith.constant 128 : index
    %265 = vector.load %arg12[%c0_199, %c128] : memref<8x512xf32, #tpu.memory_space<vmem>>, vector<1x32xf32>
    tpu.vector_store %arg12[%c0_199, %c128], %264 {strides = array<i32>} : memref<8x512xf32, #tpu.memory_space<vmem>>, vector<1x32xf32>,
    %266 = vector.extract_strided_slice %263 {offsets = [0, 32], sizes = [1, 32], strides = [1, 1]} : vector<1x256xf32> to vector<1x32xf32>
    %c1_200 = arith.constant 1 : index
    %c128_201 = arith.constant 128 : index
    %267 = vector.load %arg12[%c1_200, %c128_201] : memref<8x512xf32, #tpu.memory_space<vmem>>, vector<1x32xf32>
    tpu.vector_store %arg12[%c1_200, %c128_201], %266 {strides = array<i32>} : memref<8x512xf32, #tpu.memory_space<vmem>>, vector<1x32xf32>,
    %268 = vector.extract_strided_slice %263 {offsets = [0, 64], sizes = [1, 32], strides = [1, 1]} : vector<1x256xf32> to vector<1x32xf32>
    %c2_202 = arith.constant 2 : index
    %c128_203 = arith.constant 128 : index
    %269 = vector.load %arg12[%c2_202, %c128_203] : memref<8x512xf32, #tpu.memory_space<vmem>>, vector<1x32xf32>
    tpu.vector_store %arg12[%c2_202, %c128_203], %268 {strides = array<i32>} : memref<8x512xf32, #tpu.memory_space<vmem>>, vector<1x32xf32>,
    %270 = vector.extract_strided_slice %263 {offsets = [0, 96], sizes = [1, 32], strides = [1, 1]} : vector<1x256xf32> to vector<1x32xf32>
    %c3_204 = arith.constant 3 : index
    %c128_205 = arith.constant 128 : index
    %271 = vector.load %arg12[%c3_204, %c128_205] : memref<8x512xf32, #tpu.memory_space<vmem>>, vector<1x32xf32>
    tpu.vector_store %arg12[%c3_204, %c128_205], %270 {strides = array<i32>} : memref<8x512xf32, #tpu.memory_space<vmem>>, vector<1x32xf32>,
    %272 = vector.extract_strided_slice %263 {offsets = [0, 128], sizes = [1, 32], strides = [1, 1]} : vector<1x256xf32> to vector<1x32xf32>
    %c4_206 = arith.constant 4 : index
    %c128_207 = arith.constant 128 : index
    %273 = vector.load %arg12[%c4_206, %c128_207] : memref<8x512xf32, #tpu.memory_space<vmem>>, vector<1x32xf32>
    tpu.vector_store %arg12[%c4_206, %c128_207], %272 {strides = array<i32>} : memref<8x512xf32, #tpu.memory_space<vmem>>, vector<1x32xf32>,
    %274 = vector.extract_strided_slice %263 {offsets = [0, 160], sizes = [1, 32], strides = [1, 1]} : vector<1x256xf32> to vector<1x32xf32>
    %c5_208 = arith.constant 5 : index
    %c128_209 = arith.constant 128 : index
    %275 = vector.load %arg12[%c5_208, %c128_209] : memref<8x512xf32, #tpu.memory_space<vmem>>, vector<1x32xf32>
    tpu.vector_store %arg12[%c5_208, %c128_209], %274 {strides = array<i32>} : memref<8x512xf32, #tpu.memory_space<vmem>>, vector<1x32xf32>,
    %276 = vector.extract_strided_slice %263 {offsets = [0, 192], sizes = [1, 32], strides = [1, 1]} : vector<1x256xf32> to vector<1x32xf32>
    %c6_210 = arith.constant 6 : index
    %c128_211 = arith.constant 128 : index
    %277 = vector.load %arg12[%c6_210, %c128_211] : memref<8x512xf32, #tpu.memory_space<vmem>>, vector<1x32xf32>
    tpu.vector_store %arg12[%c6_210, %c128_211], %276 {strides = array<i32>} : memref<8x512xf32, #tpu.memory_space<vmem>>, vector<1x32xf32>,
    %278 = vector.extract_strided_slice %263 {offsets = [0, 224], sizes = [1, 32], strides = [1, 1]} : vector<1x256xf32> to vector<1x32xf32>
    %c7_212 = arith.constant 7 : index
    %c128_213 = arith.constant 128 : index
    %279 = vector.load %arg12[%c7_212, %c128_213] : memref<8x512xf32, #tpu.memory_space<vmem>>, vector<1x32xf32>
    tpu.vector_store %arg12[%c7_212, %c128_213], %278 {strides = array<i32>} : memref<8x512xf32, #tpu.memory_space<vmem>>, vector<1x32xf32>,
    %280 = vector.extract_strided_slice %144 {offsets = [26, 0], sizes = [1, 256], strides = [1, 1]} : vector<96x256xf32> to vector<1x256xf32>
    %281 = vector.extract_strided_slice %144 {offsets = [27, 0], sizes = [1, 256], strides = [1, 1]} : vector<96x256xf32> to vector<1x256xf32>
    %282 = arith.maximumf %280, %281 : vector<1x256xf32>
    %283 = vector.extract_strided_slice %144 {offsets = [38, 0], sizes = [1, 256], strides = [1, 1]} : vector<96x256xf32> to vector<1x256xf32>
    %284 = vector.extract_strided_slice %144 {offsets = [39, 0], sizes = [1, 256], strides = [1, 1]} : vector<96x256xf32> to vector<1x256xf32>
    %285 = arith.maximumf %283, %284 : vector<1x256xf32>
    %286 = arith.maximumf %282, %285 : vector<1x256xf32>
    %c0_214 = arith.constant 0 : index
    %c0_215 = arith.constant 0 : index
    %287 = vector.load %arg5[%c0_214, %c0_215] : memref<1x256xf32, #tpu.memory_space<vmem>>, vector<1x256xf32>
    %288 = arith.addf %286, %287 : vector<1x256xf32>
    %cst_216 = arith.constant 0.000000e+00 : f32
    %289 = vector.broadcast %cst_216 : f32 to vector<1x256xf32>
    %290 = arith.maximumf %288, %289 : vector<1x256xf32>
    %291 = vector.extract_strided_slice %290 {offsets = [0, 0], sizes = [1, 32], strides = [1, 1]} : vector<1x256xf32> to vector<1x32xf32>
    %c0_217 = arith.constant 0 : index
    %c160 = arith.constant 160 : index
    %292 = vector.load %arg12[%c0_217, %c160] : memref<8x512xf32, #tpu.memory_space<vmem>>, vector<1x32xf32>
    tpu.vector_store %arg12[%c0_217, %c160], %291 {strides = array<i32>} : memref<8x512xf32, #tpu.memory_space<vmem>>, vector<1x32xf32>,
    %293 = vector.extract_strided_slice %290 {offsets = [0, 32], sizes = [1, 32], strides = [1, 1]} : vector<1x256xf32> to vector<1x32xf32>
    %c1_218 = arith.constant 1 : index
    %c160_219 = arith.constant 160 : index
    %294 = vector.load %arg12[%c1_218, %c160_219] : memref<8x512xf32, #tpu.memory_space<vmem>>, vector<1x32xf32>
    tpu.vector_store %arg12[%c1_218, %c160_219], %293 {strides = array<i32>} : memref<8x512xf32, #tpu.memory_space<vmem>>, vector<1x32xf32>,
    %295 = vector.extract_strided_slice %290 {offsets = [0, 64], sizes = [1, 32], strides = [1, 1]} : vector<1x256xf32> to vector<1x32xf32>
    %c2_220 = arith.constant 2 : index
    %c160_221 = arith.constant 160 : index
    %296 = vector.load %arg12[%c2_220, %c160_221] : memref<8x512xf32, #tpu.memory_space<vmem>>, vector<1x32xf32>
    tpu.vector_store %arg12[%c2_220, %c160_221], %295 {strides = array<i32>} : memref<8x512xf32, #tpu.memory_space<vmem>>, vector<1x32xf32>,
    %297 = vector.extract_strided_slice %290 {offsets = [0, 96], sizes = [1, 32], strides = [1, 1]} : vector<1x256xf32> to vector<1x32xf32>
    %c3_222 = arith.constant 3 : index
    %c160_223 = arith.constant 160 : index
    %298 = vector.load %arg12[%c3_222, %c160_223] : memref<8x512xf32, #tpu.memory_space<vmem>>, vector<1x32xf32>
    tpu.vector_store %arg12[%c3_222, %c160_223], %297 {strides = array<i32>} : memref<8x512xf32, #tpu.memory_space<vmem>>, vector<1x32xf32>,
    %299 = vector.extract_strided_slice %290 {offsets = [0, 128], sizes = [1, 32], strides = [1, 1]} : vector<1x256xf32> to vector<1x32xf32>
    %c4_224 = arith.constant 4 : index
    %c160_225 = arith.constant 160 : index
    %300 = vector.load %arg12[%c4_224, %c160_225] : memref<8x512xf32, #tpu.memory_space<vmem>>, vector<1x32xf32>
    tpu.vector_store %arg12[%c4_224, %c160_225], %299 {strides = array<i32>} : memref<8x512xf32, #tpu.memory_space<vmem>>, vector<1x32xf32>,
    %301 = vector.extract_strided_slice %290 {offsets = [0, 160], sizes = [1, 32], strides = [1, 1]} : vector<1x256xf32> to vector<1x32xf32>
    %c5_226 = arith.constant 5 : index
    %c160_227 = arith.constant 160 : index
    %302 = vector.load %arg12[%c5_226, %c160_227] : memref<8x512xf32, #tpu.memory_space<vmem>>, vector<1x32xf32>
    tpu.vector_store %arg12[%c5_226, %c160_227], %301 {strides = array<i32>} : memref<8x512xf32, #tpu.memory_space<vmem>>, vector<1x32xf32>,
    %303 = vector.extract_strided_slice %290 {offsets = [0, 192], sizes = [1, 32], strides = [1, 1]} : vector<1x256xf32> to vector<1x32xf32>
    %c6_228 = arith.constant 6 : index
    %c160_229 = arith.constant 160 : index
    %304 = vector.load %arg12[%c6_228, %c160_229] : memref<8x512xf32, #tpu.memory_space<vmem>>, vector<1x32xf32>
    tpu.vector_store %arg12[%c6_228, %c160_229], %303 {strides = array<i32>} : memref<8x512xf32, #tpu.memory_space<vmem>>, vector<1x32xf32>,
    %305 = vector.extract_strided_slice %290 {offsets = [0, 224], sizes = [1, 32], strides = [1, 1]} : vector<1x256xf32> to vector<1x32xf32>
    %c7_230 = arith.constant 7 : index
    %c160_231 = arith.constant 160 : index
    %306 = vector.load %arg12[%c7_230, %c160_231] : memref<8x512xf32, #tpu.memory_space<vmem>>, vector<1x32xf32>
    tpu.vector_store %arg12[%c7_230, %c160_231], %305 {strides = array<i32>} : memref<8x512xf32, #tpu.memory_space<vmem>>, vector<1x32xf32>,
    %307 = vector.extract_strided_slice %144 {offsets = [28, 0], sizes = [1, 256], strides = [1, 1]} : vector<96x256xf32> to vector<1x256xf32>
    %308 = vector.extract_strided_slice %144 {offsets = [29, 0], sizes = [1, 256], strides = [1, 1]} : vector<96x256xf32> to vector<1x256xf32>
    %309 = arith.maximumf %307, %308 : vector<1x256xf32>
    %310 = vector.extract_strided_slice %144 {offsets = [40, 0], sizes = [1, 256], strides = [1, 1]} : vector<96x256xf32> to vector<1x256xf32>
    %311 = vector.extract_strided_slice %144 {offsets = [41, 0], sizes = [1, 256], strides = [1, 1]} : vector<96x256xf32> to vector<1x256xf32>
    %312 = arith.maximumf %310, %311 : vector<1x256xf32>
    %313 = arith.maximumf %309, %312 : vector<1x256xf32>
    %c0_232 = arith.constant 0 : index
    %c0_233 = arith.constant 0 : index
    %314 = vector.load %arg5[%c0_232, %c0_233] : memref<1x256xf32, #tpu.memory_space<vmem>>, vector<1x256xf32>
    %315 = arith.addf %313, %314 : vector<1x256xf32>
    %cst_234 = arith.constant 0.000000e+00 : f32
    %316 = vector.broadcast %cst_234 : f32 to vector<1x256xf32>
    %317 = arith.maximumf %315, %316 : vector<1x256xf32>
    %318 = vector.extract_strided_slice %317 {offsets = [0, 0], sizes = [1, 32], strides = [1, 1]} : vector<1x256xf32> to vector<1x32xf32>
    %c0_235 = arith.constant 0 : index
    %c192 = arith.constant 192 : index
    %319 = vector.load %arg12[%c0_235, %c192] : memref<8x512xf32, #tpu.memory_space<vmem>>, vector<1x32xf32>
    tpu.vector_store %arg12[%c0_235, %c192], %318 {strides = array<i32>} : memref<8x512xf32, #tpu.memory_space<vmem>>, vector<1x32xf32>,
    %320 = vector.extract_strided_slice %317 {offsets = [0, 32], sizes = [1, 32], strides = [1, 1]} : vector<1x256xf32> to vector<1x32xf32>
    %c1_236 = arith.constant 1 : index
    %c192_237 = arith.constant 192 : index
    %321 = vector.load %arg12[%c1_236, %c192_237] : memref<8x512xf32, #tpu.memory_space<vmem>>, vector<1x32xf32>
    tpu.vector_store %arg12[%c1_236, %c192_237], %320 {strides = array<i32>} : memref<8x512xf32, #tpu.memory_space<vmem>>, vector<1x32xf32>,
    %322 = vector.extract_strided_slice %317 {offsets = [0, 64], sizes = [1, 32], strides = [1, 1]} : vector<1x256xf32> to vector<1x32xf32>
    %c2_238 = arith.constant 2 : index
    %c192_239 = arith.constant 192 : index
    %323 = vector.load %arg12[%c2_238, %c192_239] : memref<8x512xf32, #tpu.memory_space<vmem>>, vector<1x32xf32>
    tpu.vector_store %arg12[%c2_238, %c192_239], %322 {strides = array<i32>} : memref<8x512xf32, #tpu.memory_space<vmem>>, vector<1x32xf32>,
    %324 = vector.extract_strided_slice %317 {offsets = [0, 96], sizes = [1, 32], strides = [1, 1]} : vector<1x256xf32> to vector<1x32xf32>
    %c3_240 = arith.constant 3 : index
    %c192_241 = arith.constant 192 : index
    %325 = vector.load %arg12[%c3_240, %c192_241] : memref<8x512xf32, #tpu.memory_space<vmem>>, vector<1x32xf32>
    tpu.vector_store %arg12[%c3_240, %c192_241], %324 {strides = array<i32>} : memref<8x512xf32, #tpu.memory_space<vmem>>, vector<1x32xf32>,
    %326 = vector.extract_strided_slice %317 {offsets = [0, 128], sizes = [1, 32], strides = [1, 1]} : vector<1x256xf32> to vector<1x32xf32>
    %c4_242 = arith.constant 4 : index
    %c192_243 = arith.constant 192 : index
    %327 = vector.load %arg12[%c4_242, %c192_243] : memref<8x512xf32, #tpu.memory_space<vmem>>, vector<1x32xf32>
    tpu.vector_store %arg12[%c4_242, %c192_243], %326 {strides = array<i32>} : memref<8x512xf32, #tpu.memory_space<vmem>>, vector<1x32xf32>,
    %328 = vector.extract_strided_slice %317 {offsets = [0, 160], sizes = [1, 32], strides = [1, 1]} : vector<1x256xf32> to vector<1x32xf32>
    %c5_244 = arith.constant 5 : index
    %c192_245 = arith.constant 192 : index
    %329 = vector.load %arg12[%c5_244, %c192_245] : memref<8x512xf32, #tpu.memory_space<vmem>>, vector<1x32xf32>
    tpu.vector_store %arg12[%c5_244, %c192_245], %328 {strides = array<i32>} : memref<8x512xf32, #tpu.memory_space<vmem>>, vector<1x32xf32>,
    %330 = vector.extract_strided_slice %317 {offsets = [0, 192], sizes = [1, 32], strides = [1, 1]} : vector<1x256xf32> to vector<1x32xf32>
    %c6_246 = arith.constant 6 : index
    %c192_247 = arith.constant 192 : index
    %331 = vector.load %arg12[%c6_246, %c192_247] : memref<8x512xf32, #tpu.memory_space<vmem>>, vector<1x32xf32>
    tpu.vector_store %arg12[%c6_246, %c192_247], %330 {strides = array<i32>} : memref<8x512xf32, #tpu.memory_space<vmem>>, vector<1x32xf32>,
    %332 = vector.extract_strided_slice %317 {offsets = [0, 224], sizes = [1, 32], strides = [1, 1]} : vector<1x256xf32> to vector<1x32xf32>
    %c7_248 = arith.constant 7 : index
    %c192_249 = arith.constant 192 : index
    %333 = vector.load %arg12[%c7_248, %c192_249] : memref<8x512xf32, #tpu.memory_space<vmem>>, vector<1x32xf32>
    tpu.vector_store %arg12[%c7_248, %c192_249], %332 {strides = array<i32>} : memref<8x512xf32, #tpu.memory_space<vmem>>, vector<1x32xf32>,
    %334 = vector.extract_strided_slice %144 {offsets = [30, 0], sizes = [1, 256], strides = [1, 1]} : vector<96x256xf32> to vector<1x256xf32>
    %335 = vector.extract_strided_slice %144 {offsets = [31, 0], sizes = [1, 256], strides = [1, 1]} : vector<96x256xf32> to vector<1x256xf32>
    %336 = arith.maximumf %334, %335 : vector<1x256xf32>
    %337 = vector.extract_strided_slice %144 {offsets = [42, 0], sizes = [1, 256], strides = [1, 1]} : vector<96x256xf32> to vector<1x256xf32>
    %338 = vector.extract_strided_slice %144 {offsets = [43, 0], sizes = [1, 256], strides = [1, 1]} : vector<96x256xf32> to vector<1x256xf32>
    %339 = arith.maximumf %337, %338 : vector<1x256xf32>
    %340 = arith.maximumf %336, %339 : vector<1x256xf32>
    %c0_250 = arith.constant 0 : index
    %c0_251 = arith.constant 0 : index
    %341 = vector.load %arg5[%c0_250, %c0_251] : memref<1x256xf32, #tpu.memory_space<vmem>>, vector<1x256xf32>
    %342 = arith.addf %340, %341 : vector<1x256xf32>
    %cst_252 = arith.constant 0.000000e+00 : f32
    %343 = vector.broadcast %cst_252 : f32 to vector<1x256xf32>
    %344 = arith.maximumf %342, %343 : vector<1x256xf32>
    %345 = vector.extract_strided_slice %344 {offsets = [0, 0], sizes = [1, 32], strides = [1, 1]} : vector<1x256xf32> to vector<1x32xf32>
    %c0_253 = arith.constant 0 : index
    %c224 = arith.constant 224 : index
    %346 = vector.load %arg12[%c0_253, %c224] : memref<8x512xf32, #tpu.memory_space<vmem>>, vector<1x32xf32>
    tpu.vector_store %arg12[%c0_253, %c224], %345 {strides = array<i32>} : memref<8x512xf32, #tpu.memory_space<vmem>>, vector<1x32xf32>,
    %347 = vector.extract_strided_slice %344 {offsets = [0, 32], sizes = [1, 32], strides = [1, 1]} : vector<1x256xf32> to vector<1x32xf32>
    %c1_254 = arith.constant 1 : index
    %c224_255 = arith.constant 224 : index
    %348 = vector.load %arg12[%c1_254, %c224_255] : memref<8x512xf32, #tpu.memory_space<vmem>>, vector<1x32xf32>
    tpu.vector_store %arg12[%c1_254, %c224_255], %347 {strides = array<i32>} : memref<8x512xf32, #tpu.memory_space<vmem>>, vector<1x32xf32>,
    %349 = vector.extract_strided_slice %344 {offsets = [0, 64], sizes = [1, 32], strides = [1, 1]} : vector<1x256xf32> to vector<1x32xf32>
    %c2_256 = arith.constant 2 : index
    %c224_257 = arith.constant 224 : index
    %350 = vector.load %arg12[%c2_256, %c224_257] : memref<8x512xf32, #tpu.memory_space<vmem>>, vector<1x32xf32>
    tpu.vector_store %arg12[%c2_256, %c224_257], %349 {strides = array<i32>} : memref<8x512xf32, #tpu.memory_space<vmem>>, vector<1x32xf32>,
    %351 = vector.extract_strided_slice %344 {offsets = [0, 96], sizes = [1, 32], strides = [1, 1]} : vector<1x256xf32> to vector<1x32xf32>
    %c3_258 = arith.constant 3 : index
    %c224_259 = arith.constant 224 : index
    %352 = vector.load %arg12[%c3_258, %c224_259] : memref<8x512xf32, #tpu.memory_space<vmem>>, vector<1x32xf32>
    tpu.vector_store %arg12[%c3_258, %c224_259], %351 {strides = array<i32>} : memref<8x512xf32, #tpu.memory_space<vmem>>, vector<1x32xf32>,
    %353 = vector.extract_strided_slice %344 {offsets = [0, 128], sizes = [1, 32], strides = [1, 1]} : vector<1x256xf32> to vector<1x32xf32>
    %c4_260 = arith.constant 4 : index
    %c224_261 = arith.constant 224 : index
    %354 = vector.load %arg12[%c4_260, %c224_261] : memref<8x512xf32, #tpu.memory_space<vmem>>, vector<1x32xf32>
    tpu.vector_store %arg12[%c4_260, %c224_261], %353 {strides = array<i32>} : memref<8x512xf32, #tpu.memory_space<vmem>>, vector<1x32xf32>,
    %355 = vector.extract_strided_slice %344 {offsets = [0, 160], sizes = [1, 32], strides = [1, 1]} : vector<1x256xf32> to vector<1x32xf32>
    %c5_262 = arith.constant 5 : index
    %c224_263 = arith.constant 224 : index
    %356 = vector.load %arg12[%c5_262, %c224_263] : memref<8x512xf32, #tpu.memory_space<vmem>>, vector<1x32xf32>
    tpu.vector_store %arg12[%c5_262, %c224_263], %355 {strides = array<i32>} : memref<8x512xf32, #tpu.memory_space<vmem>>, vector<1x32xf32>,
    %357 = vector.extract_strided_slice %344 {offsets = [0, 192], sizes = [1, 32], strides = [1, 1]} : vector<1x256xf32> to vector<1x32xf32>
    %c6_264 = arith.constant 6 : index
    %c224_265 = arith.constant 224 : index
    %358 = vector.load %arg12[%c6_264, %c224_265] : memref<8x512xf32, #tpu.memory_space<vmem>>, vector<1x32xf32>
    tpu.vector_store %arg12[%c6_264, %c224_265], %357 {strides = array<i32>} : memref<8x512xf32, #tpu.memory_space<vmem>>, vector<1x32xf32>,
    %359 = vector.extract_strided_slice %344 {offsets = [0, 224], sizes = [1, 32], strides = [1, 1]} : vector<1x256xf32> to vector<1x32xf32>
    %c7_266 = arith.constant 7 : index
    %c224_267 = arith.constant 224 : index
    %360 = vector.load %arg12[%c7_266, %c224_267] : memref<8x512xf32, #tpu.memory_space<vmem>>, vector<1x32xf32>
    tpu.vector_store %arg12[%c7_266, %c224_267], %359 {strides = array<i32>} : memref<8x512xf32, #tpu.memory_space<vmem>>, vector<1x32xf32>,
    %361 = vector.extract_strided_slice %144 {offsets = [48, 0], sizes = [1, 256], strides = [1, 1]} : vector<96x256xf32> to vector<1x256xf32>
    %362 = vector.extract_strided_slice %144 {offsets = [49, 0], sizes = [1, 256], strides = [1, 1]} : vector<96x256xf32> to vector<1x256xf32>
    %363 = arith.maximumf %361, %362 : vector<1x256xf32>
    %364 = vector.extract_strided_slice %144 {offsets = [60, 0], sizes = [1, 256], strides = [1, 1]} : vector<96x256xf32> to vector<1x256xf32>
    %365 = vector.extract_strided_slice %144 {offsets = [61, 0], sizes = [1, 256], strides = [1, 1]} : vector<96x256xf32> to vector<1x256xf32>
    %366 = arith.maximumf %364, %365 : vector<1x256xf32>
    %367 = arith.maximumf %363, %366 : vector<1x256xf32>
    %c0_268 = arith.constant 0 : index
    %c0_269 = arith.constant 0 : index
    %368 = vector.load %arg5[%c0_268, %c0_269] : memref<1x256xf32, #tpu.memory_space<vmem>>, vector<1x256xf32>
    %369 = arith.addf %367, %368 : vector<1x256xf32>
    %cst_270 = arith.constant 0.000000e+00 : f32
    %370 = vector.broadcast %cst_270 : f32 to vector<1x256xf32>
    %371 = arith.maximumf %369, %370 : vector<1x256xf32>
    %372 = vector.extract_strided_slice %371 {offsets = [0, 0], sizes = [1, 32], strides = [1, 1]} : vector<1x256xf32> to vector<1x32xf32>
    %c0_271 = arith.constant 0 : index
    %c256 = arith.constant 256 : index
    %373 = vector.load %arg12[%c0_271, %c256] : memref<8x512xf32, #tpu.memory_space<vmem>>, vector<1x32xf32>
    tpu.vector_store %arg12[%c0_271, %c256], %372 {strides = array<i32>} : memref<8x512xf32, #tpu.memory_space<vmem>>, vector<1x32xf32>,
    %374 = vector.extract_strided_slice %371 {offsets = [0, 32], sizes = [1, 32], strides = [1, 1]} : vector<1x256xf32> to vector<1x32xf32>
    %c1_272 = arith.constant 1 : index
    %c256_273 = arith.constant 256 : index
    %375 = vector.load %arg12[%c1_272, %c256_273] : memref<8x512xf32, #tpu.memory_space<vmem>>, vector<1x32xf32>
    tpu.vector_store %arg12[%c1_272, %c256_273], %374 {strides = array<i32>} : memref<8x512xf32, #tpu.memory_space<vmem>>, vector<1x32xf32>,
    %376 = vector.extract_strided_slice %371 {offsets = [0, 64], sizes = [1, 32], strides = [1, 1]} : vector<1x256xf32> to vector<1x32xf32>
    %c2_274 = arith.constant 2 : index
    %c256_275 = arith.constant 256 : index
    %377 = vector.load %arg12[%c2_274, %c256_275] : memref<8x512xf32, #tpu.memory_space<vmem>>, vector<1x32xf32>
    tpu.vector_store %arg12[%c2_274, %c256_275], %376 {strides = array<i32>} : memref<8x512xf32, #tpu.memory_space<vmem>>, vector<1x32xf32>,
    %378 = vector.extract_strided_slice %371 {offsets = [0, 96], sizes = [1, 32], strides = [1, 1]} : vector<1x256xf32> to vector<1x32xf32>
    %c3_276 = arith.constant 3 : index
    %c256_277 = arith.constant 256 : index
    %379 = vector.load %arg12[%c3_276, %c256_277] : memref<8x512xf32, #tpu.memory_space<vmem>>, vector<1x32xf32>
    tpu.vector_store %arg12[%c3_276, %c256_277], %378 {strides = array<i32>} : memref<8x512xf32, #tpu.memory_space<vmem>>, vector<1x32xf32>,
    %380 = vector.extract_strided_slice %371 {offsets = [0, 128], sizes = [1, 32], strides = [1, 1]} : vector<1x256xf32> to vector<1x32xf32>
    %c4_278 = arith.constant 4 : index
    %c256_279 = arith.constant 256 : index
    %381 = vector.load %arg12[%c4_278, %c256_279] : memref<8x512xf32, #tpu.memory_space<vmem>>, vector<1x32xf32>
    tpu.vector_store %arg12[%c4_278, %c256_279], %380 {strides = array<i32>} : memref<8x512xf32, #tpu.memory_space<vmem>>, vector<1x32xf32>,
    %382 = vector.extract_strided_slice %371 {offsets = [0, 160], sizes = [1, 32], strides = [1, 1]} : vector<1x256xf32> to vector<1x32xf32>
    %c5_280 = arith.constant 5 : index
    %c256_281 = arith.constant 256 : index
    %383 = vector.load %arg12[%c5_280, %c256_281] : memref<8x512xf32, #tpu.memory_space<vmem>>, vector<1x32xf32>
    tpu.vector_store %arg12[%c5_280, %c256_281], %382 {strides = array<i32>} : memref<8x512xf32, #tpu.memory_space<vmem>>, vector<1x32xf32>,
    %384 = vector.extract_strided_slice %371 {offsets = [0, 192], sizes = [1, 32], strides = [1, 1]} : vector<1x256xf32> to vector<1x32xf32>
    %c6_282 = arith.constant 6 : index
    %c256_283 = arith.constant 256 : index
    %385 = vector.load %arg12[%c6_282, %c256_283] : memref<8x512xf32, #tpu.memory_space<vmem>>, vector<1x32xf32>
    tpu.vector_store %arg12[%c6_282, %c256_283], %384 {strides = array<i32>} : memref<8x512xf32, #tpu.memory_space<vmem>>, vector<1x32xf32>,
    %386 = vector.extract_strided_slice %371 {offsets = [0, 224], sizes = [1, 32], strides = [1, 1]} : vector<1x256xf32> to vector<1x32xf32>
    %c7_284 = arith.constant 7 : index
    %c256_285 = arith.constant 256 : index
    %387 = vector.load %arg12[%c7_284, %c256_285] : memref<8x512xf32, #tpu.memory_space<vmem>>, vector<1x32xf32>
    tpu.vector_store %arg12[%c7_284, %c256_285], %386 {strides = array<i32>} : memref<8x512xf32, #tpu.memory_space<vmem>>, vector<1x32xf32>,
    %388 = vector.extract_strided_slice %144 {offsets = [50, 0], sizes = [1, 256], strides = [1, 1]} : vector<96x256xf32> to vector<1x256xf32>
    %389 = vector.extract_strided_slice %144 {offsets = [51, 0], sizes = [1, 256], strides = [1, 1]} : vector<96x256xf32> to vector<1x256xf32>
    %390 = arith.maximumf %388, %389 : vector<1x256xf32>
    %391 = vector.extract_strided_slice %144 {offsets = [62, 0], sizes = [1, 256], strides = [1, 1]} : vector<96x256xf32> to vector<1x256xf32>
    %392 = vector.extract_strided_slice %144 {offsets = [63, 0], sizes = [1, 256], strides = [1, 1]} : vector<96x256xf32> to vector<1x256xf32>
    %393 = arith.maximumf %391, %392 : vector<1x256xf32>
    %394 = arith.maximumf %390, %393 : vector<1x256xf32>
    %c0_286 = arith.constant 0 : index
    %c0_287 = arith.constant 0 : index
    %395 = vector.load %arg5[%c0_286, %c0_287] : memref<1x256xf32, #tpu.memory_space<vmem>>, vector<1x256xf32>
    %396 = arith.addf %394, %395 : vector<1x256xf32>
    %cst_288 = arith.constant 0.000000e+00 : f32
    %397 = vector.broadcast %cst_288 : f32 to vector<1x256xf32>
    %398 = arith.maximumf %396, %397 : vector<1x256xf32>
    %399 = vector.extract_strided_slice %398 {offsets = [0, 0], sizes = [1, 32], strides = [1, 1]} : vector<1x256xf32> to vector<1x32xf32>
    %c0_289 = arith.constant 0 : index
    %c288 = arith.constant 288 : index
    %400 = vector.load %arg12[%c0_289, %c288] : memref<8x512xf32, #tpu.memory_space<vmem>>, vector<1x32xf32>
    tpu.vector_store %arg12[%c0_289, %c288], %399 {strides = array<i32>} : memref<8x512xf32, #tpu.memory_space<vmem>>, vector<1x32xf32>,
    %401 = vector.extract_strided_slice %398 {offsets = [0, 32], sizes = [1, 32], strides = [1, 1]} : vector<1x256xf32> to vector<1x32xf32>
    %c1_290 = arith.constant 1 : index
    %c288_291 = arith.constant 288 : index
    %402 = vector.load %arg12[%c1_290, %c288_291] : memref<8x512xf32, #tpu.memory_space<vmem>>, vector<1x32xf32>
    tpu.vector_store %arg12[%c1_290, %c288_291], %401 {strides = array<i32>} : memref<8x512xf32, #tpu.memory_space<vmem>>, vector<1x32xf32>,
    %403 = vector.extract_strided_slice %398 {offsets = [0, 64], sizes = [1, 32], strides = [1, 1]} : vector<1x256xf32> to vector<1x32xf32>
    %c2_292 = arith.constant 2 : index
    %c288_293 = arith.constant 288 : index
    %404 = vector.load %arg12[%c2_292, %c288_293] : memref<8x512xf32, #tpu.memory_space<vmem>>, vector<1x32xf32>
    tpu.vector_store %arg12[%c2_292, %c288_293], %403 {strides = array<i32>} : memref<8x512xf32, #tpu.memory_space<vmem>>, vector<1x32xf32>,
    %405 = vector.extract_strided_slice %398 {offsets = [0, 96], sizes = [1, 32], strides = [1, 1]} : vector<1x256xf32> to vector<1x32xf32>
    %c3_294 = arith.constant 3 : index
    %c288_295 = arith.constant 288 : index
    %406 = vector.load %arg12[%c3_294, %c288_295] : memref<8x512xf32, #tpu.memory_space<vmem>>, vector<1x32xf32>
    tpu.vector_store %arg12[%c3_294, %c288_295], %405 {strides = array<i32>} : memref<8x512xf32, #tpu.memory_space<vmem>>, vector<1x32xf32>,
    %407 = vector.extract_strided_slice %398 {offsets = [0, 128], sizes = [1, 32], strides = [1, 1]} : vector<1x256xf32> to vector<1x32xf32>
    %c4_296 = arith.constant 4 : index
    %c288_297 = arith.constant 288 : index
    %408 = vector.load %arg12[%c4_296, %c288_297] : memref<8x512xf32, #tpu.memory_space<vmem>>, vector<1x32xf32>
    tpu.vector_store %arg12[%c4_296, %c288_297], %407 {strides = array<i32>} : memref<8x512xf32, #tpu.memory_space<vmem>>, vector<1x32xf32>,
    %409 = vector.extract_strided_slice %398 {offsets = [0, 160], sizes = [1, 32], strides = [1, 1]} : vector<1x256xf32> to vector<1x32xf32>
    %c5_298 = arith.constant 5 : index
    %c288_299 = arith.constant 288 : index
    %410 = vector.load %arg12[%c5_298, %c288_299] : memref<8x512xf32, #tpu.memory_space<vmem>>, vector<1x32xf32>
    tpu.vector_store %arg12[%c5_298, %c288_299], %409 {strides = array<i32>} : memref<8x512xf32, #tpu.memory_space<vmem>>, vector<1x32xf32>,
    %411 = vector.extract_strided_slice %398 {offsets = [0, 192], sizes = [1, 32], strides = [1, 1]} : vector<1x256xf32> to vector<1x32xf32>
    %c6_300 = arith.constant 6 : index
    %c288_301 = arith.constant 288 : index
    %412 = vector.load %arg12[%c6_300, %c288_301] : memref<8x512xf32, #tpu.memory_space<vmem>>, vector<1x32xf32>
    tpu.vector_store %arg12[%c6_300, %c288_301], %411 {strides = array<i32>} : memref<8x512xf32, #tpu.memory_space<vmem>>, vector<1x32xf32>,
    %413 = vector.extract_strided_slice %398 {offsets = [0, 224], sizes = [1, 32], strides = [1, 1]} : vector<1x256xf32> to vector<1x32xf32>
    %c7_302 = arith.constant 7 : index
    %c288_303 = arith.constant 288 : index
    %414 = vector.load %arg12[%c7_302, %c288_303] : memref<8x512xf32, #tpu.memory_space<vmem>>, vector<1x32xf32>
    tpu.vector_store %arg12[%c7_302, %c288_303], %413 {strides = array<i32>} : memref<8x512xf32, #tpu.memory_space<vmem>>, vector<1x32xf32>,
    %415 = vector.extract_strided_slice %144 {offsets = [52, 0], sizes = [1, 256], strides = [1, 1]} : vector<96x256xf32> to vector<1x256xf32>
    %416 = vector.extract_strided_slice %144 {offsets = [53, 0], sizes = [1, 256], strides = [1, 1]} : vector<96x256xf32> to vector<1x256xf32>
    %417 = arith.maximumf %415, %416 : vector<1x256xf32>
    %418 = vector.extract_strided_slice %144 {offsets = [64, 0], sizes = [1, 256], strides = [1, 1]} : vector<96x256xf32> to vector<1x256xf32>
    %419 = vector.extract_strided_slice %144 {offsets = [65, 0], sizes = [1, 256], strides = [1, 1]} : vector<96x256xf32> to vector<1x256xf32>
    %420 = arith.maximumf %418, %419 : vector<1x256xf32>
    %421 = arith.maximumf %417, %420 : vector<1x256xf32>
    %c0_304 = arith.constant 0 : index
    %c0_305 = arith.constant 0 : index
    %422 = vector.load %arg5[%c0_304, %c0_305] : memref<1x256xf32, #tpu.memory_space<vmem>>, vector<1x256xf32>
    %423 = arith.addf %421, %422 : vector<1x256xf32>
    %cst_306 = arith.constant 0.000000e+00 : f32
    %424 = vector.broadcast %cst_306 : f32 to vector<1x256xf32>
    %425 = arith.maximumf %423, %424 : vector<1x256xf32>
    %426 = vector.extract_strided_slice %425 {offsets = [0, 0], sizes = [1, 32], strides = [1, 1]} : vector<1x256xf32> to vector<1x32xf32>
    %c0_307 = arith.constant 0 : index
    %c320 = arith.constant 320 : index
    %427 = vector.load %arg12[%c0_307, %c320] : memref<8x512xf32, #tpu.memory_space<vmem>>, vector<1x32xf32>
    tpu.vector_store %arg12[%c0_307, %c320], %426 {strides = array<i32>} : memref<8x512xf32, #tpu.memory_space<vmem>>, vector<1x32xf32>,
    %428 = vector.extract_strided_slice %425 {offsets = [0, 32], sizes = [1, 32], strides = [1, 1]} : vector<1x256xf32> to vector<1x32xf32>
    %c1_308 = arith.constant 1 : index
    %c320_309 = arith.constant 320 : index
    %429 = vector.load %arg12[%c1_308, %c320_309] : memref<8x512xf32, #tpu.memory_space<vmem>>, vector<1x32xf32>
    tpu.vector_store %arg12[%c1_308, %c320_309], %428 {strides = array<i32>} : memref<8x512xf32, #tpu.memory_space<vmem>>, vector<1x32xf32>,
    %430 = vector.extract_strided_slice %425 {offsets = [0, 64], sizes = [1, 32], strides = [1, 1]} : vector<1x256xf32> to vector<1x32xf32>
    %c2_310 = arith.constant 2 : index
    %c320_311 = arith.constant 320 : index
    %431 = vector.load %arg12[%c2_310, %c320_311] : memref<8x512xf32, #tpu.memory_space<vmem>>, vector<1x32xf32>
    tpu.vector_store %arg12[%c2_310, %c320_311], %430 {strides = array<i32>} : memref<8x512xf32, #tpu.memory_space<vmem>>, vector<1x32xf32>,
    %432 = vector.extract_strided_slice %425 {offsets = [0, 96], sizes = [1, 32], strides = [1, 1]} : vector<1x256xf32> to vector<1x32xf32>
    %c3_312 = arith.constant 3 : index
    %c320_313 = arith.constant 320 : index
    %433 = vector.load %arg12[%c3_312, %c320_313] : memref<8x512xf32, #tpu.memory_space<vmem>>, vector<1x32xf32>
    tpu.vector_store %arg12[%c3_312, %c320_313], %432 {strides = array<i32>} : memref<8x512xf32, #tpu.memory_space<vmem>>, vector<1x32xf32>,
    %434 = vector.extract_strided_slice %425 {offsets = [0, 128], sizes = [1, 32], strides = [1, 1]} : vector<1x256xf32> to vector<1x32xf32>
    %c4_314 = arith.constant 4 : index
    %c320_315 = arith.constant 320 : index
    %435 = vector.load %arg12[%c4_314, %c320_315] : memref<8x512xf32, #tpu.memory_space<vmem>>, vector<1x32xf32>
    tpu.vector_store %arg12[%c4_314, %c320_315], %434 {strides = array<i32>} : memref<8x512xf32, #tpu.memory_space<vmem>>, vector<1x32xf32>,
    %436 = vector.extract_strided_slice %425 {offsets = [0, 160], sizes = [1, 32], strides = [1, 1]} : vector<1x256xf32> to vector<1x32xf32>
    %c5_316 = arith.constant 5 : index
    %c320_317 = arith.constant 320 : index
    %437 = vector.load %arg12[%c5_316, %c320_317] : memref<8x512xf32, #tpu.memory_space<vmem>>, vector<1x32xf32>
    tpu.vector_store %arg12[%c5_316, %c320_317], %436 {strides = array<i32>} : memref<8x512xf32, #tpu.memory_space<vmem>>, vector<1x32xf32>,
    %438 = vector.extract_strided_slice %425 {offsets = [0, 192], sizes = [1, 32], strides = [1, 1]} : vector<1x256xf32> to vector<1x32xf32>
    %c6_318 = arith.constant 6 : index
    %c320_319 = arith.constant 320 : index
    %439 = vector.load %arg12[%c6_318, %c320_319] : memref<8x512xf32, #tpu.memory_space<vmem>>, vector<1x32xf32>
    tpu.vector_store %arg12[%c6_318, %c320_319], %438 {strides = array<i32>} : memref<8x512xf32, #tpu.memory_space<vmem>>, vector<1x32xf32>,
    %440 = vector.extract_strided_slice %425 {offsets = [0, 224], sizes = [1, 32], strides = [1, 1]} : vector<1x256xf32> to vector<1x32xf32>
    %c7_320 = arith.constant 7 : index
    %c320_321 = arith.constant 320 : index
    %441 = vector.load %arg12[%c7_320, %c320_321] : memref<8x512xf32, #tpu.memory_space<vmem>>, vector<1x32xf32>
    tpu.vector_store %arg12[%c7_320, %c320_321], %440 {strides = array<i32>} : memref<8x512xf32, #tpu.memory_space<vmem>>, vector<1x32xf32>,
    %442 = vector.extract_strided_slice %144 {offsets = [54, 0], sizes = [1, 256], strides = [1, 1]} : vector<96x256xf32> to vector<1x256xf32>
    %443 = vector.extract_strided_slice %144 {offsets = [55, 0], sizes = [1, 256], strides = [1, 1]} : vector<96x256xf32> to vector<1x256xf32>
    %444 = arith.maximumf %442, %443 : vector<1x256xf32>
    %445 = vector.extract_strided_slice %144 {offsets = [66, 0], sizes = [1, 256], strides = [1, 1]} : vector<96x256xf32> to vector<1x256xf32>
    %446 = vector.extract_strided_slice %144 {offsets = [67, 0], sizes = [1, 256], strides = [1, 1]} : vector<96x256xf32> to vector<1x256xf32>
    %447 = arith.maximumf %445, %446 : vector<1x256xf32>
    %448 = arith.maximumf %444, %447 : vector<1x256xf32>
    %c0_322 = arith.constant 0 : index
    %c0_323 = arith.constant 0 : index
    %449 = vector.load %arg5[%c0_322, %c0_323] : memref<1x256xf32, #tpu.memory_space<vmem>>, vector<1x256xf32>
    %450 = arith.addf %448, %449 : vector<1x256xf32>
    %cst_324 = arith.constant 0.000000e+00 : f32
    %451 = vector.broadcast %cst_324 : f32 to vector<1x256xf32>
    %452 = arith.maximumf %450, %451 : vector<1x256xf32>
    %453 = vector.extract_strided_slice %452 {offsets = [0, 0], sizes = [1, 32], strides = [1, 1]} : vector<1x256xf32> to vector<1x32xf32>
    %c0_325 = arith.constant 0 : index
    %c352 = arith.constant 352 : index
    %454 = vector.load %arg12[%c0_325, %c352] : memref<8x512xf32, #tpu.memory_space<vmem>>, vector<1x32xf32>
    tpu.vector_store %arg12[%c0_325, %c352], %453 {strides = array<i32>} : memref<8x512xf32, #tpu.memory_space<vmem>>, vector<1x32xf32>,
    %455 = vector.extract_strided_slice %452 {offsets = [0, 32], sizes = [1, 32], strides = [1, 1]} : vector<1x256xf32> to vector<1x32xf32>
    %c1_326 = arith.constant 1 : index
    %c352_327 = arith.constant 352 : index
    %456 = vector.load %arg12[%c1_326, %c352_327] : memref<8x512xf32, #tpu.memory_space<vmem>>, vector<1x32xf32>
    tpu.vector_store %arg12[%c1_326, %c352_327], %455 {strides = array<i32>} : memref<8x512xf32, #tpu.memory_space<vmem>>, vector<1x32xf32>,
    %457 = vector.extract_strided_slice %452 {offsets = [0, 64], sizes = [1, 32], strides = [1, 1]} : vector<1x256xf32> to vector<1x32xf32>
    %c2_328 = arith.constant 2 : index
    %c352_329 = arith.constant 352 : index
    %458 = vector.load %arg12[%c2_328, %c352_329] : memref<8x512xf32, #tpu.memory_space<vmem>>, vector<1x32xf32>
    tpu.vector_store %arg12[%c2_328, %c352_329], %457 {strides = array<i32>} : memref<8x512xf32, #tpu.memory_space<vmem>>, vector<1x32xf32>,
    %459 = vector.extract_strided_slice %452 {offsets = [0, 96], sizes = [1, 32], strides = [1, 1]} : vector<1x256xf32> to vector<1x32xf32>
    %c3_330 = arith.constant 3 : index
    %c352_331 = arith.constant 352 : index
    %460 = vector.load %arg12[%c3_330, %c352_331] : memref<8x512xf32, #tpu.memory_space<vmem>>, vector<1x32xf32>
    tpu.vector_store %arg12[%c3_330, %c352_331], %459 {strides = array<i32>} : memref<8x512xf32, #tpu.memory_space<vmem>>, vector<1x32xf32>,
    %461 = vector.extract_strided_slice %452 {offsets = [0, 128], sizes = [1, 32], strides = [1, 1]} : vector<1x256xf32> to vector<1x32xf32>
    %c4_332 = arith.constant 4 : index
    %c352_333 = arith.constant 352 : index
    %462 = vector.load %arg12[%c4_332, %c352_333] : memref<8x512xf32, #tpu.memory_space<vmem>>, vector<1x32xf32>
    tpu.vector_store %arg12[%c4_332, %c352_333], %461 {strides = array<i32>} : memref<8x512xf32, #tpu.memory_space<vmem>>, vector<1x32xf32>,
    %463 = vector.extract_strided_slice %452 {offsets = [0, 160], sizes = [1, 32], strides = [1, 1]} : vector<1x256xf32> to vector<1x32xf32>
    %c5_334 = arith.constant 5 : index
    %c352_335 = arith.constant 352 : index
    %464 = vector.load %arg12[%c5_334, %c352_335] : memref<8x512xf32, #tpu.memory_space<vmem>>, vector<1x32xf32>
    tpu.vector_store %arg12[%c5_334, %c352_335], %463 {strides = array<i32>} : memref<8x512xf32, #tpu.memory_space<vmem>>, vector<1x32xf32>,
    %465 = vector.extract_strided_slice %452 {offsets = [0, 192], sizes = [1, 32], strides = [1, 1]} : vector<1x256xf32> to vector<1x32xf32>
    %c6_336 = arith.constant 6 : index
    %c352_337 = arith.constant 352 : index
    %466 = vector.load %arg12[%c6_336, %c352_337] : memref<8x512xf32, #tpu.memory_space<vmem>>, vector<1x32xf32>
    tpu.vector_store %arg12[%c6_336, %c352_337], %465 {strides = array<i32>} : memref<8x512xf32, #tpu.memory_space<vmem>>, vector<1x32xf32>,
    %467 = vector.extract_strided_slice %452 {offsets = [0, 224], sizes = [1, 32], strides = [1, 1]} : vector<1x256xf32> to vector<1x32xf32>
    %c7_338 = arith.constant 7 : index
    %c352_339 = arith.constant 352 : index
    %468 = vector.load %arg12[%c7_338, %c352_339] : memref<8x512xf32, #tpu.memory_space<vmem>>, vector<1x32xf32>
    tpu.vector_store %arg12[%c7_338, %c352_339], %467 {strides = array<i32>} : memref<8x512xf32, #tpu.memory_space<vmem>>, vector<1x32xf32>,
    %469 = vector.extract_strided_slice %144 {offsets = [72, 0], sizes = [1, 256], strides = [1, 1]} : vector<96x256xf32> to vector<1x256xf32>
    %470 = vector.extract_strided_slice %144 {offsets = [73, 0], sizes = [1, 256], strides = [1, 1]} : vector<96x256xf32> to vector<1x256xf32>
    %471 = arith.maximumf %469, %470 : vector<1x256xf32>
    %472 = vector.extract_strided_slice %144 {offsets = [84, 0], sizes = [1, 256], strides = [1, 1]} : vector<96x256xf32> to vector<1x256xf32>
    %473 = vector.extract_strided_slice %144 {offsets = [85, 0], sizes = [1, 256], strides = [1, 1]} : vector<96x256xf32> to vector<1x256xf32>
    %474 = arith.maximumf %472, %473 : vector<1x256xf32>
    %475 = arith.maximumf %471, %474 : vector<1x256xf32>
    %c0_340 = arith.constant 0 : index
    %c0_341 = arith.constant 0 : index
    %476 = vector.load %arg5[%c0_340, %c0_341] : memref<1x256xf32, #tpu.memory_space<vmem>>, vector<1x256xf32>
    %477 = arith.addf %475, %476 : vector<1x256xf32>
    %cst_342 = arith.constant 0.000000e+00 : f32
    %478 = vector.broadcast %cst_342 : f32 to vector<1x256xf32>
    %479 = arith.maximumf %477, %478 : vector<1x256xf32>
    %480 = vector.extract_strided_slice %479 {offsets = [0, 0], sizes = [1, 32], strides = [1, 1]} : vector<1x256xf32> to vector<1x32xf32>
    %c0_343 = arith.constant 0 : index
    %c384 = arith.constant 384 : index
    %481 = vector.load %arg12[%c0_343, %c384] : memref<8x512xf32, #tpu.memory_space<vmem>>, vector<1x32xf32>
    tpu.vector_store %arg12[%c0_343, %c384], %480 {strides = array<i32>} : memref<8x512xf32, #tpu.memory_space<vmem>>, vector<1x32xf32>,
    %482 = vector.extract_strided_slice %479 {offsets = [0, 32], sizes = [1, 32], strides = [1, 1]} : vector<1x256xf32> to vector<1x32xf32>
    %c1_344 = arith.constant 1 : index
    %c384_345 = arith.constant 384 : index
    %483 = vector.load %arg12[%c1_344, %c384_345] : memref<8x512xf32, #tpu.memory_space<vmem>>, vector<1x32xf32>
    tpu.vector_store %arg12[%c1_344, %c384_345], %482 {strides = array<i32>} : memref<8x512xf32, #tpu.memory_space<vmem>>, vector<1x32xf32>,
    %484 = vector.extract_strided_slice %479 {offsets = [0, 64], sizes = [1, 32], strides = [1, 1]} : vector<1x256xf32> to vector<1x32xf32>
    %c2_346 = arith.constant 2 : index
    %c384_347 = arith.constant 384 : index
    %485 = vector.load %arg12[%c2_346, %c384_347] : memref<8x512xf32, #tpu.memory_space<vmem>>, vector<1x32xf32>
    tpu.vector_store %arg12[%c2_346, %c384_347], %484 {strides = array<i32>} : memref<8x512xf32, #tpu.memory_space<vmem>>, vector<1x32xf32>,
    %486 = vector.extract_strided_slice %479 {offsets = [0, 96], sizes = [1, 32], strides = [1, 1]} : vector<1x256xf32> to vector<1x32xf32>
    %c3_348 = arith.constant 3 : index
    %c384_349 = arith.constant 384 : index
    %487 = vector.load %arg12[%c3_348, %c384_349] : memref<8x512xf32, #tpu.memory_space<vmem>>, vector<1x32xf32>
    tpu.vector_store %arg12[%c3_348, %c384_349], %486 {strides = array<i32>} : memref<8x512xf32, #tpu.memory_space<vmem>>, vector<1x32xf32>,
    %488 = vector.extract_strided_slice %479 {offsets = [0, 128], sizes = [1, 32], strides = [1, 1]} : vector<1x256xf32> to vector<1x32xf32>
    %c4_350 = arith.constant 4 : index
    %c384_351 = arith.constant 384 : index
    %489 = vector.load %arg12[%c4_350, %c384_351] : memref<8x512xf32, #tpu.memory_space<vmem>>, vector<1x32xf32>
    tpu.vector_store %arg12[%c4_350, %c384_351], %488 {strides = array<i32>} : memref<8x512xf32, #tpu.memory_space<vmem>>, vector<1x32xf32>,
    %490 = vector.extract_strided_slice %479 {offsets = [0, 160], sizes = [1, 32], strides = [1, 1]} : vector<1x256xf32> to vector<1x32xf32>
    %c5_352 = arith.constant 5 : index
    %c384_353 = arith.constant 384 : index
    %491 = vector.load %arg12[%c5_352, %c384_353] : memref<8x512xf32, #tpu.memory_space<vmem>>, vector<1x32xf32>
    tpu.vector_store %arg12[%c5_352, %c384_353], %490 {strides = array<i32>} : memref<8x512xf32, #tpu.memory_space<vmem>>, vector<1x32xf32>,
    %492 = vector.extract_strided_slice %479 {offsets = [0, 192], sizes = [1, 32], strides = [1, 1]} : vector<1x256xf32> to vector<1x32xf32>
    %c6_354 = arith.constant 6 : index
    %c384_355 = arith.constant 384 : index
    %493 = vector.load %arg12[%c6_354, %c384_355] : memref<8x512xf32, #tpu.memory_space<vmem>>, vector<1x32xf32>
    tpu.vector_store %arg12[%c6_354, %c384_355], %492 {strides = array<i32>} : memref<8x512xf32, #tpu.memory_space<vmem>>, vector<1x32xf32>,
    %494 = vector.extract_strided_slice %479 {offsets = [0, 224], sizes = [1, 32], strides = [1, 1]} : vector<1x256xf32> to vector<1x32xf32>
    %c7_356 = arith.constant 7 : index
    %c384_357 = arith.constant 384 : index
    %495 = vector.load %arg12[%c7_356, %c384_357] : memref<8x512xf32, #tpu.memory_space<vmem>>, vector<1x32xf32>
    tpu.vector_store %arg12[%c7_356, %c384_357], %494 {strides = array<i32>} : memref<8x512xf32, #tpu.memory_space<vmem>>, vector<1x32xf32>,
    %496 = vector.extract_strided_slice %144 {offsets = [74, 0], sizes = [1, 256], strides = [1, 1]} : vector<96x256xf32> to vector<1x256xf32>
    %497 = vector.extract_strided_slice %144 {offsets = [75, 0], sizes = [1, 256], strides = [1, 1]} : vector<96x256xf32> to vector<1x256xf32>
    %498 = arith.maximumf %496, %497 : vector<1x256xf32>
    %499 = vector.extract_strided_slice %144 {offsets = [86, 0], sizes = [1, 256], strides = [1, 1]} : vector<96x256xf32> to vector<1x256xf32>
    %500 = vector.extract_strided_slice %144 {offsets = [87, 0], sizes = [1, 256], strides = [1, 1]} : vector<96x256xf32> to vector<1x256xf32>
    %501 = arith.maximumf %499, %500 : vector<1x256xf32>
    %502 = arith.maximumf %498, %501 : vector<1x256xf32>
    %c0_358 = arith.constant 0 : index
    %c0_359 = arith.constant 0 : index
    %503 = vector.load %arg5[%c0_358, %c0_359] : memref<1x256xf32, #tpu.memory_space<vmem>>, vector<1x256xf32>
    %504 = arith.addf %502, %503 : vector<1x256xf32>
    %cst_360 = arith.constant 0.000000e+00 : f32
    %505 = vector.broadcast %cst_360 : f32 to vector<1x256xf32>
    %506 = arith.maximumf %504, %505 : vector<1x256xf32>
    %507 = vector.extract_strided_slice %506 {offsets = [0, 0], sizes = [1, 32], strides = [1, 1]} : vector<1x256xf32> to vector<1x32xf32>
    %c0_361 = arith.constant 0 : index
    %c416 = arith.constant 416 : index
    %508 = vector.load %arg12[%c0_361, %c416] : memref<8x512xf32, #tpu.memory_space<vmem>>, vector<1x32xf32>
    tpu.vector_store %arg12[%c0_361, %c416], %507 {strides = array<i32>} : memref<8x512xf32, #tpu.memory_space<vmem>>, vector<1x32xf32>,
    %509 = vector.extract_strided_slice %506 {offsets = [0, 32], sizes = [1, 32], strides = [1, 1]} : vector<1x256xf32> to vector<1x32xf32>
    %c1_362 = arith.constant 1 : index
    %c416_363 = arith.constant 416 : index
    %510 = vector.load %arg12[%c1_362, %c416_363] : memref<8x512xf32, #tpu.memory_space<vmem>>, vector<1x32xf32>
    tpu.vector_store %arg12[%c1_362, %c416_363], %509 {strides = array<i32>} : memref<8x512xf32, #tpu.memory_space<vmem>>, vector<1x32xf32>,
    %511 = vector.extract_strided_slice %506 {offsets = [0, 64], sizes = [1, 32], strides = [1, 1]} : vector<1x256xf32> to vector<1x32xf32>
    %c2_364 = arith.constant 2 : index
    %c416_365 = arith.constant 416 : index
    %512 = vector.load %arg12[%c2_364, %c416_365] : memref<8x512xf32, #tpu.memory_space<vmem>>, vector<1x32xf32>
    tpu.vector_store %arg12[%c2_364, %c416_365], %511 {strides = array<i32>} : memref<8x512xf32, #tpu.memory_space<vmem>>, vector<1x32xf32>,
    %513 = vector.extract_strided_slice %506 {offsets = [0, 96], sizes = [1, 32], strides = [1, 1]} : vector<1x256xf32> to vector<1x32xf32>
    %c3_366 = arith.constant 3 : index
    %c416_367 = arith.constant 416 : index
    %514 = vector.load %arg12[%c3_366, %c416_367] : memref<8x512xf32, #tpu.memory_space<vmem>>, vector<1x32xf32>
    tpu.vector_store %arg12[%c3_366, %c416_367], %513 {strides = array<i32>} : memref<8x512xf32, #tpu.memory_space<vmem>>, vector<1x32xf32>,
    %515 = vector.extract_strided_slice %506 {offsets = [0, 128], sizes = [1, 32], strides = [1, 1]} : vector<1x256xf32> to vector<1x32xf32>
    %c4_368 = arith.constant 4 : index
    %c416_369 = arith.constant 416 : index
    %516 = vector.load %arg12[%c4_368, %c416_369] : memref<8x512xf32, #tpu.memory_space<vmem>>, vector<1x32xf32>
    tpu.vector_store %arg12[%c4_368, %c416_369], %515 {strides = array<i32>} : memref<8x512xf32, #tpu.memory_space<vmem>>, vector<1x32xf32>,
    %517 = vector.extract_strided_slice %506 {offsets = [0, 160], sizes = [1, 32], strides = [1, 1]} : vector<1x256xf32> to vector<1x32xf32>
    %c5_370 = arith.constant 5 : index
    %c416_371 = arith.constant 416 : index
    %518 = vector.load %arg12[%c5_370, %c416_371] : memref<8x512xf32, #tpu.memory_space<vmem>>, vector<1x32xf32>
    tpu.vector_store %arg12[%c5_370, %c416_371], %517 {strides = array<i32>} : memref<8x512xf32, #tpu.memory_space<vmem>>, vector<1x32xf32>,
    %519 = vector.extract_strided_slice %506 {offsets = [0, 192], sizes = [1, 32], strides = [1, 1]} : vector<1x256xf32> to vector<1x32xf32>
    %c6_372 = arith.constant 6 : index
    %c416_373 = arith.constant 416 : index
    %520 = vector.load %arg12[%c6_372, %c416_373] : memref<8x512xf32, #tpu.memory_space<vmem>>, vector<1x32xf32>
    tpu.vector_store %arg12[%c6_372, %c416_373], %519 {strides = array<i32>} : memref<8x512xf32, #tpu.memory_space<vmem>>, vector<1x32xf32>,
    %521 = vector.extract_strided_slice %506 {offsets = [0, 224], sizes = [1, 32], strides = [1, 1]} : vector<1x256xf32> to vector<1x32xf32>
    %c7_374 = arith.constant 7 : index
    %c416_375 = arith.constant 416 : index
    %522 = vector.load %arg12[%c7_374, %c416_375] : memref<8x512xf32, #tpu.memory_space<vmem>>, vector<1x32xf32>
    tpu.vector_store %arg12[%c7_374, %c416_375], %521 {strides = array<i32>} : memref<8x512xf32, #tpu.memory_space<vmem>>, vector<1x32xf32>,
    %523 = vector.extract_strided_slice %144 {offsets = [76, 0], sizes = [1, 256], strides = [1, 1]} : vector<96x256xf32> to vector<1x256xf32>
    %524 = vector.extract_strided_slice %144 {offsets = [77, 0], sizes = [1, 256], strides = [1, 1]} : vector<96x256xf32> to vector<1x256xf32>
    %525 = arith.maximumf %523, %524 : vector<1x256xf32>
    %526 = vector.extract_strided_slice %144 {offsets = [88, 0], sizes = [1, 256], strides = [1, 1]} : vector<96x256xf32> to vector<1x256xf32>
    %527 = vector.extract_strided_slice %144 {offsets = [89, 0], sizes = [1, 256], strides = [1, 1]} : vector<96x256xf32> to vector<1x256xf32>
    %528 = arith.maximumf %526, %527 : vector<1x256xf32>
    %529 = arith.maximumf %525, %528 : vector<1x256xf32>
    %c0_376 = arith.constant 0 : index
    %c0_377 = arith.constant 0 : index
    %530 = vector.load %arg5[%c0_376, %c0_377] : memref<1x256xf32, #tpu.memory_space<vmem>>, vector<1x256xf32>
    %531 = arith.addf %529, %530 : vector<1x256xf32>
    %cst_378 = arith.constant 0.000000e+00 : f32
    %532 = vector.broadcast %cst_378 : f32 to vector<1x256xf32>
    %533 = arith.maximumf %531, %532 : vector<1x256xf32>
    %534 = vector.extract_strided_slice %533 {offsets = [0, 0], sizes = [1, 32], strides = [1, 1]} : vector<1x256xf32> to vector<1x32xf32>
    %c0_379 = arith.constant 0 : index
    %c448 = arith.constant 448 : index
    %535 = vector.load %arg12[%c0_379, %c448] : memref<8x512xf32, #tpu.memory_space<vmem>>, vector<1x32xf32>
    tpu.vector_store %arg12[%c0_379, %c448], %534 {strides = array<i32>} : memref<8x512xf32, #tpu.memory_space<vmem>>, vector<1x32xf32>,
    %536 = vector.extract_strided_slice %533 {offsets = [0, 32], sizes = [1, 32], strides = [1, 1]} : vector<1x256xf32> to vector<1x32xf32>
    %c1_380 = arith.constant 1 : index
    %c448_381 = arith.constant 448 : index
    %537 = vector.load %arg12[%c1_380, %c448_381] : memref<8x512xf32, #tpu.memory_space<vmem>>, vector<1x32xf32>
    tpu.vector_store %arg12[%c1_380, %c448_381], %536 {strides = array<i32>} : memref<8x512xf32, #tpu.memory_space<vmem>>, vector<1x32xf32>,
    %538 = vector.extract_strided_slice %533 {offsets = [0, 64], sizes = [1, 32], strides = [1, 1]} : vector<1x256xf32> to vector<1x32xf32>
    %c2_382 = arith.constant 2 : index
    %c448_383 = arith.constant 448 : index
    %539 = vector.load %arg12[%c2_382, %c448_383] : memref<8x512xf32, #tpu.memory_space<vmem>>, vector<1x32xf32>
    tpu.vector_store %arg12[%c2_382, %c448_383], %538 {strides = array<i32>} : memref<8x512xf32, #tpu.memory_space<vmem>>, vector<1x32xf32>,
    %540 = vector.extract_strided_slice %533 {offsets = [0, 96], sizes = [1, 32], strides = [1, 1]} : vector<1x256xf32> to vector<1x32xf32>
    %c3_384 = arith.constant 3 : index
    %c448_385 = arith.constant 448 : index
    %541 = vector.load %arg12[%c3_384, %c448_385] : memref<8x512xf32, #tpu.memory_space<vmem>>, vector<1x32xf32>
    tpu.vector_store %arg12[%c3_384, %c448_385], %540 {strides = array<i32>} : memref<8x512xf32, #tpu.memory_space<vmem>>, vector<1x32xf32>,
    %542 = vector.extract_strided_slice %533 {offsets = [0, 128], sizes = [1, 32], strides = [1, 1]} : vector<1x256xf32> to vector<1x32xf32>
    %c4_386 = arith.constant 4 : index
    %c448_387 = arith.constant 448 : index
    %543 = vector.load %arg12[%c4_386, %c448_387] : memref<8x512xf32, #tpu.memory_space<vmem>>, vector<1x32xf32>
    tpu.vector_store %arg12[%c4_386, %c448_387], %542 {strides = array<i32>} : memref<8x512xf32, #tpu.memory_space<vmem>>, vector<1x32xf32>,
    %544 = vector.extract_strided_slice %533 {offsets = [0, 160], sizes = [1, 32], strides = [1, 1]} : vector<1x256xf32> to vector<1x32xf32>
    %c5_388 = arith.constant 5 : index
    %c448_389 = arith.constant 448 : index
    %545 = vector.load %arg12[%c5_388, %c448_389] : memref<8x512xf32, #tpu.memory_space<vmem>>, vector<1x32xf32>
    tpu.vector_store %arg12[%c5_388, %c448_389], %544 {strides = array<i32>} : memref<8x512xf32, #tpu.memory_space<vmem>>, vector<1x32xf32>,
    %546 = vector.extract_strided_slice %533 {offsets = [0, 192], sizes = [1, 32], strides = [1, 1]} : vector<1x256xf32> to vector<1x32xf32>
    %c6_390 = arith.constant 6 : index
    %c448_391 = arith.constant 448 : index
    %547 = vector.load %arg12[%c6_390, %c448_391] : memref<8x512xf32, #tpu.memory_space<vmem>>, vector<1x32xf32>
    tpu.vector_store %arg12[%c6_390, %c448_391], %546 {strides = array<i32>} : memref<8x512xf32, #tpu.memory_space<vmem>>, vector<1x32xf32>,
    %548 = vector.extract_strided_slice %533 {offsets = [0, 224], sizes = [1, 32], strides = [1, 1]} : vector<1x256xf32> to vector<1x32xf32>
    %c7_392 = arith.constant 7 : index
    %c448_393 = arith.constant 448 : index
    %549 = vector.load %arg12[%c7_392, %c448_393] : memref<8x512xf32, #tpu.memory_space<vmem>>, vector<1x32xf32>
    tpu.vector_store %arg12[%c7_392, %c448_393], %548 {strides = array<i32>} : memref<8x512xf32, #tpu.memory_space<vmem>>, vector<1x32xf32>,
    %550 = vector.extract_strided_slice %144 {offsets = [78, 0], sizes = [1, 256], strides = [1, 1]} : vector<96x256xf32> to vector<1x256xf32>
    %551 = vector.extract_strided_slice %144 {offsets = [79, 0], sizes = [1, 256], strides = [1, 1]} : vector<96x256xf32> to vector<1x256xf32>
    %552 = arith.maximumf %550, %551 : vector<1x256xf32>
    %553 = vector.extract_strided_slice %144 {offsets = [90, 0], sizes = [1, 256], strides = [1, 1]} : vector<96x256xf32> to vector<1x256xf32>
    %554 = vector.extract_strided_slice %144 {offsets = [91, 0], sizes = [1, 256], strides = [1, 1]} : vector<96x256xf32> to vector<1x256xf32>
    %555 = arith.maximumf %553, %554 : vector<1x256xf32>
    %556 = arith.maximumf %552, %555 : vector<1x256xf32>
    %c0_394 = arith.constant 0 : index
    %c0_395 = arith.constant 0 : index
    %557 = vector.load %arg5[%c0_394, %c0_395] : memref<1x256xf32, #tpu.memory_space<vmem>>, vector<1x256xf32>
    %558 = arith.addf %556, %557 : vector<1x256xf32>
    %cst_396 = arith.constant 0.000000e+00 : f32
    %559 = vector.broadcast %cst_396 : f32 to vector<1x256xf32>
    %560 = arith.maximumf %558, %559 : vector<1x256xf32>
    %561 = vector.extract_strided_slice %560 {offsets = [0, 0], sizes = [1, 32], strides = [1, 1]} : vector<1x256xf32> to vector<1x32xf32>
    %c0_397 = arith.constant 0 : index
    %c480 = arith.constant 480 : index
    %562 = vector.load %arg12[%c0_397, %c480] : memref<8x512xf32, #tpu.memory_space<vmem>>, vector<1x32xf32>
    tpu.vector_store %arg12[%c0_397, %c480], %561 {strides = array<i32>} : memref<8x512xf32, #tpu.memory_space<vmem>>, vector<1x32xf32>,
    %563 = vector.extract_strided_slice %560 {offsets = [0, 32], sizes = [1, 32], strides = [1, 1]} : vector<1x256xf32> to vector<1x32xf32>
    %c1_398 = arith.constant 1 : index
    %c480_399 = arith.constant 480 : index
    %564 = vector.load %arg12[%c1_398, %c480_399] : memref<8x512xf32, #tpu.memory_space<vmem>>, vector<1x32xf32>
    tpu.vector_store %arg12[%c1_398, %c480_399], %563 {strides = array<i32>} : memref<8x512xf32, #tpu.memory_space<vmem>>, vector<1x32xf32>,
    %565 = vector.extract_strided_slice %560 {offsets = [0, 64], sizes = [1, 32], strides = [1, 1]} : vector<1x256xf32> to vector<1x32xf32>
    %c2_400 = arith.constant 2 : index
    %c480_401 = arith.constant 480 : index
    %566 = vector.load %arg12[%c2_400, %c480_401] : memref<8x512xf32, #tpu.memory_space<vmem>>, vector<1x32xf32>
    tpu.vector_store %arg12[%c2_400, %c480_401], %565 {strides = array<i32>} : memref<8x512xf32, #tpu.memory_space<vmem>>, vector<1x32xf32>,
    %567 = vector.extract_strided_slice %560 {offsets = [0, 96], sizes = [1, 32], strides = [1, 1]} : vector<1x256xf32> to vector<1x32xf32>
    %c3_402 = arith.constant 3 : index
    %c480_403 = arith.constant 480 : index
    %568 = vector.load %arg12[%c3_402, %c480_403] : memref<8x512xf32, #tpu.memory_space<vmem>>, vector<1x32xf32>
    tpu.vector_store %arg12[%c3_402, %c480_403], %567 {strides = array<i32>} : memref<8x512xf32, #tpu.memory_space<vmem>>, vector<1x32xf32>,
    %569 = vector.extract_strided_slice %560 {offsets = [0, 128], sizes = [1, 32], strides = [1, 1]} : vector<1x256xf32> to vector<1x32xf32>
    %c4_404 = arith.constant 4 : index
    %c480_405 = arith.constant 480 : index
    %570 = vector.load %arg12[%c4_404, %c480_405] : memref<8x512xf32, #tpu.memory_space<vmem>>, vector<1x32xf32>
    tpu.vector_store %arg12[%c4_404, %c480_405], %569 {strides = array<i32>} : memref<8x512xf32, #tpu.memory_space<vmem>>, vector<1x32xf32>,
    %571 = vector.extract_strided_slice %560 {offsets = [0, 160], sizes = [1, 32], strides = [1, 1]} : vector<1x256xf32> to vector<1x32xf32>
    %c5_406 = arith.constant 5 : index
    %c480_407 = arith.constant 480 : index
    %572 = vector.load %arg12[%c5_406, %c480_407] : memref<8x512xf32, #tpu.memory_space<vmem>>, vector<1x32xf32>
    tpu.vector_store %arg12[%c5_406, %c480_407], %571 {strides = array<i32>} : memref<8x512xf32, #tpu.memory_space<vmem>>, vector<1x32xf32>,
    %573 = vector.extract_strided_slice %560 {offsets = [0, 192], sizes = [1, 32], strides = [1, 1]} : vector<1x256xf32> to vector<1x32xf32>
    %c6_408 = arith.constant 6 : index
    %c480_409 = arith.constant 480 : index
    %574 = vector.load %arg12[%c6_408, %c480_409] : memref<8x512xf32, #tpu.memory_space<vmem>>, vector<1x32xf32>
    tpu.vector_store %arg12[%c6_408, %c480_409], %573 {strides = array<i32>} : memref<8x512xf32, #tpu.memory_space<vmem>>, vector<1x32xf32>,
    %575 = vector.extract_strided_slice %560 {offsets = [0, 224], sizes = [1, 32], strides = [1, 1]} : vector<1x256xf32> to vector<1x32xf32>
    %c7_410 = arith.constant 7 : index
    %c480_411 = arith.constant 480 : index
    %576 = vector.load %arg12[%c7_410, %c480_411] : memref<8x512xf32, #tpu.memory_space<vmem>>, vector<1x32xf32>
    tpu.vector_store %arg12[%c7_410, %c480_411], %575 {strides = array<i32>} : memref<8x512xf32, #tpu.memory_space<vmem>>, vector<1x32xf32>,
    %c0_412 = arith.constant 0 : index
    %c0_413 = arith.constant 0 : index
    %577 = vector.load %arg12[%c0_412, %c0_413] : memref<8x512xf32, #tpu.memory_space<vmem>>, vector<8x512xf32>
    %578 = arith.truncf %577 : vector<8x512xf32> to vector<8x512xbf16>
    %c0_414 = arith.constant 0 : index
    %c0_415 = arith.constant 0 : index
    %579 = vector.load %arg6[%c0_414, %c0_415] : memref<512x128xbf16, #tpu.memory_space<vmem>>, vector<512x128xbf16>
    %cst_416 = arith.constant dense<0.000000e+00> : vector<8x128xf32>
    %580 = tpu.matmul %578, %579, %cst_416 {dimension_numbers = #tpu.dot_dimension_numbers<[1], [0], [0], [1], [0, 0, 1, 1], [], []>} : vector<8x512xbf16>, vector<512x128xbf16>, vector<8x128xf32> -> vector<8x128xf32>
    %c0_417 = arith.constant 0 : index
    %c0_418 = arith.constant 0 : index
    %581 = vector.load %arg7[%c0_417, %c0_418] : memref<1x128xf32, #tpu.memory_space<vmem>>, vector<1x128xf32>
    %582 = vector.broadcast %581 : vector<1x128xf32> to vector<8x128xf32>
    %583 = arith.addf %580, %582 : vector<8x128xf32>
    %cst_419 = arith.constant 0.000000e+00 : f32
    %584 = vector.broadcast %cst_419 : f32 to vector<8x128xf32>
    %585 = arith.maximumf %583, %584 : vector<8x128xf32>
    %586 = arith.truncf %585 : vector<8x128xf32> to vector<8x128xbf16>
    %c0_420 = arith.constant 0 : index
    %c0_421 = arith.constant 0 : index
    %587 = vector.load %arg8[%c0_420, %c0_421] : memref<128x10xbf16, #tpu.memory_space<vmem>>, vector<128x10xbf16>
    %cst_422 = arith.constant dense<0.000000e+00> : vector<8x10xf32>
    %588 = tpu.matmul %586, %587, %cst_422 {dimension_numbers = #tpu.dot_dimension_numbers<[1], [0], [0], [1], [0, 0, 1, 1], [], []>} : vector<8x128xbf16>, vector<128x10xbf16>, vector<8x10xf32> -> vector<8x10xf32>
    %c0_423 = arith.constant 0 : index
    %c0_424 = arith.constant 0 : index
    %589 = vector.load %arg9[%c0_423, %c0_424] : memref<1x10xf32, #tpu.memory_space<vmem>>, vector<1x10xf32>
    %590 = vector.broadcast %589 : vector<1x10xf32> to vector<8x10xf32>
    %591 = arith.addf %588, %590 : vector<8x10xf32>
    %c0_425 = arith.constant 0 : index
    %c0_426 = arith.constant 0 : index
    %c0_427 = arith.constant 0 : index
    %592 = vector.load %arg10[%c0_425, %c0_426, %c0_427] : memref<1x8x10xf32, #tpu.memory_space<vmem>>, vector<1x8x10xf32>
    %593 = vector.shape_cast %592 : vector<1x8x10xf32> to vector<8x10xf32>
    %594 = vector.shape_cast %591 : vector<8x10xf32> to vector<1x8x10xf32>
    tpu.vector_store %arg10[%c0_425, %c0_426, %c0_427], %594 {strides = array<i32>} : memref<1x8x10xf32, #tpu.memory_space<vmem>>, vector<1x8x10xf32>,
    return
  }
  func.func @transform_0(%arg0: i32) -> (i32, i32, i32, i32) {
    %c0_i32 = arith.constant 0 : i32
    %c0_i32_0 = arith.constant 0 : i32
    %c0_i32_1 = arith.constant 0 : i32
    %c0_i32_2 = arith.constant 0 : i32
    return %arg0, %c0_i32, %c0_i32_0, %c0_i32_1 : i32, i32, i32, i32
  }
  func.func @transform_1(%arg0: i32) -> (i32, i32) {
    %c0_i32 = arith.constant 0 : i32
    %c0_i32_0 = arith.constant 0 : i32
    %c0_i32_1 = arith.constant 0 : i32
    return %c0_i32, %c0_i32_0 : i32, i32
  }
  func.func @transform_2(%arg0: i32) -> (i32, i32) {
    %c0_i32 = arith.constant 0 : i32
    %c0_i32_0 = arith.constant 0 : i32
    %c0_i32_1 = arith.constant 0 : i32
    return %c0_i32, %c0_i32_0 : i32, i32
  }
  func.func @transform_3(%arg0: i32) -> (i32, i32, i32) {
    %c0_i32 = arith.constant 0 : i32
    %c0_i32_0 = arith.constant 0 : i32
    %c0_i32_1 = arith.constant 0 : i32
    %c0_i32_2 = arith.constant 0 : i32
    return %c0_i32, %c0_i32_0, %c0_i32_1 : i32, i32, i32
  }
  func.func @transform_4(%arg0: i32) -> (i32, i32) {
    %c0_i32 = arith.constant 0 : i32
    %c0_i32_0 = arith.constant 0 : i32
    %c0_i32_1 = arith.constant 0 : i32
    return %c0_i32, %c0_i32_0 : i32, i32
  }
  func.func @transform_5(%arg0: i32) -> (i32, i32) {
    %c0_i32 = arith.constant 0 : i32
    %c0_i32_0 = arith.constant 0 : i32
    %c0_i32_1 = arith.constant 0 : i32
    return %c0_i32, %c0_i32_0 : i32, i32
  }
  func.func @transform_6(%arg0: i32) -> (i32, i32) {
    %c0_i32 = arith.constant 0 : i32
    %c0_i32_0 = arith.constant 0 : i32
    %c0_i32_1 = arith.constant 0 : i32
    return %c0_i32, %c0_i32_0 : i32, i32
  }
  func.func @transform_7(%arg0: i32) -> (i32, i32) {
    %c0_i32 = arith.constant 0 : i32
    %c0_i32_0 = arith.constant 0 : i32
    %c0_i32_1 = arith.constant 0 : i32
    return %c0_i32, %c0_i32_0 : i32, i32
  }
  func.func @transform_8(%arg0: i32) -> (i32, i32) {
    %c0_i32 = arith.constant 0 : i32
    %c0_i32_0 = arith.constant 0 : i32
    %c0_i32_1 = arith.constant 0 : i32
    return %c0_i32, %c0_i32_0 : i32, i32
  }
  func.func @transform_9(%arg0: i32) -> (i32, i32, i32) {
    %c0_i32 = arith.constant 0 : i32
    %c0_i32_0 = arith.constant 0 : i32
    %c0_i32_1 = arith.constant 0 : i32
    return %arg0, %c0_i32, %c0_i32_0 : i32, i32, i32
  }
}

</mosaic_0001>

<bundles_post_ra>
// kernel: simple_cnn_forward.1
= control target key start
LH: loop header
LB: loop body
LE: loop exit
PB: predicated region body
PF: predicated region fallthrough
CT: control target
= control target key end

     0   :  { %14 = vsyncpa [#allocation5], 0  ;;  %s18598_s0 = inlined_call_operand.vmem [shape: bf16[2,4,144,200], index: 0, kind: input, shape index: {}]   ;;  %s18599_s1 = inlined_call_operand.vmem [shape: bf16[200,128], index: 1, kind: input, shape index: {}]   ;;  %s18600_s2 = inlined_call_operand.vmem [shape: f32[1,128], index: 2, kind: input, shape index: {}]   ;;  %s18601_s3 = inlined_call_operand.vmem [shape: bf16[25,128,256], index: 3, kind: input, shape index: {}]   ;;  %s18602_s4 = inlined_call_operand.vmem [shape: f32[1,256], index: 4, kind: input, shape index: {}]   ;;  %s18603_s5 = inlined_call_operand.vmem [shape: bf16[512,128], index: 5, kind: input, shape index: {}]   ;;  %s18604_s6 = inlined_call_operand.vmem [shape: f32[1,128], index: 6, kind: input, shape index: {}]   ;;  %s18605_s7 = inlined_call_operand.vmem [shape: bf16[128,10], index: 7, kind: input, shape index: {}]   ;;  %s18606_s8 = inlined_call_operand.vmem [shape: f32[1,10], index: 8, kind: input, shape index: {}]   ;;  %s18607_s9 = inlined_call_operand.hbm [shape: f32[2,8,10], index: 9, kind: output, shape index: {}]  }
   0x1   :  { %16 = vsyncpa [#allocation5 + $0x1], 0  ;;  %s12368_s30 = smov 0   ;;  %s12370_s10 = smov 0  }
   0x2   :  { %s12372_s11 = smov 0   ;;  %s12374_s12 = smov 0  }
   0x3 LB: > { %s12389_s13 = sadd.s32 4294967295, %s12312_s12   ;;  %s8816_s14 = sadd.s32 4294967294, %s12312_s12   ;;  %s12312_s12 = sphi %s12374_s12, %s19295_s12   ;;  %s12308_s11 = sphi %s12372_s11, %s19294_s11   ;;  %s12304_s10 = sphi %s12370_s10, %s19293_s10   ;;  %s12300_s30 = sphi %s12368_s30, %s19292_s30  }
   0x4   : > { %s12393_s15 = sadd.s32 1, %s12312_s12   ;;  %s223_s16 = sadd.s32 1, %s12308_s11 }
   0x5   : > { %s220_s17 = ssub.s32 %s12312_s12, %s12393_s15  ;;  %p233_p0 = scmp.ne.s32.totalorder %s12308_s11, %s12304_s10 }
   0x6   : > { %p221_p1 = scmp.eq.s32.totalorder %s220_s17, 0  ;;  %p234_p2 = scmp.eq.s32.totalorder %s12389_s13, 1 }
   0x7   : > { %p239_p3 = scmp.ne.s32.totalorder %s12304_s10, %s12300_s30  ;;  %p240_p4 = scmp.eq.s32.totalorder %s8816_s14, 1 }
   0x8   : > { %s12404_s18 = scalar_select %p221_p1, %s12308_s11, %s223_s16  }
   0x9   : > { %p12406_p5 = por %p234_p2, %p233_p0  ;;  %p12410_p6 = por %p240_p4, %p239_p3 }
   0xa   : > { %18730 = sst [smem:[#allocation7_spill]] %s12404_s18  ;;  %p8819_p7 = scmp.ge.s32.totalorder %s12312_s12, 1 }
   0xb   : > { %p290_p8 = scmp.lt.s32.totalorder %s12312_s12, 3 }
   0xd   : > { %p291_p9 = pnand %p8819_p7, %p290_p8 }
   0xf   : > { %294 = sbr.rel (%p291_p9) target bundleno = 2815 (0xaff), region = 56 }
  0x14   : > { %v11529_v0 = vld [vmem:[%s18599_s1 + $0x38] sm:$0xff]  ;;  %v428_v1 = vld [vmem:[%s18599_s1 + $0x60] sm:$0xf]  ;;  %v11528_v3 = vld [vmem:[%s18599_s1 + $0x30] sm:$0xff]  ;;  %vm937_vm0 = vcmask 1043456   ;;  %p326_p10 = scmp.lt.s32.totalorder %s12389_s13, 1 }
  0x15   : > { %v802_v2 = vunpack.c.l.b16 %v428_v1  ;;  %941 = vmatpush.bf16.msra.mxu0 %v11529_v0  ;;  %v11527_v6 = vld [vmem:[%s18599_s1 + $0x28] sm:$0xff]  ;;  %v11533_v7 = vld [vmem:[%s18599_s1 + $0x58] sm:$0xff]  ;;  %v11526_v8 = vld [vmem:[%s18599_s1 + $0x20] sm:$0xff]  ;;  %vm828_vm1 = vcmask 588800   ;;  %vm1531_vm2 = vsmask.f32 7424 }
  0x16   : > { %s327_s16 = scalar_select %p326_p10, %s12389_s13, 1  ;;  %v11532_v9 = vld [vmem:[%s18599_s1 + $0x50] sm:$0xff]  ;;  %v11525_v10 = vld [vmem:[%s18599_s1 + $0x18] sm:$0xff]  ;;  %v11531_v11 = vld [vmem:[%s18599_s1 + $0x48] sm:$0xff]  ;;  %vm2156_vm3 = vsmask.f32 6400 }
  0x17   : > { %v815_v4 = vpack.c.b16 %v802_v2, %v802_v2  ;;  %v11524_v12 = vld [vmem:[%s18599_s1 + $0x10] sm:$0xff]  ;;  %v11530_v13 = vld [vmem:[%s18599_s1 + $0x40] sm:$0xff]  ;;  %v11523_v17 = vld [vmem:[%s18599_s1 + $0x8] sm:$0xff]  ;;  %vm2890_vm4 = vsmask.f32 5376  ;;  %vm2403_vm6 = vcmask 1045504  }
  0x18   : > { %s12175_s24 = smul.u32 576, %s327_s16  ;;  %v11522_v18 = vld [vmem:[%s18599_s1] sm:$0xff]  ;;  %vm3385_vm5 = vsmask.f32 4352  ;;  %vm3162_vm7 = vcmask 1044480   ;;  %vm1933_vm8 = vcmask 1046528  }
  0x19   : > { %v939_v5 = vsel %vm937_vm0, %v815_v4, 0  ;;  %942 = vmatpush.bf16.msra.mxu0 %v11528_v3  ;;  %s12315_s25 = smov 64   ;;  %s12316_s26 = smov 32   ;;  %vm7550_vm9 = vcmask 253952   ;;  %vm7594_vm10 = vcmask 516352   ;;  %vm7653_vm11 = vcmask 778752  }
  0x1a   : > { %1133 = vmatpush.bf16.msra.mxu1 %v939_v5  ;;  %s12448_s17 = scalar_lea.vmem %s18598_s0, %s12175_s24  ;;  %s12317_s27 = smov 96   ;;  %vm7696_vm12 = vcmask 1041152   ;;  %vm8739_vm13 = vcmask 80896  }
  0x1b   : > { %v11450_v14 = vld [vmem:[%s12448_s17 + $0x4] sm:$0xf]  ;;  %v8826_v15 = vld [vmem:[%s12448_s17 + $0x8] sm:$0xf0]  ;;  %v8824_v19 = vld [vmem:[%s12448_s17] sm:$0xf] }
  0x1c   : > { %v8829_v16 = vor.u32 %v11450_v14, %v8826_v15  ;;  %v11451_v20 = vld [vmem:[%s12448_s17 + $0x4] sm:$0xf0]  ;;  %v11452_v22 = vld [vmem:[%s12448_s17 + $0x14] sm:$0xf]  ;;  %v8834_v23 = vld [vmem:[%s12448_s17 + $0x18] sm:$0xf0] }
  0x1d   : > { %943 = vmatpush.bf16.msra.mxu0 %v11527_v6  ;;  %v8825_v21 = vor.u32 %v11451_v20, %v8824_v19  ;;  %v8837_v24 = vor.u32 %v11452_v22, %v8834_v23  ;;  %v8832_v25 = vld [vmem:[%s12448_s17 + $0x10] sm:$0xf]  ;;  %v11453_v26 = vld [vmem:[%s12448_s17 + $0x14] sm:$0xf0]  ;;  %v11454_v28 = vld [vmem:[%s12448_s17 + $0x24] sm:$0xf] }
  0x1e   : > { %1134 = vmatpush.bf16.msra.mxu1 %v11533_v7  ;;  %v8833_v27 = vor.u32 %v11453_v26, %v8832_v25  ;;  %v8842_v29 = vld [vmem:[%s12448_s17 + $0x28] sm:$0xf0]  ;;  %v8840_v31 = vld [vmem:[%s12448_s17 + $0x20] sm:$0xf]  ;;  %v11455_v32 = vld [vmem:[%s12448_s17 + $0x24] sm:$0xf0] }
  0x1f   : > { %v8845_v30 = vor.u32 %v11454_v28, %v8842_v29  ;;  %v8841_v33 = vor.u32 %v11455_v32, %v8840_v31  ;;  %v11456_v34 = vld [vmem:[%s12448_s17 + $0x34] sm:$0xf]  ;;  %v8850_v35 = vld [vmem:[%s12448_s17 + $0x38] sm:$0xf0]  ;;  %v8848_v37 = vld [vmem:[%s12448_s17 + $0x30] sm:$0xf] }
  0x20   : > { %v8853_v36 = vor.u32 %v11456_v34, %v8850_v35  ;;  %v11457_v38 = vld [vmem:[%s12448_s17 + $0x34] sm:$0xf0]  ;;  %v11458_v40 = vld [vmem:[%s12448_s17 + $0x44] sm:$0xf]  ;;  %v8858_v41 = vld [vmem:[%s12448_s17 + $0x48] sm:$0xf0] }
  0x21   : > { %944 = vmatpush.bf16.msra.mxu0 %v11526_v8  ;;  %v8849_v39 = vor.u32 %v11457_v38, %v8848_v37  ;;  %v8861_v42 = vor.u32 %v11458_v40, %v8858_v41  ;;  %v8856_v43 = vld [vmem:[%s12448_s17 + $0x40] sm:$0xf]  ;;  %v11459_v44 = vld [vmem:[%s12448_s17 + $0x44] sm:$0xf0]  ;;  %v11460_v46 = vld [vmem:[%s12448_s17 + $0x54] sm:$0xf] }
  0x22   : > { %1135 = vmatpush.bf16.msra.mxu1 %v11532_v9  ;;  %v8857_v45 = vor.u32 %v11459_v44, %v8856_v43  ;;  %v8866_v47 = vld [vmem:[%s12448_s17 + $0x58] sm:$0xf0]  ;;  %v8864_v49 = vld [vmem:[%s12448_s17 + $0x50] sm:$0xf]  ;;  %v11461_v50 = vld [vmem:[%s12448_s17 + $0x54] sm:$0xf0] }
  0x23   : > { %v8869_v48 = vor.u32 %v11460_v46, %v8866_v47  ;;  %v8865_v51 = vor.u32 %v11461_v50, %v8864_v49  ;;  %v11462_v52 = vld [vmem:[%s12448_s17 + $0x64] sm:$0xf]  ;;  %v8874_v53 = vld [vmem:[%s12448_s17 + $0x68] sm:$0xf0]  ;;  %v8872_v55 = vld [vmem:[%s12448_s17 + $0x60] sm:$0xf] }
  0x24   : > { %v8877_v54 = vor.u32 %v11462_v52, %v8874_v53  ;;  %v11463_v56 = vld [vmem:[%s12448_s17 + $0x64] sm:$0xf0]  ;;  %v11464_v58 = vld [vmem:[%s12448_s17 + $0x74] sm:$0xf]  ;;  %v8882_v59 = vld [vmem:[%s12448_s17 + $0x78] sm:$0xf0] }
  0x25   : > { %945 = vmatpush.bf16.msra.mxu0 %v11525_v10  ;;  %v8873_v57 = vor.u32 %v11463_v56, %v8872_v55  ;;  %v8885_v60 = vor.u32 %v11464_v58, %v8882_v59  ;;  %v8880_v61 = vld [vmem:[%s12448_s17 + $0x70] sm:$0xf]  ;;  %v11465_v62 = vld [vmem:[%s12448_s17 + $0x74] sm:$0xf0]  ;;  %v11466_v0 = vld [vmem:[%s12448_s17 + $0x84] sm:$0xf] }
  0x26   : > { %1136 = vmatpush.bf16.msra.mxu1 %v11531_v11  ;;  %v8881_v63 = vor.u32 %v11465_v62, %v8880_v61  ;;  %v8890_v1 = vld [vmem:[%s12448_s17 + $0x88] sm:$0xf0]  ;;  %v8888_v4 = vld [vmem:[%s12448_s17 + $0x80] sm:$0xf]  ;;  %v11467_v5 = vld [vmem:[%s12448_s17 + $0x84] sm:$0xf0] }
  0x27   : > { %v8893_v2 = vor.u32 %v11466_v0, %v8890_v1  ;;  %v8889_v6 = vor.u32 %v11467_v5, %v8888_v4  ;;  %v11468_v10 = vld [vmem:[%s12448_s17 + $0x94] sm:$0xf]  ;;  %v8898_v11 = vld [vmem:[%s12448_s17 + $0x98] sm:$0xf0]  ;;  %v11470_v22 = vld [vmem:[%s12448_s17 + $0xa4] sm:$0xf] }
  0x28   : > { %v8906_v23 = vld [vmem:[%s12448_s17 + $0xa8] sm:$0xf0]  ;;  %v8904_v28 = vld [vmem:[%s12448_s17 + $0xa0] sm:$0xf]  ;;  %v11471_v29 = vld [vmem:[%s12448_s17 + $0xa4] sm:$0xf0] }
  0x29   : > { %946 = vmatpush.bf16.msra.mxu0 %v11524_v12  ;;  %v8901_v12 = vor.u32 %v11468_v10, %v8898_v11  ;;  %v11472_v34 = vld [vmem:[%s12448_s17 + $0xb4] sm:$0xf]  ;;  %v8914_v35 = vld [vmem:[%s12448_s17 + $0xb8] sm:$0xf0]  ;;  %v8912_v40 = vld [vmem:[%s12448_s17 + $0xb0] sm:$0xf] }
  0x2a   : > { %1137 = vmatpush.bf16.msra.mxu1 %v11530_v13  ;;  %v11473_v41 = vld [vmem:[%s12448_s17 + $0xb4] sm:$0xf0]  ;;  %v11474_v46 = vld [vmem:[%s12448_s17 + $0xc4] sm:$0xf]  ;;  %v8922_v47 = vld [vmem:[%s12448_s17 + $0xc8] sm:$0xf0] }
  0x2b   : > { %v8920_v52 = vld [vmem:[%s12448_s17 + $0xc0] sm:$0xf]  ;;  %v11475_v53 = vld [vmem:[%s12448_s17 + $0xc4] sm:$0xf0]  ;;  %v11476_v58 = vld [vmem:[%s12448_s17 + $0xd4] sm:$0xf] }
  0x2c   : > { %v8930_v59 = vld [vmem:[%s12448_s17 + $0xd8] sm:$0xf0]  ;;  %v8928_v0 = vld [vmem:[%s12448_s17 + $0xd0] sm:$0xf]  ;;  %v11477_v1 = vld [vmem:[%s12448_s17 + $0xd4] sm:$0xf0] }
  0x2d   : > { %9158 = vmatmul.msk.bf16.vlgmr.msra.gmra.mxu1 %vm828_vm1, %v8829_v16  ;;  %947 = vmatpush.bf16.msra.mxu0 %v11523_v17  ;;  %v8896_v16 = vld [vmem:[%s12448_s17 + $0x90] sm:$0xf]  ;;  %v11469_v17 = vld [vmem:[%s12448_s17 + $0x94] sm:$0xf0]  ;;  %s323_s23 = sand.u32 1, %s12304_s10   ;;  %s11447_s24 = sshll.u32 %s12389_s13, 3 }
  0x2e   : > { %s8820_s28 = sshll.u32 %s323_s23, 3  ;;  %s8752_s14 = scalar_lea.hbm %s18607_s9, %s11447_s24 }
  0x2f   : > { %s8742_s13 = scalar_lea.sflag [#allocation5], %s323_s23 }
  0x31   : > { %948 = vmatpush.bf16.msra.mxu0 %v11522_v18  ;;  %v8897_v18 = vor.u32 %v11469_v17, %v8896_v16 }
  0x34   : > { %949 = vmatmul.bf16.vlgmr.msra.gmra.mxu0 %v8825_v21 }
  0x3d   : > { %9159 = vmatmul.msk.bf16.gmra.mxu1 %vm828_vm1, %v8837_v24  ;;  %v8909_v24 = vor.u32 %v11470_v22, %v8906_v23  ;;  %v8946_v22 = vld [vmem:[%s12448_s17 + $0xf8] sm:$0xf0] }
  0x44   : > { %954 = vmatmul.bf16.gmra.mxu0 %v8833_v27 }
  0x4d   : > { %9160 = vmatmul.msk.bf16.gmra.mxu1 %vm828_vm1, %v8845_v30  ;;  %v8905_v30 = vor.u32 %v11471_v29, %v8904_v28  ;;  %v8944_v28 = vld [vmem:[%s12448_s17 + $0xf0] sm:$0xf]  ;;  %v11481_v29 = vld [vmem:[%s12448_s17 + $0xf4] sm:$0xf0] }
  0x54   : > { %959 = vmatmul.bf16.gmra.mxu0 %v8841_v33 }
  0x5d   : > { %9161 = vmatmul.msk.bf16.gmra.mxu1 %vm828_vm1, %v8853_v36  ;;  %v8917_v36 = vor.u32 %v11472_v34, %v8914_v35  ;;  %v11482_v35 = vld [vmem:[%s12448_s17 + $0x104] sm:$0xf] }
  0x64   : > { %964 = vmatmul.bf16.gmra.mxu0 %v8849_v39 }
  0x6d   : > { %9162 = vmatmul.msk.bf16.gmra.mxu1 %vm828_vm1, %v8861_v42  ;;  %v8913_v42 = vor.u32 %v11473_v41, %v8912_v40 }
  0x74   : > { %969 = vmatmul.bf16.gmra.mxu0 %v8857_v45 }
  0x7d   : > { %9163 = vmatmul.msk.bf16.gmra.mxu1 %vm828_vm1, %v8869_v48  ;;  %v8925_v48 = vor.u32 %v11474_v46, %v8922_v47 }
  0x84   : > { %974 = vmatmul.bf16.gmra.mxu0 %v8865_v51 }
  0x8d   : > { %9164 = vmatmul.msk.bf16.gmra.mxu1 %vm828_vm1, %v8877_v54  ;;  %v8921_v54 = vor.u32 %v11475_v53, %v8920_v52 }
  0x94   : > { %979 = vmatmul.bf16.gmra.mxu0 %v8873_v57 }
  0x9d   : > { %9165 = vmatmul.msk.bf16.gmra.mxu1 %vm828_vm1, %v8885_v60  ;;  %v8933_v60 = vor.u32 %v11476_v58, %v8930_v59  ;;  %v11485_v58 = vld [vmem:[%s12448_s17 + $0x114] sm:$0xf0] }
  0xa4   : > { %984 = vmatmul.bf16.gmra.mxu0 %v8881_v63 }
  0xaa   : > { %v1139_v3 = vpop.f32.mrf.mxu1 }
  0xad   : > { %9166 = vmatmul.msk.bf16.gmra.mxu1 %vm828_vm1, %v8893_v2  ;;  %v8929_v2 = vor.u32 %v11477_v1, %v8928_v0  ;;  %v11486_v1 = vld [vmem:[%s12448_s17 + $0x124] sm:$0xf] }
  0xb1   : > { %v950_v7 = vpop.f32.mrf.mxu0 }
  0xb2   : > { %v1141_v8 = vpop.f32.mrf.mxu1  ;;  %v12507_v9 = vadd.f32 %v1139_v3, %v950_v7  ;;  %v8938_v7 = vld [vmem:[%s12448_s17 + $0xe8] sm:$0xf0] }
  0xb4   : > { %989 = vmatmul.bf16.gmra.mxu0 %v8889_v6  ;;  %v11478_v6 = vld [vmem:[%s12448_s17 + $0xe4] sm:$0xf] }
  0xb9   : > { %v952_v13 = vpop.f32.mrf.mxu0 }
  0xba   : > { %v1144_v14 = vpop.f32.mrf.mxu1  ;;  %v12511_v15 = vadd.f32 %v1141_v8, %v952_v13  ;;  %v8941_v8 = vor.u32 %v11478_v6, %v8938_v7  ;;  %v8936_v13 = vld [vmem:[%s12448_s17 + $0xe0] sm:$0xf] }
  0xbd   : > { %9167 = vmatmul.msk.bf16.gmra.mxu1 %vm828_vm1, %v8901_v12 }
  0xc1   : > { %v955_v19 = vpop.f32.mrf.mxu0 }
  0xc2   : > { %v1146_v20 = vpop.f32.mrf.mxu1  ;;  %v12516_v21 = vadd.f32 %v1144_v14, %v955_v19  ;;  %v11479_v14 = vld [vmem:[%s12448_s17 + $0xe4] sm:$0xf0] }
  0xc3   : > { %v8937_v16 = vor.u32 %v11479_v14, %v8936_v13 }
  0xc4   : > { %994 = vmatmul.bf16.gmra.mxu0 %v8897_v18 }
  0xc9   : > { %v957_v25 = vpop.f32.mrf.mxu0 }
  0xca   : > { %v1149_v26 = vpop.f32.mrf.mxu1  ;;  %v12520_v27 = vadd.f32 %v1146_v20, %v957_v25  ;;  %v11480_v20 = vld [vmem:[%s12448_s17 + $0xf4] sm:$0xf] }
  0xcb   : > { %v8949_v23 = vor.u32 %v11480_v20, %v8946_v22  ;;  %v11488_v20 = vld [vmem:[%s12448_s17 + $0x134] sm:$0xf]  ;;  %v8978_v22 = vld [vmem:[%s12448_s17 + $0x138] sm:$0xf0] }
  0xcd   : > { %9168 = vmatmul.msk.bf16.gmra.mxu1 %vm828_vm1, %v8909_v24 }
  0xd1   : > { %v960_v31 = vpop.f32.mrf.mxu0 }
  0xd2   : > { %v1151_v32 = vpop.f32.mrf.mxu1  ;;  %v12525_v33 = vadd.f32 %v1149_v26, %v960_v31 }
  0xd4   : > { %999 = vmatmul.bf16.gmra.mxu0 %v8905_v30  ;;  %v8945_v30 = vor.u32 %v11481_v29, %v8944_v28 }
  0xd9   : > { %v962_v37 = vpop.f32.mrf.mxu0 }
  0xda   : > { %v1154_v38 = vpop.f32.mrf.mxu1  ;;  %v12529_v39 = vadd.f32 %v1151_v32, %v962_v37 }
  0xdd   : > { %9169 = vmatmul.msk.bf16.gmra.mxu1 %vm828_vm1, %v8917_v36  ;;  %v8954_v36 = vld [vmem:[%s12448_s17 + $0x108] sm:$0xf0] }
  0xde   : > { %v8957_v37 = vor.u32 %v11482_v35, %v8954_v36 }
  0xe1   : > { %v965_v43 = vpop.f32.mrf.mxu0 }
  0xe2   : > { %v1156_v44 = vpop.f32.mrf.mxu1  ;;  %v12534_v45 = vadd.f32 %v1154_v38, %v965_v43  ;;  %v11483_v43 = vld [vmem:[%s12448_s17 + $0x104] sm:$0xf0] }
  0xe4   : > { %1004 = vmatmul.bf16.gmra.mxu0 %v8913_v42  ;;  %v8952_v42 = vld [vmem:[%s12448_s17 + $0x100] sm:$0xf] }
  0xe9   : > { %v967_v49 = vpop.f32.mrf.mxu0 }
  0xea   : > { %v1159_v50 = vpop.f32.mrf.mxu1  ;;  %v12538_v51 = vadd.f32 %v1156_v44, %v967_v49  ;;  %v8953_v44 = vor.u32 %v11483_v43, %v8952_v42  ;;  %v11484_v49 = vld [vmem:[%s12448_s17 + $0x114] sm:$0xf]  ;;  %v8986_v42 = vld [vmem:[%s12448_s17 + $0x148] sm:$0xf0] }
  0xed   : > { %9170 = vmatmul.msk.bf16.gmra.mxu1 %vm828_vm1, %v8925_v48 }
  0xf1   : > { %v970_v55 = vpop.f32.mrf.mxu0 }
  0xf2   : > { %v1161_v56 = vpop.f32.mrf.mxu1  ;;  %v12543_v57 = vadd.f32 %v1159_v50, %v970_v55  ;;  %v8962_v50 = vld [vmem:[%s12448_s17 + $0x118] sm:$0xf0] }
  0xf3   : > { %v8965_v52 = vor.u32 %v11484_v49, %v8962_v50  ;;  %v8984_v50 = vld [vmem:[%s12448_s17 + $0x140] sm:$0xf] }
  0xf4   : > { %1009 = vmatmul.bf16.gmra.mxu0 %v8921_v54 }
  0xf9   : > { %v972_v61 = vpop.f32.mrf.mxu0 }
  0xfa   : > { %v1164_v62 = vpop.f32.mrf.mxu1  ;;  %v12547_v63 = vadd.f32 %v1161_v56, %v972_v61  ;;  %v8960_v56 = vld [vmem:[%s12448_s17 + $0x110] sm:$0xf] }
  0xfb   : > { %v8961_v59 = vor.u32 %v11485_v58, %v8960_v56 }
  0xfd   : > { %9171 = vmatmul.msk.bf16.gmra.mxu1 %vm828_vm1, %v8933_v60 }
 0x101   : > { %v975_v3 = vpop.f32.mrf.mxu0 }
 0x102   : > { %v1166_v4 = vpop.f32.mrf.mxu1  ;;  %v12552_v5 = vadd.f32 %v1164_v62, %v975_v3 }
 0x104   : > { %1014 = vmatmul.bf16.gmra.mxu0 %v8929_v2  ;;  %v8970_v2 = vld [vmem:[%s12448_s17 + $0x128] sm:$0xf0] }
 0x105   : > { %v8973_v3 = vor.u32 %v11486_v1, %v8970_v2 }
 0x109   : > { %v977_v10 = vpop.f32.mrf.mxu0 }
 0x10a   : > { %v1169_v11 = vpop.f32.mrf.mxu1  ;;  %v12556_v12 = vadd.f32 %v1166_v4, %v977_v10  ;;  %v8968_v10 = vld [vmem:[%s12448_s17 + $0x120] sm:$0xf] }
 0x10d   : > { %9172 = vmatmul.msk.bf16.gmra.mxu1 %vm828_vm1, %v8941_v8 }
 0x111   : > { %v980_v17 = vpop.f32.mrf.mxu0 }
 0x112   : > { %v1171_v18 = vpop.f32.mrf.mxu1  ;;  %v12561_v19 = vadd.f32 %v1169_v11, %v980_v17  ;;  %v11487_v11 = vld [vmem:[%s12448_s17 + $0x124] sm:$0xf0] }
 0x113   : > { %v8969_v13 = vor.u32 %v11487_v11, %v8968_v10  ;;  %v8992_v10 = vld [vmem:[%s12448_s17 + $0x150] sm:$0xf]  ;;  %v11493_v11 = vld [vmem:[%s12448_s17 + $0x154] sm:$0xf0] }
 0x114   : > { %1019 = vmatmul.bf16.gmra.mxu0 %v8937_v16 }
 0x119   : > { %v982_v24 = vpop.f32.mrf.mxu0 }
 0x11a   : > { %v1174_v25 = vpop.f32.mrf.mxu1  ;;  %v12565_v26 = vadd.f32 %v1171_v18, %v982_v24 }
 0x11d   : > { %9173 = vmatmul.msk.bf16.gmra.mxu1 %vm828_vm1, %v8949_v23  ;;  %v8981_v23 = vor.u32 %v11488_v20, %v8978_v22 }
 0x121   : > { %v985_v31 = vpop.f32.mrf.mxu0 }
 0x122   : > { %v1176_v32 = vpop.f32.mrf.mxu1  ;;  %v12570_v34 = vadd.f32 %v1174_v25, %v985_v31  ;;  %v11489_v31 = vld [vmem:[%s12448_s17 + $0x134] sm:$0xf0] }
 0x124   : > { %1024 = vmatmul.bf16.gmra.mxu0 %v8945_v30  ;;  %v8976_v30 = vld [vmem:[%s12448_s17 + $0x130] sm:$0xf] }
 0x129   : > { %v987_v38 = vpop.f32.mrf.mxu0 }
 0x12a   : > { %v1179_v40 = vpop.f32.mrf.mxu1  ;;  %v12574_v41 = vadd.f32 %v1176_v32, %v987_v38  ;;  %v8977_v32 = vor.u32 %v11489_v31, %v8976_v30 }
 0x12d   : > { %9174 = vmatmul.msk.bf16.gmra.mxu1 %vm828_vm1, %v8957_v37 }
 0x131   : > { %v990_v46 = vpop.f32.mrf.mxu0 }
 0x132   : > { %v1181_v47 = vpop.f32.mrf.mxu1  ;;  %v12579_v48 = vadd.f32 %v1179_v40, %v990_v46  ;;  %v11490_v40 = vld [vmem:[%s12448_s17 + $0x144] sm:$0xf] }
 0x133   : > { %v8989_v43 = vor.u32 %v11490_v40, %v8986_v42  ;;  %v11495_v40 = vld [vmem:[%s12448_s17 + $0x164] sm:$0xf0] }
 0x134   : > { %18733 = vst [vmem:[#allocation8_spill] sm:$0xff] %v12579_v48  ;;  %1029 = vmatmul.bf16.gmra.mxu0 %v8953_v44 }
 0x139   : > { %v992_v53 = vpop.f32.mrf.mxu0 }
 0x13a   : > { %v1184_v54 = vpop.f32.mrf.mxu1  ;;  %v12583_v55 = vadd.f32 %v1181_v47, %v992_v53 }
 0x13c   : > { %18734 = vst [vmem:[#allocation9_spill] sm:$0xff] %v12583_v55 }
 0x13d   : > { %9175 = vmatmul.msk.bf16.gmra.mxu1 %vm828_vm1, %v8965_v52  ;;  %v11491_v52 = vld [vmem:[%s12448_s17 + $0x144] sm:$0xf0] }
 0x13e   : > { %v8985_v53 = vor.u32 %v11491_v52, %v8984_v50  ;;  %v11496_v52 = vld [vmem:[%s12448_s17 + $0x174] sm:$0xf] }
 0x141   : > { %v995_v60 = vpop.f32.mrf.mxu0 }
 0x142   : > { %v1186_v61 = vpop.f32.mrf.mxu1  ;;  %v12588_v62 = vadd.f32 %v1184_v54, %v995_v60  ;;  %v11492_v60 = vld [vmem:[%s12448_s17 + $0x154] sm:$0xf] }
 0x144   : > { %1034 = vmatmul.bf16.gmra.mxu0 %v8961_v59  ;;  %v9074_v59 = vld [vmem:[%s12448_s17 + $0x1f8] sm:$0xf0] }
 0x149   : > { %v997_v4 = vpop.f32.mrf.mxu0 }
 0x14a   : > { %v1189_v6 = vpop.f32.mrf.mxu1  ;;  %v12594_v7 = vadd.f32 %v1186_v61, %v997_v4  ;;  %v8994_v61 = vld [vmem:[%s12448_s17 + $0x158] sm:$0xf0] }
 0x14b   : > { %v8997_v1 = vor.u32 %v11492_v60, %v8994_v61 }
 0x14d   : > { %9176 = vmatmul.msk.bf16.gmra.mxu1 %vm828_vm1, %v8973_v3 }
 0x151   : > { %v1000_v14 = vpop.f32.mrf.mxu0 }
 0x152   : > { %v1191_v16 = vpop.f32.mrf.mxu1  ;;  %v12601_v17 = vadd.f32 %v1189_v6, %v1000_v14  ;;  %v11511_v6 = vld [vmem:[%s12448_s17 + $0x1e4] sm:$0xf0] }
 0x154   : > { %1039 = vmatmul.bf16.gmra.mxu0 %v8969_v13  ;;  %v8993_v13 = vor.u32 %v11493_v11, %v8992_v10 }
 0x159   : > { %v1002_v24 = vpop.f32.mrf.mxu0 }
 0x15a   : > { %v1194_v25 = vpop.f32.mrf.mxu1  ;;  %v12607_v28 = vadd.f32 %v1191_v16, %v1002_v24  ;;  %v9002_v24 = vld [vmem:[%s12448_s17 + $0x168] sm:$0xf0] }
 0x15d   : > { %9177 = vmatmul.msk.bf16.gmra.mxu1 %vm828_vm1, %v8981_v23  ;;  %v11494_v23 = vld [vmem:[%s12448_s17 + $0x164] sm:$0xf] }
 0x161   : > { %v1005_v35 = vpop.f32.mrf.mxu0 }
 0x162   : > { %v1196_v36 = vpop.f32.mrf.mxu1  ;;  %v12614_v37 = vadd.f32 %v1194_v25, %v1005_v35  ;;  %v9005_v25 = vor.u32 %v11494_v23, %v9002_v24  ;;  %v11498_v23 = vld [vmem:[%s12448_s17 + $0x184] sm:$0xf]  ;;  %v9018_v24 = vld [vmem:[%s12448_s17 + $0x188] sm:$0xf0] }
 0x164   : > { %1044 = vmatmul.bf16.gmra.mxu0 %v8977_v32 }
 0x169   : > { %v1007_v44 = vpop.f32.mrf.mxu0 }
 0x16a   : > { %v1199_v46 = vpop.f32.mrf.mxu1  ;;  %v12620_v47 = vadd.f32 %v1196_v36, %v1007_v44  ;;  %v9000_v36 = vld [vmem:[%s12448_s17 + $0x160] sm:$0xf] }
 0x16b   : > { %v9001_v42 = vor.u32 %v11495_v40, %v9000_v36 }
 0x16d   : > { %9178 = vmatmul.msk.bf16.gmra.mxu1 %vm828_vm1, %v8989_v43 }
 0x171   : > { %v1010_v54 = vpop.f32.mrf.mxu0 }
 0x172   : > { %v1201_v56 = vpop.f32.mrf.mxu1  ;;  %v12627_v58 = vadd.f32 %v1199_v46, %v1010_v54 }
 0x174   : > { %1049 = vmatmul.bf16.gmra.mxu0 %v8985_v53  ;;  %v9010_v53 = vld [vmem:[%s12448_s17 + $0x178] sm:$0xf0] }
 0x175   : > { %v9013_v54 = vor.u32 %v11496_v52, %v9010_v53 }
 0x179   : > { %v1012_v2 = vpop.f32.mrf.mxu0 }
 0x17a   : > { %v1204_v3 = vpop.f32.mrf.mxu1  ;;  %v12633_v4 = vadd.f32 %v1201_v56, %v1012_v2  ;;  %v9008_v2 = vld [vmem:[%s12448_s17 + $0x170] sm:$0xf] }
 0x17d   : > { %9179 = vmatmul.msk.bf16.gmra.mxu1 %vm828_vm1, %v8997_v1 }
 0x181   : > { %v1015_v14 = vpop.f32.mrf.mxu0 }
 0x182   : > { %v1206_v16 = vpop.f32.mrf.mxu1  ;;  %v12640_v20 = vadd.f32 %v1204_v3, %v1015_v14  ;;  %v11497_v3 = vld [vmem:[%s12448_s17 + $0x174] sm:$0xf0] }
 0x183   : > { %v9009_v10 = vor.u32 %v11497_v3, %v9008_v2  ;;  %v9026_v2 = vld [vmem:[%s12448_s17 + $0x198] sm:$0xf0] }
 0x184   : > { %1054 = vmatmul.bf16.gmra.mxu0 %v8993_v13 }
 0x189   : > { %v1017_v30 = vpop.f32.mrf.mxu0 }
 0x18a   : > { %v1209_v31 = vpop.f32.mrf.mxu1  ;;  %v12646_v32 = vadd.f32 %v1206_v16, %v1017_v30 }
 0x18d   : > { %9180 = vmatmul.msk.bf16.gmra.mxu1 %vm828_vm1, %v9005_v25  ;;  %v9021_v25 = vor.u32 %v11498_v23, %v9018_v24  ;;  %v9024_v24 = vld [vmem:[%s12448_s17 + $0x190] sm:$0xf] }
 0x191   : > { %v1020_v43 = vpop.f32.mrf.mxu0 }
 0x192   : > { %v1211_v44 = vpop.f32.mrf.mxu1  ;;  %v12653_v46 = vadd.f32 %v1209_v31, %v1020_v43  ;;  %v11499_v43 = vld [vmem:[%s12448_s17 + $0x184] sm:$0xf0] }
 0x194   : > { %1059 = vmatmul.bf16.gmra.mxu0 %v9001_v42  ;;  %v9016_v42 = vld [vmem:[%s12448_s17 + $0x180] sm:$0xf] }
 0x199   : > { %v1022_v56 = vpop.f32.mrf.mxu0 }
 0x19a   : > { %v1214_v60 = vpop.f32.mrf.mxu1  ;;  %v12659_v61 = vadd.f32 %v1211_v44, %v1022_v56  ;;  %v9017_v44 = vor.u32 %v11499_v43, %v9016_v42 }
 0x19d   : > { %9181 = vmatmul.msk.bf16.gmra.mxu1 %vm828_vm1, %v9013_v54 }
 0x1a1   : > { %v1025_v11 = vpop.f32.mrf.mxu0 }
 0x1a2   : > { %v1216_v13 = vpop.f32.mrf.mxu1  ;;  %v12666_v14 = vadd.f32 %v1214_v60, %v1025_v11  ;;  %v11500_v60 = vld [vmem:[%s12448_s17 + $0x194] sm:$0xf] }
 0x1a3   : > { %v9029_v3 = vor.u32 %v11500_v60, %v9026_v2 }
 0x1a4   : > { %1064 = vmatmul.bf16.gmra.mxu0 %v9009_v10 }
 0x1a9   : > { %v1027_v30 = vpop.f32.mrf.mxu0 }
 0x1aa   : > { %v1219_v31 = vpop.f32.mrf.mxu1  ;;  %v12672_v36 = vadd.f32 %v1216_v13, %v1027_v30 }
 0x1ad   : > { %9182 = vmatmul.msk.bf16.gmra.mxu1 %vm828_vm1, %v9021_v25  ;;  %v11501_v25 = vld [vmem:[%s12448_s17 + $0x194] sm:$0xf0] }
 0x1ae   : > { %v9025_v30 = vor.u32 %v11501_v25, %v9024_v24  ;;  %v11503_v25 = vld [vmem:[%s12448_s17 + $0x1a4] sm:$0xf0] }
 0x1b1   : > { %v1030_v52 = vpop.f32.mrf.mxu0 }
 0x1b2   : > { %v1221_v53 = vpop.f32.mrf.mxu1  ;;  %v12679_v54 = vadd.f32 %v1219_v31, %v1030_v52  ;;  %v11502_v52 = vld [vmem:[%s12448_s17 + $0x1a4] sm:$0xf] }
 0x1b4   : > { %1069 = vmatmul.bf16.gmra.mxu0 %v9017_v44 }
 0x1b9   : > { %v1032_v10 = vpop.f32.mrf.mxu0 }
 0x1ba   : > { %v1224_v11 = vpop.f32.mrf.mxu1  ;;  %v12685_v13 = vadd.f32 %v1221_v53, %v1032_v10  ;;  %v9034_v53 = vld [vmem:[%s12448_s17 + $0x1a8] sm:$0xf0] }
 0x1bb   : > { %v9037_v60 = vor.u32 %v11502_v52, %v9034_v53  ;;  %v11504_v52 = vld [vmem:[%s12448_s17 + $0x1b4] sm:$0xf] }
 0x1bc   : > { %18735 = vst [vmem:[#allocation10_spill] sm:$0xff] %v12685_v13  ;;  %v11562_v13 = vld [vmem:[%s18601_s3 + $0xb4] sm:$0xf0] }
 0x1bd   : > { %9183 = vmatmul.msk.bf16.gmra.mxu1 %vm828_vm1, %v9029_v3 }
 0x1c1   : > { %v1035_v31 = vpop.f32.mrf.mxu0 }
 0x1c2   : > { %v1226_v42 = vpop.f32.mrf.mxu1  ;;  %v12692_v43 = vadd.f32 %v1224_v11, %v1035_v31  ;;  %v9032_v11 = vld [vmem:[%s12448_s17 + $0x1a0] sm:$0xf] }
 0x1c3   : > { %v9033_v31 = vor.u32 %v11503_v25, %v9032_v11  ;;  %v11505_v11 = vld [vmem:[%s12448_s17 + $0x1b4] sm:$0xf0] }
 0x1c4   : > { %18736 = vst [vmem:[#allocation11_spill] sm:$0xff] %v12692_v43  ;;  %1074 = vmatmul.bf16.gmra.mxu0 %v9025_v30 }
 0x1c9   : > { %v1037_v2 = vpop.f32.mrf.mxu0 }
 0x1ca   : > { %v1229_v3 = vpop.f32.mrf.mxu1  ;;  %v12698_v10 = vadd.f32 %v1226_v42, %v1037_v2  ;;  %v9042_v42 = vld [vmem:[%s12448_s17 + $0x1b8] sm:$0xf0] }
 0x1cb   : > { %v9045_v53 = vor.u32 %v11504_v52, %v9042_v42  ;;  %v9050_v52 = vld [vmem:[%s12448_s17 + $0x1c8] sm:$0xf0] }
 0x1cc   : > { %18737 = vst [vmem:[#allocation12_spill] sm:$0xff] %v12698_v10  ;;  %v11519_v10 = vld [vmem:[%s12448_s17 + $0x224] sm:$0xf0] }
 0x1cd   : > { %9184 = vmatmul.msk.bf16.gmra.mxu1 %vm828_vm1, %v9037_v60  ;;  %v9040_v60 = vld [vmem:[%s12448_s17 + $0x1b0] sm:$0xf] }
 0x1ce   : > { %v9041_v25 = vor.u32 %v11505_v11, %v9040_v60  ;;  %v11507_v60 = vld [vmem:[%s12448_s17 + $0x1c4] sm:$0xf0] }
 0x1d1   : > { %v1040_v30 = vpop.f32.mrf.mxu0 }
 0x1d2   : > { %v1231_v44 = vpop.f32.mrf.mxu1  ;;  %v12705_v23 = vadd.f32 %v1229_v3, %v1040_v30 }
 0x1d4   : > { %1079 = vmatmul.bf16.gmra.mxu0 %v9033_v31  ;;  %v11506_v31 = vld [vmem:[%s12448_s17 + $0x1c4] sm:$0xf] }
 0x1d5   : > { %v9053_v42 = vor.u32 %v11506_v31, %v9050_v52  ;;  %v9058_v31 = vld [vmem:[%s12448_s17 + $0x1d8] sm:$0xf0] }
 0x1d9   : > { %v1042_v2 = vpop.f32.mrf.mxu0 }
 0x1da   : > { %v1234_v56 = vpop.f32.mrf.mxu1  ;;  %v12709_v24 = vadd.f32 %v1231_v44, %v1042_v2 }
 0x1dd   : > { %9185 = vmatmul.msk.bf16.gmra.mxu1 %vm828_vm1, %v9045_v53  ;;  %v9048_v53 = vld [vmem:[%s12448_s17 + $0x1c0] sm:$0xf] }
 0x1de   : > { %v9049_v11 = vor.u32 %v11507_v60, %v9048_v53  ;;  %v11509_v53 = vld [vmem:[%s12448_s17 + $0x1d4] sm:$0xf0] }
 0x1e1   : > { %v1045_v40 = vpop.f32.mrf.mxu0 }
 0x1e2   : > { %v1236_v3 = vpop.f32.mrf.mxu1  ;;  %v12714_v30 = vadd.f32 %v1234_v56, %v1045_v40 }
 0x1e4   : > { %1084 = vmatmul.bf16.gmra.mxu0 %v9041_v25  ;;  %v11508_v25 = vld [vmem:[%s12448_s17 + $0x1d4] sm:$0xf] }
 0x1e5   : > { %v9061_v52 = vor.u32 %v11508_v25, %v9058_v31  ;;  %v9066_v25 = vld [vmem:[%s12448_s17 + $0x1e8] sm:$0xf0] }
 0x1e9   : > { %v1047_v16 = vpop.f32.mrf.mxu0 }
 0x1ea   : > { %v1239_v44 = vpop.f32.mrf.mxu1  ;;  %v12718_v2 = vadd.f32 %v1236_v3, %v1047_v16 }
 0x1ed   : > { %9186 = vmatmul.msk.bf16.gmra.mxu1 %vm828_vm1, %v9053_v42  ;;  %v9056_v42 = vld [vmem:[%s12448_s17 + $0x1d0] sm:$0xf] }
 0x1ee   : > { %v9057_v60 = vor.u32 %v11509_v53, %v9056_v42 }
 0x1f1   : > { %v1050_v1 = vpop.f32.mrf.mxu0 }
 0x1f2   : > { %v1241_v40 = vpop.f32.mrf.mxu1  ;;  %v12723_v56 = vadd.f32 %v1239_v44, %v1050_v1 }
 0x1f4   : > { %1089 = vmatmul.bf16.gmra.mxu0 %v9049_v11  ;;  %v11510_v11 = vld [vmem:[%s12448_s17 + $0x1e4] sm:$0xf] }
 0x1f5   : > { %v9069_v31 = vor.u32 %v11510_v11, %v9066_v25 }
 0x1f9   : > { %v1052_v50 = vpop.f32.mrf.mxu0 }
 0x1fa   : > { %v1244_v16 = vpop.f32.mrf.mxu1  ;;  %v12727_v3 = vadd.f32 %v1241_v40, %v1052_v50 }
 0x1fd   : > { %9187 = vmatmul.msk.bf16.gmra.mxu1 %vm828_vm1, %v9061_v52  ;;  %v9064_v52 = vld [vmem:[%s12448_s17 + $0x1e0] sm:$0xf] }
 0x1fe   : > { %v9065_v42 = vor.u32 %v11511_v6, %v9064_v52  ;;  %v9752_v6 = vld [vmem:[%s18601_s3 + $0x370] sm:$0xf] }
 0x201   : > { %v1055_v35 = vpop.f32.mrf.mxu0 }
 0x202   : > { %v1246_v1 = vpop.f32.mrf.mxu1  ;;  %v12732_v44 = vadd.f32 %v1244_v16, %v1055_v35 }
 0x204   : > { %1094 = vmatmul.bf16.gmra.mxu0 %v9057_v60  ;;  %v11512_v60 = vld [vmem:[%s12448_s17 + $0x1f4] sm:$0xf] }
 0x205   : > { %v9077_v49 = vor.u32 %v11512_v60, %v9074_v59  ;;  %v9754_v60 = vld [vmem:[%s18601_s3 + $0x378] sm:$0xf0] }
 0x209   : > { %v1057_v22 = vpop.f32.mrf.mxu0 }
 0x20a   : > { %v1249_v50 = vpop.f32.mrf.mxu1  ;;  %v12736_v40 = vadd.f32 %v1246_v1, %v1057_v22  ;;  %v11650_v1 = vld [vmem:[%s18601_s3 + $0x374] sm:$0xf0] }
 0x20b   : > { %v9753_v52 = vor.u32 %v11650_v1, %v9752_v6  ;;  %v9082_v6 = vld [vmem:[%s12448_s17 + $0x208] sm:$0xf0] }
 0x20d   : > { %9188 = vmatmul.msk.bf16.gmra.mxu1 %vm828_vm1, %v9069_v31  ;;  %v9072_v31 = vld [vmem:[%s12448_s17 + $0x1f0] sm:$0xf] }
 0x20e   : > { %3039 = vmatpush.bf16.msrb.mxu1 %v9753_v52 }
 0x211   : > { %v1060_v53 = vpop.f32.mrf.mxu0 }
 0x212   : > { %v1251_v35 = vpop.f32.mrf.mxu1  ;;  %v12741_v16 = vadd.f32 %v1249_v50, %v1060_v53  ;;  %v11513_v50 = vld [vmem:[%s12448_s17 + $0x1f4] sm:$0xf0] }
 0x213   : > { %v9073_v59 = vor.u32 %v11513_v50, %v9072_v31 }
 0x214   : > { %1099 = vmatmul.bf16.gmra.mxu0 %v9065_v42 }
 0x219   : > { %v1062_v11 = vpop.f32.mrf.mxu0 }
 0x21a   : > { %v1254_v25 = vpop.f32.mrf.mxu1  ;;  %v12745_v22 = vadd.f32 %v1251_v35, %v1062_v11  ;;  %v11514_v11 = vld [vmem:[%s12448_s17 + $0x204] sm:$0xf] }
 0x21b   : > { %v9085_v31 = vor.u32 %v11514_v11, %v9082_v6 }
 0x21d   : > { %9189 = vmatmul.msk.bf16.gmra.mxu1 %vm828_vm1, %v9077_v49  ;;  %v11649_v49 = vld [vmem:[%s18601_s3 + $0x374] sm:$0xf] }
 0x21e   : > { %v9757_v1 = vor.u32 %v11649_v49, %v9754_v60  ;;  %v11516_v49 = vld [vmem:[%s12448_s17 + $0x214] sm:$0xf]  ;;  %v9090_v60 = vld [vmem:[%s12448_s17 + $0x218] sm:$0xf0] }
 0x21f   : > { %v9093_v11 = vor.u32 %v11516_v49, %v9090_v60 }
 0x220   : > { %3078 = vmatpush.bf16.msrb.mxu0 %v9757_v1  ;;  %v9088_v1 = vld [vmem:[%s12448_s17 + $0x210] sm:$0xf] }
 0x221   : > { %v1065_v42 = vpop.f32.mrf.mxu0 }
 0x222   : > { %v1256_v53 = vpop.f32.mrf.mxu1  ;;  %v12756_v35 = vadd.f32 %v1254_v25, %v1065_v42  ;;  %v11515_v42 = vld [vmem:[%s12448_s17 + $0x204] sm:$0xf0] }
 0x224   : > { %1104 = vmatmul.bf16.gmra.mxu0 %v9073_v59  ;;  %v9080_v59 = vld [vmem:[%s12448_s17 + $0x200] sm:$0xf] }
 0x225   : > { %v9081_v38 = vor.u32 %v11515_v42, %v9080_v59 }
 0x229   : > { %v1067_v50 = vpop.f32.mrf.mxu0 }
 0x22a   : > { %v1259_v52 = vpop.f32.mrf.mxu1  ;;  %v12766_v25 = vadd.f32 %v1256_v53, %v1067_v50 }
 0x22d   : > { %9190 = vmatmul.msk.bf16.gmra.mxu1 %vm828_vm1, %v9085_v31  ;;  %v11517_v31 = vld [vmem:[%s12448_s17 + $0x214] sm:$0xf0] }
 0x22e   : > { %v9089_v50 = vor.u32 %v11517_v31, %v9088_v1 }
 0x231   : > { %v1070_v29 = vpop.f32.mrf.mxu0 }
 0x232   : > { %v12771_v18 = vpop.f32.mrf.mxu1  ;;  %v12773_v8 = vadd.f32 %v1259_v52, %v1070_v29  ;;  %v9098_v52 = vld [vmem:[%s12448_s17 + $0x228] sm:$0xf0] }
 0x234   : > { %1109 = vmatmul.bf16.gmra.mxu0 %v9081_v38  ;;  %v11518_v38 = vld [vmem:[%s12448_s17 + $0x224] sm:$0xf] }
 0x235   : > { %v9101_v0 = vor.u32 %v11518_v38, %v9098_v52  ;;  %v11520_v52 = vld [vmem:[%s12448_s17 + $0x234] sm:$0xf] }
 0x239   : > { %v12777_v6 = vpop.f32.mrf.mxu0 }
 0x23a   : > { %v1264_v53 = vpop.f32.mrf.mxu1 }
 0x23d   : > { %9191 = vmatmul.msk.bf16.gmra.mxu1 %vm828_vm1, %v9093_v11  ;;  %v9096_v11 = vld [vmem:[%s12448_s17 + $0x220] sm:$0xf] }
 0x23e   : > { %v9097_v55 = vor.u32 %v11519_v10, %v9096_v11  ;;  %v9290_v10 = vld [vmem:[%s18601_s3 + $0xf8] sm:$0xf0]  ;;  %v9280_v11 = vld [vmem:[%s18601_s3 + $0xe0] sm:$0xf] }
 0x241   : > { %v1075_v59 = vpop.f32.mrf.mxu0 }
 0x242   : > { %v12782_v42 = vpop.f32.mrf.mxu1  ;;  %v12784_v29 = vadd.f32 %v1264_v53, %v1075_v59  ;;  %v9288_v53 = vld [vmem:[%s18601_s3 + $0xf0] sm:$0xf] }
 0x244   : > { %1114 = vmatmul.bf16.gmra.mxu0 %v9089_v50  ;;  %v11570_v50 = vld [vmem:[%s18601_s3 + $0xf4] sm:$0xf0] }
 0x245   : > { %v9289_v59 = vor.u32 %v11570_v50, %v9288_v53  ;;  %v11567_v53 = vld [vmem:[%s18601_s3 + $0xe4] sm:$0xf] }
 0x247   : > { %1670 = vmatpush.bf16.msra.mxu2 %v9289_v59 }
 0x249   : > { %v12788_v49 = vpop.f32.mrf.mxu0 }
 0x24a   : > { %v1269_v60 = vpop.f32.mrf.mxu1 }
 0x24d   : > { %9192 = vmatmul.msk.bf16.gmra.mxu1 %vm828_vm1, %v9101_v0  ;;  %v11569_v0 = vld [vmem:[%s18601_s3 + $0xf4] sm:$0xf] }
 0x24e   : > { %v9293_v38 = vor.u32 %v11569_v0, %v9290_v10 }
 0x250   : > { %1709 = vmatpush.bf16.msra.mxu3 %v9293_v38 }
 0x251   : > { %v1080_v1 = vpop.f32.mrf.mxu0 }
 0x252   : > { %v12793_v31 = vpop.f32.mrf.mxu1  ;;  %v12795_v43 = vadd.f32 %v1269_v60, %v1080_v1  ;;  %v9106_v60 = vld [vmem:[%s12448_s17 + $0x238] sm:$0xf0]  ;;  %v11568_v1 = vld [vmem:[%s18601_s3 + $0xe4] sm:$0xf0] }
 0x253   : > { %18738 = vst [vmem:[#allocation13_spill] sm:$0xff] %v12793_v31  ;;  %v9281_v50 = vor.u32 %v11568_v1, %v9280_v11  ;;  %v9109_v0 = vor.u32 %v11520_v52, %v9106_v60  ;;  %v9272_v31 = vld [vmem:[%s18601_s3 + $0xd0] sm:$0xf]  ;;  %v11566_v11 = vld [vmem:[%s18601_s3 + $0xd4] sm:$0xf0] }
 0x254   : > { %18739 = vst [vmem:[#allocation14_spill] sm:$0xff] %v12795_v43  ;;  %1119 = vmatmul.bf16.gmra.mxu0 %v9097_v55  ;;  %v9282_v55 = vld [vmem:[%s18601_s3 + $0xe8] sm:$0xf0]  ;;  %v11565_v1 = vld [vmem:[%s18601_s3 + $0xd4] sm:$0xf]  ;;  %v9273_v48 = vor.u32 %v11566_v11, %v9272_v31 }
 0x255   : > { %v9285_v59 = vor.u32 %v11567_v53, %v9282_v55  ;;  %1671 = vmatpush.bf16.msra.mxu2 %v9281_v50  ;;  %v9274_v52 = vld [vmem:[%s18601_s3 + $0xd8] sm:$0xf0]  ;;  %v9104_v53 = vld [vmem:[%s12448_s17 + $0x230] sm:$0xf]  ;;  %v11521_v50 = vld [vmem:[%s12448_s17 + $0x234] sm:$0xf0] }
 0x256   : > { %v9277_v60 = vor.u32 %v11565_v1, %v9274_v52  ;;  %v9264_v55 = vld [vmem:[%s18601_s3 + $0xc0] sm:$0xf]  ;;  %v11563_v31 = vld [vmem:[%s18601_s3 + $0xc4] sm:$0xf]  ;;  %v9105_v1 = vor.u32 %v11521_v50, %v9104_v53  ;;  %v9256_v43 = vld [vmem:[%s18601_s3 + $0xb0] sm:$0xf] }
 0x257   : > { %1710 = vmatpush.bf16.msra.mxu3 %v9285_v59  ;;  %v11564_v59 = vld [vmem:[%s18601_s3 + $0xc4] sm:$0xf0]  ;;  %v9258_v53 = vld [vmem:[%s18601_s3 + $0xb8] sm:$0xf0] }
 0x258   : > { %v9265_v11 = vor.u32 %v11564_v59, %v9264_v55  ;;  %v11561_v55 = vld [vmem:[%s18601_s3 + $0xb4] sm:$0xf]  ;;  %v9257_v59 = vor.u32 %v11562_v13, %v9256_v43  ;;  %v11560_v13 = vld [vmem:[%s18601_s3 + $0xa4] sm:$0xf0] }
 0x259   : > { %v12823_v10 = vpop.f32.mrf.mxu0  ;;  %1672 = vmatpush.bf16.msra.mxu2 %v9273_v48  ;;  %v9261_v50 = vor.u32 %v11561_v55, %v9258_v53  ;;  %v9746_v53 = vld [vmem:[%s18601_s3 + $0x368] sm:$0xf0] }
 0x25a   : > { %18740 = vst [vmem:[#allocation15_spill] sm:$0xff] %v12823_v10  ;;  %v1274_v38 = vpop.f32.mrf.mxu1 }
 0x25b   : > { %1711 = vmatpush.bf16.msra.mxu3 %v9277_v60 }
 0x25d   : > { %9193 = vmatmul.msk.bf16.gmra.mxu1 %vm828_vm1, %v9109_v0  ;;  %v9266_v0 = vld [vmem:[%s18601_s3 + $0xc8] sm:$0xf0]  ;;  %1673 = vmatpush.bf16.msra.mxu2 %v9265_v11 }
 0x25e   : > { %v9269_v48 = vor.u32 %v11563_v31, %v9266_v0  ;;  %v18741_v31 = vmax.f32 %v12507_v9, %v12588_v62  ;;  %v9248_v0 = vld [vmem:[%s18601_s3 + $0xa0] sm:$0xf]  ;;  %v11648_v62 = vld [vmem:[%s18601_s3 + $0x364] sm:$0xf0] }
 0x25f   : > { %v9249_v43 = vor.u32 %v11560_v13, %v9248_v0  ;;  %v9744_v9 = vld [vmem:[%s18601_s3 + $0x360] sm:$0xf]  ;;  %v9240_v0 = vld [vmem:[%s18601_s3 + $0x90] sm:$0xf]  ;;  %v11558_v13 = vld [vmem:[%s18601_s3 + $0x94] sm:$0xf0] }
 0x260   : > { %1712 = vmatpush.bf16.msra.mxu3 %v9269_v48  ;;  %v11647_v48 = vld [vmem:[%s18601_s3 + $0x364] sm:$0xf] }
 0x261   : > { %v1085_v52 = vpop.f32.mrf.mxu0  ;;  %1674 = vmatpush.bf16.msra.mxu2 %v9257_v59  ;;  %v9745_v59 = vor.u32 %v11648_v62, %v9744_v9  ;;  %v9736_v62 = vld [vmem:[%s18601_s3 + $0x350] sm:$0xf] }
 0x262   : > { %v1276_v60 = vpop.f32.mrf.mxu1  ;;  %v1275_v10 = vadd.f32 %v1274_v38, %v1085_v52 }
 0x263   : > { %3040 = vmatpush.bf16.msrb.mxu1 %v9745_v59 }
 0x264   : > { %v1337_v38 = vmax.f32 %v12705_v23, %v1275_v10  ;;  %1124 = vmatmul.bf16.gmra.mxu0 %v9105_v1  ;;  %1713 = vmatpush.bf16.msra.mxu3 %v9261_v50  ;;  %v11559_v23 = vld [vmem:[%s18601_s3 + $0xa4] sm:$0xf]  ;;  %v9250_v10 = vld [vmem:[%s18601_s3 + $0xa8] sm:$0xf0] }
 0x265   : > { %v9253_v1 = vor.u32 %v11559_v23, %v9250_v10  ;;  %1675 = vmatpush.bf16.msra.mxu2 %v9249_v43  ;;  %v9241_v23 = vor.u32 %v11558_v13, %v9240_v0  ;;  %v11557_v43 = vld [vmem:[%s18601_s3 + $0x94] sm:$0xf]  ;;  %v9232_v0 = vld [vmem:[%s18601_s3 + $0x80] sm:$0xf]  ;;  %v11556_v13 = vld [vmem:[%s18601_s3 + $0x84] sm:$0xf0] }
 0x266   : > { %v1355_v11 = vmax.f32 %v18741_v31, %v1337_v38  ;;  %v12895_v38 = vld [vmem:[%s18600_s2] ss:$0 sm:$0xff]  ;;  %v9749_v31 = vor.u32 %v11647_v48, %v9746_v53  ;;  %v11645_v48 = vld [vmem:[%s18601_s3 + $0x354] sm:$0xf]  ;;  %v18742_v53 = vmax.f32 %v12511_v15, %v12594_v7  ;;  %v9234_v15 = vld [vmem:[%s18601_s3 + $0x88] sm:$0xf0] }
 0x268   : > { %1714 = vmatpush.bf16.msra.mxu3 %v9253_v1  ;;  %3079 = vmatpush.bf16.msrb.mxu0 %v9749_v31  ;;  %v11646_v1 = vld [vmem:[%s18601_s3 + $0x354] sm:$0xf0]  ;;  %v1377_v59 = vadd.f32 %v12895_v38, %v1355_v11  ;;  %v9233_v11 = vor.u32 %v11556_v13, %v9232_v0 }
 0x269   : > { %v1087_v52 = vpop.f32.mrf.mxu0  ;;  %1676 = vmatpush.bf16.msra.mxu2 %v9241_v23  ;;  %v11555_v23 = vld [vmem:[%s18601_s3 + $0x84] sm:$0xf] }
 0x26a   : > { %v1279_v55 = vpop.f32.mrf.mxu1  ;;  %v1277_v50 = vadd.f32 %v1276_v60, %v1087_v52  ;;  %v9242_v60 = vld [vmem:[%s18601_s3 + $0x98] sm:$0xf0]  ;;  %v9737_v52 = vor.u32 %v11646_v1, %v9736_v62 }
 0x26b   : > { %v9245_v9 = vor.u32 %v11557_v43, %v9242_v60  ;;  %v9237_v43 = vor.u32 %v11555_v23, %v9234_v15  ;;  %v9728_v60 = vld [vmem:[%s18601_s3 + $0x340] sm:$0xf]  ;;  %v9720_v23 = vld [vmem:[%s18601_s3 + $0x330] sm:$0xf]  ;;  %v9722_v15 = vld [vmem:[%s18601_s3 + $0x338] sm:$0xf0] }
 0x26c   : > { %v1338_v10 = vmax.f32 %v12709_v24, %v1277_v50  ;;  %v9738_v24 = vld [vmem:[%s18601_s3 + $0x358] sm:$0xf0]  ;;  %3041 = vmatpush.bf16.msrb.mxu1 %v9737_v52  ;;  %v9730_v52 = vld [vmem:[%s18601_s3 + $0x348] sm:$0xf0] }
 0x26d   : > { %1715 = vmatpush.bf16.msra.mxu3 %v9245_v9  ;;  %v9741_v31 = vor.u32 %v11645_v48, %v9738_v24  ;;  %v11643_v9 = vld [vmem:[%s18601_s3 + $0x344] sm:$0xf]  ;;  %1677 = vmatpush.bf16.msra.mxu2 %v9233_v11  ;;  %v1395_v24 = vmax.f32 %v1377_v59, 0.0  ;;  %v11642_v11 = vld [vmem:[%s18601_s3 + $0x334] sm:$0xf0] }
 0x26e   : > { %v1356_v50 = vmax.f32 %v18742_v53, %v1338_v10  ;;  %v11644_v10 = vld [vmem:[%s18601_s3 + $0x344] sm:$0xf0]  ;;  %v9721_v59 = vor.u32 %v11642_v11, %v9720_v23  ;;  %v9704_v23 = vld [vmem:[%s18601_s3 + $0x310] sm:$0xf]  ;;  %v11637_v11 = vld [vmem:[%s18601_s3 + $0x314] sm:$0xf] }
 0x26f   : > { %3080 = vmatpush.bf16.msrb.mxu0 %v9741_v31  ;;  %v9729_v48 = vor.u32 %v11644_v10, %v9728_v60  ;;  %v9733_v31 = vor.u32 %v11643_v9, %v9730_v52  ;;  %v9712_v60 = vld [vmem:[%s18601_s3 + $0x320] sm:$0xf]  ;;  %v11640_v10 = vld [vmem:[%s18601_s3 + $0x324] sm:$0xf0]  ;;  %v11639_v52 = vld [vmem:[%s18601_s3 + $0x324] sm:$0xf] }
 0x270   : > { %v1378_v7 = vadd.f32 %v12895_v38, %v1356_v50 }
 0x271   : > { %v1090_v62 = vpop.f32.mrf.mxu0  ;;  %1716 = vmatpush.bf16.msra.mxu3 %v9237_v43  ;;  %3042 = vmatpush.bf16.msrb.mxu1 %v9729_v48  ;;  %v9713_v48 = vor.u32 %v11640_v10, %v9712_v60 }
 0x272   : > { %v1281_v1 = vpop.f32.mrf.mxu1  ;;  %v1396_v53 = vmax.f32 %v1378_v7, 0.0  ;;  %v1280_v50 = vadd.f32 %v1279_v55, %v1090_v62  ;;  %v11641_v55 = vld [vmem:[%s18601_s3 + $0x334] sm:$0xf] }
 0x273   : > { %3081 = vmatpush.bf16.msrb.mxu0 %v9733_v31  ;;  %v9725_v43 = vor.u32 %v11641_v55, %v9722_v15  ;;  %v18744_v15 = vmax.f32 %v12520_v27, %v12607_v28 }
 0x274   : > { %v12951_v0 = vpack.c.bf16 %v1396_v53, %v1395_v24  ;;  %v1339_v13 = vmax.f32 %v12714_v30, %v1280_v50  ;;  %v18743_v30 = vmax.f32 %v12516_v21, %v12601_v17  ;;  %v9714_v21 = vld [vmem:[%s18601_s3 + $0x328] sm:$0xf0]  ;;  %v9352_v24 = vld [vmem:[%s18601_s3 + $0x70] sm:$0xf]  ;;  %v11554_v53 = vld [vmem:[%s18601_s3 + $0x74] sm:$0xf0] }
 0x275   : > { %3043 = vmatpush.bf16.msrb.mxu1 %v9721_v59  ;;  %v9717_v50 = vor.u32 %v11639_v52, %v9714_v21  ;;  %v9353_v31 = vor.u32 %v11554_v53, %v9352_v24  ;;  %v9706_v59 = vld [vmem:[%s18601_s3 + $0x318] sm:$0xf0]  ;;  %v9698_v21 = vld [vmem:[%s18601_s3 + $0x308] sm:$0xf0] }
 0x276   : > { %12005 = vst [vmem:[#allocation2] sm:$0xff] %v12951_v0   ;;  %v1357_v7 = vmax.f32 %v18743_v30, %v1339_v13 }
 0x277   : > { %3082 = vmatpush.bf16.msrb.mxu0 %v9725_v43  ;;  %1834 = vmatpush.bf16.msrb.mxu2 %v9353_v31  ;;  %v9709_v43 = vor.u32 %v11637_v11, %v9706_v59  ;;  %v18745_v11 = vmax.f32 %v12525_v33, %v12614_v37  ;;  %v11553_v59 = vld [vmem:[%s18601_s3 + $0x74] sm:$0xf]  ;;  %v9344_v37 = vld [vmem:[%s18601_s3 + $0x60] sm:$0xf] }
 0x279   : > { %v1092_v9 = vpop.f32.mrf.mxu0  ;;  %3044 = vmatpush.bf16.msrb.mxu1 %v9713_v48  ;;  %v11636_v48 = vld [vmem:[%s18601_s3 + $0x304] sm:$0xf0] }
 0x27a   : > { %v1284_v62 = vpop.f32.mrf.mxu1  ;;  %v1282_v17 = vadd.f32 %v1281_v1, %v1092_v9  ;;  %v11638_v1 = vld [vmem:[%s18601_s3 + $0x314] sm:$0xf0]  ;;  %v9696_v9 = vld [vmem:[%s18601_s3 + $0x300] sm:$0xf] }
 0x27b   : > { %3083 = vmatpush.bf16.msrb.mxu0 %v9717_v50  ;;  %v9705_v55 = vor.u32 %v11638_v1, %v9704_v23  ;;  %v9697_v52 = vor.u32 %v11636_v48, %v9696_v9  ;;  %v18613_v1 = vunpack.c.h.b16 %v12951_v0 }
 0x27c   : > { %v1340_v13 = vmax.f32 %v12718_v2, %v1282_v17  ;;  %v1379_v2 = vadd.f32 %v12895_v38, %v1357_v7  ;;  %v11635_v7 = vld [vmem:[%s18601_s3 + $0x304] sm:$0xf] }
 0x27d   : > { %3045 = vmatpush.bf16.msrb.mxu1 %v9705_v55  ;;  %v1912_v60 = vld [vmem:[#allocation2] sm:$0xe]  ;;  %v9701_v50 = vor.u32 %v11635_v7, %v9698_v21  ;;  %v18746_v21 = vmax.f32 %v12529_v39, %v12620_v47 }
 0x27e   : > { %v1358_v30 = vmax.f32 %v18744_v15, %v1340_v13  ;;  %v1397_v17 = vmax.f32 %v1379_v2, 0.0  ;;  %v1931_v31 = vunpack.c.l.b16 %v1912_v60  ;;  %v11552_v60 = vld [vmem:[%s18601_s3 + $0x64] sm:$0xf0] }
 0x27f   : > { %3084 = vmatpush.bf16.msrb.mxu0 %v9709_v43  ;;  %v1535_v43 = vshll.u32 %v12951_v0, 16 }
 0x280   : > { %v1380_v10 = vadd.f32 %v12895_v38, %v1358_v30 }
 0x281   : > { %v1095_v27 = vpop.f32.mrf.mxu0  ;;  %3046 = vmatpush.bf16.msrb.mxu1 %v9697_v52  ;;  %v1537_v52 = vrot.slane %v1535_v43, 1  ;;  %v3141_v43 = vld [vmem:[#allocation2 + $0x4] sm:$0x8] }
 0x282   : > { %v1286_v28 = vpop.f32.mrf.mxu1  ;;  %v1398_v24 = vmax.f32 %v1380_v10, 0.0  ;;  %v1285_v53 = vadd.f32 %v1284_v62, %v1095_v27  ;;  %v9354_v62 = vld [vmem:[%s18601_s3 + $0x78] sm:$0xf0]  ;;  %v9345_v10 = vor.u32 %v11552_v60, %v9344_v37 }
 0x283   : > { %3085 = vmatpush.bf16.msrb.mxu0 %v9701_v50  ;;  %v9357_v2 = vor.u32 %v11553_v59, %v9354_v62 }
 0x284   : > { %v12009_v13 = vpack.c.bf16 %v1398_v24, %v1397_v17  ;;  %v1341_v23 = vmax.f32 %v12723_v56, %v1285_v53  ;;  %v13031_v56 = vpack.c.b16 %v18613_v1, %v1931_v31  ;;  %1835 = vmatpush.bf16.msrb.mxu2 %v9345_v10  ;;  %v1533_v24 = vshrl.u32 %v12951_v0, 16  ;;  %v2605_v31 = vld [vmem:[#allocation2 + $0x4] sm:$0xc] }
 0x285   : > { %1873 = vmatpush.bf16.msrb.mxu3 %v9357_v2  ;;  %v2648_v10 = vunpack.c.l.b16 %v2605_v31 }
 0x286   : > { %12099 = vst [vmem:[#allocation2 + $0x8] sm:$0xff] %v12009_v13   ;;  %v1359_v55 = vmax.f32 %v18745_v11, %v1341_v23  ;;  %v2158_v9 = vshrl.u32 %v13031_v56, 16  ;;  %v2161_v48 = vshll.u32 %v13031_v56, 16  ;;  %v12057_v59 = vunpack.c.l.b16 %v12009_v13 }
 0x287   : > { %v1538_v2 = vor.u32 %v1537_v52, %v1533_v24 }
 0x288   : > { %v2160_v23 = vrot.slane %v2158_v9, 1  ;;  %v2163_v11 = vrot.slane %v2161_v48, 2  ;;  %v13059_v52 = vpack.c.b16 %v12057_v59, %v2648_v10 }
 0x289   : > { %v1097_v15 = vpop.f32.mrf.mxu0 }
 0x28a   : > { %v1289_v30 = vpop.f32.mrf.mxu1  ;;  %v1287_v33 = vadd.f32 %v1286_v28, %v1097_v15  ;;  %v1381_v28 = vadd.f32 %v12895_v38, %v1359_v55  ;;  %v2164_v48 = vor.u32 %v2163_v11, %v2160_v23  ;;  %v9336_v11 = vld [vmem:[%s18601_s3 + $0x50] sm:$0xf] }
 0x28c   : > { %v1342_v7 = vmax.f32 %v12727_v3, %v1287_v33  ;;  %v1399_v33 = vmax.f32 %v1381_v28, 0.0 }
 0x28d   : > { %v13043_v27 = vld [vmem:[#allocation2 + $0x8] sm:$0xff] }
 0x28e   : > { %v1360_v17 = vmax.f32 %v18746_v21, %v1342_v7  ;;  %v1540_v53 = vshll.u32 %v13043_v27, 16  ;;  %v1544_v50 = vshrl.u32 %v13043_v27, 16 }
 0x290   : > { %v1382_v3 = vadd.f32 %v12895_v38, %v1360_v17  ;;  %v1542_v15 = vrot.slane %v1540_v53, 1  ;;  %v2166_v39 = vrot.slane %v1540_v53, 2  ;;  %v2165_v47 = vrot.slane %v1544_v50, 1  ;;  %v11551_v53 = vld [vmem:[%s18601_s3 + $0x64] sm:$0xf] }
 0x291   : > { %v1100_v62 = vpop.f32.mrf.mxu0  ;;  %v3160_v17 = vunpack.c.l.b16 %v3141_v43  ;;  %v9338_v43 = vld [vmem:[%s18601_s3 + $0x58] sm:$0xf0] }
 0x292   : > { %v1291_v55 = vpop.f32.mrf.mxu1  ;;  %v1400_v37 = vmax.f32 %v1382_v3, 0.0  ;;  %v1290_v60 = vadd.f32 %v1289_v30, %v1100_v62  ;;  %v1543_v9 = vsel %vm1531_vm2, %v1538_v2, %v1542_v15  ;;  %v13056_v7 = vor.u32 %v2166_v39, %v2165_v47 }
 0x293   : > { %1678 = vmatmul.bf16.vlgmr.msra.gmra.mxu2 %v1543_v9  ;;  %1717 = vmatmul.bf16.vlgmr.msra.gmra.mxu3 %v1543_v9  ;;  %v18747_v30 = vmax.f32 %v12534_v45, %v12627_v58  ;;  %v13074_v31 = vpack.c.b16 %v12057_v59, %v3160_v17  ;;  %v11550_v45 = vld [vmem:[%s18601_s3 + $0x54] sm:$0xf0]  ;;  %v2892_v58 = vshrl.u32 %v13059_v52, 16  ;;  %v2895_v3 = vshll.u32 %v13059_v52, 16  ;;  %v11549_v59 = vld [vmem:[%s18601_s3 + $0x54] sm:$0xf] }
 0x294   : > { %v12014_v13 = vpack.c.bf16 %v1400_v37, %v1399_v33  ;;  %v1343_v21 = vmax.f32 %v12732_v44, %v1290_v60  ;;  %v13063_v24 = vsel %vm2156_vm3, %v2164_v48, %v13056_v7  ;;  %v9346_v44 = vld [vmem:[%s18601_s3 + $0x68] sm:$0xf0]  ;;  %v9337_v62 = vor.u32 %v11550_v45, %v9336_v11 }
 0x295   : > { %v9349_v23 = vor.u32 %v11551_v53, %v9346_v44  ;;  %v3387_v33 = vshrl.u32 %v13074_v31, 16  ;;  %v3390_v37 = vshll.u32 %v13074_v31, 16  ;;  %v9341_v60 = vor.u32 %v11549_v59, %v9338_v43 }
 0x296   : > { %12100 = vst [vmem:[#allocation2 + $0x10] sm:$0xff] %v12014_v13   ;;  %v1361_v28 = vmax.f32 %v18747_v30, %v1343_v21  ;;  %1836 = vmatpush.bf16.msrb.mxu2 %v9337_v62  ;;  %v2894_v9 = vrot.slane %v2892_v58, 2  ;;  %v2897_v48 = vrot.slane %v2895_v3, 3  ;;  %v18748_v17 = vmax.f32 %v12538_v51, %v12633_v4 }
 0x297   : > { %1874 = vmatpush.bf16.msrb.mxu3 %v9349_v23  ;;  %v3389_v53 = vrot.slane %v3387_v33, 3  ;;  %v3392_v44 = vrot.slane %v3390_v37, 4  ;;  %v1546_v3 = vor.u32 %v1544_v50, %v1542_v15 }
 0x298   : > { %v1383_v21 = vadd.f32 %v12895_v38, %v1361_v28  ;;  %v2898_v28 = vor.u32 %v2897_v48, %v2894_v9 }
 0x299   : > { %v1102_v2 = vpop.f32.mrf.mxu0  ;;  %v3393_v27 = vor.u32 %v3392_v44, %v3389_v53  ;;  %v9328_v53 = vld [vmem:[%s18601_s3 + $0x40] sm:$0xf] }
 0x29a   : > { %v1294_v39 = vpop.f32.mrf.mxu1  ;;  %v1292_v47 = vadd.f32 %v1291_v55, %v1102_v2  ;;  %v1401_v43 = vmax.f32 %v1383_v21, 0.0 }
 0x29b   : > { %1875 = vmatpush.bf16.msrb.mxu3 %v9341_v60 }
 0x29c   : > { %v1344_v10 = vmax.f32 %v12736_v40, %v1292_v47 }
 0x29d   : > { %v13093_v13 = vld [vmem:[#allocation2 + $0x10] sm:$0xff] }
 0x29e   : > { %v13095_v55 = vld [vmem:[#allocation2 + $0xc] sm:$0xff]   ;;  %v1362_v30 = vmax.f32 %v18748_v17, %v1344_v10  ;;  %v1548_v23 = vshll.u32 %v13093_v13, 16  ;;  %v1552_v45 = vshrl.u32 %v13093_v13, 16 }
 0x29f   : > { %v2900_v40 = vshrl.u32 %v13095_v55, 16  ;;  %v2903_v11 = vshll.u32 %v13095_v55, 16 }
 0x2a0   : > { %v1384_v58 = vadd.f32 %v12895_v38, %v1362_v30  ;;  %v13108_v4 = vrot.slane %v1548_v23, 1  ;;  %v2169_v50 = vrot.slane %v1552_v45, 1  ;;  %v2170_v21 = vrot.slane %v1548_v23, 2 }
 0x2a1   : > { %v1105_v62 = vpop.f32.mrf.mxu0  ;;  %v2902_v2 = vrot.slane %v2900_v40, 2  ;;  %v2905_v47 = vrot.slane %v2903_v11, 3  ;;  %v3394_v59 = vrot.slane %v2900_v40, 3  ;;  %v3395_v60 = vrot.slane %v2903_v11, 4 }
 0x2a2   : > { %v1296_v51 = vpop.f32.mrf.mxu1  ;;  %v1402_v33 = vmax.f32 %v1384_v58, 0.0  ;;  %v1295_v37 = vadd.f32 %v1294_v39, %v1105_v62  ;;  %v1551_v10 = vsel %vm1531_vm2, %v1546_v3, %v13108_v4  ;;  %v18749_v30 = vmax.f32 %v12543_v57, %v12640_v20  ;;  %v4070_v3 = vld [vmem:[#allocation2 + $0x10] sm:$0xf] }
 0x2a3   : > { %v13112_v17 = vor.u32 %v2905_v47, %v2902_v2  ;;  %1683 = vmatmul.bf16.gmra.mxu2 %v1551_v10  ;;  %1722 = vmatmul.bf16.gmra.mxu3 %v1551_v10  ;;  %v13117_v48 = vor.u32 %v3395_v60, %v3394_v59  ;;  %v13134_v23 = vor.u32 %v2170_v21, %v2169_v50  ;;  %v2668_v57 = vrot.slane %v13059_v52, 2  ;;  %v9320_v60 = vld [vmem:[%s18601_s3 + $0x30] sm:$0xf] }
 0x2a4   : > { %v12019_v15 = vpack.c.bf16 %v1402_v33, %v1401_v43  ;;  %v1345_v9 = vmax.f32 %v12741_v16, %v1295_v37  ;;  %v11548_v16 = vld [vmem:[%s18601_s3 + $0x44] sm:$0xf0]  ;;  %v2669_v20 = vrot.slane %v13095_v55, 2  ;;  %v3163_v52 = vrot.slane %v13074_v31, 3  ;;  %v9330_v43 = vld [vmem:[%s18601_s3 + $0x48] sm:$0xf0] }
 0x2a5   : > { %v2907_v39 = vsel %vm2890_vm4, %v2898_v28, %v13112_v17  ;;  %v13132_v44 = vsel %vm3385_vm5, %v3393_v27, %v13117_v48  ;;  %v9329_v11 = vor.u32 %v11548_v16, %v9328_v53  ;;  %v13141_v58 = vsel %vm2156_vm3, %v13056_v7, %v13134_v23  ;;  %v11547_v7 = vld [vmem:[%s18601_s3 + $0x44] sm:$0xf]  ;;  %v4840_v33 = vld [vmem:[#allocation2 + $0xc] sm:$0xc]  ;;  %v11546_v31 = vld [vmem:[%s18601_s3 + $0x34] sm:$0xf0] }
 0x2a6   : > { %12101 = vst [vmem:[#allocation2 + $0x18] sm:$0xff] %v12019_v15   ;;  %v1363_v40 = vmax.f32 %v18749_v30, %v1345_v9  ;;  %3047 = vmatmul.bf16.vlgmr.msrb.gmra.mxu1 %v2907_v39  ;;  %3086 = vmatmul.bf16.vlgmr.msrb.gmra.mxu0 %v2907_v39  ;;  %v13146_v2 = vsel %vm2403_vm6, %v2668_v57, %v2669_v20  ;;  %v3164_v47 = vrot.slane %v13095_v55, 3  ;;  %v13162_v10 = vunpack.c.l.b16 %v4070_v3 }
 0x2a7   : > { %1837 = vmatpush.bf16.msrb.mxu2 %v9329_v11  ;;  %18750 = vst [vmem:[#allocation16_spill] sm:$0xff] %v13146_v2  ;;  %v9333_v37 = vor.u32 %v11547_v7, %v9330_v43  ;;  %v9321_v50 = vor.u32 %v11546_v31, %v9320_v60  ;;  %v4859_v21 = vunpack.c.l.b16 %v4840_v33  ;;  %v18752_v30 = vmax.f32 %v12547_v63, %v12646_v32 }
 0x2a8   : > { %v1385_v39 = vadd.f32 %v12895_v38, %v1363_v40  ;;  %v1554_v40 = vor.u32 %v1552_v45, %v13108_v4  ;;  %v18757_v55 = vmax.f32 %v12556_v12, %v12659_v61 }
 0x2a9   : > { %v1107_v28 = vpop.f32.mrf.mxu0  ;;  %1876 = vmatpush.bf16.msrb.mxu3 %v9333_v37  ;;  %v4860_v3 = vpack.c.b16 %v13162_v10, %v4859_v21 }
 0x2aa   : > { %v1299_v62 = vpop.f32.mrf.mxu1  ;;  %v1297_v59 = vadd.f32 %v1296_v51, %v1107_v28  ;;  %v13167_v51 = vsel %vm3162_vm7, %v3163_v52, %v3164_v47  ;;  %v1403_v60 = vmax.f32 %v1385_v39, 0.0 }
 0x2ab   : > { %18751 = vst [vmem:[#allocation17_spill] sm:$0xff] %v13167_v51  ;;  %1838 = vmatpush.bf16.msrb.mxu2 %v9321_v50  ;;  %v4861_v13 = vrot.slane %v4860_v3, 2  ;;  %v18778_v51 = vld [vmem:[#allocation11_spill] sm:$0xff] }
 0x2ac   : > { %v1346_v27 = vmax.f32 %v12745_v22, %v1297_v59 }
 0x2ad   : > { %v13170_v15 = vld [vmem:[#allocation2 + $0x18] sm:$0xff] }
 0x2ae   : > { %v13172_v9 = vld [vmem:[#allocation2 + $0x14] sm:$0xff]   ;;  %v1364_v53 = vmax.f32 %v18752_v30, %v1346_v27  ;;  %v1556_v11 = vshll.u32 %v13170_v15, 16  ;;  %v1560_v63 = vshrl.u32 %v13170_v15, 16 }
 0x2af   : > { %v13178_v16 = vld [vmem:[#allocation2 + $0x14] sm:$0xff]  ;;  %v2909_v22 = vshrl.u32 %v13172_v9, 16  ;;  %v2912_v57 = vshll.u32 %v13172_v9, 16 }
 0x2b0   : > { %v1386_v28 = vadd.f32 %v12895_v38, %v1364_v53  ;;  %v4862_v32 = vrot.slane %v13178_v16, 2  ;;  %v1558_v7 = vrot.slane %v1556_v11, 1  ;;  %v2173_v1 = vrot.slane %v1560_v63, 1 }
 0x2b1   : > { %v1110_v52 = vpop.f32.mrf.mxu0  ;;  %v2911_v43 = vrot.slane %v2909_v22, 2  ;;  %v2914_v33 = vrot.slane %v2912_v57, 3  ;;  %v3398_v37 = vrot.slane %v2909_v22, 3  ;;  %v3399_v50 = vrot.slane %v2912_v57, 4  ;;  %v13206_v57 = vld [vmem:[#allocation2 + $0x18] sm:$0xff]  }
 0x2b2   : > { %v1301_v59 = vpop.f32.mrf.mxu1  ;;  %v1404_v31 = vmax.f32 %v1386_v28, 0.0  ;;  %v1300_v27 = vadd.f32 %v1299_v62, %v1110_v52  ;;  %v1559_v21 = vsel %vm1531_vm2, %v1554_v40, %v1558_v7  ;;  %v2174_v39 = vrot.slane %v1556_v11, 2  ;;  %18753 = vst [vmem:[#allocation18_spill] sm:$0xff] %v13206_v57  ;;  %v11545_v28 = vld [vmem:[%s18601_s3 + $0x34] sm:$0xf] }
 0x2b3   : > { %v13191_v30 = vor.u32 %v2914_v33, %v2911_v43  ;;  %1688 = vmatmul.bf16.gmra.mxu2 %v1559_v21  ;;  %1727 = vmatmul.bf16.gmra.mxu3 %v1559_v21  ;;  %v13194_v53 = vor.u32 %v3399_v50, %v3398_v37  ;;  %v13204_v22 = vsel %vm2403_vm6, %v4861_v13, %v4862_v32  ;;  %v2671_v40 = vrot.slane %v13172_v9, 2  ;;  %v4069_v50 = vld [vmem:[#allocation2 + $0xc] sm:$0xf] }
 0x2b4   : > { %v12024_v45 = vpack.c.bf16 %v1404_v31, %v1403_v60  ;;  %v1347_v4 = vmax.f32 %v12756_v35, %v1300_v27  ;;  %v18754_v35 = vmax.f32 %v12552_v5, %v12653_v46  ;;  %v13223_v5 = vor.u32 %v2174_v39, %v2173_v1  ;;  %v11544_v27 = vld [vmem:[%s18601_s3 + $0x24] sm:$0xf0] }
 0x2b5   : > { %v2916_v62 = vsel %vm2890_vm4, %v13112_v17, %v13191_v30  ;;  %v9322_v17 = vld [vmem:[%s18601_s3 + $0x38] sm:$0xf0]  ;;  %v13220_v11 = vsel %vm3385_vm5, %v13117_v48, %v13194_v53  ;;  %v13230_v46 = vsel %vm2403_vm6, %v2669_v20, %v2671_v40  ;;  %v18615_v43 = vshrl.u32 %v13206_v57, 16  ;;  %v9312_v20 = vld [vmem:[%s18601_s3 + $0x20] sm:$0xf] }
 0x2b6   : > { %12102 = vst [vmem:[#allocation2 + $0x20] sm:$0xff] %v12024_v45   ;;  %v1365_v3 = vmax.f32 %v18754_v35, %v1347_v4  ;;  %3052 = vmatmul.bf16.gmra.mxu1 %v2916_v62  ;;  %3091 = vmatmul.bf16.gmra.mxu0 %v2916_v62  ;;  %v9325_v52 = vor.u32 %v11545_v28, %v9322_v17  ;;  %v18614_v33 = vshll.u32 %v13206_v57, 16  ;;  %v18616_v1 = vrot.slane %v13172_v9, 3 }
 0x2b7   : > { %18755 = vst [vmem:[#allocation19_spill] sm:$0xff] %v13230_v46  ;;  %v13237_v48 = vsel %vm2156_vm3, %v13134_v23, %v13223_v5  ;;  %v9313_v21 = vor.u32 %v11544_v27, %v9312_v20  ;;  %v4112_v39 = vunpack.c.l.b16 %v4069_v50 }
 0x2b8   : > { %1877 = vmatpush.bf16.msrb.mxu3 %v9325_v52  ;;  %v13251_v23 = vsel %vm3162_vm7, %v3164_v47, %v18616_v1  ;;  %v5849_v45 = vrot.slane %v18614_v33, 4  ;;  %v1387_v35 = vadd.f32 %v12895_v38, %v1365_v3  ;;  %v1562_v3 = vor.u32 %v1560_v63, %v1558_v7 }
 0x2b9   : > { %v1112_v37 = vpop.f32.mrf.mxu0  ;;  %18756 = vst [vmem:[#allocation20_spill] sm:$0xff] %v13251_v23  ;;  %1839 = vmatpush.bf16.msrb.mxu2 %v9313_v21  ;;  %v18777_v23 = vld [vmem:[#allocation8_spill] sm:$0xff] }
 0x2ba   : > { %v1304_v60 = vpop.f32.mrf.mxu1  ;;  %v1302_v31 = vadd.f32 %v1301_v59, %v1112_v37  ;;  %v5848_v59 = vrot.slane %v18615_v43, 3 }
 0x2bc   : > { %v1348_v13 = vmax.f32 %v12766_v25, %v1302_v31  ;;  %v13268_v25 = vor.u32 %v5849_v45, %v5848_v59  ;;  %v13274_v31 = vpack.c.b16 %v13162_v10, %v4112_v39 }
 0x2bd   : > { %v13258_v4 = vld [vmem:[#allocation2 + $0x20] sm:$0xff] }
 0x2be   : > { %v13260_v62 = vld [vmem:[#allocation2 + $0x1c] sm:$0xff]   ;;  %v1366_v47 = vmax.f32 %v18757_v55, %v1348_v13  ;;  %18758 = vst [vmem:[#allocation21_spill] sm:$0xff] %v13268_v25  ;;  %v1564_v17 = vshll.u32 %v13258_v4, 16  ;;  %v1568_v12 = vshrl.u32 %v13258_v4, 16  ;;  %v1405_v55 = vmax.f32 %v1387_v35, 0.0 }
 0x2bf   : > { %v13266_v28 = vld [vmem:[#allocation2 + $0x1c] sm:$0xff]  ;;  %v2918_v52 = vshrl.u32 %v13260_v62, 16  ;;  %v2921_v37 = vshll.u32 %v13260_v62, 16 }
 0x2c0   : > { %v1388_v20 = vadd.f32 %v12895_v38, %v1366_v47  ;;  %v18622_v61 = vrot.slane %v13266_v28, 2  ;;  %v13281_v21 = vrot.slane %v1564_v17, 1  ;;  %v2178_v35 = vrot.slane %v1564_v17, 2 }
 0x2c1   : > { %v1115_v27 = vpop.f32.mrf.mxu0  ;;  %v2920_v13 = vrot.slane %v2918_v52, 2  ;;  %v2923_v59 = vrot.slane %v2921_v37, 3  ;;  %v3402_v45 = vrot.slane %v2918_v52, 3  ;;  %v3403_v43 = vrot.slane %v2921_v37, 4 }
 0x2c2   : > { %v1306_v50 = vpop.f32.mrf.mxu1  ;;  %v1406_v33 = vmax.f32 %v1388_v20, 0.0  ;;  %v1305_v39 = vadd.f32 %v1304_v60, %v1115_v27  ;;  %v1567_v47 = vsel %vm1531_vm2, %v1562_v3, %v13281_v21  ;;  %v2177_v52 = vrot.slane %v1568_v12, 1 }
 0x2c3   : > { %v13285_v15 = vor.u32 %v2923_v59, %v2920_v13  ;;  %1693 = vmatmul.bf16.gmra.mxu2 %v1567_v47  ;;  %1732 = vmatmul.bf16.gmra.mxu3 %v1567_v47  ;;  %v13290_v1 = vor.u32 %v3403_v43, %v3402_v45  ;;  %v4135_v43 = vshll.u32 %v13274_v31, 16  ;;  %v18761_v37 = vmax.f32 %v12561_v19, %v12666_v14  ;;  %v9304_v19 = vld [vmem:[%s18601_s3 + $0x10] sm:$0xf]  ;;  %v11542_v14 = vld [vmem:[%s18601_s3 + $0x14] sm:$0xf0] }
 0x2c4   : > { %v13287_v63 = vpack.c.bf16 %v1406_v33, %v1405_v55  ;;  %v1349_v7 = vmax.f32 %v12773_v8, %v1305_v39  ;;  %v13302_v33 = vsel %vm2403_vm6, %v4862_v32, %v18622_v61  ;;  %v13304_v8 = vld [vmem:[#allocation2 + $0x20] sm:$0xff]   ;;  %v9314_v32 = vld [vmem:[%s18601_s3 + $0x28] sm:$0xf0]  ;;  %v18617_v3 = vrot.slane %v13260_v62, 2  ;;  %v9912_v55 = vld [vmem:[%s18601_s3 + $0x470] sm:$0xf] }
 0x2c5   : > { %v2925_v60 = vsel %vm2890_vm4, %v13191_v30, %v13285_v15  ;;  %18759 = vst [vmem:[#allocation22_spill] sm:$0xff] %v13302_v33  ;;  %v11543_v30 = vld [vmem:[%s18601_s3 + $0x24] sm:$0xf]  ;;  %v13320_v17 = vsel %vm3385_vm5, %v13194_v53, %v13290_v1  ;;  %v13329_v13 = vor.u32 %v2178_v35, %v2177_v52  ;;  %v18621_v59 = vshll.u32 %v13178_v16, 16  ;;  %v11682_v39 = vld [vmem:[%s18601_s3 + $0x474] sm:$0xf0] }
 0x2c6   : > { %18760 = vst [vmem:[#allocation23_spill] sm:$0xff] %v13304_v8  ;;  %v1367_v20 = vmax.f32 %v18761_v37, %v1349_v7  ;;  %3057 = vmatmul.bf16.gmra.mxu1 %v2925_v60  ;;  %3096 = vmatmul.bf16.gmra.mxu0 %v2925_v60  ;;  %v9317_v27 = vor.u32 %v11543_v30, %v9314_v32  ;;  %v11681_v47 = vld [vmem:[%s18601_s3 + $0x474] sm:$0xf]  ;;  %v9914_v60 = vld [vmem:[%s18601_s3 + $0x478] sm:$0xf0]  ;;  %v18618_v37 = vshrl.u32 %v13304_v8, 16 }
 0x2c7   : > { %12103 = vst [vmem:[#allocation2 + $0x28] sm:$0xff] %v13287_v63   ;;  %v1262_v45 = vadd.f32 %v12771_v18, %v12777_v6  ;;  %v9305_v53 = vor.u32 %v11542_v14, %v9304_v19  ;;  %v13348_v7 = vsel %vm2403_vm6, %v2671_v40, %v18617_v3  ;;  %v9913_v52 = vor.u32 %v11682_v39, %v9912_v55  ;;  %v11541_v40 = vld [vmem:[%s18601_s3 + $0x14] sm:$0xf]  ;;  %v9904_v3 = vld [vmem:[%s18601_s3 + $0x460] sm:$0xf] }
 0x2c8   : > { %18762 = vst [vmem:[#allocation24_spill] sm:$0xff] %v13348_v7  ;;  %1878 = vmatpush.bf16.msrb.mxu3 %v9317_v27  ;;  %v13356_v35 = vsel %vm2156_vm3, %v13223_v5, %v13329_v13  ;;  %v18620_v30 = vshll.u32 %v13304_v8, 16  ;;  %v9306_v27 = vld [vmem:[%s18601_s3 + $0x18] sm:$0xf0]  ;;  %v9917_v19 = vor.u32 %v11681_v47, %v9914_v60  ;;  %v18619_v14 = vrot.slane %v13260_v62, 3 }
 0x2c9   : > { %v1117_v18 = vpop.f32.mrf.mxu0  ;;  %1840 = vmatpush.bf16.msrb.mxu2 %v9305_v53  ;;  %v4137_v55 = vrot.slane %v4135_v43, 1  ;;  %v1389_v5 = vadd.f32 %v12895_v38, %v1367_v20  ;;  %v9309_v39 = vor.u32 %v11541_v40, %v9306_v27  ;;  %3509 = vmatpush.bf16.msra.mxu1 %v9913_v52  ;;  %v4133_v53 = vshrl.u32 %v13274_v31, 16  ;;  %v11680_v47 = vld [vmem:[%s18601_s3 + $0x464] sm:$0xf0]  ;;  %v11679_v43 = vld [vmem:[%s18601_s3 + $0x464] sm:$0xf] }
 0x2ca   : > { %v1309_v6 = vpop.f32.mrf.mxu1  ;;  %v1307_v32 = vadd.f32 %v1306_v50, %v1117_v18  ;;  %v5852_v50 = vrot.slane %v18618_v37, 3  ;;  %3548 = vmatpush.bf16.msra.mxu0 %v9917_v19  ;;  %v18763_v20 = vrot.slane %v13172_v9, 3  ;;  %v9905_v60 = vor.u32 %v11680_v47, %v9904_v3 }
 0x2cb   : > { %v5853_v40 = vrot.slane %v18620_v30, 4  ;;  %v13398_v27 = vrot.slane %v18621_v59, 1  ;;  %v18765_v9 = vmax.f32 %v12565_v26, %v12672_v36  ;;  %v4138_v37 = vor.u32 %v4137_v55, %v4133_v53  ;;  %v9896_v26 = vld [vmem:[%s18601_s3 + $0x450] sm:$0xf]  ;;  %v11678_v36 = vld [vmem:[%s18601_s3 + $0x454] sm:$0xf0] }
 0x2cc   : > { %v1350_v18 = vmax.f32 %v1262_v45, %v1307_v32  ;;  %v13385_v31 = vsel %vm3162_vm7, %v18763_v20, %v18619_v14  ;;  %1879 = vmatpush.bf16.msrb.mxu3 %v9309_v39  ;;  %v9906_v32 = vld [vmem:[%s18601_s3 + $0x468] sm:$0xf0]  ;;  %v1407_v14 = vmax.f32 %v1389_v5, 0.0  ;;  %v1570_v59 = vor.u32 %v1568_v12, %v13281_v21  ;;  %v11677_v55 = vld [vmem:[%s18601_s3 + $0x454] sm:$0xf] }
 0x2cd   : > { %18764 = vst [vmem:[#allocation25_spill] sm:$0xff] %v13385_v31  ;;  %v9909_v20 = vor.u32 %v11679_v43, %v9906_v32  ;;  %3510 = vmatpush.bf16.msra.mxu1 %v9905_v60  ;;  %v13419_v5 = vor.u32 %v5853_v40, %v5852_v50  ;;  %v13423_v53 = vsel %vm1531_vm2, %v4138_v37, %v13398_v27  ;;  %v9898_v60 = vld [vmem:[%s18601_s3 + $0x458] sm:$0xf0]  ;;  %v9296_v50 = vld [vmem:[%s18601_s3] sm:$0xf] }
 0x2ce   : > { %v13387_v45 = vld [vmem:[#allocation2 + $0x28] sm:$0xff]  ;;  %v1368_v19 = vmax.f32 %v18765_v9, %v1350_v18  ;;  %18766 = vst [vmem:[#allocation26_spill] sm:$0xff] %v13423_v53  ;;  %v9897_v43 = vor.u32 %v11678_v36, %v9896_v26  ;;  %v9901_v40 = vor.u32 %v11677_v55, %v9898_v60 }
 0x2cf   : > { %v13389_v52 = vld [vmem:[#allocation2 + $0x24] sm:$0xff]   ;;  %v1572_v3 = vshll.u32 %v13387_v45, 16  ;;  %3549 = vmatpush.bf16.msra.mxu0 %v9909_v20 }
 0x2d0   : > { %v2927_v39 = vshrl.u32 %v13389_v52, 16  ;;  %v2930_v47 = vshll.u32 %v13389_v52, 16  ;;  %v1390_v30 = vadd.f32 %v12895_v38, %v1368_v19  ;;  %v11540_v37 = vld [vmem:[%s18601_s3 + $0x4] sm:$0xf0] }
 0x2d1   : > { %v1120_v4 = vpop.f32.mrf.mxu0  ;;  %v13425_v12 = vrot.slane %v1572_v3, 1  ;;  %v9297_v61 = vor.u32 %v11540_v37, %v9296_v50  ;;  %3511 = vmatpush.bf16.msra.mxu1 %v9897_v43  ;;  %v13447_v19 = vld [vmem:[#allocation2 + $0x24] sm:$0xff]  ;;  %v9890_v43 = vld [vmem:[%s18601_s3 + $0x448] sm:$0xf0] }
 0x2d2   : > { %v2929_v21 = vrot.slane %v2927_v39, 2  ;;  %v2932_v18 = vrot.slane %v2930_v47, 3  ;;  %v1408_v32 = vmax.f32 %v1390_v30, 0.0  ;;  %v1310_v9 = vadd.f32 %v1309_v6, %v1120_v4  ;;  %v1311_v36 = vpop.f32.mrf.mxu1  ;;  %v11539_v6 = vld [vmem:[%s18601_s3 + $0x4] sm:$0xf] }
 0x2d3   : > { %v1575_v20 = vsel %vm1531_vm2, %v1570_v59, %v13425_v12  ;;  %v9298_v30 = vld [vmem:[%s18601_s3 + $0x8] sm:$0xf0]  ;;  %v3406_v4 = vrot.slane %v2927_v39, 3  ;;  %v11675_v39 = vld [vmem:[%s18601_s3 + $0x444] sm:$0xf]  ;;  %1841 = vmatpush.bf16.msrb.mxu2 %v9297_v61  ;;  %3550 = vmatpush.bf16.msra.mxu0 %v9901_v40 }
 0x2d4   : > { %v13439_v26 = vor.u32 %v2932_v18, %v2929_v21  ;;  %v12034_v55 = vpack.c.bf16 %v1408_v32, %v1407_v14  ;;  %v1351_v60 = vmax.f32 %v12784_v29, %v1310_v9  ;;  %1698 = vmatmul.bf16.gmra.mxu2 %v1575_v20  ;;  %1737 = vmatmul.bf16.gmra.mxu3 %v1575_v20  ;;  %v9888_v21 = vld [vmem:[%s18601_s3 + $0x440] sm:$0xf]  ;;  %v11676_v18 = vld [vmem:[%s18601_s3 + $0x444] sm:$0xf0]  ;;  %v3407_v32 = vrot.slane %v2930_v47, 4 }
 0x2d5   : > { %v9301_v59 = vor.u32 %v11539_v6, %v9298_v30  ;;  %v9889_v29 = vor.u32 %v11676_v18, %v9888_v21  ;;  %v18767_v9 = vmax.f32 %v12570_v34, %v12679_v54  ;;  %v9893_v37 = vor.u32 %v11675_v39, %v9890_v43  ;;  %v9432_v61 = vld [vmem:[%s18601_s3 + $0x170] sm:$0xf]  ;;  %v9882_v21 = vld [vmem:[%s18601_s3 + $0x438] sm:$0xf0] }
 0x2d6   : > { %v2934_v14 = vsel %vm2890_vm4, %v13285_v15, %v13439_v26  ;;  %12104 = vst [vmem:[#allocation2 + $0x30] sm:$0xff] %v12034_v55   ;;  %v18768_v20 = vshrl.u32 %v13387_v45, 16  ;;  %v11586_v15 = vld [vmem:[%s18601_s3 + $0x174] sm:$0xf0]  ;;  %v13476_v47 = vor.u32 %v3407_v32, %v3406_v4  ;;  %v2182_v34 = vrot.slane %v1572_v3, 2 }
 0x2d7   : > { %v1369_v50 = vmax.f32 %v18767_v9, %v1351_v60  ;;  %3062 = vmatmul.bf16.gmra.mxu1 %v2934_v14  ;;  %3101 = vmatmul.bf16.gmra.mxu0 %v2934_v14  ;;  %v18624_v54 = vrot.slane %v13447_v19, 2  ;;  %v9433_v40 = vor.u32 %v11586_v15, %v9432_v61  ;;  %v9880_v30 = vld [vmem:[%s18601_s3 + $0x430] sm:$0xf]  ;;  %v11674_v55 = vld [vmem:[%s18601_s3 + $0x434] sm:$0xf0]  ;;  %v13491_v4 = vsel %vm3385_vm5, %v13268_v25, %v13419_v5 }
 0x2d8   : > { %v2181_v6 = vrot.slane %v18768_v20, 1  ;;  %1880 = vmatpush.bf16.msrb.mxu3 %v9301_v59  ;;  %3512 = vmatpush.bf16.msra.mxu1 %v9889_v29  ;;  %v11673_v60 = vld [vmem:[%s18601_s3 + $0x434] sm:$0xf]  ;;  %18769 = vst [vmem:[#allocation27_spill] sm:$0xff] %v13491_v4  ;;  %v9881_v59 = vor.u32 %v11674_v55, %v9880_v30  ;;  %v13499_v18 = vsel %vm3385_vm5, %v13290_v1, %v13476_v47  ;;  %v18770_v14 = vrot.slane %v13266_v28, 2 }
 0x2d9   : > { %v1122_v3 = vpop.f32.mrf.mxu0  ;;  %3551 = vmatpush.bf16.msra.mxu0 %v9893_v37  ;;  %v1267_v43 = vadd.f32 %v12782_v42, %v12788_v49  ;;  %2033 = vmatpush.bf16.msra.mxu2 %v9433_v40  ;;  %v9885_v9 = vor.u32 %v11673_v60, %v9882_v21  ;;  %v9872_v1 = vld [vmem:[%s18601_s3 + $0x420] sm:$0xf]  ;;  %v11672_v37 = vld [vmem:[%s18601_s3 + $0x424] sm:$0xf0]  ;;  %v9874_v42 = vld [vmem:[%s18601_s3 + $0x428] sm:$0xf0]  ;;  %v1391_v30 = vadd.f32 %v12895_v38, %v1369_v50 }
 0x2da   : > { %v13501_v39 = vor.u32 %v2182_v34, %v2181_v6  ;;  %v13508_v29 = vsel %vm2403_vm6, %v18770_v14, %v18624_v54  ;;  %v1312_v32 = vadd.f32 %v1311_v36, %v1122_v3  ;;  %v9873_v20 = vor.u32 %v11672_v37, %v9872_v1  ;;  %v11671_v6 = vld [vmem:[%s18601_s3 + $0x424] sm:$0xf]  ;;  %v11585_v49 = vld [vmem:[%s18601_s3 + $0x174] sm:$0xf]  ;;  %v9434_v15 = vld [vmem:[%s18601_s3 + $0x178] sm:$0xf0]  ;;  %v1314_v55 = vpop.f32.mrf.mxu1 }
 0x2db   : > { %18771 = vst [vmem:[#allocation28_spill] sm:$0xff] %v13508_v29  ;;  %v9864_v34 = vld [vmem:[%s18601_s3 + $0x410] sm:$0xf]  ;;  %v11670_v40 = vld [vmem:[%s18601_s3 + $0x414] sm:$0xf0]  ;;  %v12074_v1 = vunpack.c.h.b16 %v13287_v63  ;;  %v12230_v29 = vld [vmem:[#allocation2 + $0x1c] sm:$0xff] }
 0x2dc   : > { %3513 = vmatpush.bf16.msra.mxu1 %v9881_v59  ;;  %v13530_v36 = vsel %vm2156_vm3, %v13329_v13, %v13501_v39  ;;  %v1352_v61 = vmax.f32 %v1267_v43, %v1312_v32  ;;  %v9877_v13 = vor.u32 %v11671_v6, %v9874_v42  ;;  %v9437_v59 = vor.u32 %v11585_v49, %v9434_v15  ;;  %v18772_v21 = vld [vmem:[#allocation10_spill] sm:$0xff]  ;;  %v9866_v50 = vld [vmem:[%s18601_s3 + $0x418] sm:$0xf0]  ;;  %v11584_v63 = vld [vmem:[%s18601_s3 + $0x164] sm:$0xf0] }
 0x2dd   : > { %v1480_v60 = vld [vmem:[#allocation2 + $0x30] sm:$0x1]  ;;  %3552 = vmatpush.bf16.msra.mxu0 %v9885_v9  ;;  %v18773_v14 = vmax.f32 %v12574_v41, %v18772_v21  ;;  %v11669_v38 = vld [vmem:[%s18601_s3 + $0x414] sm:$0xf]  ;;  %v9424_v9 = vld [vmem:[%s18601_s3 + $0x160] sm:$0xf]  ;;  %v9865_v41 = vor.u32 %v11670_v40, %v9864_v34 }
 0x2de   : > { %v13542_v3 = vld [vmem:[#allocation2 + $0x30] sm:$0xf]  ;;  %v1523_v32 = vunpack.c.l.b16 %v1480_v60  ;;  %2072 = vmatpush.bf16.msra.mxu3 %v9437_v59  ;;  %v13564_v6 = vld [vmem:[%s18600_s2] ss:$0 sm:$0xff]  ;;  %v11668_v34 = vld [vmem:[%s18601_s3 + $0x404] sm:$0xf0]  ;;  %v9869_v59 = vor.u32 %v11669_v38, %v9866_v50  ;;  %v9425_v21 = vor.u32 %v11584_v63, %v9424_v9 }
 0x2df   : > { %v1370_v43 = vmax.f32 %v18773_v14, %v1352_v61  ;;  %v18623_v37 = vunpack.c.l.b16 %v13542_v3  ;;  %v9856_v15 = vld [vmem:[%s18601_s3 + $0x400] sm:$0xf]  ;;  %v1409_v40 = vmax.f32 %v1391_v30, 0.0  ;;  %v11667_v14 = vld [vmem:[%s18601_s3 + $0x404] sm:$0xf]  ;;  %v18775_v30 = vshrl.u32 %v13387_v45, 16 }
 0x2e0   : > { %3514 = vmatpush.bf16.msra.mxu1 %v9873_v20  ;;  %v13567_v49 = vpack.c.b16 %v1523_v32, %v1523_v32  ;;  %v2869_v20 = vld [vmem:[#allocation2 + $0x34] sm:$0x7]  ;;  %v9858_v54 = vld [vmem:[%s18601_s3 + $0x408] sm:$0xf0]  ;;  %2034 = vmatpush.bf16.msra.mxu2 %v9425_v21  ;;  %v9857_v9 = vor.u32 %v11668_v34, %v9856_v15  ;;  %v18779_v45 = vmax.f32 %v18777_v23, %v18778_v51  ;;  %v18780_v51 = vld [vmem:[#allocation15_spill] sm:$0xff]  ;;  %v4396_v33 = vrot.slane %v12230_v29, 1 }
 0x2e1   : > { %v1392_v42 = vadd.f32 %v13564_v6, %v1370_v43  ;;  %v13571_v61 = vpack.c.b16 %v18623_v37, %v12074_v1  ;;  %v1125_v60 = vpop.f32.mrf.mxu0  ;;  %3553 = vmatpush.bf16.msra.mxu0 %v9877_v13  ;;  %v1578_v13 = vor.u32 %v18775_v30, %v13425_v12  ;;  %v2888_v50 = vunpack.c.l.b16 %v2869_v20  ;;  %v18781_v23 = vld [vmem:[#allocation13_spill] sm:$0xff] }
 0x2e2   : > { %v1315_v32 = vadd.f32 %v1314_v55, %v1125_v60  ;;  %v1580_v1 = vshll.u32 %v13567_v49, 16  ;;  %v18776_v55 = vld [vmem:[#allocation14_spill] sm:$0xff]  ;;  %v9861_v31 = vor.u32 %v11667_v14, %v9858_v54  ;;  %v1272_v21 = vadd.f32 %v18781_v23, %v18780_v51 }
 0x2e3   : > { %18774 = vst [vmem:[#allocation10_spill] sm:$0xff] %v13571_v61  ;;  %v1410_v43 = vmax.f32 %v1392_v42, 0.0  ;;  %v2936_v37 = vshrl.u32 %v13571_v61, 16  ;;  %v2939_v38 = vshll.u32 %v13571_v61, 16  ;;  %v13596_v34 = vpack.c.b16 %v2888_v50, %v2888_v50 }
 0x2e4   : > { %3515 = vmatpush.bf16.msra.mxu1 %v9865_v41  ;;  %v1353_v42 = vmax.f32 %v18776_v55, %v1315_v32  ;;  %v1582_v60 = vrot.slane %v1580_v1, 1  ;;  %v1316_v41 = vpop.f32.mrf.mxu1  ;;  %v11582_v32 = vld [vmem:[%s18601_s3 + $0x154] sm:$0xf0] }
 0x2e5   : > { %v12039_v63 = vpack.c.bf16 %v1410_v43, %v1409_v40  ;;  %v2938_v53 = vrot.slane %v2936_v37, 2  ;;  %v2941_v4 = vrot.slane %v2939_v38, 3  ;;  %3554 = vmatpush.bf16.msra.mxu0 %v9869_v59  ;;  %v3410_v25 = vrot.slane %v2936_v37, 3  ;;  %v13598_v40 = vld [vmem:[#allocation2 + $0x2c] sm:$0xff] }
 0x2e6   : > { %v1371_v12 = vmax.f32 %v18779_v45, %v1353_v42  ;;  %v1583_v30 = vsel %vm1531_vm2, %v1578_v13, %v1582_v60  ;;  %v3411_v20 = vrot.slane %v2939_v38, 4  ;;  %v9416_v43 = vld [vmem:[%s18601_s3 + $0x150] sm:$0xf]  ;;  %v4868_v1 = vrot.slane %v13598_v40, 2  ;;  %v18785_v60 = vld [vmem:[#allocation9_spill] sm:$0xff]  ;;  %v18786_v45 = vld [vmem:[#allocation12_spill] sm:$0xff] }
 0x2e7   : > { %12105 = vst [vmem:[#allocation2 + $0x38] sm:$0xff] %v12039_v63   ;;  %1703 = vmatmul.bf16.gmra.mxu2 %v1583_v30  ;;  %1742 = vmatmul.bf16.gmra.mxu3 %v1583_v30  ;;  %v2942_v15 = vor.u32 %v2941_v4, %v2938_v53  ;;  %v11583_v53 = vld [vmem:[%s18601_s3 + $0x164] sm:$0xf]  ;;  %v2948_v38 = vshll.u32 %v13596_v34, 16  ;;  %v9417_v50 = vor.u32 %v11582_v32, %v9416_v43  ;;  %v18783_v63 = vrot.slane %v13447_v19, 2 }
 0x2e8   : > { %3516 = vmatpush.bf16.msra.mxu1 %v9857_v9  ;;  %v13600_v59 = vor.u32 %v3411_v20, %v3410_v25  ;;  %v9426_v25 = vld [vmem:[%s18601_s3 + $0x168] sm:$0xf0]  ;;  %v1393_v42 = vadd.f32 %v13564_v6, %v1371_v12  ;;  %v18787_v30 = vmax.f32 %v18785_v60, %v18786_v45  ;;  %v18631_v32 = vrot.slane %v13571_v61, 2  ;;  %v11581_v60 = vld [vmem:[%s18601_s3 + $0x154] sm:$0xf] }
 0x2e9   : > { %v1127_v54 = vpop.f32.mrf.mxu0  ;;  %v2943_v37 = vsel %vm2890_vm4, %v13439_v26, %v2942_v15  ;;  %3555 = vmatpush.bf16.msra.mxu0 %v9861_v31  ;;  %v2945_v31 = vshrl.u32 %v13596_v34, 16  ;;  %v9429_v26 = vor.u32 %v11583_v53, %v9426_v25  ;;  %v13632_v55 = vsel %vm2403_vm6, %v18783_v63, %v4868_v1  ;;  %2035 = vmatpush.bf16.msra.mxu2 %v9417_v50  ;;  %v9418_v45 = vld [vmem:[%s18601_s3 + $0x158] sm:$0xf0] }
 0x2ea   : > { %v1317_v14 = vadd.f32 %v1316_v41, %v1127_v54  ;;  %3067 = vmatmul.bf16.gmra.mxu1 %v2943_v37  ;;  %3106 = vmatmul.bf16.gmra.mxu0 %v2943_v37  ;;  %v13615_v4 = vsel %vm3385_vm5, %v13476_v47, %v13600_v59  ;;  %v2675_v47 = vrot.slane %v13389_v52, 2  ;;  %18784 = vst [vmem:[#allocation8_spill] sm:$0xff] %v13632_v55  ;;  %v18788_v41 = vrot.slane %v13260_v62, 2  ;;  %v11611_v55 = vld [vmem:[%s18601_s3 + $0x244] sm:$0xf] }
 0x2eb   : > { %2073 = vmatpush.bf16.msra.mxu3 %v9429_v26  ;;  %v2947_v51 = vrot.slane %v2945_v31, 2  ;;  %v2950_v23 = vrot.slane %v2948_v38, 3  ;;  %v1411_v53 = vmax.f32 %v1393_v42, 0.0  ;;  %v13650_v26 = vld [vmem:[#allocation2 + $0x28] sm:$0xff]   ;;  %v13655_v31 = vld [vmem:[#allocation2 + $0x30] sm:$0xff]   ;;  %v12223_v42 = vld [vmem:[#allocation2] sm:$0xff] }
 0x2ec   : > { %v1354_v13 = vmax.f32 %v1272_v21, %v1317_v14  ;;  %v13641_v54 = vsel %vm2403_vm6, %v18788_v41, %v2675_v47  ;;  %v3364_v21 = vld [vmem:[#allocation2 + $0x34] sm:$0xf]  ;;  %18791 = vst [vmem:[#allocation13_spill] sm:$0xff] %v13650_v26  ;;  %v18633_v38 = vshrl.u32 %v13650_v26, 16  ;;  %v18632_v50 = vshll.u32 %v13650_v26, 16 }
 0x2ed   : > { %18789 = vst [vmem:[#allocation11_spill] sm:$0xff] %v13641_v54  ;;  %v13652_v43 = vunpack.c.l.b16 %v3364_v21  ;;  %v13662_v63 = vsel %vm2403_vm6, %v2675_v47, %v18631_v32  ;;  %v18795_v47 = vunpack.c.l.b16 %v13542_v3  ;;  %v7294_v32 = vld [vmem:[#allocation2 + $0x18] sm:$0xc] }
 0x2ee   : > { %v13627_v9 = vld [vmem:[#allocation2 + $0x34] sm:$0xff]  ;;  %v1372_v20 = vmax.f32 %v18787_v30, %v1354_v13  ;;  %18792 = vst [vmem:[#allocation9_spill] sm:$0xff] %v13655_v31  ;;  %v18636_v30 = vshrl.u32 %v13655_v31, 16  ;;  %v5857_v3 = vrot.slane %v18632_v50, 4 }
 0x2ef   : > { %18782 = vst [vmem:[#allocation14_spill] sm:$0xff] %v13627_v9  ;;  %v18634_v14 = vrot.slane %v13627_v9, 2  ;;  %v13677_v41 = vpack.c.b16 %v13652_v43, %v18795_v47 }
 0x2f0   : > { %v1394_v37 = vadd.f32 %v13564_v6, %v1372_v20  ;;  %v2951_v6 = vor.u32 %v2950_v23, %v2947_v51  ;;  %18793 = vst [vmem:[#allocation12_spill] sm:$0xff] %v13662_v63  ;;  %v3170_v20 = vrot.slane %v13389_v52, 3  ;;  %v9421_v51 = vor.u32 %v11581_v60, %v9418_v45 }
 0x2f1   : > { %v13648_v12 = vsel %vm2403_vm6, %v4868_v1, %v18634_v14  ;;  %v13664_v1 = vld [vmem:[#allocation2 + $0x38] sm:$0xff]   ;;  %18796 = vst [vmem:[#allocation30_spill] sm:$0xff] %v13677_v41  ;;  %v18635_v23 = vshll.u32 %v13655_v31, 16  ;;  %v5856_v52 = vrot.slane %v18633_v38, 3  ;;  %v4148_v60 = vshll.u32 %v13266_v28, 16 }
 0x2f2   : > { %v1412_v25 = vmax.f32 %v1394_v37, 0.0  ;;  %18790 = vst [vmem:[#allocation15_spill] sm:$0xff] %v13648_v12  ;;  %v2952_v37 = vsel %vm2890_vm4, %v2942_v15, %v2951_v6  ;;  %v18637_v21 = vshrl.u32 %v13664_v1, 16  ;;  %v9408_v15 = vld [vmem:[%s18601_s3 + $0x140] sm:$0xf]  ;;  %v3172_v6 = vrot.slane %v13571_v61, 3  ;;  %2074 = vmatpush.bf16.msra.mxu3 %v9421_v51 }
 0x2f3   : > { %18794 = vst [vmem:[#allocation29_spill] sm:$0xff] %v13664_v1  ;;  %v5858_v47 = vor.u32 %v5857_v3, %v5856_v52  ;;  %v5861_v38 = vrot.slane %v18635_v23, 4  ;;  %v3174_v14 = vrot.slane %v13596_v34, 3  ;;  %v18801_v3 = vshll.u32 %v13664_v1, 16  ;;  %v11743_v12 = vld [vmem:[%s18601_s3 + $0x604] sm:$0xf0] }
 0x2f4   : > { %v12044_v13 = vpack.c.bf16 %v1412_v25, %v1411_v53  ;;  %v18797_v25 = vrot.slane %v13260_v62, 3  ;;  %v11580_v62 = vld [vmem:[%s18601_s3 + $0x144] sm:$0xf0]  ;;  %v13706_v50 = vsel %vm3162_vm7, %v3170_v20, %v3172_v6  ;;  %v5864_v52 = vrot.slane %v18637_v21, 3 }
 0x2f5   : > { %v9409_v45 = vor.u32 %v11580_v62, %v9408_v15  ;;  %18799 = vst [vmem:[#allocation32_spill] sm:$0xff] %v13706_v50  ;;  %v13714_v51 = vsel %vm3385_vm5, %v13419_v5, %v5858_v47  ;;  %v5865_v15 = vrot.slane %v18801_v3, 4  ;;  %v13722_v23 = vsel %vm3162_vm7, %v3172_v6, %v3174_v14  ;;  %v9410_v5 = vld [vmem:[%s18601_s3 + $0x148] sm:$0xf0] }
 0x2f6   : > { %12106 = vst [vmem:[#allocation2 + $0x40] sm:$0xff] %v12044_v13   ;;  %v13686_v13 = vsel %vm3162_vm7, %v18797_v25, %v3170_v20  ;;  %v5860_v25 = vrot.slane %v18636_v30, 3  ;;  %v4150_v34 = vrot.slane %v4148_v60, 1  ;;  %v7313_v30 = vunpack.c.l.b16 %v7294_v32 }
 0x2f7   : > { %1842 = vmatmul.bf16.vlgmr.msrb.gmra.mxu2 %v12223_v42  ;;  %1881 = vmatmul.bf16.vlgmr.msrb.gmra.mxu3 %v12223_v42  ;;  %18798 = vst [vmem:[#allocation31_spill] sm:$0xff] %v13686_v13  ;;  %v13692_v42 = vld [vmem:[#allocation2 + $0x18] sm:$0xff]   ;;  %v4152_v3 = vshrl.u32 %v13266_v28, 16  ;;  %v4156_v32 = vshll.u32 %v13447_v19, 16  ;;  %v4628_v41 = vrot.slane %v4148_v60, 2  ;;  %v18835_v61 = vshll.u32 %v13627_v9, 16 }
 0x2f8   : > { %v12098_v53 = vunpack.c.h.b16 %v13692_v42  ;;  %2036 = vmatpush.bf16.msra.mxu2 %v9409_v45  ;;  %18800 = vst [vmem:[#allocation33_spill] sm:$0xff] %v13714_v51  ;;  %v5862_v62 = vor.u32 %v5861_v38, %v5860_v25  ;;  %v11579_v42 = vld [vmem:[%s18601_s3 + $0x144] sm:$0xf]  ;;  %v13730_v45 = vor.u32 %v5865_v15, %v5864_v52  ;;  %v18834_v51 = vshrl.u32 %v13627_v9, 16 }
 0x2f9   : > { %18802 = vst [vmem:[#allocation34_spill] sm:$0xff] %v13722_v23  ;;  %v9413_v21 = vor.u32 %v11579_v42, %v9410_v5  ;;  %v13744_v25 = vld [vmem:[#allocation2 + $0x20] sm:$0xff]  ;;  %v4154_v52 = vor.u32 %v4152_v3, %v4150_v34  ;;  %v4158_v15 = vrot.slane %v4156_v32, 1  ;;  %v18807_v42 = vshll.u32 %v13178_v16, 16 }
 0x2fa   : > { %3072 = vmatmul.bf16.gmra.mxu1 %v2952_v37  ;;  %3111 = vmatmul.bf16.gmra.mxu0 %v2952_v37  ;;  %v4144_v37 = vshrl.u32 %v13178_v16, 16  ;;  %18803 = vst [vmem:[#allocation35_spill] sm:$0xff] %v13730_v45  ;;  %v13742_v38 = vsel %vm3385_vm5, %v5862_v62, %v13730_v45  ;;  %v7314_v28 = vpack.c.b16 %v12098_v53, %v7313_v30  ;;  %v9400_v16 = vld [vmem:[%s18601_s3 + $0x130] sm:$0xf]  ;;  %v11578_v30 = vld [vmem:[%s18601_s3 + $0x134] sm:$0xf0] }
 0x2fb   : > { %18806 = vst [vmem:[#allocation38_spill] sm:$0xff] %v13742_v38  ;;  %2075 = vmatpush.bf16.msra.mxu3 %v9413_v21  ;;  %v13749_v5 = vsel %vm1531_vm2, %v4154_v52, %v4158_v15  ;;  %v9401_v21 = vor.u32 %v11578_v30, %v9400_v16  ;;  %v11577_v52 = vld [vmem:[%s18601_s3 + $0x134] sm:$0xf]  ;;  %v9392_v30 = vld [vmem:[%s18601_s3 + $0x120] sm:$0xf]  ;;  %v18662_v45 = vshrl.u32 %v13627_v9, 16 }
 0x2fc   : > { %v4146_v20 = vor.u32 %v4144_v37, %v13398_v27  ;;  %v13734_v27 = vsel %vm3385_vm5, %v5858_v47, %v5862_v62  ;;  %v4623_v6 = vrot.slane %v4144_v37, 1  ;;  %v4624_v47 = vrot.slane %v18807_v42, 2  ;;  %18808 = vst [vmem:[#allocation39_spill] sm:$0xff] %v13749_v5  ;;  %v13754_v37 = vld [vmem:[#allocation2 + $0x8] sm:$0xff] }
 0x2fd   : > { %18804 = vst [vmem:[#allocation36_spill] sm:$0xff] %v13734_v27  ;;  %v7315_v23 = vrot.slane %v7314_v28, 2  ;;  %v7316_v62 = vrot.slane %v13744_v25, 2  ;;  %2037 = vmatpush.bf16.msra.mxu2 %v9401_v21  ;;  %v13779_v42 = vld [vmem:[#allocation2 + $0x28] sm:$0xff]  ;;  %v4639_v13 = vrot.slane %v18834_v51, 1  ;;  %v4640_v63 = vrot.slane %v18835_v61, 2 }
 0x2fe   : > { %v13737_v14 = vsel %vm1531_vm2, %v4146_v20, %v4150_v34  ;;  %v4627_v20 = vrot.slane %v4152_v3, 1  ;;  %v6826_v34 = vld [vmem:[#allocation2 + $0x18] sm:$0xe]  ;;  %v11576_v21 = vld [vmem:[%s18601_s3 + $0x124] sm:$0xf0] }
 0x2ff   : > { %18805 = vst [vmem:[#allocation37_spill] sm:$0xff] %v13737_v14  ;;  %v13751_v14 = vor.u32 %v4624_v47, %v4623_v6  ;;  %v13765_v3 = vsel %vm2403_vm6, %v7315_v23, %v7316_v62  ;;  %v6845_v28 = vunpack.c.l.b16 %v6826_v34  ;;  %v4160_v47 = vshrl.u32 %v13447_v19, 16  ;;  %v11713_v61 = vld [vmem:[%s18601_s3 + $0x544] sm:$0xf] }
 0x300   : > { %v4629_v60 = vor.u32 %v4628_v41, %v4627_v20  ;;  %18810 = vst [vmem:[#allocation41_spill] sm:$0xff] %v13765_v3  ;;  %v9402_v41 = vld [vmem:[%s18601_s3 + $0x138] sm:$0xf0] }
 0x301   : > { %18809 = vst [vmem:[#allocation40_spill] sm:$0xff] %v13751_v14  ;;  %v9405_v23 = vor.u32 %v11577_v52, %v9402_v41  ;;  %v4162_v20 = vor.u32 %v4160_v47, %v4158_v15  ;;  %v13791_v34 = vpack.c.b16 %v12098_v53, %v6845_v28  ;;  %v9393_v52 = vor.u32 %v11576_v21, %v9392_v30  ;;  %v4081_v53 = vld [vmem:[#allocation2 + $0x3c] sm:$0x1] }
 0x302   : > { %v13771_v6 = vsel %vm2156_vm3, %v13751_v14, %v4629_v60  ;;  %v18647_v41 = vrot.slane %v13779_v42, 2  ;;  %v6594_v15 = vshll.u32 %v13744_v25, 16 }
 0x303   : > { %18811 = vst [vmem:[#allocation42_spill] sm:$0xff] %v13771_v6  ;;  %2076 = vmatpush.bf16.msra.mxu3 %v9405_v23  ;;  %2038 = vmatpush.bf16.msra.mxu2 %v9393_v52  ;;  %v4631_v23 = vrot.slane %v4160_v47, 1  ;;  %v6598_v6 = vshrl.u32 %v13744_v25, 16  ;;  %v7070_v28 = vshrl.u32 %v13791_v34, 16 }
 0x304   : > { %18812 = vst [vmem:[#allocation43_spill] sm:$0xff] %v13791_v34  ;;  %v13801_v3 = vsel %vm2403_vm6, %v7316_v62, %v18647_v41  ;;  %v13806_v21 = vrot.slane %v6594_v15, 1  ;;  %v13811_v41 = vld [vmem:[#allocation2 + $0x10] sm:$0xff] }
 0x305   : > { %18814 = vst [vmem:[#allocation45_spill] sm:$0xff] %v13801_v3  ;;  %v7077_v14 = vrot.slane %v6598_v6, 1  ;;  %v7072_v52 = vrot.slane %v7070_v28, 1  ;;  %v11575_v3 = vld [vmem:[%s18601_s3 + $0x124] sm:$0xf] }
 0x306   : > { %18815 = vst [vmem:[#allocation46_spill] sm:$0xff] %v13806_v21 }
 0x307   : > { %1847 = vmatmul.bf16.gmra.mxu2 %v13754_v37  ;;  %1886 = vmatmul.bf16.gmra.mxu3 %v13754_v37 }
 0x30a   : > { %3517 = vmatmul.bf16.vlgmr.msra.gmra.mxu1 %v13132_v44  ;;  %3556 = vmatmul.bf16.vlgmr.msra.gmra.mxu0 %v13132_v44  ;;  %v18641_v44 = vshll.u32 %v13598_v40, 16 }
 0x30c   : > { %v4166_v16 = vrot.slane %v18641_v44, 1  ;;  %v4632_v44 = vrot.slane %v4156_v32, 2  ;;  %v4124_v32 = vunpack.c.l.b16 %v4081_v53  ;;  %v6600_v53 = vor.u32 %v6598_v6, %v13806_v21 }
 0x30e   : > { %v13794_v19 = vsel %vm1531_vm2, %v4162_v20, %v4166_v16  ;;  %v7073_v20 = vshll.u32 %v13791_v34, 16  ;;  %v4633_v30 = vor.u32 %v4632_v44, %v4631_v23  ;;  %v6602_v23 = vshll.u32 %v13779_v42, 16  ;;  %v13846_v34 = vld [vmem:[#allocation2 + $0x30] sm:$0xff] }
 0x30f   : > { %18813 = vst [vmem:[#allocation44_spill] sm:$0xff] %v13794_v19  ;;  %v7078_v19 = vrot.slane %v6594_v15, 2  ;;  %v6606_v15 = vshrl.u32 %v13779_v42, 16  ;;  %v18838_v51 = vrot.slane %v13846_v34, 2 }
 0x310   : > { %v7075_v47 = vrot.slane %v7073_v20, 2  ;;  %v13809_v5 = vsel %vm2156_vm3, %v4629_v60, %v4633_v30  ;;  %v6604_v60 = vrot.slane %v6602_v23, 1  ;;  %v7082_v20 = vrot.slane %v6602_v23, 2  ;;  %v11574_v23 = vld [vmem:[%s18601_s3 + $0x114] sm:$0xf0] }
 0x311   : > { %18816 = vst [vmem:[#allocation47_spill] sm:$0xff] %v13809_v5  ;;  %v7079_v62 = vor.u32 %v7078_v19, %v7077_v14  ;;  %v7081_v19 = vrot.slane %v6606_v15, 1 }
 0x312   : > { %v7076_v28 = vor.u32 %v7075_v47, %v7072_v52  ;;  %v9394_v52 = vld [vmem:[%s18601_s3 + $0x128] sm:$0xf0]  ;;  %v13833_v47 = vpack.c.b16 %v4124_v32, %v4124_v32  ;;  %v13844_v21 = vsel %vm1531_vm2, %v6600_v53, %v6604_v60 }
 0x313   : > { %v9397_v6 = vor.u32 %v11575_v3, %v9394_v52  ;;  %18818 = vst [vmem:[#allocation49_spill] sm:$0xff] %v13844_v21  ;;  %v13848_v32 = vor.u32 %v7082_v20, %v7081_v19 }
 0x314   : > { %v13823_v14 = vsel %vm2156_vm3, %v7076_v28, %v7079_v62  ;;  %v9384_v28 = vld [vmem:[%s18601_s3 + $0x110] sm:$0xf]  ;;  %v4180_v38 = vshll.u32 %v13833_v47, 16 }
 0x315   : > { %18817 = vst [vmem:[#allocation48_spill] sm:$0xff] %v13823_v14  ;;  %v18656_v14 = vshll.u32 %v13627_v9, 16  ;;  %v9385_v5 = vor.u32 %v11574_v23, %v9384_v28  ;;  %2077 = vmatpush.bf16.msra.mxu3 %v9397_v6  ;;  %v13856_v27 = vsel %vm2156_vm3, %v7079_v62, %v13848_v32  ;;  %v18661_v6 = vrot.slane %v13846_v34, 2 }
 0x316   : > { %v13815_v25 = vpop.f32.mrf.mxu2  ;;  %v13817_v44 = vpop.f32.mrf.mxu3  ;;  %18819 = vst [vmem:[#allocation50_spill] sm:$0xff] %v13856_v27  ;;  %v4182_v20 = vrot.slane %v4180_v38, 1  ;;  %v18822_v62 = vshll.u32 %v13598_v40, 16  ;;  %v18823_v27 = vrot.slane %v13779_v42, 2  ;;  %v18668_v42 = vrot.slane %v13650_v26, 3 }
 0x317   : > { %1852 = vmatmul.bf16.gmra.mxu2 %v13811_v41  ;;  %1891 = vmatmul.bf16.gmra.mxu3 %v13811_v41  ;;  %v4174_v52 = vrot.slane %v18656_v14, 1 }
 0x318   : > { %2039 = vmatpush.bf16.msra.mxu2 %v9385_v5  ;;  %v4636_v14 = vrot.slane %v18822_v62, 2  ;;  %v11573_v62 = vld [vmem:[%s18601_s3 + $0x114] sm:$0xf] }
 0x31a   : > { %3522 = vmatmul.bf16.gmra.mxu1 %v13220_v11  ;;  %3561 = vmatmul.bf16.gmra.mxu0 %v13220_v11  ;;  %v4168_v11 = vshrl.u32 %v13598_v40, 16 }
 0x31c   : > { %v4170_v3 = vor.u32 %v4168_v11, %v4166_v16  ;;  %v4178_v16 = vor.u32 %v18662_v45, %v4174_v52  ;;  %v4635_v23 = vrot.slane %v4168_v11, 1  ;;  %v18660_v11 = vrot.slane %v13655_v31, 2 }
 0x31e   : > { %v13858_v53 = vpop.f32.mrf.mxu2  ;;  %v13860_v28 = vpop.f32.mrf.mxu3  ;;  %v13863_v19 = vsel %vm1531_vm2, %v4170_v3, %v4174_v52  ;;  %v13869_v5 = vsel %vm1531_vm2, %v4178_v16, %v4182_v20  ;;  %v13878_v3 = vsel %vm2403_vm6, %v18823_v27, %v18661_v6  ;;  %v13884_v38 = vor.u32 %v4636_v14, %v4635_v23  ;;  %v13901_v20 = vld [vmem:[#allocation2 + $0x18] sm:$0xff] }
 0x31f   : > { %18820 = vst [vmem:[#allocation51_spill] sm:$0xff] %v13863_v19  ;;  %v18659_v16 = vrot.slane %v13650_v26, 2  ;;  %v18670_v14 = vrot.slane %v13655_v31, 3  ;;  %v18669_v6 = vshrl.u32 %v13846_v34, 16 }
 0x320   : > { %18821 = vst [vmem:[#allocation52_spill] sm:$0xff] %v13869_v5  ;;  %v13890_v40 = vsel %vm2156_vm3, %v4633_v30, %v13884_v38 }
 0x321   : > { %18824 = vst [vmem:[#allocation53_spill] sm:$0xff] %v13878_v3  ;;  %v13897_v27 = vsel %vm2403_vm6, %v18659_v16, %v18660_v11  ;;  %v9386_v16 = vld [vmem:[%s18601_s3 + $0x118] sm:$0xf0]  ;;  %v6610_v11 = vshll.u32 %v13846_v34, 16  ;;  %v6608_v3 = vor.u32 %v6606_v15, %v6604_v60  ;;  %v7085_v5 = vrot.slane %v18669_v6, 1 }
 0x322   : > { %18827 = vst [vmem:[#allocation56_spill] sm:$0xff] %v13890_v40  ;;  %v9389_v45 = vor.u32 %v11573_v62, %v9386_v16  ;;  %v10096_v16 = vld [vmem:[%s18601_s3 + $0x570] sm:$0xf]  ;;  %v11720_v62 = vld [vmem:[%s18601_s3 + $0x574] sm:$0xf0] }
 0x323   : > { %v13880_v21 = vpop.f32.mrf.mxu1  ;;  %v13882_v52 = vpop.f32.mrf.mxu0  ;;  %18828 = vst [vmem:[#allocation57_spill] sm:$0xff] %v13897_v27  ;;  %v13922_v27 = vsel %vm3162_vm7, %v18668_v42, %v18670_v14  ;;  %v13924_v40 = vrot.slane %v6610_v11, 1  ;;  %v7086_v19 = vrot.slane %v6610_v11, 2  ;;  %v11719_v15 = vld [vmem:[%s18601_s3 + $0x574] sm:$0xf]  ;;  %v10097_v11 = vor.u32 %v11720_v62, %v10096_v16 }
 0x324   : > { %18825 = vst [vmem:[#allocation54_spill] sm:$0xff] %v13880_v21  ;;  %2078 = vmatpush.bf16.msra.mxu3 %v9389_v45  ;;  %v9376_v6 = vld [vmem:[%s18601_s3 + $0x100] sm:$0xf]  ;;  %v11572_v14 = vld [vmem:[%s18601_s3 + $0x104] sm:$0xf0] }
 0x325   : > { %18826 = vst [vmem:[#allocation55_spill] sm:$0xff] %v13882_v52  ;;  %v9377_v16 = vor.u32 %v11572_v14, %v9376_v6  ;;  %v10088_v62 = vld [vmem:[%s18601_s3 + $0x560] sm:$0xf]  ;;  %v11717_v52 = vld [vmem:[%s18601_s3 + $0x564] sm:$0xf]  ;;  %3967 = vmatpush.bf16.msrb.mxu1 %v10097_v11 }
 0x326   : > { %v13905_v23 = vpop.f32.mrf.mxu2  ;;  %v13907_v30 = vpop.f32.mrf.mxu3  ;;  %18829 = vst [vmem:[#allocation58_spill] sm:$0xff] %v13922_v27  ;;  %v13954_v27 = vsel %vm1531_vm2, %v6608_v3, %v13924_v40  ;;  %v11716_v11 = vld [vmem:[%s18601_s3 + $0x554] sm:$0xf0] }
 0x327   : > { %1857 = vmatmul.bf16.gmra.mxu2 %v13901_v20  ;;  %1896 = vmatmul.bf16.gmra.mxu3 %v13901_v20  ;;  %18832 = vst [vmem:[#allocation61_spill] sm:$0xff] %v13954_v27  ;;  %v12314_v27 = vmov 0.0|0.0  }
 0x328   : > { %2040 = vmatpush.bf16.msra.mxu2 %v9377_v16  ;;  %v12047_v50 = vunpack.c.l.bf16 %v12314_v27 }
 0x32a   : > { %3527 = vmatmul.bf16.gmra.mxu1 %v13320_v17  ;;  %3566 = vmatmul.bf16.gmra.mxu0 %v13320_v17  ;;  %v10098_v17 = vld [vmem:[%s18601_s3 + $0x578] sm:$0xf0] }
 0x32b   : > { %v13939_v60 = vpop.f32.mrf.mxu1  ;;  %v13941_v42 = vpop.f32.mrf.mxu0  ;;  %v10101_v45 = vor.u32 %v11719_v15, %v10098_v17  ;;  %v11571_v17 = vld [vmem:[%s18601_s3 + $0x104] sm:$0xf] }
 0x32c   : > { %18830 = vst [vmem:[#allocation59_spill] sm:$0xff] %v13939_v60  ;;  %v13956_v60 = vor.u32 %v7086_v19, %v7085_v5  ;;  %v10090_v19 = vld [vmem:[%s18601_s3 + $0x568] sm:$0xf0]  ;;  %v13970_v5 = vld [vmem:[#allocation2 + $0x38] sm:$0xff] }
 0x32d   : > { %18831 = vst [vmem:[#allocation60_spill] sm:$0xff] %v13941_v42  ;;  %v11718_v42 = vld [vmem:[%s18601_s3 + $0x564] sm:$0xf0]  ;;  %4006 = vmatpush.bf16.msrb.mxu0 %v10101_v45  ;;  %v10093_v3 = vor.u32 %v11717_v52, %v10090_v19  ;;  %v10082_v52 = vld [vmem:[%s18601_s3 + $0x558] sm:$0xf0]  ;;  %v18682_v19 = vrot.slane %v13970_v5, 2 }
 0x32e   : > { %v10089_v21 = vor.u32 %v11718_v42, %v10088_v62  ;;  %v13975_v6 = vsel %vm2156_vm3, %v13848_v32, %v13956_v60  ;;  %v13977_v14 = vpop.f32.mrf.mxu2  ;;  %v13979_v15 = vpop.f32.mrf.mxu3  ;;  %v10080_v42 = vld [vmem:[%s18601_s3 + $0x550] sm:$0xf]  ;;  %v11715_v32 = vld [vmem:[%s18601_s3 + $0x554] sm:$0xf]  ;;  %v9378_v45 = vld [vmem:[%s18601_s3 + $0x108] sm:$0xf0] }
 0x32f   : > { %18833 = vst [vmem:[#allocation62_spill] sm:$0xff] %v13975_v6  ;;  %v10081_v16 = vor.u32 %v11716_v11, %v10080_v42  ;;  %v9381_v62 = vor.u32 %v11571_v17, %v9378_v45  ;;  %v10085_v6 = vor.u32 %v11715_v32, %v10082_v52  ;;  %v14019_v27 = vsel %vm2403_vm6, %v18838_v51, %v18682_v19  ;;  %v10074_v42 = vld [vmem:[%s18601_s3 + $0x548] sm:$0xf0]  ;;  %v14036_v51 = vld [vmem:[#allocation2 + $0x20] sm:$0xff] }
 0x330   : > { %3968 = vmatpush.bf16.msrb.mxu1 %v10089_v21  ;;  %v10072_v21 = vld [vmem:[%s18601_s3 + $0x540] sm:$0xf]  ;;  %18839 = vst [vmem:[#allocation65_spill] sm:$0xff] %v14019_v27  ;;  %v12049_v11 = vpack.c.bf16 %v12047_v50, %v12047_v50  ;;  %v14027_v32 = vor.u32 %v4640_v63, %v4639_v13  ;;  %v18685_v17 = vrot.slane %v13664_v1, 2  ;;  %v10077_v13 = vor.u32 %v11713_v61, %v10074_v42 }
 0x331   : > { %4007 = vmatpush.bf16.msrb.mxu0 %v10093_v3  ;;  %2079 = vmatpush.bf16.msra.mxu3 %v9381_v62  ;;  %v11714_v3 = vld [vmem:[%s18601_s3 + $0x544] sm:$0xf0]  ;;  %v18686_v62 = vrot.slane %v13664_v1, 3  ;;  %v18844_v61 = vrot.slane %v13655_v31, 3  ;;  %v18846_v19 = vshrl.u32 %v13846_v34, 16 }
 0x332   : > { %18840 = vst [vmem:[#allocation66_spill] sm:$0xff] %v14027_v32  ;;  %v10073_v52 = vor.u32 %v11714_v3, %v10072_v21  ;;  %v14033_v45 = vsel %vm2156_vm3, %v13884_v38, %v14027_v32  ;;  %v11602_v38 = vld [vmem:[%s18601_s3 + $0x1f4] sm:$0xf0]  ;;  %v6618_v3 = vshll.u32 %v13970_v5, 16  ;;  %v11711_v34 = vld [vmem:[%s18601_s3 + $0x534] sm:$0xf] }
 0x333   : > { %v14004_v54 = vpop.f32.mrf.mxu1  ;;  %v14006_v26 = vpop.f32.mrf.mxu0  ;;  %12107 = vst [vmem:[#allocation2 + $0x48] sm:$0xff] %v12049_v11   ;;  %v14063_v42 = vsel %vm3162_vm7, %v18844_v61, %v18686_v62  ;;  %v6616_v32 = vor.u32 %v18846_v19, %v13924_v40  ;;  %v11710_v61 = vld [vmem:[%s18601_s3 + $0x524] sm:$0xf0] }
 0x334   : > { %18836 = vst [vmem:[#allocation63_spill] sm:$0xff] %v14004_v54  ;;  %3969 = vmatpush.bf16.msrb.mxu1 %v10081_v16  ;;  %v18842_v16 = vrot.slane %v13655_v31, 2  ;;  %v14068_v27 = vrot.slane %v6618_v3, 1 }
 0x335   : > { %18837 = vst [vmem:[#allocation64_spill] sm:$0xff] %v14006_v26  ;;  %4008 = vmatpush.bf16.msrb.mxu0 %v10085_v6  ;;  %v9512_v6 = vld [vmem:[%s18601_s3 + $0x1f0] sm:$0xf] }
 0x336   : > { %18841 = vst [vmem:[#allocation67_spill] sm:$0xff] %v14033_v45  ;;  %v14040_v50 = vpop.f32.mrf.mxu2  ;;  %v14042_v63 = vpop.f32.mrf.mxu3  ;;  %v14055_v21 = vsel %vm2403_vm6, %v18842_v16, %v18685_v17  ;;  %v9513_v11 = vor.u32 %v11602_v38, %v9512_v6  ;;  %v7090_v17 = vrot.slane %v6618_v3, 2  ;;  %v10064_v6 = vld [vmem:[%s18601_s3 + $0x530] sm:$0xf]  ;;  %v10056_v3 = vld [vmem:[%s18601_s3 + $0x520] sm:$0xf]  ;;  %v14097_v62 = vsel %vm1531_vm2, %v6616_v32, %v14068_v27 }
 0x337   : > { %1862 = vmatmul.bf16.gmra.mxu2 %v14036_v51  ;;  %1901 = vmatmul.bf16.gmra.mxu3 %v14036_v51  ;;  %18843 = vst [vmem:[#allocation68_spill] sm:$0xff] %v14055_v21  ;;  %v9514_v32 = vld [vmem:[%s18601_s3 + $0x1f8] sm:$0xf0] }
 0x338   : > { %18845 = vst [vmem:[#allocation69_spill] sm:$0xff] %v14063_v42  ;;  %3970 = vmatpush.bf16.msrb.mxu1 %v10073_v52  ;;  %v11712_v52 = vld [vmem:[%s18601_s3 + $0x534] sm:$0xf0]  ;;  %2280 = vmatpush.bf16.msrb.mxu2 %v9513_v11  ;;  %v10058_v11 = vld [vmem:[%s18601_s3 + $0x528] sm:$0xf0] }
 0x339   : > { %4009 = vmatpush.bf16.msrb.mxu0 %v10077_v13  ;;  %v10065_v38 = vor.u32 %v11712_v52, %v10064_v6  ;;  %18849 = vst [vmem:[#allocation72_spill] sm:$0xff] %v14097_v62  ;;  %v11709_v13 = vld [vmem:[%s18601_s3 + $0x524] sm:$0xf]  ;;  %v11601_v6 = vld [vmem:[%s18601_s3 + $0x1f4] sm:$0xf]  ;;  %v10057_v52 = vor.u32 %v11710_v61, %v10056_v3 }
 0x33a   : > { %3532 = vmatmul.bf16.gmra.mxu1 %v13499_v18  ;;  %3571 = vmatmul.bf16.gmra.mxu0 %v13499_v18  ;;  %v10066_v18 = vld [vmem:[%s18601_s3 + $0x538] sm:$0xf0]  ;;  %v14111_v62 = vld [vmem:[#allocation2 + $0x40] sm:$0xff]  ;;  %v9517_v42 = vor.u32 %v11601_v6, %v9514_v32  ;;  %v11708_v3 = vld [vmem:[%s18601_s3 + $0x514] sm:$0xf0] }
 0x33b   : > { %v14082_v40 = vpop.f32.mrf.mxu1  ;;  %v14084_v19 = vpop.f32.mrf.mxu0  ;;  %v10069_v16 = vor.u32 %v11711_v34, %v10066_v18  ;;  %18850 = vst [vmem:[#allocation73_spill] sm:$0xff] %v14111_v62  ;;  %v18851_v34 = vshrl.u32 %v13970_v5, 16  ;;  %v5819_v61 = vld [vmem:[#allocation2 + $0x40] sm:$0xf]  ;;  %v11707_v6 = vld [vmem:[%s18601_s3 + $0x514] sm:$0xf] }
 0x33c   : > { %18847 = vst [vmem:[#allocation70_spill] sm:$0xff] %v14082_v40  ;;  %3971 = vmatpush.bf16.msrb.mxu1 %v10065_v38  ;;  %v10048_v38 = vld [vmem:[%s18601_s3 + $0x510] sm:$0xf]  ;;  %v6535_v40 = vld [vmem:[#allocation2 + $0x48] sm:$0x1]  ;;  %2319 = vmatpush.bf16.msrb.mxu3 %v9517_v42  ;;  %v18695_v42 = vrot.slane %v14111_v62, 2 }
 0x33d   : > { %18848 = vst [vmem:[#allocation71_spill] sm:$0xff] %v14084_v19  ;;  %v7089_v18 = vrot.slane %v18851_v34, 1  ;;  %4010 = vmatpush.bf16.msrb.mxu0 %v10069_v16  ;;  %v10061_v19 = vor.u32 %v11709_v13, %v10058_v11  ;;  %v9504_v16 = vld [vmem:[%s18601_s3 + $0x1e0] sm:$0xf]  ;;  %v11600_v13 = vld [vmem:[%s18601_s3 + $0x1e4] sm:$0xf0]  ;;  %v10049_v11 = vor.u32 %v11708_v3, %v10048_v38 }
 0x33e   : > { %v14115_v21 = vpop.f32.mrf.mxu2  ;;  %v14117_v45 = vpop.f32.mrf.mxu3  ;;  %v9505_v32 = vor.u32 %v11600_v13, %v9504_v16  ;;  %v7048_v34 = vld [vmem:[#allocation2 + $0x48] sm:$0x3]  ;;  %v18855_v38 = vrot.slane %v13970_v5, 2  ;;  %v14156_v13 = vunpack.c.l.b16 %v5819_v61  ;;  %v10040_v61 = vld [vmem:[%s18601_s3 + $0x500] sm:$0xf] }
 0x33f   : > { %v14125_v26 = vor.u32 %v7090_v17, %v7089_v18  ;;  %v10050_v17 = vld [vmem:[%s18601_s3 + $0x518] sm:$0xf0]  ;;  %v7067_v54 = vunpack.c.l.b16 %v7048_v34  ;;  %v12094_v34 = vunpack.c.h.b16 %v13664_v1 }
 0x340   : > { %3972 = vmatpush.bf16.msrb.mxu1 %v10057_v52  ;;  %2281 = vmatpush.bf16.msrb.mxu2 %v9505_v32  ;;  %v6578_v52 = vunpack.c.l.b16 %v6535_v40  ;;  %v14154_v3 = vsel %vm2403_vm6, %v18855_v38, %v18695_v42  ;;  %v10053_v16 = vor.u32 %v11707_v6, %v10050_v17  ;;  %18857 = vst [vmem:[#allocation78_spill] sm:$0xff] %v14156_v13  ;;  %v11705_v6 = vld [vmem:[%s18601_s3 + $0x504] sm:$0xf]  ;;  %v10042_v38 = vld [vmem:[%s18601_s3 + $0x508] sm:$0xf0] }
 0x341   : > { %v14143_v18 = vsel %vm2156_vm3, %v13956_v60, %v14125_v26  ;;  %4011 = vmatpush.bf16.msrb.mxu0 %v10061_v19  ;;  %18856 = vst [vmem:[#allocation77_spill] sm:$0xff] %v14154_v3  ;;  %v14158_v60 = vpack.c.b16 %v7067_v54, %v7067_v54  ;;  %v11706_v54 = vld [vmem:[%s18601_s3 + $0x504] sm:$0xf0]  ;;  %v3384_v17 = vpack.c.b16 %v13652_v43, %v13652_v43  ;;  %v11599_v43 = vld [vmem:[%s18601_s3 + $0x1e4] sm:$0xf] }
 0x342   : > { %18852 = vst [vmem:[#allocation74_spill] sm:$0xff] %v14143_v18  ;;  %v14161_v18 = vld [vmem:[#allocation2 + $0x28] sm:$0xff]  ;;  %v10041_v32 = vor.u32 %v11706_v54, %v10040_v61  ;;  %v14186_v42 = vpack.c.b16 %v14156_v13, %v12094_v34  ;;  %v10045_v3 = vor.u32 %v11705_v6, %v10042_v38  ;;  %v18861_v34 = vshrl.u32 %v13970_v5, 16 }
 0x343   : > { %v14145_v31 = vpop.f32.mrf.mxu1  ;;  %v14147_v7 = vpop.f32.mrf.mxu0  ;;  %18858 = vst [vmem:[#allocation79_spill] sm:$0xff] %v14158_v60  ;;  %v7098_v54 = vshrl.u32 %v14158_v60, 16  ;;  %v7101_v8 = vshll.u32 %v14158_v60, 16  ;;  %v3415_v46 = vshrl.u32 %v3384_v17, 16  ;;  %v3418_v57 = vshll.u32 %v3384_v17, 16 }
 0x344   : > { %18853 = vst [vmem:[#allocation75_spill] sm:$0xff] %v14145_v31  ;;  %3973 = vmatpush.bf16.msrb.mxu1 %v10049_v11  ;;  %v14178_v11 = vpack.c.b16 %v6578_v52, %v6578_v52  ;;  %v6630_v31 = vshrl.u32 %v14111_v62, 16  ;;  %v6624_v61 = vor.u32 %v18861_v34, %v14068_v27  ;;  %v18890_v9 = vrot.slane %v14161_v18, 1 }
 0x345   : > { %18854 = vst [vmem:[#allocation76_spill] sm:$0xff] %v14147_v7  ;;  %4012 = vmatpush.bf16.msrb.mxu0 %v10053_v16  ;;  %v6626_v7 = vshll.u32 %v14111_v62, 16  ;;  %v9506_v16 = vld [vmem:[%s18601_s3 + $0x1e8] sm:$0xf0]  ;;  %v7100_v1 = vrot.slane %v7098_v54, 1 }
 0x346   : > { %v14165_v40 = vpop.f32.mrf.mxu2  ;;  %v14167_v19 = vpop.f32.mrf.mxu3  ;;  %18859 = vst [vmem:[#allocation80_spill] sm:$0xff] %v14178_v11  ;;  %v6634_v52 = vshll.u32 %v14178_v11, 16  ;;  %v7093_v11 = vrot.slane %v6630_v31, 1 }
 0x347   : > { %1867 = vmatmul.bf16.gmra.mxu2 %v14161_v18  ;;  %1906 = vmatmul.bf16.gmra.mxu3 %v14161_v18  ;;  %18860 = vst [vmem:[#allocation81_spill] sm:$0xff] %v14186_v42  ;;  %v6628_v42 = vrot.slane %v6626_v7, 1  ;;  %v7094_v13 = vrot.slane %v6626_v7, 2  ;;  %v9496_v7 = vld [vmem:[%s18601_s3 + $0x1d0] sm:$0xf] }
 0x348   : > { %3974 = vmatpush.bf16.msrb.mxu1 %v10041_v32  ;;  %v6636_v62 = vrot.slane %v6634_v52, 1 }
 0x349   : > { %4013 = vmatpush.bf16.msrb.mxu0 %v10045_v3  ;;  %v14209_v5 = vsel %vm1531_vm2, %v6624_v61, %v6628_v42  ;;  %v6632_v27 = vor.u32 %v6630_v31, %v6628_v42  ;;  %v7095_v34 = vor.u32 %v7094_v13, %v7093_v11  ;;  %v11598_v3 = vld [vmem:[%s18601_s3 + $0x1d4] sm:$0xf0]  ;;  %v3417_v42 = vrot.slane %v3415_v46, 3  ;;  %v9498_v46 = vld [vmem:[%s18601_s3 + $0x1d8] sm:$0xf0] }
 0x34a   : > { %3537 = vmatmul.bf16.gmra.mxu1 %v13615_v4  ;;  %3576 = vmatmul.bf16.gmra.mxu0 %v13615_v4  ;;  %v9509_v4 = vor.u32 %v11599_v43, %v9506_v16  ;;  %18864 = vst [vmem:[#allocation84_spill] sm:$0xff] %v14209_v5  ;;  %v9497_v52 = vor.u32 %v11598_v3, %v9496_v7  ;;  %v3420_v13 = vrot.slane %v3418_v57, 4  ;;  %v1935_v11 = vrot.slane %v13754_v37, 1  ;;  %v11597_v57 = vld [vmem:[%s18601_s3 + $0x1d4] sm:$0xf] }
 0x34b   : > { %v14203_v6 = vpop.f32.mrf.mxu1  ;;  %v14205_v38 = vpop.f32.mrf.mxu0  ;;  %v14222_v17 = vsel %vm1531_vm2, %v6632_v27, %v6636_v62  ;;  %v14226_v31 = vsel %vm2156_vm3, %v14125_v26, %v7095_v34  ;;  %v1934_v16 = vrot.slane %v13031_v56, 1  ;;  %v9501_v37 = vor.u32 %v11597_v57, %v9498_v46  ;;  %v11596_v27 = vld [vmem:[%s18601_s3 + $0x1c4] sm:$0xf0]  ;;  %v11594_v46 = vld [vmem:[%s18601_s3 + $0x1b4] sm:$0xf0] }
 0x34c   : > { %18862 = vst [vmem:[#allocation82_spill] sm:$0xff] %v14203_v6  ;;  %2320 = vmatpush.bf16.msrb.mxu3 %v9509_v4  ;;  %v7103_v6 = vrot.slane %v7101_v8, 2  ;;  %2282 = vmatpush.bf16.msrb.mxu2 %v9497_v52  ;;  %v3421_v54 = vor.u32 %v3420_v13, %v3417_v42  ;;  %v9488_v4 = vld [vmem:[%s18601_s3 + $0x1c0] sm:$0xf]  ;;  %v11595_v42 = vld [vmem:[%s18601_s3 + $0x1c4] sm:$0xf] }
 0x34d   : > { %18863 = vst [vmem:[#allocation83_spill] sm:$0xff] %v14205_v38  ;;  %v1936_v26 = vsel %vm1933_vm8, %v1934_v16, %v1935_v11  ;;  %v9490_v13 = vld [vmem:[%s18601_s3 + $0x1c8] sm:$0xf0]  ;;  %v11590_v5 = vld [vmem:[%s18601_s3 + $0x194] sm:$0xf0] }
 0x34e   : > { %v14211_v38 = vpop.f32.mrf.mxu2  ;;  %v14213_v32 = vpop.f32.mrf.mxu3  ;;  %18865 = vst [vmem:[#allocation85_spill] sm:$0xff] %v14222_v17  ;;  %v7104_v8 = vor.u32 %v7103_v6, %v7100_v1  ;;  %v3422_v6 = vsel %vm3385_vm5, %v13600_v59, %v3421_v54  ;;  %v9493_v16 = vor.u32 %v11595_v42, %v9490_v13  ;;  %v11593_v42 = vld [vmem:[%s18601_s3 + $0x1b4] sm:$0xf]  ;;  %v9482_v13 = vld [vmem:[%s18601_s3 + $0x1b8] sm:$0xf0] }
 0x34f   : > { %18866 = vst [vmem:[#allocation86_spill] sm:$0xff] %v14226_v31 }
 0x350   : > { %v14230_v43 = vsel %vm2156_vm3, %v7095_v34, %v7104_v8  ;;  %2321 = vmatpush.bf16.msrb.mxu3 %v9501_v37  ;;  %v9489_v34 = vor.u32 %v11596_v27, %v9488_v4  ;;  %v1937_v8 = vrot.slane %v13811_v41, 1  ;;  %v9480_v41 = vld [vmem:[%s18601_s3 + $0x1b0] sm:$0xf] }
 0x351   : > { %18867 = vst [vmem:[#allocation87_spill] sm:$0xff] %v14230_v43  ;;  %v11699_v37 = vld [vmem:[#allocation2 + $0xc] sm:$0xff] }
 0x352   : > { %2283 = vmatpush.bf16.msrb.mxu2 %v9489_v34  ;;  %v1938_v54 = vsel %vm1933_vm8, %v1935_v11, %v1937_v8 }
 0x354   : > { %v14233_v61 = vpop.f32.mrf.mxu1  ;;  %v14235_v62 = vpop.f32.mrf.mxu0  ;;  %2322 = vmatpush.bf16.msrb.mxu3 %v9493_v16  ;;  %v9485_v16 = vor.u32 %v11593_v42, %v9482_v13 }
 0x355   : > { %18868 = vst [vmem:[#allocation88_spill] sm:$0xff] %v14233_v61  ;;  %v10252_v61 = vld [vmem:[%s18601_s3 + $0x640] sm:$0xf] }
 0x356   : > { %18869 = vst [vmem:[#allocation89_spill] sm:$0xff] %v14235_v62  ;;  %v11702_v62 = vld [vmem:[#allocation2 + $0x24] sm:$0xff] }
 0x357   : > { %2041 = vmatmul.bf16.vlgmr.msra.gmra.mxu2 %v1936_v26  ;;  %2080 = vmatmul.bf16.vlgmr.msra.gmra.mxu3 %v1936_v26  ;;  %v14244_v1 = vpop.f32.mrf.mxu2  ;;  %v14246_v56 = vpop.f32.mrf.mxu3 }
 0x358   : > { %2323 = vmatpush.bf16.msrb.mxu3 %v9485_v16 }
 0x35a   : > { %3542 = vmatmul.bf16.gmra.mxu1 %v3422_v6  ;;  %3581 = vmatmul.bf16.gmra.mxu0 %v3422_v6  ;;  %v9481_v6 = vor.u32 %v11594_v46, %v9480_v41  ;;  %v1939_v46 = vrot.slane %v13901_v20, 1  ;;  %v11700_v20 = vld [vmem:[#allocation2 + $0x14] sm:$0xff] }
 0x35c   : > { %v14256_v7 = vpop.f32.mrf.mxu1  ;;  %v14258_v3 = vpop.f32.mrf.mxu0  ;;  %2284 = vmatpush.bf16.msrb.mxu2 %v9481_v6  ;;  %v11592_v6 = vld [vmem:[%s18601_s3 + $0x1a4] sm:$0xf0]  ;;  %v1940_v31 = vsel %vm1933_vm8, %v1937_v8, %v1939_v46 }
 0x35d   : > { %18870 = vst [vmem:[#allocation90_spill] sm:$0xff] %v14256_v7 }
 0x35e   : > { %18871 = vst [vmem:[#allocation91_spill] sm:$0xff] %v14258_v3  ;;  %v18885_v3 = vrot.slane %v14161_v18, 1  ;;  %v11742_v18 = vld [vmem:[%s18601_s3 + $0x604] sm:$0xf] }
 0x35f   : > { %v14260_v52 = vpop.f32.mrf.mxu2  ;;  %v14262_v59 = vpop.f32.mrf.mxu3 }
 0x367   : > { %v14272_v26 = vpop.f32.mrf.mxu1  ;;  %v14274_v57 = vpop.f32.mrf.mxu0  ;;  %2046 = vmatmul.bf16.gmra.mxu2 %v1938_v54  ;;  %2085 = vmatmul.bf16.gmra.mxu3 %v1938_v54 }
 0x368   : > { %18872 = vst [vmem:[#allocation92_spill] sm:$0xff] %v14272_v26 }
 0x369   : > { %18873 = vst [vmem:[#allocation93_spill] sm:$0xff] %v14274_v57 }
 0x36a   : > { %3975 = vmatmul.bf16.vlgmr.msrb.gmra.mxu1 %v11699_v37  ;;  %4014 = vmatmul.bf16.vlgmr.msrb.gmra.mxu0 %v11699_v37  ;;  %v14282_v11 = vpop.f32.mrf.mxu2  ;;  %v14284_v4 = vpop.f32.mrf.mxu3  ;;  %v9472_v37 = vld [vmem:[%s18601_s3 + $0x1a0] sm:$0xf] }
 0x36b   : > { %v9473_v43 = vor.u32 %v11592_v6, %v9472_v37  ;;  %v11591_v37 = vld [vmem:[%s18601_s3 + $0x1a4] sm:$0xf] }
 0x36d   : > { %2285 = vmatpush.bf16.msrb.mxu2 %v9473_v43  ;;  %v9474_v43 = vld [vmem:[%s18601_s3 + $0x1a8] sm:$0xf0] }
 0x36e   : > { %v9477_v8 = vor.u32 %v11591_v37, %v9474_v43  ;;  %v1941_v37 = vrot.slane %v14036_v51, 1 }
 0x36f   : > { %v14286_v27 = vpop.f32.mrf.mxu1  ;;  %v14288_v34 = vpop.f32.mrf.mxu0 }
 0x370   : > { %18874 = vst [vmem:[#allocation94_spill] sm:$0xff] %v14286_v27  ;;  %2324 = vmatpush.bf16.msrb.mxu3 %v9477_v8  ;;  %v1942_v43 = vsel %vm1933_vm8, %v1939_v46, %v1941_v37  ;;  %v10276_v46 = vld [vmem:[%s18601_s3 + $0x670] sm:$0xf]  ;;  %v1944_v7 = vsel %vm1933_vm8, %v1941_v37, %v18885_v3  ;;  %v11750_v3 = vld [vmem:[%s18601_s3 + $0x644] sm:$0xf] }
 0x371   : > { %18875 = vst [vmem:[#allocation95_spill] sm:$0xff] %v14288_v34 }
 0x372   : > { %v14296_v54 = vpop.f32.mrf.mxu2  ;;  %v14298_v41 = vpop.f32.mrf.mxu3 }
 0x373   : > { %18876 = vst [vmem:[#allocation96_spill] sm:$0xff] %v14298_v41 }
 0x377   : > { %v14308_v42 = vpop.f32.mrf.mxu1  ;;  %v14310_v13 = vpop.f32.mrf.mxu0  ;;  %2051 = vmatmul.bf16.gmra.mxu2 %v1940_v31  ;;  %2090 = vmatmul.bf16.gmra.mxu3 %v1940_v31 }
 0x378   : > { %18877 = vst [vmem:[#allocation97_spill] sm:$0xff] %v14308_v42 }
 0x379   : > { %18878 = vst [vmem:[#allocation98_spill] sm:$0xff] %v14310_v13 }
 0x37a   : > { %3980 = vmatmul.bf16.gmra.mxu1 %v11700_v20  ;;  %4019 = vmatmul.bf16.gmra.mxu0 %v11700_v20  ;;  %v14312_v16 = vpop.f32.mrf.mxu2  ;;  %v14314_v17 = vpop.f32.mrf.mxu3  ;;  %v9464_v20 = vld [vmem:[%s18601_s3 + $0x190] sm:$0xf] }
 0x37b   : > { %v9465_v60 = vor.u32 %v11590_v5, %v9464_v20  ;;  %v9466_v5 = vld [vmem:[%s18601_s3 + $0x198] sm:$0xf0] }
 0x37c   : > { %v11701_v20 = vld [vmem:[#allocation2 + $0x1c] sm:$0xff] }
 0x37d   : > { %2286 = vmatpush.bf16.msrb.mxu2 %v9465_v60 }
 0x37f   : > { %v14322_v6 = vpop.f32.mrf.mxu1  ;;  %v14324_v31 = vpop.f32.mrf.mxu0 }
 0x380   : > { %18879 = vst [vmem:[#allocation99_spill] sm:$0xff] %v14322_v6  ;;  %v11589_v6 = vld [vmem:[%s18601_s3 + $0x194] sm:$0xf] }
 0x381   : > { %18880 = vst [vmem:[#allocation100_spill] sm:$0xff] %v14324_v31  ;;  %v9469_v34 = vor.u32 %v11589_v6, %v9466_v5  ;;  %v10278_v5 = vld [vmem:[%s18601_s3 + $0x678] sm:$0xf0] }
 0x382   : > { %v14332_v13 = vpop.f32.mrf.mxu2  ;;  %v14334_v42 = vpop.f32.mrf.mxu3 }
 0x383   : > { %2325 = vmatpush.bf16.msrb.mxu3 %v9469_v34  ;;  %v9456_v34 = vld [vmem:[%s18601_s3 + $0x180] sm:$0xf] }
 0x387   : > { %v14338_v8 = vpop.f32.mrf.mxu1  ;;  %v14340_v31 = vpop.f32.mrf.mxu0  ;;  %2056 = vmatmul.bf16.gmra.mxu2 %v1942_v43  ;;  %2095 = vmatmul.bf16.gmra.mxu3 %v1942_v43  ;;  %v11757_v43 = vld [vmem:[%s18601_s3 + $0x674] sm:$0xf0] }
 0x388   : > { %18881 = vst [vmem:[#allocation101_spill] sm:$0xff] %v14338_v8  ;;  %v10277_v6 = vor.u32 %v11757_v43, %v10276_v46  ;;  %v10268_v46 = vld [vmem:[%s18601_s3 + $0x660] sm:$0xf]  ;;  %v11755_v43 = vld [vmem:[%s18601_s3 + $0x664] sm:$0xf0] }
 0x389   : > { %18882 = vst [vmem:[#allocation102_spill] sm:$0xff] %v14340_v31  ;;  %v11756_v31 = vld [vmem:[%s18601_s3 + $0x674] sm:$0xf] }
 0x38a   : > { %3985 = vmatmul.bf16.gmra.mxu1 %v11701_v20  ;;  %4024 = vmatmul.bf16.gmra.mxu0 %v11701_v20  ;;  %v14348_v51 = vpop.f32.mrf.mxu2  ;;  %v14350_v60 = vpop.f32.mrf.mxu3  ;;  %v11588_v20 = vld [vmem:[%s18601_s3 + $0x184] sm:$0xf0]  ;;  %v10281_v8 = vor.u32 %v11756_v31, %v10278_v5  ;;  %v11754_v31 = vld [vmem:[%s18601_s3 + $0x664] sm:$0xf]  ;;  %v10269_v5 = vor.u32 %v11755_v43, %v10268_v46  ;;  %v11753_v46 = vld [vmem:[%s18601_s3 + $0x654] sm:$0xf0] }
 0x38b   : > { %v9457_v27 = vor.u32 %v11588_v20, %v9456_v34  ;;  %4492 = vmatpush.bf16.msra.mxu1 %v10277_v6  ;;  %v10270_v6 = vld [vmem:[%s18601_s3 + $0x668] sm:$0xf0]  ;;  %v11752_v43 = vld [vmem:[%s18601_s3 + $0x654] sm:$0xf] }
 0x38c   : > { %4531 = vmatpush.bf16.msra.mxu0 %v10281_v8  ;;  %v10273_v34 = vor.u32 %v11754_v31, %v10270_v6  ;;  %v10262_v6 = vld [vmem:[%s18601_s3 + $0x658] sm:$0xf0] }
 0x38d   : > { %2287 = vmatpush.bf16.msrb.mxu2 %v9457_v27  ;;  %v10265_v20 = vor.u32 %v11752_v43, %v10262_v6  ;;  %v11751_v43 = vld [vmem:[%s18601_s3 + $0x644] sm:$0xf0]  ;;  %v11618_v6 = vld [vmem:[%s18601_s3 + $0x274] sm:$0xf0] }
 0x38e   : > { %v10253_v37 = vor.u32 %v11751_v43, %v10252_v61  ;;  %v10244_v61 = vld [vmem:[%s18601_s3 + $0x630] sm:$0xf]  ;;  %v11748_v43 = vld [vmem:[%s18601_s3 + $0x634] sm:$0xf] }
 0x38f   : > { %v14370_v57 = vpop.f32.mrf.mxu1  ;;  %v14372_v26 = vpop.f32.mrf.mxu0  ;;  %4493 = vmatpush.bf16.msra.mxu1 %v10269_v5  ;;  %v11587_v5 = vld [vmem:[%s18601_s3 + $0x184] sm:$0xf] }
 0x390   : > { %18883 = vst [vmem:[#allocation103_spill] sm:$0xff] %v14370_v57  ;;  %4532 = vmatpush.bf16.msra.mxu0 %v10273_v34  ;;  %v9458_v34 = vld [vmem:[%s18601_s3 + $0x188] sm:$0xf0] }
 0x391   : > { %18884 = vst [vmem:[#allocation104_spill] sm:$0xff] %v14372_v26  ;;  %v10260_v26 = vld [vmem:[%s18601_s3 + $0x650] sm:$0xf]  ;;  %v9461_v57 = vor.u32 %v11587_v5, %v9458_v34 }
 0x392   : > { %v14386_v8 = vpop.f32.mrf.mxu2  ;;  %v14388_v27 = vpop.f32.mrf.mxu3  ;;  %v10261_v31 = vor.u32 %v11753_v46, %v10260_v26 }
 0x393   : > { %2326 = vmatpush.bf16.msrb.mxu3 %v9461_v57 }
 0x394   : > { %4494 = vmatpush.bf16.msra.mxu1 %v10261_v31  ;;  %4533 = vmatpush.bf16.msra.mxu0 %v10265_v20  ;;  %v10254_v31 = vld [vmem:[%s18601_s3 + $0x648] sm:$0xf0]  ;;  %v11749_v20 = vld [vmem:[%s18601_s3 + $0x634] sm:$0xf0] }
 0x395   : > { %v10257_v5 = vor.u32 %v11750_v3, %v10254_v31  ;;  %v10246_v3 = vld [vmem:[%s18601_s3 + $0x638] sm:$0xf0] }
 0x397   : > { %v14412_v26 = vpop.f32.mrf.mxu1  ;;  %v14414_v46 = vpop.f32.mrf.mxu0  ;;  %2061 = vmatmul.bf16.gmra.mxu2 %v1944_v7  ;;  %2100 = vmatmul.bf16.gmra.mxu3 %v1944_v7  ;;  %v9592_v7 = vld [vmem:[%s18601_s3 + $0x270] sm:$0xf] }
 0x398   : > { %18886 = vst [vmem:[#allocation105_spill] sm:$0xff] %v14412_v26  ;;  %v9593_v34 = vor.u32 %v11618_v6, %v9592_v7  ;;  %4495 = vmatpush.bf16.msra.mxu1 %v10253_v37  ;;  %4534 = vmatpush.bf16.msra.mxu0 %v10257_v5  ;;  %v10249_v37 = vor.u32 %v11748_v43, %v10246_v3  ;;  %v10236_v6 = vld [vmem:[%s18601_s3 + $0x620] sm:$0xf]  ;;  %v11746_v5 = vld [vmem:[%s18601_s3 + $0x624] sm:$0xf] }
 0x399   : > { %18887 = vst [vmem:[#allocation106_spill] sm:$0xff] %v14414_v46  ;;  %v11617_v43 = vld [vmem:[%s18601_s3 + $0x274] sm:$0xf] }
 0x39a   : > { %3990 = vmatmul.bf16.gmra.mxu1 %v11702_v62  ;;  %4029 = vmatmul.bf16.gmra.mxu0 %v11702_v62  ;;  %v14434_v46 = vpop.f32.mrf.mxu2  ;;  %v14436_v57 = vpop.f32.mrf.mxu3  ;;  %v10245_v62 = vor.u32 %v11749_v20, %v10244_v61  ;;  %v10238_v20 = vld [vmem:[%s18601_s3 + $0x628] sm:$0xf0] }
 0x39b   : > { %2503 = vmatpush.bf16.msra.mxu2 %v9593_v34  ;;  %v11747_v34 = vld [vmem:[%s18601_s3 + $0x624] sm:$0xf0]  ;;  %v10241_v3 = vor.u32 %v11746_v5, %v10238_v20  ;;  %v11744_v5 = vld [vmem:[%s18601_s3 + $0x614] sm:$0xf] }
 0x39c   : > { %4496 = vmatpush.bf16.msra.mxu1 %v10245_v62  ;;  %4535 = vmatpush.bf16.msra.mxu0 %v10249_v37  ;;  %v10237_v61 = vor.u32 %v11747_v34, %v10236_v6  ;;  %v9594_v62 = vld [vmem:[%s18601_s3 + $0x278] sm:$0xf0]  ;;  %v1945_v37 = vrot.slane %v13567_v49, 1  ;;  %v10228_v6 = vld [vmem:[%s18601_s3 + $0x610] sm:$0xf] }
 0x39d   : > { %v11745_v34 = vld [vmem:[%s18601_s3 + $0x614] sm:$0xf0]  ;;  %v10230_v49 = vld [vmem:[%s18601_s3 + $0x618] sm:$0xf0] }
 0x39e   : > { %v10229_v20 = vor.u32 %v11745_v34, %v10228_v6  ;;  %v1946_v2 = vsel %vm1933_vm8, %v18890_v9, %v1945_v37  ;;  %v10220_v34 = vld [vmem:[%s18601_s3 + $0x600] sm:$0xf] }
 0x39f   : > { %v14450_v31 = vpop.f32.mrf.mxu1  ;;  %v14452_v7 = vpop.f32.mrf.mxu0  ;;  %v10221_v9 = vor.u32 %v11743_v12, %v10220_v34  ;;  %v9586_v12 = vld [vmem:[%s18601_s3 + $0x268] sm:$0xf0]  ;;  %v9576_v34 = vld [vmem:[%s18601_s3 + $0x250] sm:$0xf] }
 0x3a0   : > { %18888 = vst [vmem:[#allocation107_spill] sm:$0xff] %v14450_v31  ;;  %4497 = vmatpush.bf16.msra.mxu1 %v10237_v61  ;;  %4536 = vmatpush.bf16.msra.mxu0 %v10241_v3  ;;  %v11616_v61 = vld [vmem:[%s18601_s3 + $0x264] sm:$0xf0] }
 0x3a1   : > { %18889 = vst [vmem:[#allocation108_spill] sm:$0xff] %v14452_v7  ;;  %v9597_v7 = vor.u32 %v11617_v43, %v9594_v62  ;;  %v10233_v43 = vor.u32 %v11744_v5, %v10230_v49  ;;  %v11703_v5 = vld [vmem:[#allocation2 + $0x2c] sm:$0xff] }
 0x3a2   : > { %v14472_v31 = vpop.f32.mrf.mxu2  ;;  %v14474_v26 = vpop.f32.mrf.mxu3 }
 0x3a3   : > { %2542 = vmatpush.bf16.msra.mxu3 %v9597_v7  ;;  %v9584_v7 = vld [vmem:[%s18601_s3 + $0x260] sm:$0xf] }
 0x3a4   : > { %v9585_v62 = vor.u32 %v11616_v61, %v9584_v7  ;;  %4498 = vmatpush.bf16.msra.mxu1 %v10229_v20  ;;  %4537 = vmatpush.bf16.msra.mxu0 %v10233_v43  ;;  %v11615_v61 = vld [vmem:[%s18601_s3 + $0x264] sm:$0xf] }
 0x3a5   : > { %v9589_v20 = vor.u32 %v11615_v61, %v9586_v12  ;;  %v11613_v61 = vld [vmem:[%s18601_s3 + $0x254] sm:$0xf]  ;;  %v9578_v12 = vld [vmem:[%s18601_s3 + $0x258] sm:$0xf0] }
 0x3a6   : > { %2504 = vmatpush.bf16.msra.mxu2 %v9585_v62 }
 0x3a7   : > { %v14498_v3 = vpop.f32.mrf.mxu1  ;;  %v14500_v6 = vpop.f32.mrf.mxu0  ;;  %2066 = vmatmul.bf16.gmra.mxu2 %v1946_v2  ;;  %2105 = vmatmul.bf16.gmra.mxu3 %v1946_v2  ;;  %v10222_v2 = vld [vmem:[%s18601_s3 + $0x608] sm:$0xf0] }
 0x3a8   : > { %18891 = vst [vmem:[#allocation109_spill] sm:$0xff] %v14498_v3  ;;  %v10225_v37 = vor.u32 %v11742_v18, %v10222_v2  ;;  %4499 = vmatpush.bf16.msra.mxu1 %v10221_v9  ;;  %2543 = vmatpush.bf16.msra.mxu3 %v9589_v20  ;;  %v11614_v18 = vld [vmem:[%s18601_s3 + $0x254] sm:$0xf0] }
 0x3a9   : > { %18892 = vst [vmem:[#allocation110_spill] sm:$0xff] %v14500_v6  ;;  %v11704_v20 = vld [vmem:[#allocation2 + $0x34] sm:$0xff] }
 0x3aa   : > { %3995 = vmatmul.bf16.gmra.mxu1 %v11703_v5  ;;  %4034 = vmatmul.bf16.gmra.mxu0 %v11703_v5  ;;  %v14514_v49 = vpop.f32.mrf.mxu2  ;;  %v14516_v7 = vpop.f32.mrf.mxu3  ;;  %v9577_v5 = vor.u32 %v11614_v18, %v9576_v34  ;;  %v9581_v34 = vor.u32 %v11613_v61, %v9578_v12 }
 0x3ab   : > { %4538 = vmatpush.bf16.msra.mxu0 %v10225_v37 }
 0x3ac   : > { %2505 = vmatpush.bf16.msra.mxu2 %v9577_v5  ;;  %2544 = vmatpush.bf16.msra.mxu3 %v9581_v34 }
 0x3af   : > { %v14524_v43 = vpop.f32.mrf.mxu1  ;;  %v14526_v62 = vpop.f32.mrf.mxu0 }
 0x3b0   : > { %18893 = vst [vmem:[#allocation111_spill] sm:$0xff] %v14524_v43 }
 0x3b1   : > { %18894 = vst [vmem:[#allocation112_spill] sm:$0xff] %v14526_v62  ;;  %v4372_v62 = vld [vmem:[#allocation2 + $0xc] sm:$0xe] }
 0x3b2   : > { %v14534_v2 = vpop.f32.mrf.mxu2  ;;  %v14536_v6 = vpop.f32.mrf.mxu3  ;;  %v4391_v12 = vunpack.c.l.b16 %v4372_v62 }
 0x3b4   : > { %v14569_v34 = vpack.c.b16 %v13162_v10, %v4391_v12  ;;  %v9560_v12 = vld [vmem:[%s18601_s3 + $0x230] sm:$0xf] }
 0x3b6   : > { %18899 = vst [vmem:[#allocation117_spill] sm:$0xff] %v14569_v34  ;;  %v4393_v10 = vrot.slane %v14569_v34, 1  ;;  %v11609_v34 = vld [vmem:[%s18601_s3 + $0x234] sm:$0xf] }
 0x3b7   : > { %v14538_v9 = vpop.f32.mrf.mxu1  ;;  %v14540_v37 = vpop.f32.mrf.mxu0  ;;  %2288 = vmatmul.bf16.vlgmr.msrb.gmra.mxu2 %v13063_v24  ;;  %2327 = vmatmul.bf16.vlgmr.msrb.gmra.mxu3 %v13063_v24  ;;  %v9568_v24 = vld [vmem:[%s18601_s3 + $0x240] sm:$0xf] }
 0x3b8   : > { %18895 = vst [vmem:[#allocation113_spill] sm:$0xff] %v14538_v9 }
 0x3b9   : > { %18896 = vst [vmem:[#allocation114_spill] sm:$0xff] %v14540_v37  ;;  %v11612_v37 = vld [vmem:[%s18601_s3 + $0x244] sm:$0xf0] }
 0x3ba   : > { %4000 = vmatmul.bf16.gmra.mxu1 %v11704_v20  ;;  %4039 = vmatmul.bf16.gmra.mxu0 %v11704_v20  ;;  %v14550_v18 = vpop.f32.mrf.mxu2  ;;  %v14552_v5 = vpop.f32.mrf.mxu3  ;;  %v9569_v9 = vor.u32 %v11612_v37, %v9568_v24  ;;  %v12229_v24 = vld [vmem:[#allocation2 + $0x14] sm:$0xff] }
 0x3bc   : > { %2506 = vmatpush.bf16.msra.mxu2 %v9569_v9  ;;  %v9570_v9 = vld [vmem:[%s18601_s3 + $0x248] sm:$0xf0] }
 0x3bd   : > { %v9573_v37 = vor.u32 %v11611_v55, %v9570_v9  ;;  %v11610_v55 = vld [vmem:[%s18601_s3 + $0x234] sm:$0xf0] }
 0x3be   : > { %v9561_v9 = vor.u32 %v11610_v55, %v9560_v12  ;;  %v9562_v12 = vld [vmem:[%s18601_s3 + $0x238] sm:$0xf0] }
 0x3bf   : > { %v14560_v43 = vpop.f32.mrf.mxu1  ;;  %v14562_v61 = vpop.f32.mrf.mxu0  ;;  %2545 = vmatpush.bf16.msra.mxu3 %v9573_v37 }
 0x3c0   : > { %18897 = vst [vmem:[#allocation115_spill] sm:$0xff] %v14560_v43  ;;  %v4394_v43 = vrot.slane %v12229_v24, 1  ;;  %2507 = vmatpush.bf16.msra.mxu2 %v9561_v9  ;;  %v9552_v9 = vld [vmem:[%s18601_s3 + $0x220] sm:$0xf] }
 0x3c1   : > { %18898 = vst [vmem:[#allocation116_spill] sm:$0xff] %v14562_v61 }
 0x3c2   : > { %v14564_v20 = vpop.f32.mrf.mxu2  ;;  %v14566_v3 = vpop.f32.mrf.mxu3  ;;  %v4395_v37 = vsel %vm1933_vm8, %v4393_v10, %v4394_v43  ;;  %v9565_v10 = vor.u32 %v11609_v34, %v9562_v12  ;;  %v1844_v12 = vadd.f32 %v14312_v16, %v13815_v25  ;;  %v9554_v25 = vld [vmem:[%s18601_s3 + $0x228] sm:$0xf0] }
 0x3c4   : > { %2546 = vmatpush.bf16.msra.mxu3 %v9565_v10  ;;  %v1883_v10 = vadd.f32 %v14314_v17, %v13817_v44 }
 0x3c7   : > { %v14577_v62 = vpop.f32.mrf.mxu1  ;;  %v14579_v61 = vpop.f32.mrf.mxu0  ;;  %2293 = vmatmul.bf16.gmra.mxu2 %v13141_v58  ;;  %2332 = vmatmul.bf16.gmra.mxu3 %v13141_v58 }
 0x3c8   : > { %18900 = vst [vmem:[#allocation118_spill] sm:$0xff] %v14577_v62 }
 0x3c9   : > { %18901 = vst [vmem:[#allocation119_spill] sm:$0xff] %v14579_v61 }
 0x3ca   : > { %4500 = vmatmul.bf16.vlgmr.msra.gmra.mxu1 %v4395_v37  ;;  %4539 = vmatmul.bf16.vlgmr.msra.gmra.mxu0 %v4395_v37  ;;  %v14591_v24 = vpop.f32.mrf.mxu2  ;;  %v14593_v61 = vpop.f32.mrf.mxu3 }
 0x3cf   : > { %v14595_v58 = vpop.f32.mrf.mxu1  ;;  %v14597_v62 = vpop.f32.mrf.mxu0 }
 0x3d0   : > { %18902 = vst [vmem:[#allocation120_spill] sm:$0xff] %v14595_v58 }
 0x3d1   : > { %18903 = vst [vmem:[#allocation121_spill] sm:$0xff] %v14597_v62  ;;  %v11608_v62 = vld [vmem:[%s18601_s3 + $0x224] sm:$0xf0] }
 0x3d2   : > { %v14605_v55 = vpop.f32.mrf.mxu2  ;;  %v14607_v37 = vpop.f32.mrf.mxu3  ;;  %v9553_v58 = vor.u32 %v11608_v62, %v9552_v9 }
 0x3d3   : > { %18904 = vst [vmem:[#allocation122_spill] sm:$0xff] %v14607_v37  ;;  %v4397_v37 = vsel %vm1933_vm8, %v4394_v43, %v4396_v33  ;;  %v9544_v43 = vld [vmem:[%s18601_s3 + $0x210] sm:$0xf] }
 0x3d4   : > { %2508 = vmatpush.bf16.msra.mxu2 %v9553_v58 }
 0x3d7   : > { %v14615_v41 = vpop.f32.mrf.mxu1  ;;  %v14617_v34 = vpop.f32.mrf.mxu0  ;;  %2298 = vmatmul.bf16.gmra.mxu2 %v13237_v48  ;;  %2337 = vmatmul.bf16.gmra.mxu3 %v13237_v48  ;;  %v11607_v48 = vld [vmem:[%s18601_s3 + $0x224] sm:$0xf] }
 0x3d8   : > { %18905 = vst [vmem:[#allocation123_spill] sm:$0xff] %v14617_v34  ;;  %v9557_v16 = vor.u32 %v11607_v48, %v9554_v25 }
 0x3da   : > { %4505 = vmatmul.bf16.gmra.mxu1 %v4397_v37  ;;  %4544 = vmatmul.bf16.gmra.mxu0 %v4397_v37  ;;  %v2042_v29 = vpop.f32.mrf.mxu2  ;;  %v2081_v62 = vpop.f32.mrf.mxu3  ;;  %v11606_v37 = vld [vmem:[%s18601_s3 + $0x214] sm:$0xf0] }
 0x3db   : > { %v14626_v58 = vadd.f32 %v2042_v29, %v1844_v12  ;;  %v14628_v9 = vadd.f32 %v2081_v62, %v1883_v10  ;;  %2547 = vmatpush.bf16.msra.mxu3 %v9557_v16  ;;  %v9545_v12 = vor.u32 %v11606_v37, %v9544_v43  ;;  %v1846_v10 = vadd.f32 %v14332_v13, %v13858_v53  ;;  %v11605_v53 = vld [vmem:[%s18601_s3 + $0x214] sm:$0xf] }
 0x3dc   : > { %v1885_v29 = vadd.f32 %v14334_v42, %v13860_v28  ;;  %v9546_v28 = vld [vmem:[%s18601_s3 + $0x218] sm:$0xf0]  ;;  %v1849_v13 = vadd.f32 %v14348_v51, %v13905_v23  ;;  %v1888_v37 = vadd.f32 %v14350_v60, %v13907_v30  ;;  %v10436_v23 = vld [vmem:[%s18601_s3 + $0x770] sm:$0xf]  ;;  %v11789_v30 = vld [vmem:[%s18601_s3 + $0x774] sm:$0xf0] }
 0x3dd   : > { %2509 = vmatpush.bf16.msra.mxu2 %v9545_v12  ;;  %v9549_v42 = vor.u32 %v11605_v53, %v9546_v28  ;;  %v10437_v51 = vor.u32 %v11789_v30, %v10436_v23  ;;  %v10438_v60 = vld [vmem:[%s18601_s3 + $0x778] sm:$0xf0]  ;;  %v11604_v53 = vld [vmem:[%s18601_s3 + $0x204] sm:$0xf0]  ;;  %v11786_v23 = vld [vmem:[%s18601_s3 + $0x764] sm:$0xf] }
 0x3df   : > { %v14636_v44 = vpop.f32.mrf.mxu1  ;;  %v14638_v17 = vpop.f32.mrf.mxu0  ;;  %2548 = vmatpush.bf16.msra.mxu3 %v9549_v42  ;;  %4960 = vmatpush.bf16.msrb.mxu1 %v10437_v51  ;;  %v1851_v51 = vadd.f32 %v14386_v8, %v13977_v14  ;;  %v10420_v14 = vld [vmem:[%s18601_s3 + $0x750] sm:$0xf]  ;;  %v11784_v8 = vld [vmem:[%s18601_s3 + $0x754] sm:$0xf] }
 0x3e0   : > { %18906 = vst [vmem:[#allocation124_spill] sm:$0xff] %v14636_v44 }
 0x3e1   : > { %18907 = vst [vmem:[#allocation125_spill] sm:$0xff] %v14638_v17  ;;  %v14654_v17 = vld [vmem:[#allocation2 + $0x24] sm:$0xff] }
 0x3e2   : > { %v2044_v62 = vpop.f32.mrf.mxu2  ;;  %v2083_v48 = vpop.f32.mrf.mxu3  ;;  %v18721_v44 = vrot.slane %v14654_v17, 1 }
 0x3e3   : > { %v14650_v25 = vadd.f32 %v2044_v62, %v1846_v10  ;;  %v14652_v16 = vadd.f32 %v2083_v48, %v1885_v29  ;;  %v9536_v48 = vld [vmem:[%s18601_s3 + $0x200] sm:$0xf] }
 0x3e4   : > { %v4399_v12 = vsel %vm1933_vm8, %v4396_v33, %v18721_v44  ;;  %v11788_v33 = vld [vmem:[%s18601_s3 + $0x774] sm:$0xf]  ;;  %v9537_v42 = vor.u32 %v11604_v53, %v9536_v48 }
 0x3e5   : > { %v10441_v28 = vor.u32 %v11788_v33, %v10438_v60  ;;  %v10430_v33 = vld [vmem:[%s18601_s3 + $0x768] sm:$0xf0]  ;;  %v1890_v60 = vadd.f32 %v14388_v27, %v13979_v15  ;;  %v11785_v15 = vld [vmem:[%s18601_s3 + $0x754] sm:$0xf0] }
 0x3e6   : > { %2510 = vmatpush.bf16.msra.mxu2 %v9537_v42  ;;  %v10433_v48 = vor.u32 %v11786_v23, %v10430_v33  ;;  %v14718_v42 = vld [vmem:[#allocation2 + $0x2c] sm:$0xff]  ;;  %v10421_v27 = vor.u32 %v11785_v15, %v10420_v14  ;;  %v11603_v23 = vld [vmem:[%s18601_s3 + $0x204] sm:$0xf]  ;;  %v11783_v14 = vld [vmem:[%s18601_s3 + $0x744] sm:$0xf0]  ;;  %v18911_v15 = vrot.slane %v14654_v17, 1  ;;  %v1854_v17 = vadd.f32 %v14434_v46, %v14040_v50 }
 0x3e7   : > { %v14657_v34 = vpop.f32.mrf.mxu1  ;;  %v14659_v43 = vpop.f32.mrf.mxu0  ;;  %2303 = vmatmul.bf16.gmra.mxu2 %v13356_v35  ;;  %2342 = vmatmul.bf16.gmra.mxu3 %v13356_v35  ;;  %v18722_v44 = vrot.slane %v14718_v42, 1  ;;  %v10404_v50 = vld [vmem:[%s18601_s3 + $0x730] sm:$0xf]  ;;  %v11780_v46 = vld [vmem:[%s18601_s3 + $0x734] sm:$0xf] }
 0x3e8   : > { %4999 = vmatpush.bf16.msrb.mxu0 %v10441_v28 }
 0x3ea   : > { %4510 = vmatmul.bf16.gmra.mxu1 %v4399_v12  ;;  %4549 = vmatmul.bf16.gmra.mxu0 %v4399_v12  ;;  %v2047_v35 = vpop.f32.mrf.mxu2  ;;  %v2086_v10 = vpop.f32.mrf.mxu3 }
 0x3eb   : > { %v14676_v29 = vadd.f32 %v2047_v35, %v1849_v13  ;;  %v14678_v62 = vadd.f32 %v2086_v10, %v1888_v37  ;;  %v2135_v13 = vld [vmem:[#allocation2 + $0x30] sm:$0x3]  ;;  %v10428_v35 = vld [vmem:[%s18601_s3 + $0x760] sm:$0xf]  ;;  %v11787_v10 = vld [vmem:[%s18601_s3 + $0x764] sm:$0xf0] }
 0x3ec   : > { %v10429_v30 = vor.u32 %v11787_v10, %v10428_v35  ;;  %5000 = vmatpush.bf16.msrb.mxu0 %v10433_v48 }
 0x3ee   : > { %4961 = vmatpush.bf16.msrb.mxu1 %v10429_v30  ;;  %v9538_v30 = vld [vmem:[%s18601_s3 + $0x208] sm:$0xf0] }
 0x3ef   : > { %v14698_v37 = vpop.f32.mrf.mxu1  ;;  %v14700_v12 = vpop.f32.mrf.mxu0 }
 0x3f0   : > { %18908 = vst [vmem:[#allocation126_spill] sm:$0xff] %v14700_v12  ;;  %v2154_v12 = vunpack.c.l.b16 %v2135_v13  ;;  %v10422_v13 = vld [vmem:[%s18601_s3 + $0x758] sm:$0xf0] }
 0x3f1   : > { %v10425_v33 = vor.u32 %v11784_v8, %v10422_v13  ;;  %v4401_v8 = vsel %vm1933_vm8, %v18911_v15, %v18722_v44  ;;  %v9672_v13 = vld [vmem:[%s18601_s3 + $0x2f0] sm:$0xf] }
 0x3f2   : > { %v2049_v53 = vpop.f32.mrf.mxu2  ;;  %v2088_v28 = vpop.f32.mrf.mxu3  ;;  %4962 = vmatpush.bf16.msrb.mxu1 %v10421_v27  ;;  %v10414_v27 = vld [vmem:[%s18601_s3 + $0x748] sm:$0xf0] }
 0x3f3   : > { %v14721_v35 = vadd.f32 %v2049_v53, %v1851_v51  ;;  %v14723_v10 = vadd.f32 %v2088_v28, %v1890_v60  ;;  %v9541_v51 = vor.u32 %v11603_v23, %v9538_v30  ;;  %v14743_v60 = vpack.c.b16 %v2154_v12, %v2154_v12  ;;  %v10412_v28 = vld [vmem:[%s18601_s3 + $0x740] sm:$0xf]  ;;  %v11782_v12 = vld [vmem:[%s18601_s3 + $0x744] sm:$0xf]  ;;  %5001 = vmatpush.bf16.msrb.mxu0 %v10425_v33  ;;  %v11634_v23 = vld [vmem:[%s18601_s3 + $0x2f4] sm:$0xf0] }
 0x3f4   : > { %v1893_v30 = vadd.f32 %v14436_v57, %v14042_v63  ;;  %v10417_v33 = vor.u32 %v11782_v12, %v10414_v27  ;;  %v11781_v63 = vld [vmem:[%s18601_s3 + $0x734] sm:$0xf0]  ;;  %v10406_v12 = vld [vmem:[%s18601_s3 + $0x738] sm:$0xf0] }
 0x3f5   : > { %2549 = vmatpush.bf16.msra.mxu3 %v9541_v51  ;;  %v9673_v51 = vor.u32 %v11634_v23, %v9672_v13  ;;  %v2186_v15 = vshrl.u32 %v14743_v60, 16  ;;  %v2189_v44 = vshll.u32 %v14743_v60, 16  ;;  %v10405_v57 = vor.u32 %v11781_v63, %v10404_v50 }
 0x3f6   : > { %v1895_v50 = vadd.f32 %v14474_v26, %v14117_v45  ;;  %v11776_v45 = vld [vmem:[%s18601_s3 + $0x714] sm:$0xf] }
 0x3f7   : > { %v14745_v48 = vpop.f32.mrf.mxu1  ;;  %v14747_v53 = vpop.f32.mrf.mxu0  ;;  %2308 = vmatmul.bf16.gmra.mxu2 %v13530_v36  ;;  %2347 = vmatmul.bf16.gmra.mxu3 %v13530_v36  ;;  %v10413_v36 = vor.u32 %v11783_v14, %v10412_v28  ;;  %v2191_v27 = vrot.slane %v2189_v44, 2  ;;  %v10398_v44 = vld [vmem:[%s18601_s3 + $0x728] sm:$0xf0] }
 0x3f8   : > { %18909 = vst [vmem:[#allocation127_spill] sm:$0xff] %v14745_v48  ;;  %2767 = vmatpush.bf16.msrb.mxu2 %v9673_v51  ;;  %5002 = vmatpush.bf16.msrb.mxu0 %v10417_v33  ;;  %v11778_v33 = vld [vmem:[%s18601_s3 + $0x724] sm:$0xf] }
 0x3f9   : > { %18910 = vst [vmem:[#allocation128_spill] sm:$0xff] %v14747_v53  ;;  %4963 = vmatpush.bf16.msrb.mxu1 %v10413_v36  ;;  %v2188_v36 = vrot.slane %v2186_v15, 1  ;;  %v1856_v15 = vadd.f32 %v14472_v31, %v14115_v21  ;;  %v10401_v63 = vor.u32 %v11778_v33, %v10398_v44  ;;  %v11777_v21 = vld [vmem:[%s18601_s3 + $0x714] sm:$0xf0]  ;;  %v10390_v31 = vld [vmem:[%s18601_s3 + $0x718] sm:$0xf0] }
 0x3fa   : > { %4515 = vmatmul.bf16.gmra.mxu1 %v4401_v8  ;;  %4554 = vmatmul.bf16.gmra.mxu0 %v4401_v8  ;;  %v2052_v28 = vpop.f32.mrf.mxu2  ;;  %v2091_v14 = vpop.f32.mrf.mxu3  ;;  %v10409_v8 = vor.u32 %v11780_v46, %v10406_v12  ;;  %v14844_v33 = vld [vmem:[#allocation2 + $0x34] sm:$0xff]  ;;  %v10393_v44 = vor.u32 %v11776_v45, %v10390_v31  ;;  %v2382_v31 = vld [vmem:[#allocation2] sm:$0xc] }
 0x3fb   : > { %v14780_v53 = vadd.f32 %v2052_v28, %v1854_v17  ;;  %v14782_v48 = vadd.f32 %v2091_v14, %v1893_v30  ;;  %v10396_v17 = vld [vmem:[%s18601_s3 + $0x720] sm:$0xf]  ;;  %v11779_v30 = vld [vmem:[%s18601_s3 + $0x724] sm:$0xf0]  ;;  %v11633_v28 = vld [vmem:[%s18601_s3 + $0x2f4] sm:$0xf] }
 0x3fc   : > { %5003 = vmatpush.bf16.msrb.mxu0 %v10409_v8  ;;  %v10397_v51 = vor.u32 %v11779_v30, %v10396_v17  ;;  %v9674_v14 = vld [vmem:[%s18601_s3 + $0x2f8] sm:$0xf0]  ;;  %v2192_v8 = vor.u32 %v2191_v27, %v2188_v36  ;;  %v9664_v36 = vld [vmem:[%s18601_s3 + $0x2e0] sm:$0xf]  ;;  %v11632_v27 = vld [vmem:[%s18601_s3 + $0x2e4] sm:$0xf0] }
 0x3fd   : > { %4964 = vmatpush.bf16.msrb.mxu1 %v10405_v57  ;;  %v9677_v46 = vor.u32 %v11633_v28, %v9674_v14  ;;  %v9665_v28 = vor.u32 %v11632_v27, %v9664_v36 }
 0x3ff   : > { %v14796_v13 = vpop.f32.mrf.mxu1  ;;  %v14798_v23 = vpop.f32.mrf.mxu0  ;;  %2806 = vmatpush.bf16.msrb.mxu3 %v9677_v46  ;;  %v11774_v46 = vld [vmem:[%s18601_s3 + $0x704] sm:$0xf]  ;;  %2768 = vmatpush.bf16.msrb.mxu2 %v9665_v28 }
 0x400   : > { %18912 = vst [vmem:[#allocation129_spill] sm:$0xff] %v14798_v23  ;;  %v10388_v23 = vld [vmem:[%s18601_s3 + $0x710] sm:$0xf]  ;;  %5004 = vmatpush.bf16.msrb.mxu0 %v10401_v63  ;;  %v11775_v63 = vld [vmem:[%s18601_s3 + $0x704] sm:$0xf0] }
 0x401   : > { %4965 = vmatpush.bf16.msrb.mxu1 %v10397_v51  ;;  %v10389_v26 = vor.u32 %v11777_v21, %v10388_v23  ;;  %v4402_v51 = vrot.slane %v14844_v33, 1  ;;  %v2193_v23 = vsel %vm2156_vm3, %v13501_v39, %v2192_v8  ;;  %v1898_v8 = vadd.f32 %v14516_v7, %v14167_v19  ;;  %v9666_v19 = vld [vmem:[%s18601_s3 + $0x2e8] sm:$0xf0] }
 0x402   : > { %v2054_v57 = vpop.f32.mrf.mxu2  ;;  %v2093_v12 = vpop.f32.mrf.mxu3  ;;  %v18913_v21 = vrot.slane %v14718_v42, 1 }
 0x403   : > { %v14822_v17 = vadd.f32 %v2054_v57, %v1856_v15  ;;  %v14824_v30 = vadd.f32 %v2093_v12, %v1895_v50  ;;  %v10380_v50 = vld [vmem:[%s18601_s3 + $0x700] sm:$0xf]  ;;  %v10382_v57 = vld [vmem:[%s18601_s3 + $0x708] sm:$0xf0]  ;;  %v1859_v12 = vadd.f32 %v14514_v49, %v14165_v40  ;;  %v11631_v40 = vld [vmem:[%s18601_s3 + $0x2e4] sm:$0xf]  ;;  %v2401_v49 = vunpack.c.l.b16 %v2382_v31 }
 0x404   : > { %5005 = vmatpush.bf16.msrb.mxu0 %v10393_v44  ;;  %v10381_v39 = vor.u32 %v11775_v63, %v10380_v50  ;;  %v4403_v45 = vsel %vm1933_vm8, %v18913_v21, %v4402_v51  ;;  %v10385_v36 = vor.u32 %v11774_v46, %v10382_v57  ;;  %v9669_v7 = vor.u32 %v11631_v40, %v9666_v19  ;;  %v11630_v50 = vld [vmem:[%s18601_s3 + $0x2d4] sm:$0xf0] }
 0x405   : > { %4966 = vmatpush.bf16.msrb.mxu1 %v10389_v26  ;;  %v18914_v63 = vunpack.c.h.b16 %v12951_v0  ;;  %v4404_v0 = vrot.slane %v13833_v47, 1  ;;  %v1864_v47 = vadd.f32 %v14550_v18, %v14244_v1  ;;  %v11628_v1 = vld [vmem:[%s18601_s3 + $0x2c4] sm:$0xf0] }
 0x406   : > { %2807 = vmatpush.bf16.msrb.mxu3 %v9669_v7 }
 0x407   : > { %v14849_v14 = vpop.f32.mrf.mxu1  ;;  %v14851_v15 = vpop.f32.mrf.mxu0  ;;  %2313 = vmatmul.bf16.gmra.mxu2 %v2193_v23  ;;  %2352 = vmatmul.bf16.gmra.mxu3 %v2193_v23  ;;  %v9656_v23 = vld [vmem:[%s18601_s3 + $0x2d0] sm:$0xf]  ;;  %v2402_v46 = vpack.c.b16 %v18914_v63, %v2401_v49  ;;  %v1903_v49 = vadd.f32 %v14552_v5, %v14246_v56  ;;  %v4405_v7 = vsel %vm1933_vm8, %v4402_v51, %v4404_v0 }
 0x408   : > { %5006 = vmatpush.bf16.msrb.mxu0 %v10385_v36  ;;  %v9657_v57 = vor.u32 %v11630_v50, %v9656_v23  ;;  %v1866_v51 = vadd.f32 %v14564_v20, %v14260_v52 }
 0x409   : > { %4967 = vmatpush.bf16.msrb.mxu1 %v10381_v39  ;;  %v1861_v39 = vadd.f32 %v14534_v2, %v14211_v38 }
 0x40a   : > { %4520 = vmatmul.bf16.gmra.mxu1 %v4403_v45  ;;  %4559 = vmatmul.bf16.gmra.mxu0 %v4403_v45  ;;  %v2057_v26 = vpop.f32.mrf.mxu2  ;;  %v2096_v27 = vpop.f32.mrf.mxu3  ;;  %v12234_v45 = vld [vmem:[#allocation2 + $0x8] sm:$0xff] }
 0x40b   : > { %v14872_v33 = vadd.f32 %v2057_v26, %v1859_v12  ;;  %v14874_v44 = vadd.f32 %v2096_v27, %v1898_v8  ;;  %v1900_v12 = vadd.f32 %v14536_v6, %v14213_v32  ;;  %v2405_v31 = vrot.slane %v12234_v45, 2  ;;  %2769 = vmatpush.bf16.msrb.mxu2 %v9657_v57  ;;  %v11629_v32 = vld [vmem:[%s18601_s3 + $0x2d4] sm:$0xf]  ;;  %v9658_v6 = vld [vmem:[%s18601_s3 + $0x2d8] sm:$0xf0] }
 0x40c   : > { %v2404_v27 = vrot.slane %v2402_v46, 2  ;;  %v9661_v2 = vor.u32 %v11629_v32, %v9658_v6  ;;  %v9648_v57 = vld [vmem:[%s18601_s3 + $0x2c0] sm:$0xf]  ;;  %v9650_v32 = vld [vmem:[%s18601_s3 + $0x2c8] sm:$0xf0] }
 0x40d   : > { %v9649_v56 = vor.u32 %v11628_v1, %v9648_v57  ;;  %v9640_v6 = vld [vmem:[%s18601_s3 + $0x2b0] sm:$0xf] }
 0x40e   : > { %v2406_v40 = vsel %vm2403_vm6, %v2404_v27, %v2405_v31  ;;  %2808 = vmatpush.bf16.msrb.mxu3 %v9661_v2  ;;  %v11626_v2 = vld [vmem:[%s18601_s3 + $0x2b4] sm:$0xf0] }
 0x40f   : > { %v14882_v42 = vpop.f32.mrf.mxu1  ;;  %v14884_v28 = vpop.f32.mrf.mxu0  ;;  %2770 = vmatpush.bf16.msrb.mxu2 %v9649_v56 }
 0x412   : > { %v2059_v8 = vpop.f32.mrf.mxu2  ;;  %v2098_v21 = vpop.f32.mrf.mxu3 }
 0x413   : > { %v14898_v36 = vadd.f32 %v2059_v8, %v1861_v39  ;;  %v14900_v26 = vadd.f32 %v2098_v21, %v1900_v12  ;;  %v1905_v39 = vadd.f32 %v14566_v3, %v14262_v59  ;;  %v12235_v21 = vld [vmem:[#allocation2 + $0x10] sm:$0xff] }
 0x414   : > { %v2407_v45 = vrot.slane %v12235_v21, 2  ;;  %v12236_v21 = vld [vmem:[#allocation2 + $0x18] sm:$0xff] }
 0x416   : > { %v2408_v20 = vsel %vm2403_vm6, %v2405_v31, %v2407_v45  ;;  %v1908_v31 = vadd.f32 %v14593_v61, %v14284_v4  ;;  %v9642_v4 = vld [vmem:[%s18601_s3 + $0x2b8] sm:$0xf0]  ;;  %v1871_v61 = vadd.f32 %v14605_v55, %v14296_v54  ;;  %v11624_v54 = vld [vmem:[%s18601_s3 + $0x2a4] sm:$0xf0] }
 0x417   : > { %v14904_v19 = vpop.f32.mrf.mxu1  ;;  %v14906_v38 = vpop.f32.mrf.mxu0  ;;  %2511 = vmatmul.bf16.vlgmr.msra.gmra.mxu2 %v2406_v40  ;;  %2550 = vmatmul.bf16.vlgmr.msra.gmra.mxu3 %v2406_v40  ;;  %v11627_v40 = vld [vmem:[%s18601_s3 + $0x2c4] sm:$0xf] }
 0x418   : > { %v9653_v52 = vor.u32 %v11627_v40, %v9650_v32  ;;  %v2409_v40 = vrot.slane %v12236_v21, 2 }
 0x41a   : > { %4525 = vmatmul.bf16.gmra.mxu1 %v4405_v7  ;;  %4564 = vmatmul.bf16.gmra.mxu0 %v4405_v7  ;;  %v2062_v23 = vpop.f32.mrf.mxu2  ;;  %v2101_v50 = vpop.f32.mrf.mxu3 }
 0x41b   : > { %v14919_v63 = vadd.f32 %v2062_v23, %v1864_v47  ;;  %v14921_v46 = vadd.f32 %v2101_v50, %v1903_v49  ;;  %2809 = vmatpush.bf16.msrb.mxu3 %v9653_v52  ;;  %v9641_v47 = vor.u32 %v11626_v2, %v9640_v6  ;;  %v1869_v49 = vadd.f32 %v14591_v24, %v14282_v11  ;;  %v11625_v11 = vld [vmem:[%s18601_s3 + $0x2b4] sm:$0xf]  ;;  %v18915_v24 = vld [vmem:[#allocation96_spill] sm:$0xff] }
 0x41c   : > { %v2410_v6 = vsel %vm2403_vm6, %v2407_v45, %v2409_v40  ;;  %v11623_v45 = vld [vmem:[%s18601_s3 + $0x2a4] sm:$0xf] }
 0x41d   : > { %2771 = vmatpush.bf16.msrb.mxu2 %v9641_v47 }
 0x41f   : > { %v14929_v18 = vpop.f32.mrf.mxu1  ;;  %v14931_v5 = vpop.f32.mrf.mxu0 }
 0x422   : > { %v2064_v12 = vpop.f32.mrf.mxu2  ;;  %v2103_v8 = vpop.f32.mrf.mxu3 }
 0x423   : > { %v14937_v27 = vadd.f32 %v2064_v12, %v1866_v51  ;;  %v14939_v0 = vadd.f32 %v2103_v8, %v1905_v39  ;;  %v18916_v51 = vld [vmem:[#allocation122_spill] sm:$0xff] }
 0x424   : > { %v1910_v39 = vadd.f32 %v18916_v51, %v18915_v24 }
 0x427   : > { %v14948_v59 = vpop.f32.mrf.mxu1  ;;  %v14950_v3 = vpop.f32.mrf.mxu0  ;;  %2516 = vmatmul.bf16.gmra.mxu2 %v2408_v20  ;;  %2555 = vmatmul.bf16.gmra.mxu3 %v2408_v20  ;;  %v9632_v20 = vld [vmem:[%s18601_s3 + $0x2a0] sm:$0xf] }
 0x428   : > { %v9633_v55 = vor.u32 %v11624_v54, %v9632_v20 }
 0x42a   : > { %4968 = vmatmul.bf16.vlgmr.msrb.gmra.mxu1 %v13204_v22  ;;  %5007 = vmatmul.bf16.vlgmr.msrb.gmra.mxu0 %v13204_v22  ;;  %v2067_v7 = vpop.f32.mrf.mxu2  ;;  %v2106_v23 = vpop.f32.mrf.mxu3  ;;  %v9645_v22 = vor.u32 %v11625_v11, %v9642_v4  ;;  %v9634_v4 = vld [vmem:[%s18601_s3 + $0x2a8] sm:$0xf0] }
 0x42b   : > { %v14964_v50 = vadd.f32 %v2067_v7, %v1869_v49  ;;  %v14966_v57 = vadd.f32 %v2106_v23, %v1908_v31  ;;  %2772 = vmatpush.bf16.msrb.mxu2 %v9633_v55  ;;  %v18919_v49 = vld [vmem:[#allocation22_spill] sm:$0xff] }
 0x42c   : > { %2810 = vmatpush.bf16.msrb.mxu3 %v9645_v22  ;;  %v9637_v22 = vor.u32 %v11623_v45, %v9634_v4  ;;  %v18924_v45 = vld [vmem:[#allocation28_spill] sm:$0xff] }
 0x42f   : > { %v14968_v1 = vpop.f32.mrf.mxu1  ;;  %v14970_v56 = vpop.f32.mrf.mxu0 }
 0x430   : > { %2811 = vmatpush.bf16.msrb.mxu3 %v9637_v22 }
 0x432   : > { %v2069_v12 = vpop.f32.mrf.mxu2  ;;  %v2108_v8 = vpop.f32.mrf.mxu3 }
 0x433   : > { %v14982_v32 = vadd.f32 %v2069_v12, %v1871_v61  ;;  %v14984_v52 = vadd.f32 %v2108_v8, %v1910_v39  ;;  %v12237_v8 = vld [vmem:[#allocation2 + $0x20] sm:$0xff] }
 0x434   : > { %v2411_v21 = vrot.slane %v12237_v8, 2 }
 0x436   : > { %v2412_v55 = vsel %vm2403_vm6, %v2409_v40, %v2411_v21 }
 0x437   : > { %v14993_v2 = vpop.f32.mrf.mxu1  ;;  %v14995_v47 = vpop.f32.mrf.mxu0  ;;  %2521 = vmatmul.bf16.gmra.mxu2 %v2410_v6  ;;  %2560 = vmatmul.bf16.gmra.mxu3 %v2410_v6 }
 0x438   : > { %18917 = vst [vmem:[#allocation96_spill] sm:$0xff] %v14993_v2 }
 0x439   : > { %18918 = vst [vmem:[#allocation122_spill] sm:$0xff] %v14995_v47 }
 0x43a   : > { %4973 = vmatmul.bf16.gmra.mxu1 %v18919_v49  ;;  %5012 = vmatmul.bf16.gmra.mxu0 %v18919_v49  ;;  %v2289_v31 = vpop.f32.mrf.mxu2  ;;  %v2328_v7 = vpop.f32.mrf.mxu3 }
 0x43b   : > { %v15000_v23 = vadd.f32 %v2289_v31, %v14626_v58  ;;  %v15003_v11 = vadd.f32 %v2328_v7, %v14628_v9  ;;  %v9624_v58 = vld [vmem:[%s18601_s3 + $0x290] sm:$0xf]  ;;  %v11622_v9 = vld [vmem:[%s18601_s3 + $0x294] sm:$0xf0]  ;;  %v11621_v31 = vld [vmem:[%s18601_s3 + $0x294] sm:$0xf] }
 0x43c   : > { %v9625_v51 = vor.u32 %v11622_v9, %v9624_v58  ;;  %v10596_v58 = vld [vmem:[%s18601_s3 + $0x870] sm:$0xf]  ;;  %v11821_v9 = vld [vmem:[%s18601_s3 + $0x874] sm:$0xf0] }
 0x43e   : > { %2773 = vmatpush.bf16.msrb.mxu2 %v9625_v51  ;;  %v11820_v51 = vld [vmem:[%s18601_s3 + $0x874] sm:$0xf] }
 0x43f   : > { %v15011_v61 = vpop.f32.mrf.mxu1  ;;  %v15013_v24 = vpop.f32.mrf.mxu0 }
 0x440   : > { %18920 = vst [vmem:[#allocation22_spill] sm:$0xff] %v15011_v61  ;;  %v5326_v61 = vld [vmem:[#allocation2 + $0x40] sm:$0x7] }
 0x441   : > { %18921 = vst [vmem:[#allocation130_spill] sm:$0xff] %v15013_v24  ;;  %v10724_v24 = vld [vmem:[%s18601_s3 + $0x930] sm:$0xf] }
 0x442   : > { %v2291_v39 = vpop.f32.mrf.mxu2  ;;  %v2330_v12 = vpop.f32.mrf.mxu3 }
 0x443   : > { %v15022_v20 = vadd.f32 %v2291_v39, %v14650_v25  ;;  %v15025_v54 = vadd.f32 %v2330_v12, %v14652_v16  ;;  %v9626_v25 = vld [vmem:[%s18601_s3 + $0x298] sm:$0xf0]  ;;  %v10597_v39 = vor.u32 %v11821_v9, %v10596_v58  ;;  %v11620_v12 = vld [vmem:[%s18601_s3 + $0x284] sm:$0xf0]  ;;  %v10590_v58 = vld [vmem:[%s18601_s3 + $0x868] sm:$0xf0] }
 0x444   : > { %v9629_v7 = vor.u32 %v11621_v31, %v9626_v25 }
 0x445   : > { %5495 = vmatpush.bf16.msra.mxu1 %v10597_v39 }
 0x446   : > { %2812 = vmatpush.bf16.msrb.mxu3 %v9629_v7  ;;  %v10588_v7 = vld [vmem:[%s18601_s3 + $0x860] sm:$0xf] }
 0x447   : > { %v15028_v6 = vpop.f32.mrf.mxu1  ;;  %v15030_v49 = vpop.f32.mrf.mxu0  ;;  %2526 = vmatmul.bf16.gmra.mxu2 %v2412_v55  ;;  %2565 = vmatmul.bf16.gmra.mxu3 %v2412_v55 }
 0x448   : > { %18922 = vst [vmem:[#allocation131_spill] sm:$0xff] %v15028_v6 }
 0x449   : > { %18923 = vst [vmem:[#allocation132_spill] sm:$0xff] %v15030_v49 }
 0x44a   : > { %4978 = vmatmul.bf16.gmra.mxu1 %v18924_v45  ;;  %5017 = vmatmul.bf16.gmra.mxu0 %v18924_v45  ;;  %v2294_v16 = vpop.f32.mrf.mxu2  ;;  %v2333_v40 = vpop.f32.mrf.mxu3  ;;  %v11819_v45 = vld [vmem:[%s18601_s3 + $0x864] sm:$0xf0] }
 0x44b   : > { %v15041_v4 = vadd.f32 %v2294_v16, %v14676_v29  ;;  %v15044_v22 = vadd.f32 %v2333_v40, %v14678_v62  ;;  %v10598_v29 = vld [vmem:[%s18601_s3 + $0x878] sm:$0xf0]  ;;  %v9616_v62 = vld [vmem:[%s18601_s3 + $0x280] sm:$0xf]  ;;  %v11818_v16 = vld [vmem:[%s18601_s3 + $0x864] sm:$0xf]  ;;  %v10589_v40 = vor.u32 %v11819_v45, %v10588_v7 }
 0x44c   : > { %v10601_v8 = vor.u32 %v11820_v51, %v10598_v29  ;;  %v9617_v55 = vor.u32 %v11620_v12, %v9616_v62  ;;  %v10593_v9 = vor.u32 %v11818_v16, %v10590_v58  ;;  %v15080_v29 = vld [vmem:[#allocation2 + $0x28] sm:$0xff]  ;;  %v11817_v7 = vld [vmem:[%s18601_s3 + $0x854] sm:$0xf0]  ;;  %v11816_v45 = vld [vmem:[%s18601_s3 + $0x854] sm:$0xf] }
 0x44d   : > { %v18723_v62 = vrot.slane %v15080_v29, 2  ;;  %5496 = vmatpush.bf16.msra.mxu1 %v10589_v40  ;;  %v9618_v40 = vld [vmem:[%s18601_s3 + $0x288] sm:$0xf0] }
 0x44e   : > { %5534 = vmatpush.bf16.msra.mxu0 %v10601_v8  ;;  %2774 = vmatpush.bf16.msrb.mxu2 %v9617_v55  ;;  %v10580_v55 = vld [vmem:[%s18601_s3 + $0x850] sm:$0xf] }
 0x44f   : > { %v15064_v31 = vpop.f32.mrf.mxu1  ;;  %v15066_v25 = vpop.f32.mrf.mxu0  ;;  %v10581_v16 = vor.u32 %v11817_v7, %v10580_v55  ;;  %v10572_v7 = vld [vmem:[%s18601_s3 + $0x840] sm:$0xf] }
 0x450   : > { %18925 = vst [vmem:[#allocation28_spill] sm:$0xff] %v15064_v31 }
 0x451   : > { %18926 = vst [vmem:[#allocation133_spill] sm:$0xff] %v15066_v25  ;;  %5497 = vmatpush.bf16.msra.mxu1 %v10581_v16  ;;  %v10574_v16 = vld [vmem:[%s18601_s3 + $0x848] sm:$0xf0] }
 0x452   : > { %v2296_v51 = vpop.f32.mrf.mxu2  ;;  %v2335_v39 = vpop.f32.mrf.mxu3  ;;  %5535 = vmatpush.bf16.msra.mxu0 %v10593_v9 }
 0x453   : > { %v15084_v12 = vadd.f32 %v2296_v51, %v14721_v35  ;;  %v15087_v8 = vadd.f32 %v2335_v39, %v14723_v10  ;;  %v10582_v35 = vld [vmem:[%s18601_s3 + $0x858] sm:$0xf0]  ;;  %v11619_v10 = vld [vmem:[%s18601_s3 + $0x284] sm:$0xf]  ;;  %v2414_v51 = vsel %vm2403_vm6, %v2411_v21, %v18723_v62 }
 0x454   : > { %v10585_v58 = vor.u32 %v11816_v45, %v10582_v35  ;;  %v9621_v9 = vor.u32 %v11619_v10, %v9618_v40  ;;  %v11815_v45 = vld [vmem:[%s18601_s3 + $0x844] sm:$0xf0]  ;;  %v11814_v35 = vld [vmem:[%s18601_s3 + $0x844] sm:$0xf]  ;;  %v9832_v10 = vld [vmem:[%s18601_s3 + $0x3f0] sm:$0xf] }
 0x455   : > { %v10573_v21 = vor.u32 %v11815_v45, %v10572_v7  ;;  %v11666_v40 = vld [vmem:[%s18601_s3 + $0x3f4] sm:$0xf0] }
 0x456   : > { %5536 = vmatpush.bf16.msra.mxu0 %v10585_v58  ;;  %2813 = vmatpush.bf16.msrb.mxu3 %v9621_v9  ;;  %v9833_v62 = vor.u32 %v11666_v40, %v9832_v10  ;;  %v10556_v10 = vld [vmem:[%s18601_s3 + $0x820] sm:$0xf]  ;;  %v11811_v40 = vld [vmem:[%s18601_s3 + $0x824] sm:$0xf0] }
 0x457   : > { %v15110_v39 = vpop.f32.mrf.mxu1  ;;  %v15112_v55 = vpop.f32.mrf.mxu0  ;;  %2531 = vmatmul.bf16.gmra.mxu2 %v2414_v51  ;;  %2570 = vmatmul.bf16.gmra.mxu3 %v2414_v51  ;;  %v10577_v51 = vor.u32 %v11814_v35, %v10574_v16  ;;  %v11813_v35 = vld [vmem:[%s18601_s3 + $0x834] sm:$0xf0] }
 0x458   : > { %18927 = vst [vmem:[#allocation134_spill] sm:$0xff] %v15110_v39  ;;  %5498 = vmatpush.bf16.msra.mxu1 %v10573_v21  ;;  %3262 = vmatpush.bf16.msra.mxu2 %v9833_v62  ;;  %v10564_v39 = vld [vmem:[%s18601_s3 + $0x830] sm:$0xf] }
 0x459   : > { %18928 = vst [vmem:[#allocation135_spill] sm:$0xff] %v15112_v55  ;;  %v18929_v55 = vld [vmem:[#allocation8_spill] sm:$0xff] }
 0x45a   : > { %4983 = vmatmul.bf16.gmra.mxu1 %v18929_v55  ;;  %5022 = vmatmul.bf16.gmra.mxu0 %v18929_v55  ;;  %v2299_v58 = vpop.f32.mrf.mxu2  ;;  %v2338_v9 = vpop.f32.mrf.mxu3  ;;  %v11812_v55 = vld [vmem:[%s18601_s3 + $0x834] sm:$0xf] }
 0x45b   : > { %v15135_v7 = vadd.f32 %v2299_v58, %v14780_v53  ;;  %v15138_v45 = vadd.f32 %v2338_v9, %v14782_v48  ;;  %5537 = vmatpush.bf16.msra.mxu0 %v10577_v51  ;;  %v10565_v53 = vor.u32 %v11813_v35, %v10564_v39  ;;  %v10566_v48 = vld [vmem:[%s18601_s3 + $0x838] sm:$0xf0]  ;;  %v11810_v39 = vld [vmem:[%s18601_s3 + $0x824] sm:$0xf]  ;;  %v10557_v51 = vor.u32 %v11811_v40, %v10556_v10  ;;  %v10558_v58 = vld [vmem:[%s18601_s3 + $0x828] sm:$0xf0] }
 0x45c   : > { %v10569_v21 = vor.u32 %v11812_v55, %v10566_v48  ;;  %v11665_v9 = vld [vmem:[%s18601_s3 + $0x3f4] sm:$0xf]  ;;  %v9834_v35 = vld [vmem:[%s18601_s3 + $0x3f8] sm:$0xf0]  ;;  %v10561_v55 = vor.u32 %v11810_v39, %v10558_v58  ;;  %v10548_v40 = vld [vmem:[%s18601_s3 + $0x810] sm:$0xf] }
 0x45d   : > { %5499 = vmatpush.bf16.msra.mxu1 %v10565_v53  ;;  %v9837_v53 = vor.u32 %v11665_v9, %v9834_v35  ;;  %v11809_v39 = vld [vmem:[%s18601_s3 + $0x814] sm:$0xf0]  ;;  %v18932_v35 = vrot.slane %v15080_v29, 2  ;;  %v11806_v29 = vld [vmem:[%s18601_s3 + $0x804] sm:$0xf] }
 0x45f   : > { %v15152_v62 = vpop.f32.mrf.mxu1  ;;  %v15154_v16 = vpop.f32.mrf.mxu0  ;;  %5538 = vmatpush.bf16.msra.mxu0 %v10569_v21  ;;  %3301 = vmatpush.bf16.msra.mxu3 %v9837_v53 }
 0x460   : > { %18930 = vst [vmem:[#allocation8_spill] sm:$0xff] %v15152_v62  ;;  %v2415_v62 = vrot.slane %v14743_v60, 2  ;;  %v11808_v60 = vld [vmem:[%s18601_s3 + $0x814] sm:$0xf] }
 0x461   : > { %18931 = vst [vmem:[#allocation136_spill] sm:$0xff] %v15154_v16  ;;  %5500 = vmatpush.bf16.msra.mxu1 %v10557_v51  ;;  %v11664_v51 = vld [vmem:[%s18601_s3 + $0x3e4] sm:$0xf0] }
 0x462   : > { %v2301_v48 = vpop.f32.mrf.mxu2  ;;  %v2340_v16 = vpop.f32.mrf.mxu3  ;;  %v2416_v53 = vsel %vm2403_vm6, %v18932_v35, %v2415_v62 }
 0x463   : > { %v15176_v21 = vadd.f32 %v2301_v48, %v14822_v17  ;;  %v15179_v10 = vadd.f32 %v2340_v16, %v14824_v30  ;;  %5539 = vmatpush.bf16.msra.mxu0 %v10561_v55  ;;  %v10549_v17 = vor.u32 %v11809_v39, %v10548_v40  ;;  %v10550_v30 = vld [vmem:[%s18601_s3 + $0x818] sm:$0xf0]  ;;  %v9824_v16 = vld [vmem:[%s18601_s3 + $0x3e0] sm:$0xf]  ;;  %v11807_v39 = vld [vmem:[%s18601_s3 + $0x804] sm:$0xf0] }
 0x464   : > { %v10553_v58 = vor.u32 %v11808_v60, %v10550_v30  ;;  %v9825_v9 = vor.u32 %v11664_v51, %v9824_v16  ;;  %v10540_v40 = vld [vmem:[%s18601_s3 + $0x800] sm:$0xf]  ;;  %v10542_v60 = vld [vmem:[%s18601_s3 + $0x808] sm:$0xf0]  ;;  %v18935_v16 = vld [vmem:[#allocation15_spill] sm:$0xff] }
 0x465   : > { %5501 = vmatpush.bf16.msra.mxu1 %v10549_v17  ;;  %v10541_v62 = vor.u32 %v11807_v39, %v10540_v40  ;;  %v10545_v30 = vor.u32 %v11806_v29, %v10542_v60  ;;  %v11662_v60 = vld [vmem:[%s18601_s3 + $0x3d4] sm:$0xf0] }
 0x466   : > { %3263 = vmatpush.bf16.msra.mxu2 %v9825_v9  ;;  %v9826_v9 = vld [vmem:[%s18601_s3 + $0x3e8] sm:$0xf0] }
 0x467   : > { %v15202_v55 = vpop.f32.mrf.mxu1  ;;  %v15204_v48 = vpop.f32.mrf.mxu0  ;;  %2536 = vmatmul.bf16.gmra.mxu2 %v2416_v53  ;;  %2575 = vmatmul.bf16.gmra.mxu3 %v2416_v53  ;;  %v4594_v53 = vld [vmem:[#allocation2 + $0x3c] sm:$0x3] }
 0x468   : > { %18933 = vst [vmem:[#allocation137_spill] sm:$0xff] %v15202_v55  ;;  %5540 = vmatpush.bf16.msra.mxu0 %v10553_v58  ;;  %v11663_v58 = vld [vmem:[%s18601_s3 + $0x3e4] sm:$0xf]  ;;  %v4613_v39 = vunpack.c.l.b16 %v4594_v53 }
 0x469   : > { %18934 = vst [vmem:[#allocation138_spill] sm:$0xff] %v15204_v48  ;;  %5502 = vmatpush.bf16.msra.mxu1 %v10541_v62  ;;  %v9829_v40 = vor.u32 %v11663_v58, %v9826_v9  ;;  %v5062_v58 = vld [vmem:[#allocation2 + $0x10] sm:$0xc]  ;;  %v5063_v9 = vld [vmem:[#allocation2 + $0x14] sm:$0xf] }
 0x46a   : > { %4988 = vmatmul.bf16.gmra.mxu1 %v18935_v16  ;;  %5027 = vmatmul.bf16.gmra.mxu0 %v18935_v16  ;;  %v2304_v51 = vpop.f32.mrf.mxu2  ;;  %v2343_v35 = vpop.f32.mrf.mxu3 }
 0x46b   : > { %v15221_v48 = vadd.f32 %v2304_v51, %v14872_v33  ;;  %v15224_v17 = vadd.f32 %v2343_v35, %v14874_v44  ;;  %3302 = vmatpush.bf16.msra.mxu3 %v9829_v40  ;;  %v9816_v44 = vld [vmem:[%s18601_s3 + $0x3d0] sm:$0xf]  ;;  %v15242_v51 = vpack.c.b16 %v4613_v39, %v4613_v39  ;;  %v5105_v39 = vunpack.c.l.b16 %v5062_v58 }
 0x46c   : > { %5541 = vmatpush.bf16.msra.mxu0 %v10545_v30  ;;  %v9817_v16 = vor.u32 %v11662_v60, %v9816_v44  ;;  %v18940_v44 = vld [vmem:[#allocation16_spill] sm:$0xff]  ;;  %v15257_v60 = vunpack.c.l.b16 %v5063_v9 }
 0x46d   : > { %v4872_v40 = vrot.slane %v15242_v51, 2 }
 0x46e   : > { %3264 = vmatpush.bf16.msra.mxu2 %v9817_v16  ;;  %18941 = vst [vmem:[#allocation16_spill] sm:$0xff] %v15257_v60  ;;  %v15275_v55 = vpack.c.b16 %v15257_v60, %v5105_v39  ;;  %v18946_v39 = vld [vmem:[#allocation18_spill] sm:$0xff] }
 0x46f   : > { %v15232_v29 = vpop.f32.mrf.mxu1  ;;  %v15234_v33 = vpop.f32.mrf.mxu0 }
 0x470   : > { %18936 = vst [vmem:[#allocation15_spill] sm:$0xff] %v15232_v29 }
 0x471   : > { %18937 = vst [vmem:[#allocation139_spill] sm:$0xff] %v15234_v33 }
 0x472   : > { %v2306_v62 = vpop.f32.mrf.mxu2  ;;  %v2345_v30 = vpop.f32.mrf.mxu3 }
 0x473   : > { %v15245_v35 = vadd.f32 %v2306_v62, %v14898_v36  ;;  %v15248_v53 = vadd.f32 %v2345_v30, %v14900_v26  ;;  %v11661_v36 = vld [vmem:[%s18601_s3 + $0x3d4] sm:$0xf]  ;;  %v9818_v26 = vld [vmem:[%s18601_s3 + $0x3d8] sm:$0xf0] }
 0x474   : > { %v9821_v16 = vor.u32 %v11661_v36, %v9818_v26  ;;  %v18942_v62 = vld [vmem:[#allocation14_spill] sm:$0xff]  ;;  %v9808_v36 = vld [vmem:[%s18601_s3 + $0x3c0] sm:$0xf] }
 0x475   : > { %v18943_v30 = vrot.slane %v18942_v62, 2 }
 0x476   : > { %3303 = vmatpush.bf16.msra.mxu3 %v9821_v16  ;;  %v18947_v16 = vshrl.u32 %v18946_v39, 16 }
 0x477   : > { %v15251_v33 = vpop.f32.mrf.mxu1  ;;  %v15253_v29 = vpop.f32.mrf.mxu0  ;;  %2775 = vmatmul.bf16.vlgmr.msrb.gmra.mxu2 %v18940_v44  ;;  %2814 = vmatmul.bf16.vlgmr.msrb.gmra.mxu3 %v18940_v44 }
 0x478   : > { %18938 = vst [vmem:[#allocation140_spill] sm:$0xff] %v15251_v33  ;;  %v5358_v62 = vrot.slane %v18947_v16, 2  ;;  %v9810_v16 = vld [vmem:[%s18601_s3 + $0x3c8] sm:$0xf0] }
 0x479   : > { %18939 = vst [vmem:[#allocation141_spill] sm:$0xff] %v15253_v29  ;;  %v4873_v29 = vsel %vm2403_vm6, %v18943_v30, %v4872_v40  ;;  %v18948_v30 = vshll.u32 %v18946_v39, 16 }
 0x47a   : > { %4993 = vmatmul.bf16.gmra.mxu1 %v4873_v29  ;;  %5032 = vmatmul.bf16.gmra.mxu0 %v4873_v29  ;;  %v2309_v33 = vpop.f32.mrf.mxu2  ;;  %v2348_v44 = vpop.f32.mrf.mxu3  ;;  %v11660_v29 = vld [vmem:[%s18601_s3 + $0x3c4] sm:$0xf0] }
 0x47b   : > { %v15269_v58 = vadd.f32 %v2309_v33, %v14919_v63  ;;  %v15272_v9 = vadd.f32 %v2348_v44, %v14921_v46  ;;  %v9809_v40 = vor.u32 %v11660_v29, %v9808_v36  ;;  %v5348_v46 = vshrl.u32 %v15275_v55, 16 }
 0x47c   : > { %v5351_v33 = vshll.u32 %v15275_v55, 16  ;;  %v5361_v44 = vrot.slane %v18948_v30, 3 }
 0x47d   : > { %3265 = vmatpush.bf16.msra.mxu2 %v9809_v40  ;;  %v5350_v29 = vrot.slane %v5348_v46, 2  ;;  %v11658_v46 = vld [vmem:[%s18601_s3 + $0x3b4] sm:$0xf0] }
 0x47e   : > { %v5353_v40 = vrot.slane %v5351_v33, 3  ;;  %v5362_v30 = vor.u32 %v5361_v44, %v5358_v62 }
 0x47f   : > { %v15283_v26 = vpop.f32.mrf.mxu1  ;;  %v15285_v63 = vpop.f32.mrf.mxu0 }
 0x480   : > { %18944 = vst [vmem:[#allocation14_spill] sm:$0xff] %v15283_v26 }
 0x481   : > { %18945 = vst [vmem:[#allocation142_spill] sm:$0xff] %v15285_v63  ;;  %v11659_v63 = vld [vmem:[%s18601_s3 + $0x3c4] sm:$0xf] }
 0x482   : > { %v2311_v25 = vpop.f32.mrf.mxu2  ;;  %v2350_v31 = vpop.f32.mrf.mxu3  ;;  %v9813_v39 = vor.u32 %v11659_v63, %v9810_v16 }
 0x483   : > { %v15294_v49 = vadd.f32 %v2311_v25, %v14937_v27  ;;  %v15297_v36 = vadd.f32 %v2350_v31, %v14939_v0  ;;  %v18951_v25 = vld [vmem:[#allocation19_spill] sm:$0xff]  ;;  %v5354_v0 = vor.u32 %v5353_v40, %v5350_v29  ;;  %v9800_v31 = vld [vmem:[%s18601_s3 + $0x3b0] sm:$0xf] }
 0x484   : > { %3304 = vmatpush.bf16.msra.mxu3 %v9813_v39  ;;  %v9801_v63 = vor.u32 %v11658_v46, %v9800_v31  ;;  %v18954_v46 = vld [vmem:[#allocation23_spill] sm:$0xff] }
 0x485   : > { %v5363_v33 = vsel %vm2890_vm4, %v5354_v0, %v5362_v30  ;;  %v9802_v0 = vld [vmem:[%s18601_s3 + $0x3b8] sm:$0xf0] }
 0x486   : > { %3266 = vmatpush.bf16.msra.mxu2 %v9801_v63 }
 0x487   : > { %v15305_v26 = vpop.f32.mrf.mxu1  ;;  %v15307_v27 = vpop.f32.mrf.mxu0  ;;  %2780 = vmatmul.bf16.gmra.mxu2 %v18951_v25  ;;  %2819 = vmatmul.bf16.gmra.mxu3 %v18951_v25  ;;  %v11657_v25 = vld [vmem:[%s18601_s3 + $0x3b4] sm:$0xf] }
 0x488   : > { %18949 = vst [vmem:[#allocation18_spill] sm:$0xff] %v15305_v26  ;;  %v9805_v31 = vor.u32 %v11657_v25, %v9802_v0  ;;  %v11656_v25 = vld [vmem:[%s18601_s3 + $0x3a4] sm:$0xf0] }
 0x489   : > { %18950 = vst [vmem:[#allocation143_spill] sm:$0xff] %v15307_v27  ;;  %v9792_v27 = vld [vmem:[%s18601_s3 + $0x3a0] sm:$0xf] }
 0x48a   : > { %5503 = vmatmul.bf16.vlgmr.msra.gmra.mxu1 %v5363_v33  ;;  %5542 = vmatmul.bf16.vlgmr.msra.gmra.mxu0 %v5363_v33  ;;  %v2314_v62 = vpop.f32.mrf.mxu2  ;;  %v2353_v44 = vpop.f32.mrf.mxu3  ;;  %v9793_v0 = vor.u32 %v11656_v25, %v9792_v27 }
 0x48b   : > { %v15319_v16 = vadd.f32 %v2314_v62, %v14964_v50  ;;  %v15322_v29 = vadd.f32 %v2353_v44, %v14966_v57  ;;  %v18955_v50 = vshrl.u32 %v18954_v46, 16  ;;  %v18956_v57 = vshll.u32 %v18954_v46, 16  ;;  %3305 = vmatpush.bf16.msra.mxu3 %v9805_v31 }
 0x48c   : > { %3267 = vmatpush.bf16.msra.mxu2 %v9793_v0 }
 0x48d   : > { %v5367_v33 = vrot.slane %v18955_v50, 2  ;;  %v5370_v62 = vrot.slane %v18956_v57, 3 }
 0x48f   : > { %v15324_v40 = vpop.f32.mrf.mxu1  ;;  %v15326_v39 = vpop.f32.mrf.mxu0  ;;  %v5371_v46 = vor.u32 %v5370_v62, %v5367_v33  ;;  %v11655_v33 = vld [vmem:[%s18601_s3 + $0x3a4] sm:$0xf]  ;;  %v9794_v62 = vld [vmem:[%s18601_s3 + $0x3a8] sm:$0xf0] }
 0x490   : > { %18952 = vst [vmem:[#allocation19_spill] sm:$0xff] %v15324_v40  ;;  %v9797_v25 = vor.u32 %v11655_v33, %v9794_v62 }
 0x491   : > { %18953 = vst [vmem:[#allocation144_spill] sm:$0xff] %v15326_v39 }
 0x492   : > { %v2316_v63 = vpop.f32.mrf.mxu2  ;;  %v2355_v44 = vpop.f32.mrf.mxu3  ;;  %3306 = vmatpush.bf16.msra.mxu3 %v9797_v25 }
 0x493   : > { %v15339_v39 = vadd.f32 %v2316_v63, %v14982_v32  ;;  %v15342_v40 = vadd.f32 %v2355_v44, %v14984_v52  ;;  %v18959_v32 = vld [vmem:[#allocation24_spill] sm:$0xff]  ;;  %v5372_v52 = vsel %vm2890_vm4, %v5362_v30, %v5371_v46 }
 0x497   : > { %v15350_v50 = vpop.f32.mrf.mxu1  ;;  %v15352_v31 = vpop.f32.mrf.mxu0  ;;  %2785 = vmatmul.bf16.gmra.mxu2 %v18959_v32  ;;  %2824 = vmatmul.bf16.gmra.mxu3 %v18959_v32 }
 0x498   : > { %18957 = vst [vmem:[#allocation23_spill] sm:$0xff] %v15350_v50 }
 0x499   : > { %18958 = vst [vmem:[#allocation145_spill] sm:$0xff] %v15352_v31 }
 0x49a   : > { %5508 = vmatmul.bf16.gmra.mxu1 %v5372_v52  ;;  %5547 = vmatmul.bf16.gmra.mxu0 %v5372_v52  ;;  %v2512_v57 = vpop.f32.mrf.mxu2  ;;  %v2551_v63 = vpop.f32.mrf.mxu3  ;;  %v18962_v52 = vld [vmem:[#allocation13_spill] sm:$0xff] }
 0x49b   : > { %v15358_v44 = vadd.f32 %v2512_v57, %v15000_v23  ;;  %v15361_v27 = vadd.f32 %v2551_v63, %v15003_v11  ;;  %v9784_v23 = vld [vmem:[%s18601_s3 + $0x390] sm:$0xf]  ;;  %v11654_v11 = vld [vmem:[%s18601_s3 + $0x394] sm:$0xf0]  ;;  %v18963_v57 = vshrl.u32 %v18962_v52, 16  ;;  %v18964_v31 = vshll.u32 %v18962_v52, 16 }
 0x49c   : > { %v9785_v32 = vor.u32 %v11654_v11, %v9784_v23  ;;  %v18967_v11 = vld [vmem:[#allocation11_spill] sm:$0xff] }
 0x49d   : > { %v5376_v63 = vrot.slane %v18963_v57, 2  ;;  %v5379_v33 = vrot.slane %v18964_v31, 3  ;;  %v11653_v31 = vld [vmem:[%s18601_s3 + $0x394] sm:$0xf] }
 0x49e   : > { %3268 = vmatpush.bf16.msra.mxu2 %v9785_v32 }
 0x49f   : > { %v15369_v30 = vpop.f32.mrf.mxu1  ;;  %v15371_v0 = vpop.f32.mrf.mxu0  ;;  %v15389_v50 = vor.u32 %v5379_v33, %v5376_v63 }
 0x4a0   : > { %18960 = vst [vmem:[#allocation24_spill] sm:$0xff] %v15369_v30 }
 0x4a1   : > { %18961 = vst [vmem:[#allocation146_spill] sm:$0xff] %v15371_v0  ;;  %v5381_v32 = vsel %vm2890_vm4, %v5371_v46, %v15389_v50  ;;  %v11852_v46 = vld [vmem:[%s18601_s3 + $0x974] sm:$0xf] }
 0x4a2   : > { %v2514_v62 = vpop.f32.mrf.mxu2  ;;  %v2553_v25 = vpop.f32.mrf.mxu3 }
 0x4a3   : > { %v15384_v0 = vadd.f32 %v2514_v62, %v15022_v20  ;;  %v15387_v30 = vadd.f32 %v2553_v25, %v15025_v54  ;;  %v9786_v20 = vld [vmem:[%s18601_s3 + $0x398] sm:$0xf0]  ;;  %v10756_v25 = vld [vmem:[%s18601_s3 + $0x970] sm:$0xf] }
 0x4a4   : > { %v9789_v54 = vor.u32 %v11653_v31, %v9786_v20  ;;  %v11652_v20 = vld [vmem:[%s18601_s3 + $0x384] sm:$0xf0] }
 0x4a6   : > { %3307 = vmatpush.bf16.msra.mxu3 %v9789_v54 }
 0x4a7   : > { %v15391_v26 = vpop.f32.mrf.mxu1  ;;  %v15393_v23 = vpop.f32.mrf.mxu0  ;;  %2790 = vmatmul.bf16.gmra.mxu2 %v18967_v11  ;;  %2829 = vmatmul.bf16.gmra.mxu3 %v18967_v11  ;;  %v11853_v11 = vld [vmem:[%s18601_s3 + $0x974] sm:$0xf0] }
 0x4a8   : > { %18965 = vst [vmem:[#allocation147_spill] sm:$0xff] %v15391_v26  ;;  %v10757_v31 = vor.u32 %v11853_v11, %v10756_v25  ;;  %v10748_v25 = vld [vmem:[%s18601_s3 + $0x960] sm:$0xf]  ;;  %v11851_v11 = vld [vmem:[%s18601_s3 + $0x964] sm:$0xf0] }
 0x4a9   : > { %18966 = vst [vmem:[#allocation148_spill] sm:$0xff] %v15393_v23 }
 0x4aa   : > { %5513 = vmatmul.bf16.gmra.mxu1 %v5381_v32  ;;  %5552 = vmatmul.bf16.gmra.mxu0 %v5381_v32  ;;  %v2517_v57 = vpop.f32.mrf.mxu2  ;;  %v2556_v63 = vpop.f32.mrf.mxu3 }
 0x4ab   : > { %v15406_v33 = vadd.f32 %v2517_v57, %v15041_v4  ;;  %v15409_v62 = vadd.f32 %v2556_v63, %v15044_v22  ;;  %v10758_v4 = vld [vmem:[%s18601_s3 + $0x978] sm:$0xf0]  ;;  %v9776_v22 = vld [vmem:[%s18601_s3 + $0x380] sm:$0xf]  ;;  %5963 = vmatpush.bf16.msrb.mxu1 %v10757_v31  ;;  %v10750_v31 = vld [vmem:[%s18601_s3 + $0x968] sm:$0xf0] }
 0x4ac   : > { %v10761_v54 = vor.u32 %v11852_v46, %v10758_v4  ;;  %v9777_v32 = vor.u32 %v11652_v20, %v9776_v22  ;;  %v11850_v46 = vld [vmem:[%s18601_s3 + $0x964] sm:$0xf]  ;;  %v10749_v4 = vor.u32 %v11851_v11, %v10748_v25  ;;  %v18970_v22 = vld [vmem:[#allocation9_spill] sm:$0xff]  ;;  %v10740_v25 = vld [vmem:[%s18601_s3 + $0x950] sm:$0xf] }
 0x4ad   : > { %v18971_v20 = vshrl.u32 %v18970_v22, 16  ;;  %v11849_v11 = vld [vmem:[%s18601_s3 + $0x954] sm:$0xf0] }
 0x4ae   : > { %6002 = vmatpush.bf16.msrb.mxu0 %v10761_v54  ;;  %3269 = vmatpush.bf16.msra.mxu2 %v9777_v32  ;;  %v18972_v32 = vshll.u32 %v18970_v22, 16  ;;  %v2617_v22 = vld [vmem:[#allocation2 + $0x34] sm:$0x3] }
 0x4af   : > { %v15429_v57 = vpop.f32.mrf.mxu1  ;;  %v15431_v63 = vpop.f32.mrf.mxu0  ;;  %v5385_v54 = vrot.slane %v18971_v20, 2  ;;  %5964 = vmatpush.bf16.msrb.mxu1 %v10749_v4  ;;  %v10741_v4 = vor.u32 %v11849_v11, %v10740_v25  ;;  %v18975_v25 = vld [vmem:[#allocation12_spill] sm:$0xff] }
 0x4b0   : > { %18968 = vst [vmem:[#allocation11_spill] sm:$0xff] %v15429_v57  ;;  %v10753_v57 = vor.u32 %v11850_v46, %v10750_v31  ;;  %v11848_v46 = vld [vmem:[%s18601_s3 + $0x954] sm:$0xf]  ;;  %v10732_v11 = vld [vmem:[%s18601_s3 + $0x940] sm:$0xf] }
 0x4b1   : > { %18969 = vst [vmem:[#allocation149_spill] sm:$0xff] %v15431_v63  ;;  %v5388_v63 = vrot.slane %v18972_v32, 3 }
 0x4b2   : > { %v2519_v23 = vpop.f32.mrf.mxu2  ;;  %v2558_v26 = vpop.f32.mrf.mxu3  ;;  %6003 = vmatpush.bf16.msrb.mxu0 %v10753_v57 }
 0x4b3   : > { %v15450_v6 = vadd.f32 %v2519_v23, %v15084_v12  ;;  %v15453_v52 = vadd.f32 %v2558_v26, %v15087_v8  ;;  %v10742_v12 = vld [vmem:[%s18601_s3 + $0x958] sm:$0xf0]  ;;  %v11651_v8 = vld [vmem:[%s18601_s3 + $0x384] sm:$0xf]  ;;  %v9778_v26 = vld [vmem:[%s18601_s3 + $0x388] sm:$0xf0]  ;;  %v15473_v23 = vor.u32 %v5388_v63, %v5385_v54  ;;  %5965 = vmatpush.bf16.msrb.mxu1 %v10741_v4 }
 0x4b4   : > { %v10745_v57 = vor.u32 %v11848_v46, %v10742_v12  ;;  %v9781_v31 = vor.u32 %v11651_v8, %v9778_v26  ;;  %v11847_v63 = vld [vmem:[%s18601_s3 + $0x944] sm:$0xf0]  ;;  %v11846_v54 = vld [vmem:[%s18601_s3 + $0x944] sm:$0xf]  ;;  %v10734_v4 = vld [vmem:[%s18601_s3 + $0x948] sm:$0xf0] }
 0x4b5   : > { %v10733_v46 = vor.u32 %v11847_v63, %v10732_v11  ;;  %v9992_v12 = vld [vmem:[%s18601_s3 + $0x4f0] sm:$0xf]  ;;  %v11698_v8 = vld [vmem:[%s18601_s3 + $0x4f4] sm:$0xf0]  ;;  %v5390_v26 = vsel %vm2890_vm4, %v15389_v50, %v15473_v23  ;;  %v2660_v63 = vunpack.c.l.b16 %v2617_v22  ;;  %v11844_v22 = vld [vmem:[%s18601_s3 + $0x934] sm:$0xf] }
 0x4b6   : > { %6004 = vmatpush.bf16.msrb.mxu0 %v10745_v57  ;;  %3308 = vmatpush.bf16.msra.mxu3 %v9781_v31  ;;  %v9993_v57 = vor.u32 %v11698_v8, %v9992_v12  ;;  %v11845_v50 = vld [vmem:[%s18601_s3 + $0x934] sm:$0xf0]  ;;  %v10716_v8 = vld [vmem:[%s18601_s3 + $0x920] sm:$0xf] }
 0x4b7   : > { %v15475_v20 = vpop.f32.mrf.mxu1  ;;  %v15477_v32 = vpop.f32.mrf.mxu0  ;;  %2795 = vmatmul.bf16.gmra.mxu2 %v18975_v25  ;;  %2834 = vmatmul.bf16.gmra.mxu3 %v18975_v25  ;;  %v10737_v25 = vor.u32 %v11846_v54, %v10734_v4 }
 0x4b8   : > { %18973 = vst [vmem:[#allocation9_spill] sm:$0xff] %v15475_v20  ;;  %5966 = vmatpush.bf16.msrb.mxu1 %v10733_v46  ;;  %3720 = vmatpush.bf16.msrb.mxu2 %v9993_v57  ;;  %v2667_v46 = vpack.c.b16 %v2660_v63, %v2660_v63  ;;  %v10718_v57 = vld [vmem:[%s18601_s3 + $0x928] sm:$0xf0] }
 0x4b9   : > { %18974 = vst [vmem:[#allocation150_spill] sm:$0xff] %v15477_v32  ;;  %v18978_v63 = vld [vmem:[#allocation29_spill] sm:$0xff] }
 0x4ba   : > { %5518 = vmatmul.bf16.gmra.mxu1 %v5390_v26  ;;  %5557 = vmatmul.bf16.gmra.mxu0 %v5390_v26  ;;  %v2522_v31 = vpop.f32.mrf.mxu2  ;;  %v2561_v11 = vpop.f32.mrf.mxu3  ;;  %v11843_v26 = vld [vmem:[%s18601_s3 + $0x924] sm:$0xf0] }
 0x4bb   : > { %v15503_v32 = vadd.f32 %v2522_v31, %v15135_v7  ;;  %v15506_v20 = vadd.f32 %v2561_v11, %v15138_v45  ;;  %6005 = vmatpush.bf16.msrb.mxu0 %v10737_v25  ;;  %v10725_v7 = vor.u32 %v11845_v50, %v10724_v24  ;;  %v10726_v45 = vld [vmem:[%s18601_s3 + $0x938] sm:$0xf0]  ;;  %v11842_v24 = vld [vmem:[%s18601_s3 + $0x924] sm:$0xf]  ;;  %v10717_v25 = vor.u32 %v11843_v26, %v10716_v8  ;;  %v11697_v31 = vld [vmem:[%s18601_s3 + $0x4f4] sm:$0xf] }
 0x4bc   : > { %v10729_v54 = vor.u32 %v11844_v22, %v10726_v45  ;;  %v9994_v11 = vld [vmem:[%s18601_s3 + $0x4f8] sm:$0xf0]  ;;  %v18979_v50 = vshrl.u32 %v18978_v63, 16 }
 0x4bd   : > { %5967 = vmatpush.bf16.msrb.mxu1 %v10725_v7  ;;  %v18980_v7 = vshll.u32 %v18978_v63, 16  ;;  %v9997_v8 = vor.u32 %v11697_v31, %v9994_v11  ;;  %v5345_v31 = vunpack.c.l.b16 %v5326_v61  ;;  %v10700_v63 = vld [vmem:[%s18601_s3 + $0x900] sm:$0xf]  ;;  %v11839_v61 = vld [vmem:[%s18601_s3 + $0x904] sm:$0xf0] }
 0x4be   : > { %v5394_v22 = vrot.slane %v18979_v50, 2  ;;  %v10708_v50 = vld [vmem:[%s18601_s3 + $0x910] sm:$0xf] }
 0x4bf   : > { %v15520_v4 = vpop.f32.mrf.mxu1  ;;  %v15522_v12 = vpop.f32.mrf.mxu0  ;;  %6006 = vmatpush.bf16.msrb.mxu0 %v10729_v54  ;;  %v5397_v45 = vrot.slane %v18980_v7, 3  ;;  %v10721_v54 = vor.u32 %v11842_v24, %v10718_v57  ;;  %3759 = vmatpush.bf16.msrb.mxu3 %v9997_v8  ;;  %v11841_v24 = vld [vmem:[%s18601_s3 + $0x914] sm:$0xf0]  ;;  %v18981_v8 = vld [vmem:[#allocation10_spill] sm:$0xff] }
 0x4c0   : > { %18976 = vst [vmem:[#allocation12_spill] sm:$0xff] %v15520_v4  ;;  %v2679_v4 = vrot.slane %v2667_v46, 2  ;;  %v11840_v46 = vld [vmem:[%s18601_s3 + $0x914] sm:$0xf] }
 0x4c1   : > { %18977 = vst [vmem:[#allocation151_spill] sm:$0xff] %v15522_v12  ;;  %5968 = vmatpush.bf16.msrb.mxu1 %v10717_v25  ;;  %v11696_v25 = vld [vmem:[%s18601_s3 + $0x4e4] sm:$0xf0]  ;;  %v5398_v57 = vor.u32 %v5397_v45, %v5394_v22  ;;  %v11838_v22 = vld [vmem:[%s18601_s3 + $0x904] sm:$0xf] }
 0x4c2   : > { %v2524_v26 = vpop.f32.mrf.mxu2  ;;  %v2563_v12 = vpop.f32.mrf.mxu3  ;;  %v10702_v45 = vld [vmem:[%s18601_s3 + $0x908] sm:$0xf0] }
 0x4c3   : > { %v15547_v47 = vadd.f32 %v2524_v26, %v15176_v21  ;;  %v15550_v2 = vadd.f32 %v2563_v12, %v15179_v10  ;;  %6007 = vmatpush.bf16.msrb.mxu0 %v10721_v54  ;;  %v10709_v21 = vor.u32 %v11841_v24, %v10708_v50  ;;  %v10710_v10 = vld [vmem:[%s18601_s3 + $0x918] sm:$0xf0]  ;;  %v9984_v12 = vld [vmem:[%s18601_s3 + $0x4e0] sm:$0xf]  ;;  %v18982_v26 = vrot.slane %v18981_v8, 2 }
 0x4c4   : > { %v10713_v11 = vor.u32 %v11840_v46, %v10710_v10  ;;  %v9985_v7 = vor.u32 %v11696_v25, %v9984_v12  ;;  %v5399_v46 = vsel %vm2890_vm4, %v15473_v23, %v5398_v57  ;;  %v15591_v10 = vpack.c.b16 %v5345_v31, %v5345_v31  ;;  %v9986_v23 = vld [vmem:[%s18601_s3 + $0x4e8] sm:$0xf0] }
 0x4c5   : > { %v2680_v54 = vsel %vm2403_vm6, %v18982_v26, %v2679_v4  ;;  %5969 = vmatpush.bf16.msrb.mxu1 %v10709_v21  ;;  %v10701_v4 = vor.u32 %v11839_v61, %v10700_v63  ;;  %v10705_v12 = vor.u32 %v11838_v22, %v10702_v45  ;;  %v11695_v21 = vld [vmem:[%s18601_s3 + $0x4e4] sm:$0xf]  ;;  %v11694_v61 = vld [vmem:[%s18601_s3 + $0x4d4] sm:$0xf0] }
 0x4c6   : > { %18984 = vst [vmem:[#allocation152_spill] sm:$0xff] %v15591_v10  ;;  %3721 = vmatpush.bf16.msrb.mxu2 %v9985_v7  ;;  %v9989_v31 = vor.u32 %v11695_v21, %v9986_v23  ;;  %v5404_v7 = vshll.u32 %v15591_v10, 16  ;;  %v5597_v21 = vld [vmem:[#allocation2 + $0x10] sm:$0x8] }
 0x4c7   : > { %v15573_v50 = vpop.f32.mrf.mxu1  ;;  %v15575_v24 = vpop.f32.mrf.mxu0  ;;  %2800 = vmatmul.bf16.gmra.mxu2 %v2680_v54  ;;  %2839 = vmatmul.bf16.gmra.mxu3 %v2680_v54  ;;  %v9976_v54 = vld [vmem:[%s18601_s3 + $0x4d0] sm:$0xf] }
 0x4c8   : > { %18983 = vst [vmem:[#allocation10_spill] sm:$0xff] %v15575_v24  ;;  %6008 = vmatpush.bf16.msrb.mxu0 %v10713_v11  ;;  %v5401_v11 = vshrl.u32 %v15591_v10, 16  ;;  %3760 = vmatpush.bf16.msrb.mxu3 %v9989_v31  ;;  %v9977_v22 = vor.u32 %v11694_v61, %v9976_v54  ;;  %v5406_v45 = vrot.slane %v5404_v7, 3  ;;  %v11693_v7 = vld [vmem:[%s18601_s3 + $0x4d4] sm:$0xf] }
 0x4c9   : > { %5970 = vmatpush.bf16.msrb.mxu1 %v10701_v4 }
 0x4ca   : > { %5523 = vmatmul.bf16.gmra.mxu1 %v5399_v46  ;;  %5562 = vmatmul.bf16.gmra.mxu0 %v5399_v46  ;;  %v2527_v25 = vpop.f32.mrf.mxu2  ;;  %v2566_v8 = vpop.f32.mrf.mxu3  ;;  %v5403_v4 = vrot.slane %v5401_v11, 2  ;;  %v5616_v11 = vunpack.c.l.b16 %v5597_v21 }
 0x4cb   : > { %v15594_v26 = vadd.f32 %v2527_v25, %v15221_v48  ;;  %v15597_v63 = vadd.f32 %v2566_v8, %v15224_v17  ;;  %3722 = vmatpush.bf16.msrb.mxu2 %v9977_v22 }
 0x4cc   : > { %6009 = vmatpush.bf16.msrb.mxu0 %v10705_v12  ;;  %v5407_v23 = vor.u32 %v5406_v45, %v5403_v4  ;;  %v15643_v45 = vpack.c.b16 %v15257_v60, %v5616_v11 }
 0x4ce   : > { %v5408_v54 = vsel %vm2890_vm4, %v5398_v57, %v5407_v23  ;;  %v11692_v57 = vld [vmem:[%s18601_s3 + $0x4c4] sm:$0xf0]  ;;  %v5844_v23 = vshll.u32 %v15643_v45, 16 }
 0x4cf   : > { %v15607_v48 = vpop.f32.mrf.mxu1  ;;  %v15609_v17 = vpop.f32.mrf.mxu0 }
 0x4d0   : > { %18985 = vst [vmem:[#allocation153_spill] sm:$0xff] %v15607_v48  ;;  %v11248_v48 = vld [vmem:[%s18601_s3 + $0xc30] sm:$0xf] }
 0x4d1   : > { %18986 = vst [vmem:[#allocation154_spill] sm:$0xff] %v15609_v17  ;;  %v18989_v17 = vld [vmem:[#allocation17_spill] sm:$0xff] }
 0x4d2   : > { %v2529_v46 = vpop.f32.mrf.mxu2  ;;  %v2568_v12 = vpop.f32.mrf.mxu3 }
 0x4d3   : > { %v15618_v25 = vadd.f32 %v2529_v46, %v15245_v35  ;;  %v15621_v8 = vadd.f32 %v2568_v12, %v15248_v53  ;;  %v9978_v35 = vld [vmem:[%s18601_s3 + $0x4d8] sm:$0xf0]  ;;  %v9968_v46 = vld [vmem:[%s18601_s3 + $0x4c0] sm:$0xf] }
 0x4d4   : > { %v9981_v53 = vor.u32 %v11693_v7, %v9978_v35  ;;  %v9969_v12 = vor.u32 %v11692_v57, %v9968_v46  ;;  %v9970_v46 = vld [vmem:[%s18601_s3 + $0x4c8] sm:$0xf0] }
 0x4d6   : > { %3761 = vmatpush.bf16.msrb.mxu3 %v9981_v53  ;;  %3723 = vmatpush.bf16.msrb.mxu2 %v9969_v12 }
 0x4d7   : > { %v15623_v31 = vpop.f32.mrf.mxu1  ;;  %v15625_v10 = vpop.f32.mrf.mxu0  ;;  %3270 = vmatmul.bf16.vlgmr.msra.gmra.mxu2 %v18989_v17  ;;  %3309 = vmatmul.bf16.vlgmr.msra.gmra.mxu3 %v18989_v17 }
 0x4d8   : > { %18987 = vst [vmem:[#allocation155_spill] sm:$0xff] %v15623_v31  ;;  %v11088_v31 = vld [vmem:[%s18601_s3 + $0xb30] sm:$0xf] }
 0x4d9   : > { %18988 = vst [vmem:[#allocation156_spill] sm:$0xff] %v15625_v10 }
 0x4da   : > { %5528 = vmatmul.bf16.gmra.mxu1 %v5408_v54  ;;  %5567 = vmatmul.bf16.gmra.mxu0 %v5408_v54  ;;  %v2532_v61 = vpop.f32.mrf.mxu2  ;;  %v2571_v22 = vpop.f32.mrf.mxu3 }
 0x4db   : > { %v15637_v4 = vadd.f32 %v2532_v61, %v15269_v58  ;;  %v15640_v17 = vadd.f32 %v2571_v22, %v15272_v9  ;;  %v5841_v9 = vshrl.u32 %v15643_v45, 16  ;;  %v5846_v61 = vrot.slane %v5844_v23, 4  ;;  %v11691_v22 = vld [vmem:[%s18601_s3 + $0x4c4] sm:$0xf]  ;;  %v11690_v23 = vld [vmem:[%s18601_s3 + $0x4b4] sm:$0xf0] }
 0x4dc   : > { %v9973_v57 = vor.u32 %v11691_v22, %v9970_v46 }
 0x4dd   : > { %v5843_v54 = vrot.slane %v5841_v9, 3  ;;  %v9960_v9 = vld [vmem:[%s18601_s3 + $0x4b0] sm:$0xf] }
 0x4de   : > { %3762 = vmatpush.bf16.msrb.mxu3 %v9973_v57 }
 0x4df   : > { %v15651_v21 = vpop.f32.mrf.mxu1  ;;  %v15653_v58 = vpop.f32.mrf.mxu0 }
 0x4e0   : > { %18990 = vst [vmem:[#allocation17_spill] sm:$0xff] %v15651_v21 }
 0x4e1   : > { %18991 = vst [vmem:[#allocation157_spill] sm:$0xff] %v15653_v58 }
 0x4e2   : > { %v2534_v11 = vpop.f32.mrf.mxu2  ;;  %v2573_v7 = vpop.f32.mrf.mxu3 }
 0x4e3   : > { %v15658_v35 = vadd.f32 %v2534_v11, %v15294_v49  ;;  %v15661_v53 = vadd.f32 %v2573_v7, %v15297_v36  ;;  %v18994_v49 = vld [vmem:[#allocation20_spill] sm:$0xff]  ;;  %v5847_v36 = vor.u32 %v5846_v61, %v5843_v54  ;;  %v9961_v11 = vor.u32 %v11690_v23, %v9960_v9  ;;  %v18995_v7 = vld [vmem:[#allocation21_spill] sm:$0xff]  ;;  %v11689_v9 = vld [vmem:[%s18601_s3 + $0x4b4] sm:$0xf] }
 0x4e5   : > { %v5851_v22 = vsel %vm3385_vm5, %v5847_v36, %v18995_v7  ;;  %3724 = vmatpush.bf16.msrb.mxu2 %v9961_v11  ;;  %v9962_v36 = vld [vmem:[%s18601_s3 + $0x4b8] sm:$0xf0] }
 0x4e6   : > { %v9965_v23 = vor.u32 %v11689_v9, %v9962_v36 }
 0x4e7   : > { %v15669_v12 = vpop.f32.mrf.mxu1  ;;  %v15671_v60 = vpop.f32.mrf.mxu0  ;;  %3275 = vmatmul.bf16.gmra.mxu2 %v18994_v49  ;;  %3314 = vmatmul.bf16.gmra.mxu3 %v18994_v49 }
 0x4e8   : > { %18992 = vst [vmem:[#allocation158_spill] sm:$0xff] %v15669_v12  ;;  %3763 = vmatpush.bf16.msrb.mxu3 %v9965_v23  ;;  %v19000_v23 = vld [vmem:[#allocation25_spill] sm:$0xff]  ;;  %v10908_v12 = vld [vmem:[%s18601_s3 + $0xa30] sm:$0xf] }
 0x4e9   : > { %18993 = vst [vmem:[#allocation159_spill] sm:$0xff] %v15671_v60 }
 0x4ea   : > { %5971 = vmatmul.bf16.vlgmr.msrb.gmra.mxu1 %v5851_v22  ;;  %6010 = vmatmul.bf16.vlgmr.msrb.gmra.mxu0 %v5851_v22  ;;  %v2537_v46 = vpop.f32.mrf.mxu2  ;;  %v2576_v57 = vpop.f32.mrf.mxu3  ;;  %v9952_v22 = vld [vmem:[%s18601_s3 + $0x4a0] sm:$0xf] }
 0x4eb   : > { %v15684_v60 = vadd.f32 %v2537_v46, %v15319_v16  ;;  %v15687_v54 = vadd.f32 %v2576_v57, %v15322_v29  ;;  %v11688_v46 = vld [vmem:[%s18601_s3 + $0x4a4] sm:$0xf0] }
 0x4ec   : > { %v9953_v57 = vor.u32 %v11688_v46, %v9952_v22  ;;  %v11687_v46 = vld [vmem:[%s18601_s3 + $0x4a4] sm:$0xf] }
 0x4ee   : > { %3725 = vmatpush.bf16.msrb.mxu2 %v9953_v57  ;;  %v9954_v57 = vld [vmem:[%s18601_s3 + $0x4a8] sm:$0xf0] }
 0x4ef   : > { %v15689_v61 = vpop.f32.mrf.mxu1  ;;  %v15691_v49 = vpop.f32.mrf.mxu0 }
 0x4f0   : > { %18996 = vst [vmem:[#allocation20_spill] sm:$0xff] %v15689_v61  ;;  %v11885_v61 = vld [vmem:[%s18601_s3 + $0xa44] sm:$0xf0] }
 0x4f1   : > { %18997 = vst [vmem:[#allocation21_spill] sm:$0xff] %v15691_v49 }
 0x4f2   : > { %v2539_v7 = vpop.f32.mrf.mxu2  ;;  %v2578_v16 = vpop.f32.mrf.mxu3 }
 0x4f3   : > { %v15700_v29 = vadd.f32 %v2539_v7, %v15339_v39  ;;  %v15703_v11 = vadd.f32 %v2578_v16, %v15342_v40  ;;  %v19001_v40 = vld [vmem:[#allocation27_spill] sm:$0xff] }
 0x4f7   : > { %v15711_v9 = vpop.f32.mrf.mxu1  ;;  %v15713_v36 = vpop.f32.mrf.mxu0  ;;  %3280 = vmatmul.bf16.gmra.mxu2 %v19000_v23  ;;  %3319 = vmatmul.bf16.gmra.mxu3 %v19000_v23  ;;  %v9957_v23 = vor.u32 %v11687_v46, %v9954_v57 }
 0x4f8   : > { %18998 = vst [vmem:[#allocation160_spill] sm:$0xff] %v15711_v9 }
 0x4f9   : > { %18999 = vst [vmem:[#allocation161_spill] sm:$0xff] %v15713_v36  ;;  %3764 = vmatpush.bf16.msrb.mxu3 %v9957_v23 }
 0x4fa   : > { %5976 = vmatmul.bf16.gmra.mxu1 %v19001_v40  ;;  %6015 = vmatmul.bf16.gmra.mxu0 %v19001_v40  ;;  %v2776_v39 = vpop.f32.mrf.mxu2  ;;  %v2815_v7 = vpop.f32.mrf.mxu3 }
 0x4fb   : > { %v15720_v16 = vadd.f32 %v2776_v39, %v15358_v44  ;;  %v15723_v22 = vadd.f32 %v2815_v7, %v15361_v27  ;;  %v9944_v44 = vld [vmem:[%s18601_s3 + $0x490] sm:$0xf]  ;;  %v11686_v27 = vld [vmem:[%s18601_s3 + $0x494] sm:$0xf0] }
 0x4fc   : > { %v9945_v39 = vor.u32 %v11686_v27, %v9944_v44  ;;  %v11685_v44 = vld [vmem:[%s18601_s3 + $0x494] sm:$0xf] }
 0x4fe   : > { %3726 = vmatpush.bf16.msrb.mxu2 %v9945_v39  ;;  %v19007_v39 = vld [vmem:[#allocation33_spill] sm:$0xff] }
 0x4ff   : > { %v15731_v36 = vpop.f32.mrf.mxu1  ;;  %v15733_v40 = vpop.f32.mrf.mxu0 }
 0x500   : > { %19002 = vst [vmem:[#allocation25_spill] sm:$0xff] %v15731_v36 }
 0x501   : > { %19003 = vst [vmem:[#allocation27_spill] sm:$0xff] %v15733_v40  ;;  %v19006_v40 = vld [vmem:[#allocation31_spill] sm:$0xff] }
 0x502   : > { %v2778_v7 = vpop.f32.mrf.mxu2  ;;  %v2817_v9 = vpop.f32.mrf.mxu3 }
 0x503   : > { %v15742_v49 = vadd.f32 %v2778_v7, %v15384_v0  ;;  %v15745_v46 = vadd.f32 %v2817_v9, %v15387_v30  ;;  %v9946_v0 = vld [vmem:[%s18601_s3 + $0x498] sm:$0xf0] }
 0x504   : > { %v9949_v27 = vor.u32 %v11685_v44, %v9946_v0  ;;  %v11891_v44 = vld [vmem:[%s18601_s3 + $0xa74] sm:$0xf0]  ;;  %v11890_v0 = vld [vmem:[%s18601_s3 + $0xa74] sm:$0xf] }
 0x506   : > { %3765 = vmatpush.bf16.msrb.mxu3 %v9949_v27  ;;  %v11684_v27 = vld [vmem:[%s18601_s3 + $0x484] sm:$0xf0] }
 0x507   : > { %v15747_v57 = vpop.f32.mrf.mxu1  ;;  %v15749_v23 = vpop.f32.mrf.mxu0  ;;  %3285 = vmatmul.bf16.gmra.mxu2 %v19006_v40  ;;  %3324 = vmatmul.bf16.gmra.mxu3 %v19006_v40 }
 0x508   : > { %19004 = vst [vmem:[#allocation162_spill] sm:$0xff] %v15747_v57 }
 0x509   : > { %19005 = vst [vmem:[#allocation163_spill] sm:$0xff] %v15749_v23  ;;  %v10940_v23 = vld [vmem:[%s18601_s3 + $0xa70] sm:$0xf] }
 0x50a   : > { %5981 = vmatmul.bf16.gmra.mxu1 %v19007_v39  ;;  %6020 = vmatmul.bf16.gmra.mxu0 %v19007_v39  ;;  %v2781_v30 = vpop.f32.mrf.mxu2  ;;  %v2820_v9 = vpop.f32.mrf.mxu3  ;;  %v10941_v39 = vor.u32 %v11891_v44, %v10940_v23  ;;  %v10932_v23 = vld [vmem:[%s18601_s3 + $0xa60] sm:$0xf]  ;;  %v11889_v44 = vld [vmem:[%s18601_s3 + $0xa64] sm:$0xf0] }
 0x50b   : > { %v15762_v7 = vadd.f32 %v2781_v30, %v15406_v33  ;;  %v15765_v40 = vadd.f32 %v2820_v9, %v15409_v62  ;;  %v10942_v33 = vld [vmem:[%s18601_s3 + $0xa78] sm:$0xf0]  ;;  %v9936_v62 = vld [vmem:[%s18601_s3 + $0x480] sm:$0xf] }
 0x50c   : > { %v10945_v30 = vor.u32 %v11890_v0, %v10942_v33  ;;  %v9937_v9 = vor.u32 %v11684_v27, %v9936_v62  ;;  %6421 = vmatpush.bf16.msra.mxu1 %v10941_v39  ;;  %v11888_v0 = vld [vmem:[%s18601_s3 + $0xa64] sm:$0xf]  ;;  %v10933_v33 = vor.u32 %v11889_v44, %v10932_v23  ;;  %v10934_v39 = vld [vmem:[%s18601_s3 + $0xa68] sm:$0xf0]  ;;  %v11887_v23 = vld [vmem:[%s18601_s3 + $0xa54] sm:$0xf0] }
 0x50d   : > { %v10937_v62 = vor.u32 %v11888_v0, %v10934_v39  ;;  %v11886_v44 = vld [vmem:[%s18601_s3 + $0xa54] sm:$0xf] }
 0x50e   : > { %6460 = vmatpush.bf16.msra.mxu0 %v10945_v30  ;;  %3727 = vmatpush.bf16.msrb.mxu2 %v9937_v9 }
 0x50f   : > { %v15785_v57 = vpop.f32.mrf.mxu1  ;;  %v15787_v36 = vpop.f32.mrf.mxu0 }
 0x510   : > { %19008 = vst [vmem:[#allocation31_spill] sm:$0xff] %v15785_v57  ;;  %6422 = vmatpush.bf16.msra.mxu1 %v10933_v33  ;;  %v10924_v57 = vld [vmem:[%s18601_s3 + $0xa50] sm:$0xf]  ;;  %v9938_v33 = vld [vmem:[%s18601_s3 + $0x488] sm:$0xf0] }
 0x511   : > { %19009 = vst [vmem:[#allocation33_spill] sm:$0xff] %v15787_v36  ;;  %v10925_v0 = vor.u32 %v11887_v23, %v10924_v57  ;;  %v19012_v57 = vld [vmem:[#allocation32_spill] sm:$0xff] }
 0x512   : > { %v2783_v27 = vpop.f32.mrf.mxu2  ;;  %v2822_v30 = vpop.f32.mrf.mxu3  ;;  %6461 = vmatpush.bf16.msra.mxu0 %v10937_v62  ;;  %v10916_v23 = vld [vmem:[%s18601_s3 + $0xa40] sm:$0xf] }
 0x513   : > { %v15802_v9 = vadd.f32 %v2783_v27, %v15450_v6  ;;  %v15805_v36 = vadd.f32 %v2822_v30, %v15453_v52  ;;  %v10926_v6 = vld [vmem:[%s18601_s3 + $0xa58] sm:$0xf0]  ;;  %v11683_v52 = vld [vmem:[%s18601_s3 + $0x484] sm:$0xf] }
 0x514   : > { %v10929_v39 = vor.u32 %v11886_v44, %v10926_v6  ;;  %v9941_v62 = vor.u32 %v11683_v52, %v9938_v33  ;;  %6423 = vmatpush.bf16.msra.mxu1 %v10925_v0  ;;  %v11884_v44 = vld [vmem:[%s18601_s3 + $0xa44] sm:$0xf]  ;;  %v10917_v0 = vor.u32 %v11885_v61, %v10916_v23  ;;  %v10918_v6 = vld [vmem:[%s18601_s3 + $0xa48] sm:$0xf0]  ;;  %v10196_v52 = vld [vmem:[%s18601_s3 + $0x5f0] sm:$0xf] }
 0x515   : > { %v11741_v33 = vld [vmem:[%s18601_s3 + $0x5f4] sm:$0xf0] }
 0x516   : > { %6462 = vmatpush.bf16.msra.mxu0 %v10929_v39  ;;  %3766 = vmatpush.bf16.msrb.mxu3 %v9941_v62 }
 0x517   : > { %v15825_v27 = vpop.f32.mrf.mxu1  ;;  %v15827_v30 = vpop.f32.mrf.mxu0  ;;  %3290 = vmatmul.bf16.gmra.mxu2 %v19012_v57  ;;  %3329 = vmatmul.bf16.gmra.mxu3 %v19012_v57  ;;  %v10921_v57 = vor.u32 %v11884_v44, %v10918_v6  ;;  %v11883_v44 = vld [vmem:[%s18601_s3 + $0xa34] sm:$0xf0] }
 0x518   : > { %19010 = vst [vmem:[#allocation164_spill] sm:$0xff] %v15825_v27  ;;  %v19013_v27 = vld [vmem:[#allocation36_spill] sm:$0xff]  ;;  %6424 = vmatpush.bf16.msra.mxu1 %v10917_v0 }
 0x519   : > { %19011 = vst [vmem:[#allocation165_spill] sm:$0xff] %v15827_v30  ;;  %v10197_v30 = vor.u32 %v11741_v33, %v10196_v52  ;;  %v10900_v52 = vld [vmem:[%s18601_s3 + $0xa20] sm:$0xf]  ;;  %v11881_v33 = vld [vmem:[%s18601_s3 + $0xa24] sm:$0xf0] }
 0x51a   : > { %5986 = vmatmul.bf16.gmra.mxu1 %v19013_v27  ;;  %6025 = vmatmul.bf16.gmra.mxu0 %v19013_v27  ;;  %v2786_v39 = vpop.f32.mrf.mxu2  ;;  %v2825_v61 = vpop.f32.mrf.mxu3  ;;  %v11882_v27 = vld [vmem:[%s18601_s3 + $0xa34] sm:$0xf] }
 0x51b   : > { %v15852_v62 = vadd.f32 %v2786_v39, %v15503_v32  ;;  %v15855_v23 = vadd.f32 %v2825_v61, %v15506_v20  ;;  %4270 = vmatpush.bf16.msra.mxu2 %v10197_v30  ;;  %6463 = vmatpush.bf16.msra.mxu0 %v10921_v57  ;;  %v10909_v32 = vor.u32 %v11883_v44, %v10908_v12  ;;  %v10910_v20 = vld [vmem:[%s18601_s3 + $0xa38] sm:$0xf0]  ;;  %v11880_v12 = vld [vmem:[%s18601_s3 + $0xa24] sm:$0xf]  ;;  %v10902_v39 = vld [vmem:[%s18601_s3 + $0xa28] sm:$0xf0] }
 0x51c   : > { %v10913_v0 = vor.u32 %v11882_v27, %v10910_v20  ;;  %v10901_v57 = vor.u32 %v11881_v33, %v10900_v52  ;;  %v11740_v61 = vld [vmem:[%s18601_s3 + $0x5f4] sm:$0xf]  ;;  %v10198_v44 = vld [vmem:[%s18601_s3 + $0x5f8] sm:$0xf0]  ;;  %v10905_v27 = vor.u32 %v11880_v12, %v10902_v39  ;;  %v10892_v52 = vld [vmem:[%s18601_s3 + $0xa10] sm:$0xf] }
 0x51d   : > { %6425 = vmatpush.bf16.msra.mxu1 %v10909_v32  ;;  %v10201_v32 = vor.u32 %v11740_v61, %v10198_v44  ;;  %v11879_v33 = vld [vmem:[%s18601_s3 + $0xa14] sm:$0xf0]  ;;  %v11878_v12 = vld [vmem:[%s18601_s3 + $0xa14] sm:$0xf] }
 0x51f   : > { %v15869_v30 = vpop.f32.mrf.mxu1  ;;  %v15871_v6 = vpop.f32.mrf.mxu0  ;;  %6464 = vmatpush.bf16.msra.mxu0 %v10913_v0  ;;  %4309 = vmatpush.bf16.msra.mxu3 %v10201_v32 }
 0x520   : > { %19014 = vst [vmem:[#allocation32_spill] sm:$0xff] %v15869_v30 }
 0x521   : > { %19015 = vst [vmem:[#allocation36_spill] sm:$0xff] %v15871_v6  ;;  %6426 = vmatpush.bf16.msra.mxu1 %v10901_v57  ;;  %v11739_v57 = vld [vmem:[%s18601_s3 + $0x5e4] sm:$0xf0] }
 0x522   : > { %v2788_v20 = vpop.f32.mrf.mxu2  ;;  %v2827_v6 = vpop.f32.mrf.mxu3 }
 0x523   : > { %v15892_v30 = vadd.f32 %v2788_v20, %v15547_v47  ;;  %v15895_v0 = vadd.f32 %v2827_v6, %v15550_v2  ;;  %6465 = vmatpush.bf16.msra.mxu0 %v10905_v27  ;;  %v10893_v47 = vor.u32 %v11879_v33, %v10892_v52  ;;  %v10894_v2 = vld [vmem:[%s18601_s3 + $0xa18] sm:$0xf0]  ;;  %v10188_v6 = vld [vmem:[%s18601_s3 + $0x5e0] sm:$0xf]  ;;  %v19018_v27 = vld [vmem:[#allocation34_spill] sm:$0xff] }
 0x524   : > { %v10897_v39 = vor.u32 %v11878_v12, %v10894_v2  ;;  %v10189_v61 = vor.u32 %v11739_v57, %v10188_v6  ;;  %v10884_v20 = vld [vmem:[%s18601_s3 + $0xa00] sm:$0xf]  ;;  %v11877_v52 = vld [vmem:[%s18601_s3 + $0xa04] sm:$0xf0]  ;;  %v11876_v33 = vld [vmem:[%s18601_s3 + $0xa04] sm:$0xf] }
 0x525   : > { %6427 = vmatpush.bf16.msra.mxu1 %v10893_v47  ;;  %v10885_v12 = vor.u32 %v11877_v52, %v10884_v20  ;;  %v10886_v2 = vld [vmem:[%s18601_s3 + $0xa08] sm:$0xf0]  ;;  %v19019_v6 = vld [vmem:[#allocation78_spill] sm:$0xff] }
 0x526   : > { %v5839_v57 = vpack.c.b16 %v19019_v6, %v19019_v6  ;;  %4271 = vmatpush.bf16.msra.mxu2 %v10189_v61  ;;  %v10190_v61 = vld [vmem:[%s18601_s3 + $0x5e8] sm:$0xf0] }
 0x527   : > { %v15915_v44 = vpop.f32.mrf.mxu1  ;;  %v15917_v32 = vpop.f32.mrf.mxu0  ;;  %3295 = vmatmul.bf16.gmra.mxu2 %v19018_v27  ;;  %3334 = vmatmul.bf16.gmra.mxu3 %v19018_v27  ;;  %v10889_v27 = vor.u32 %v11876_v33, %v10886_v2 }
 0x528   : > { %19016 = vst [vmem:[#allocation166_spill] sm:$0xff] %v15915_v44  ;;  %6466 = vmatpush.bf16.msra.mxu0 %v10897_v39  ;;  %v11738_v39 = vld [vmem:[%s18601_s3 + $0x5e4] sm:$0xf]  ;;  %v5872_v52 = vshll.u32 %v5839_v57, 16 }
 0x529   : > { %19017 = vst [vmem:[#allocation167_spill] sm:$0xff] %v15917_v32  ;;  %v19020_v32 = vld [vmem:[#allocation38_spill] sm:$0xff]  ;;  %6428 = vmatpush.bf16.msra.mxu1 %v10885_v12  ;;  %v10193_v20 = vor.u32 %v11738_v39, %v10190_v61 }
 0x52a   : > { %5991 = vmatmul.bf16.gmra.mxu1 %v19020_v32  ;;  %6030 = vmatmul.bf16.gmra.mxu0 %v19020_v32  ;;  %v2791_v44 = vpop.f32.mrf.mxu2  ;;  %v2830_v58 = vpop.f32.mrf.mxu3  ;;  %v5869_v32 = vshrl.u32 %v5839_v57, 16  ;;  %v5874_v12 = vrot.slane %v5872_v52, 4 }
 0x52b   : > { %v15938_v21 = vadd.f32 %v2791_v44, %v15594_v26  ;;  %v15941_v47 = vadd.f32 %v2830_v58, %v15597_v63  ;;  %4310 = vmatpush.bf16.msra.mxu3 %v10193_v20  ;;  %v10180_v63 = vld [vmem:[%s18601_s3 + $0x5d0] sm:$0xf]  ;;  %v11737_v58 = vld [vmem:[%s18601_s3 + $0x5d4] sm:$0xf0] }
 0x52c   : > { %6467 = vmatpush.bf16.msra.mxu0 %v10889_v27  ;;  %v10181_v44 = vor.u32 %v11737_v58, %v10180_v63  ;;  %v5871_v2 = vrot.slane %v5869_v32, 3  ;;  %v11736_v32 = vld [vmem:[%s18601_s3 + $0x5d4] sm:$0xf]  ;;  %v19025_v63 = vld [vmem:[#allocation35_spill] sm:$0xff] }
 0x52e   : > { %4272 = vmatpush.bf16.msra.mxu2 %v10181_v44  ;;  %v5875_v61 = vor.u32 %v5874_v12, %v5871_v2  ;;  %v10172_v12 = vld [vmem:[%s18601_s3 + $0x5c0] sm:$0xf] }
 0x52f   : > { %v15949_v33 = vpop.f32.mrf.mxu1  ;;  %v15951_v26 = vpop.f32.mrf.mxu0 }
 0x530   : > { %19021 = vst [vmem:[#allocation34_spill] sm:$0xff] %v15949_v33  ;;  %v12239_v33 = vld [vmem:[#allocation2 + $0x8] sm:$0xff] }
 0x531   : > { %19022 = vst [vmem:[#allocation78_spill] sm:$0xff] %v15951_v26 }
 0x532   : > { %v2793_v6 = vpop.f32.mrf.mxu2  ;;  %v2832_v27 = vpop.f32.mrf.mxu3 }
 0x533   : > { %v15960_v57 = vadd.f32 %v2793_v6, %v15618_v25  ;;  %v15963_v39 = vadd.f32 %v2832_v27, %v15621_v8  ;;  %v10182_v25 = vld [vmem:[%s18601_s3 + $0x5d8] sm:$0xf0]  ;;  %v5876_v8 = vsel %vm3385_vm5, %v19025_v63, %v5875_v61  ;;  %v11735_v6 = vld [vmem:[%s18601_s3 + $0x5c4] sm:$0xf0]  ;;  %v11734_v63 = vld [vmem:[%s18601_s3 + $0x5c4] sm:$0xf] }
 0x534   : > { %v10185_v52 = vor.u32 %v11736_v32, %v10182_v25  ;;  %v10173_v27 = vor.u32 %v11735_v6, %v10172_v12  ;;  %v11870_v12 = vld [vmem:[#allocation2 + $0x18] sm:$0xff] }
 0x536   : > { %4311 = vmatpush.bf16.msra.mxu3 %v10185_v52  ;;  %4273 = vmatpush.bf16.msra.mxu2 %v10173_v27 }
 0x537   : > { %v15965_v20 = vpop.f32.mrf.mxu1  ;;  %v15967_v26 = vpop.f32.mrf.mxu0  ;;  %3728 = vmatmul.bf16.vlgmr.msrb.gmra.mxu2 %v12239_v33  ;;  %3767 = vmatmul.bf16.vlgmr.msrb.gmra.mxu3 %v12239_v33 }
 0x538   : > { %19023 = vst [vmem:[#allocation38_spill] sm:$0xff] %v15965_v20 }
 0x539   : > { %19024 = vst [vmem:[#allocation168_spill] sm:$0xff] %v15967_v26 }
 0x53a   : > { %5996 = vmatmul.bf16.gmra.mxu1 %v5876_v8  ;;  %6035 = vmatmul.bf16.gmra.mxu0 %v5876_v8  ;;  %v2796_v58 = vpop.f32.mrf.mxu2  ;;  %v2835_v44 = vpop.f32.mrf.mxu3  ;;  %v10174_v8 = vld [vmem:[%s18601_s3 + $0x5c8] sm:$0xf0] }
 0x53b   : > { %v15978_v2 = vadd.f32 %v2796_v58, %v15637_v4  ;;  %v15981_v33 = vadd.f32 %v2835_v44, %v15640_v17  ;;  %v10177_v58 = vor.u32 %v11734_v63, %v10174_v8  ;;  %v12109_v44 = vld [vmem:[#allocation2 + $0x10] sm:$0xff]  }
 0x53d   : > { %4312 = vmatpush.bf16.msra.mxu3 %v10177_v58 }
 0x53f   : > { %v15989_v61 = vpop.f32.mrf.mxu1  ;;  %v15991_v32 = vpop.f32.mrf.mxu0 }
 0x540   : > { %19026 = vst [vmem:[#allocation35_spill] sm:$0xff] %v15989_v61 }
 0x541   : > { %19027 = vst [vmem:[#allocation169_spill] sm:$0xff] %v15991_v32 }
 0x542   : > { %v2798_v4 = vpop.f32.mrf.mxu2  ;;  %v2837_v25 = vpop.f32.mrf.mxu3 }
 0x543   : > { %v15994_v17 = vadd.f32 %v2798_v4, %v15658_v35  ;;  %v15997_v52 = vadd.f32 %v2837_v25, %v15661_v53  ;;  %v10164_v35 = vld [vmem:[%s18601_s3 + $0x5b0] sm:$0xf]  ;;  %v11733_v53 = vld [vmem:[%s18601_s3 + $0x5b4] sm:$0xf0] }
 0x544   : > { %v10165_v6 = vor.u32 %v11733_v53, %v10164_v35  ;;  %v10166_v35 = vld [vmem:[%s18601_s3 + $0x5b8] sm:$0xf0] }
 0x546   : > { %4274 = vmatpush.bf16.msra.mxu2 %v10165_v6  ;;  %v11731_v6 = vld [vmem:[%s18601_s3 + $0x5a4] sm:$0xf0] }
 0x547   : > { %3733 = vmatmul.bf16.gmra.mxu2 %v12109_v44  ;;  %3772 = vmatmul.bf16.gmra.mxu3 %v12109_v44  ;;  %v16011_v25 = vpop.f32.mrf.mxu1  ;;  %v16013_v63 = vpop.f32.mrf.mxu0  ;;  %v11732_v44 = vld [vmem:[%s18601_s3 + $0x5b4] sm:$0xf] }
 0x548   : > { %19028 = vst [vmem:[#allocation170_spill] sm:$0xff] %v16011_v25  ;;  %v10169_v53 = vor.u32 %v11732_v44, %v10166_v35  ;;  %v12240_v35 = vld [vmem:[#allocation2 + $0x18] sm:$0xff]  }
 0x549   : > { %19029 = vst [vmem:[#allocation171_spill] sm:$0xff] %v16013_v63 }
 0x54a   : > { %6429 = vmatmul.bf16.vlgmr.msra.gmra.mxu1 %v11870_v12  ;;  %6468 = vmatmul.bf16.vlgmr.msra.gmra.mxu0 %v11870_v12  ;;  %v2801_v27 = vpop.f32.mrf.mxu2  ;;  %v2840_v4 = vpop.f32.mrf.mxu3 }
 0x54b   : > { %v16016_v8 = vadd.f32 %v2801_v27, %v15684_v60  ;;  %v16019_v58 = vadd.f32 %v2840_v4, %v15687_v54  ;;  %4313 = vmatpush.bf16.msra.mxu3 %v10169_v53  ;;  %v10156_v54 = vld [vmem:[%s18601_s3 + $0x5a0] sm:$0xf]  ;;  %v19033_v53 = vld [vmem:[#allocation55_spill] sm:$0xff] }
 0x54c   : > { %v10157_v27 = vor.u32 %v11731_v6, %v10156_v54 }
 0x54e   : > { %4275 = vmatpush.bf16.msra.mxu2 %v10157_v27  ;;  %v11730_v27 = vld [vmem:[%s18601_s3 + $0x5a4] sm:$0xf] }
 0x54f   : > { %v16039_v4 = vpop.f32.mrf.mxu1  ;;  %v16041_v44 = vpop.f32.mrf.mxu0 }
 0x550   : > { %19030 = vst [vmem:[#allocation172_spill] sm:$0xff] %v16039_v4 }
 0x551   : > { %19031 = vst [vmem:[#allocation173_spill] sm:$0xff] %v16041_v44  ;;  %v12111_v44 = vld [vmem:[#allocation2 + $0x20] sm:$0xff]  }
 0x552   : > { %v2803_v12 = vpop.f32.mrf.mxu2  ;;  %v2842_v25 = vpop.f32.mrf.mxu3 }
 0x553   : > { %v16028_v63 = vadd.f32 %v2803_v12, %v15700_v29  ;;  %v16031_v60 = vadd.f32 %v2842_v25, %v15703_v11  ;;  %v11871_v29 = vld [vmem:[#allocation2 + $0x20] sm:$0xff]  ;;  %v19032_v11 = vld [vmem:[#allocation54_spill] sm:$0xff]  ;;  %v3118_v12 = vadd.f32 %v19033_v53, %v15723_v22 }
 0x554   : > { %v3117_v25 = vadd.f32 %v19032_v11, %v15720_v16 }
 0x557   : > { %3738 = vmatmul.bf16.gmra.mxu2 %v12240_v35  ;;  %3777 = vmatmul.bf16.gmra.mxu3 %v12240_v35  ;;  %v10158_v35 = vld [vmem:[%s18601_s3 + $0x5a8] sm:$0xf0]  ;;  %v16057_v11 = vpop.f32.mrf.mxu1  ;;  %v16059_v22 = vpop.f32.mrf.mxu0 }
 0x558   : > { %v10161_v16 = vor.u32 %v11730_v27, %v10158_v35  ;;  %19034 = vst [vmem:[#allocation54_spill] sm:$0xff] %v16057_v11 }
 0x559   : > { %19035 = vst [vmem:[#allocation55_spill] sm:$0xff] %v16059_v22 }
 0x55a   : > { %6434 = vmatmul.bf16.gmra.mxu1 %v11871_v29  ;;  %6473 = vmatmul.bf16.gmra.mxu0 %v11871_v29  ;;  %v3271_v32 = vpop.f32.mrf.mxu2  ;;  %v3310_v61 = vpop.f32.mrf.mxu3 }
 0x55b   : > { %v16047_v54 = vadd.f32 %v3271_v32, %v3117_v25  ;;  %v16049_v6 = vadd.f32 %v3310_v61, %v3118_v12  ;;  %4314 = vmatpush.bf16.msra.mxu3 %v10161_v16  ;;  %v10148_v32 = vld [vmem:[%s18601_s3 + $0x590] sm:$0xf]  ;;  %v11729_v61 = vld [vmem:[%s18601_s3 + $0x594] sm:$0xf0]  ;;  %v19037_v12 = vld [vmem:[#allocation60_spill] sm:$0xff] }
 0x55c   : > { %v10149_v29 = vor.u32 %v11729_v61, %v10148_v32  ;;  %v19036_v25 = vld [vmem:[#allocation59_spill] sm:$0xff]  ;;  %v3120_v27 = vadd.f32 %v19037_v12, %v15745_v46  ;;  %v11728_v32 = vld [vmem:[%s18601_s3 + $0x594] sm:$0xf]  ;;  %v11872_v61 = vld [vmem:[#allocation2 + $0x28] sm:$0xff] }
 0x55d   : > { %v3119_v53 = vadd.f32 %v19036_v25, %v15742_v49  ;;  %v10150_v49 = vld [vmem:[%s18601_s3 + $0x598] sm:$0xf0] }
 0x55e   : > { %4276 = vmatpush.bf16.msra.mxu2 %v10149_v29  ;;  %v10153_v46 = vor.u32 %v11728_v32, %v10150_v49  ;;  %v11120_v32 = vld [vmem:[%s18601_s3 + $0xb70] sm:$0xf] }
 0x55f   : > { %v16081_v25 = vpop.f32.mrf.mxu1  ;;  %v16083_v29 = vpop.f32.mrf.mxu0 }
 0x560   : > { %19038 = vst [vmem:[#allocation59_spill] sm:$0xff] %v16081_v25  ;;  %4315 = vmatpush.bf16.msra.mxu3 %v10153_v46  ;;  %v10140_v46 = vld [vmem:[%s18601_s3 + $0x580] sm:$0xf] }
 0x561   : > { %19039 = vst [vmem:[#allocation60_spill] sm:$0xff] %v16083_v29 }
 0x562   : > { %v3273_v35 = vpop.f32.mrf.mxu2  ;;  %v3312_v16 = vpop.f32.mrf.mxu3 }
 0x563   : > { %v16071_v11 = vadd.f32 %v3273_v35, %v3119_v53  ;;  %v16073_v22 = vadd.f32 %v3312_v16, %v3120_v27  ;;  %v19040_v53 = vld [vmem:[#allocation63_spill] sm:$0xff]  ;;  %v19041_v27 = vld [vmem:[#allocation64_spill] sm:$0xff] }
 0x564   : > { %v3121_v12 = vadd.f32 %v19040_v53, %v15762_v7  ;;  %v11928_v7 = vld [vmem:[%s18601_s3 + $0xb74] sm:$0xf0]  ;;  %v11727_v53 = vld [vmem:[%s18601_s3 + $0x584] sm:$0xf0] }
 0x565   : > { %v11121_v49 = vor.u32 %v11928_v7, %v11120_v32  ;;  %v11114_v7 = vld [vmem:[%s18601_s3 + $0xb68] sm:$0xf0] }
 0x567   : > { %3743 = vmatmul.bf16.gmra.mxu2 %v12111_v44  ;;  %3782 = vmatmul.bf16.gmra.mxu3 %v12111_v44  ;;  %v3122_v44 = vadd.f32 %v19041_v27, %v15765_v40  ;;  %v11927_v40 = vld [vmem:[%s18601_s3 + $0xb74] sm:$0xf]  ;;  %v10141_v27 = vor.u32 %v11727_v53, %v10140_v46  ;;  %v16127_v29 = vpop.f32.mrf.mxu1  ;;  %v16129_v25 = vpop.f32.mrf.mxu0 }
 0x568   : > { %6946 = vmatpush.bf16.msrb.mxu1 %v11121_v49  ;;  %19044 = vst [vmem:[#allocation63_spill] sm:$0xff] %v16127_v29 }
 0x569   : > { %4277 = vmatpush.bf16.msra.mxu2 %v10141_v27  ;;  %19045 = vst [vmem:[#allocation64_spill] sm:$0xff] %v16129_v25 }
 0x56a   : > { %6439 = vmatmul.bf16.gmra.mxu1 %v11872_v61  ;;  %6478 = vmatmul.bf16.gmra.mxu0 %v11872_v61  ;;  %v3276_v35 = vpop.f32.mrf.mxu2  ;;  %v3315_v16 = vpop.f32.mrf.mxu3  ;;  %v11122_v61 = vld [vmem:[%s18601_s3 + $0xb78] sm:$0xf0] }
 0x56b   : > { %v16089_v4 = vadd.f32 %v3276_v35, %v3121_v12  ;;  %v16091_v26 = vadd.f32 %v3315_v16, %v3122_v44  ;;  %v11125_v12 = vor.u32 %v11927_v40, %v11122_v61  ;;  %v11112_v44 = vld [vmem:[%s18601_s3 + $0xb60] sm:$0xf]  ;;  %v11926_v35 = vld [vmem:[%s18601_s3 + $0xb64] sm:$0xf0]  ;;  %v11925_v16 = vld [vmem:[%s18601_s3 + $0xb64] sm:$0xf] }
 0x56c   : > { %v11113_v32 = vor.u32 %v11926_v35, %v11112_v44  ;;  %v19042_v40 = vld [vmem:[#allocation70_spill] sm:$0xff]  ;;  %v19043_v61 = vld [vmem:[#allocation71_spill] sm:$0xff]  ;;  %v11117_v53 = vor.u32 %v11925_v16, %v11114_v7  ;;  %v11726_v7 = vld [vmem:[%s18601_s3 + $0x584] sm:$0xf] }
 0x56d   : > { %6985 = vmatpush.bf16.msrb.mxu0 %v11125_v12  ;;  %v3123_v49 = vadd.f32 %v19042_v40, %v15802_v9  ;;  %v3124_v46 = vadd.f32 %v19043_v61, %v15805_v36  ;;  %v11104_v9 = vld [vmem:[%s18601_s3 + $0xb50] sm:$0xf]  ;;  %v11924_v36 = vld [vmem:[%s18601_s3 + $0xb54] sm:$0xf0]  ;;  %v11923_v35 = vld [vmem:[%s18601_s3 + $0xb54] sm:$0xf] }
 0x56e   : > { %6947 = vmatpush.bf16.msrb.mxu1 %v11113_v32  ;;  %v11105_v16 = vor.u32 %v11924_v36, %v11104_v9  ;;  %v11106_v32 = vld [vmem:[%s18601_s3 + $0xb58] sm:$0xf0]  ;;  %v10142_v40 = vld [vmem:[%s18601_s3 + $0x588] sm:$0xf0]  ;;  %v11921_v9 = vld [vmem:[%s18601_s3 + $0xb44] sm:$0xf] }
 0x56f   : > { %v10145_v61 = vor.u32 %v11726_v7, %v10142_v40  ;;  %v19046_v7 = vld [vmem:[#allocation75_spill] sm:$0xff] }
 0x570   : > { %v3125_v40 = vadd.f32 %v19046_v7, %v15852_v62  ;;  %v11920_v62 = vld [vmem:[%s18601_s3 + $0xb34] sm:$0xf0] }
 0x571   : > { %6986 = vmatpush.bf16.msrb.mxu0 %v11117_v53  ;;  %v12241_v53 = vld [vmem:[#allocation2 + $0x28] sm:$0xff]  ;;  %4316 = vmatpush.bf16.msra.mxu3 %v10145_v61 }
 0x572   : > { %v3278_v12 = vpop.f32.mrf.mxu2  ;;  %v3317_v27 = vpop.f32.mrf.mxu3  ;;  %6948 = vmatpush.bf16.msrb.mxu1 %v11105_v16  ;;  %v10356_v16 = vld [vmem:[%s18601_s3 + $0x6f0] sm:$0xf] }
 0x573   : > { %v16131_v20 = vadd.f32 %v3278_v12, %v3123_v49  ;;  %v16133_v44 = vadd.f32 %v3317_v27, %v3124_v46  ;;  %v11109_v49 = vor.u32 %v11923_v35, %v11106_v32  ;;  %v11873_v46 = vld [vmem:[#allocation2 + $0x30] sm:$0xff]  ;;  %v11096_v12 = vld [vmem:[%s18601_s3 + $0xb40] sm:$0xf]  ;;  %v11922_v27 = vld [vmem:[%s18601_s3 + $0xb44] sm:$0xf0] }
 0x574   : > { %v11097_v36 = vor.u32 %v11922_v27, %v11096_v12  ;;  %v11098_v35 = vld [vmem:[%s18601_s3 + $0xb48] sm:$0xf0]  ;;  %v11773_v32 = vld [vmem:[%s18601_s3 + $0x6f4] sm:$0xf0] }
 0x575   : > { %6987 = vmatpush.bf16.msrb.mxu0 %v11109_v49  ;;  %v11101_v61 = vor.u32 %v11921_v9, %v11098_v35  ;;  %v10357_v12 = vor.u32 %v11773_v32, %v10356_v16  ;;  %v16191_v9 = vpop.f32.mrf.mxu1  ;;  %v11080_v16 = vld [vmem:[%s18601_s3 + $0xb20] sm:$0xf]  ;;  %v11918_v32 = vld [vmem:[%s18601_s3 + $0xb24] sm:$0xf0] }
 0x576   : > { %6949 = vmatpush.bf16.msrb.mxu1 %v11097_v36  ;;  %19048 = vst [vmem:[#allocation70_spill] sm:$0xff] %v16191_v9  ;;  %v16193_v36 = vpop.f32.mrf.mxu0  ;;  %v11081_v7 = vor.u32 %v11918_v32, %v11080_v16 }
 0x577   : > { %3748 = vmatmul.bf16.gmra.mxu2 %v12241_v53  ;;  %3787 = vmatmul.bf16.gmra.mxu3 %v12241_v53  ;;  %v19047_v53 = vld [vmem:[#allocation76_spill] sm:$0xff]  ;;  %19049 = vst [vmem:[#allocation71_spill] sm:$0xff] %v16193_v36  ;;  %v11072_v36 = vld [vmem:[%s18601_s3 + $0xb10] sm:$0xf] }
 0x578   : > { %v3126_v49 = vadd.f32 %v19047_v53, %v15855_v23  ;;  %4738 = vmatpush.bf16.msrb.mxu2 %v10357_v12  ;;  %v11919_v23 = vld [vmem:[%s18601_s3 + $0xb34] sm:$0xf] }
 0x579   : > { %6988 = vmatpush.bf16.msrb.mxu0 %v11101_v61  ;;  %v11772_v53 = vld [vmem:[%s18601_s3 + $0x6f4] sm:$0xf] }
 0x57a   : > { %6444 = vmatmul.bf16.gmra.mxu1 %v11873_v46  ;;  %6483 = vmatmul.bf16.gmra.mxu0 %v11873_v46  ;;  %v3281_v27 = vpop.f32.mrf.mxu2  ;;  %v3320_v25 = vpop.f32.mrf.mxu3  ;;  %v11089_v46 = vor.u32 %v11920_v62, %v11088_v31  ;;  %v11917_v31 = vld [vmem:[%s18601_s3 + $0xb24] sm:$0xf]  ;;  %v19050_v61 = vld [vmem:[#allocation82_spill] sm:$0xff] }
 0x57b   : > { %v16175_v29 = vadd.f32 %v3281_v27, %v3125_v40  ;;  %v16177_v10 = vadd.f32 %v3320_v25, %v3126_v49  ;;  %v11090_v25 = vld [vmem:[%s18601_s3 + $0xb38] sm:$0xf0]  ;;  %v11082_v40 = vld [vmem:[%s18601_s3 + $0xb28] sm:$0xf0]  ;;  %v3127_v12 = vadd.f32 %v19050_v61, %v15892_v30  ;;  %v11916_v30 = vld [vmem:[%s18601_s3 + $0xb14] sm:$0xf0] }
 0x57c   : > { %v11093_v35 = vor.u32 %v11919_v23, %v11090_v25  ;;  %6950 = vmatpush.bf16.msrb.mxu1 %v11089_v46  ;;  %v10358_v49 = vld [vmem:[%s18601_s3 + $0x6f8] sm:$0xf0]  ;;  %v11085_v23 = vor.u32 %v11917_v31, %v11082_v40  ;;  %v11073_v31 = vor.u32 %v11916_v30, %v11072_v36  ;;  %v11064_v36 = vld [vmem:[%s18601_s3 + $0xb00] sm:$0xf]  ;;  %v11066_v30 = vld [vmem:[%s18601_s3 + $0xb08] sm:$0xf0] }
 0x57d   : > { %v19051_v27 = vld [vmem:[#allocation83_spill] sm:$0xff]  ;;  %v10361_v46 = vor.u32 %v11772_v53, %v10358_v49  ;;  %v11771_v53 = vld [vmem:[%s18601_s3 + $0x6e4] sm:$0xf0] }
 0x57e   : > { %6989 = vmatpush.bf16.msrb.mxu0 %v11093_v35  ;;  %v3128_v62 = vadd.f32 %v19051_v27, %v15895_v0  ;;  %v11915_v0 = vld [vmem:[%s18601_s3 + $0xb14] sm:$0xf]  ;;  %v11074_v40 = vld [vmem:[%s18601_s3 + $0xb18] sm:$0xf0]  ;;  %v16241_v27 = vpop.f32.mrf.mxu0 }
 0x57f   : > { %4777 = vmatpush.bf16.msrb.mxu3 %v10361_v46  ;;  %v11077_v49 = vor.u32 %v11915_v0, %v11074_v40  ;;  %19053 = vst [vmem:[#allocation76_spill] sm:$0xff] %v16241_v27  ;;  %v11913_v46 = vld [vmem:[%s18601_s3 + $0xb04] sm:$0xf] }
 0x580   : > { %6951 = vmatpush.bf16.msrb.mxu1 %v11081_v7  ;;  %v10348_v7 = vld [vmem:[%s18601_s3 + $0x6e0] sm:$0xf] }
 0x581   : > { %v10349_v61 = vor.u32 %v11771_v53, %v10348_v7  ;;  %v19055_v0 = vld [vmem:[#allocation88_spill] sm:$0xff]  ;;  %v19056_v7 = vld [vmem:[#allocation89_spill] sm:$0xff] }
 0x582   : > { %v3283_v25 = vpop.f32.mrf.mxu2  ;;  %v3322_v35 = vpop.f32.mrf.mxu3  ;;  %6990 = vmatpush.bf16.msrb.mxu0 %v11085_v23  ;;  %v11914_v23 = vld [vmem:[%s18601_s3 + $0xb04] sm:$0xf0]  ;;  %v3129_v40 = vadd.f32 %v19055_v0, %v15938_v21  ;;  %v3130_v53 = vadd.f32 %v19056_v7, %v15941_v47  ;;  %v10350_v21 = vld [vmem:[%s18601_s3 + $0x6e8] sm:$0xf0] }
 0x583   : > { %v16217_v16 = vadd.f32 %v3283_v25, %v3127_v12  ;;  %v16219_v32 = vadd.f32 %v3322_v35, %v3128_v62  ;;  %v16239_v12 = vpop.f32.mrf.mxu1  ;;  %v19054_v62 = vld [vmem:[#allocation30_spill] sm:$0xff]  ;;  %v11874_v25 = vld [vmem:[#allocation2 + $0x38] sm:$0xff]  ;;  %v11065_v35 = vor.u32 %v11914_v23, %v11064_v36  ;;  %4739 = vmatpush.bf16.msrb.mxu2 %v10349_v61 }
 0x584   : > { %19052 = vst [vmem:[#allocation75_spill] sm:$0xff] %v16239_v12  ;;  %6952 = vmatpush.bf16.msrb.mxu1 %v11073_v31  ;;  %v10340_v61 = vld [vmem:[%s18601_s3 + $0x6d0] sm:$0xf] }
 0x586   : > { %6991 = vmatpush.bf16.msrb.mxu0 %v11077_v49  ;;  %v11770_v49 = vld [vmem:[%s18601_s3 + $0x6e4] sm:$0xf]  ;;  %v16279_v23 = vpop.f32.mrf.mxu0 }
 0x587   : > { %3753 = vmatmul.bf16.gmra.mxu2 %v19054_v62  ;;  %3792 = vmatmul.bf16.gmra.mxu3 %v19054_v62  ;;  %v11069_v62 = vor.u32 %v11913_v46, %v11066_v30  ;;  %v10353_v47 = vor.u32 %v11770_v49, %v10350_v21  ;;  %19058 = vst [vmem:[#allocation83_spill] sm:$0xff] %v16279_v23  ;;  %v19059_v46 = vld [vmem:[#allocation90_spill] sm:$0xff] }
 0x588   : > { %6953 = vmatpush.bf16.msrb.mxu1 %v11065_v35  ;;  %v19060_v35 = vld [vmem:[#allocation91_spill] sm:$0xff]  ;;  %v11768_v49 = vld [vmem:[%s18601_s3 + $0x6d4] sm:$0xf] }
 0x589   : > { %4778 = vmatpush.bf16.msrb.mxu3 %v10353_v47  ;;  %v3132_v30 = vadd.f32 %v19060_v35, %v15963_v39  ;;  %v11875_v39 = vld [vmem:[#allocation2 + $0x40] sm:$0xff] }
 0x58a   : > { %6449 = vmatmul.bf16.gmra.mxu1 %v11874_v25  ;;  %6488 = vmatmul.bf16.gmra.mxu0 %v11874_v25  ;;  %v3286_v27 = vpop.f32.mrf.mxu2  ;;  %v3325_v12 = vpop.f32.mrf.mxu3  ;;  %v3131_v25 = vadd.f32 %v19059_v46, %v15960_v57  ;;  %v10342_v57 = vld [vmem:[%s18601_s3 + $0x6d8] sm:$0xf0]  ;;  %v19062_v47 = vld [vmem:[#allocation92_spill] sm:$0xff] }
 0x58b   : > { %v16261_v9 = vadd.f32 %v3286_v27, %v3129_v40  ;;  %v16263_v31 = vadd.f32 %v3325_v12, %v3130_v53  ;;  %6992 = vmatpush.bf16.msrb.mxu0 %v11069_v62  ;;  %v11769_v12 = vld [vmem:[%s18601_s3 + $0x6d4] sm:$0xf0]  ;;  %v16277_v36 = vpop.f32.mrf.mxu1  ;;  %v19061_v62 = vld [vmem:[#allocation26_spill] sm:$0xff]  ;;  %v10345_v21 = vor.u32 %v11768_v49, %v10342_v57 }
 0x58c   : > { %v10341_v27 = vor.u32 %v11769_v12, %v10340_v61  ;;  %19057 = vst [vmem:[#allocation82_spill] sm:$0xff] %v16277_v36  ;;  %v3133_v61 = vadd.f32 %v19062_v47, %v15978_v2  ;;  %v19063_v12 = vld [vmem:[#allocation93_spill] sm:$0xff]  ;;  %v10332_v2 = vld [vmem:[%s18601_s3 + $0x6c0] sm:$0xf]  ;;  %v19066_v49 = vld [vmem:[#allocation94_spill] sm:$0xff] }
 0x58d   : > { %4779 = vmatpush.bf16.msrb.mxu3 %v10345_v21  ;;  %v3135_v57 = vadd.f32 %v19066_v49, %v15994_v17  ;;  %v19070_v49 = vld [vmem:[#allocation37_spill] sm:$0xff] }
 0x58e   : > { %4740 = vmatpush.bf16.msrb.mxu2 %v10341_v27  ;;  %v3134_v27 = vadd.f32 %v19063_v12, %v15981_v33  ;;  %v11767_v33 = vld [vmem:[%s18601_s3 + $0x6c4] sm:$0xf0] }
 0x592   : > { %v3288_v0 = vpop.f32.mrf.mxu2  ;;  %v3327_v40 = vpop.f32.mrf.mxu3 }
 0x593   : > { %v16285_v7 = vadd.f32 %v3288_v0, %v3131_v25  ;;  %v16287_v53 = vadd.f32 %v3327_v40, %v3132_v30  ;;  %v16301_v35 = vpop.f32.mrf.mxu1  ;;  %v16303_v30 = vpop.f32.mrf.mxu0 }
 0x594   : > { %19064 = vst [vmem:[#allocation30_spill] sm:$0xff] %v16301_v35 }
 0x595   : > { %19065 = vst [vmem:[#allocation88_spill] sm:$0xff] %v16303_v30 }
 0x597   : > { %4278 = vmatmul.bf16.vlgmr.msra.gmra.mxu2 %v19061_v62  ;;  %4317 = vmatmul.bf16.vlgmr.msra.gmra.mxu3 %v19061_v62  ;;  %v10333_v62 = vor.u32 %v11767_v33, %v10332_v2 }
 0x599   : > { %4741 = vmatpush.bf16.msrb.mxu2 %v10333_v62 }
 0x59a   : > { %6454 = vmatmul.bf16.gmra.mxu1 %v11875_v39  ;;  %6493 = vmatmul.bf16.gmra.mxu0 %v11875_v39  ;;  %v3291_v46 = vpop.f32.mrf.mxu2  ;;  %v3330_v25 = vpop.f32.mrf.mxu3  ;;  %v19067_v39 = vld [vmem:[#allocation95_spill] sm:$0xff] }
 0x59b   : > { %v16305_v0 = vadd.f32 %v3291_v46, %v3133_v61  ;;  %v16307_v40 = vadd.f32 %v3330_v25, %v3134_v27  ;;  %v3136_v47 = vadd.f32 %v19067_v39, %v15997_v52  ;;  %v11766_v46 = vld [vmem:[%s18601_s3 + $0x6c4] sm:$0xf]  ;;  %v10334_v25 = vld [vmem:[%s18601_s3 + $0x6c8] sm:$0xf0]  ;;  %v16329_v33 = vpop.f32.mrf.mxu1  ;;  %v16331_v17 = vpop.f32.mrf.mxu0 }
 0x59c   : > { %v10337_v2 = vor.u32 %v11766_v46, %v10334_v25  ;;  %19068 = vst [vmem:[#allocation89_spill] sm:$0xff] %v16329_v33  ;;  %v12242_v52 = vld [vmem:[#allocation2 + $0x20] sm:$0xff]  ;;  %v19072_v25 = vld [vmem:[#allocation97_spill] sm:$0xff] }
 0x59d   : > { %19069 = vst [vmem:[#allocation90_spill] sm:$0xff] %v16331_v17  ;;  %v6848_v62 = vrot.slane %v12242_v52, 1  ;;  %v19073_v52 = vld [vmem:[#allocation98_spill] sm:$0xff] }
 0x59e   : > { %4780 = vmatpush.bf16.msrb.mxu3 %v10337_v2  ;;  %v3137_v2 = vadd.f32 %v19072_v25, %v16016_v8  ;;  %v3138_v17 = vadd.f32 %v19073_v52, %v16019_v58  ;;  %v11764_v8 = vld [vmem:[%s18601_s3 + $0x6b4] sm:$0xf]  ;;  %v10326_v58 = vld [vmem:[%s18601_s3 + $0x6b8] sm:$0xf0] }
 0x5a2   : > { %v3293_v61 = vpop.f32.mrf.mxu2  ;;  %v3332_v12 = vpop.f32.mrf.mxu3 }
 0x5a3   : > { %v16319_v27 = vadd.f32 %v3293_v61, %v3135_v57  ;;  %v16321_v21 = vadd.f32 %v3332_v12, %v3136_v47  ;;  %v19071_v57 = vld [vmem:[#allocation43_spill] sm:$0xff]  ;;  %v10324_v47 = vld [vmem:[%s18601_s3 + $0x6b0] sm:$0xf]  ;;  %v16351_v35 = vpop.f32.mrf.mxu1 }
 0x5a4   : > { %v6847_v39 = vrot.slane %v19071_v57, 1  ;;  %v11765_v61 = vld [vmem:[%s18601_s3 + $0x6b4] sm:$0xf0]  ;;  %19074 = vst [vmem:[#allocation91_spill] sm:$0xff] %v16351_v35  ;;  %v16414_v35 = vld [vmem:[#allocation2 + $0x30] sm:$0xff] }
 0x5a5   : > { %v10325_v12 = vor.u32 %v11765_v61, %v10324_v47  ;;  %v16353_v47 = vpop.f32.mrf.mxu0  ;;  %v19076_v61 = vld [vmem:[#allocation99_spill] sm:$0xff] }
 0x5a6   : > { %v6849_v46 = vsel %vm1933_vm8, %v6847_v39, %v6848_v62  ;;  %19075 = vst [vmem:[#allocation26_spill] sm:$0xff] %v16353_v47  ;;  %v10329_v39 = vor.u32 %v11764_v8, %v10326_v58  ;;  %v11763_v8 = vld [vmem:[%s18601_s3 + $0x6a4] sm:$0xf0] }
 0x5a7   : > { %4283 = vmatmul.bf16.gmra.mxu2 %v19070_v49  ;;  %4322 = vmatmul.bf16.gmra.mxu3 %v19070_v49 }
 0x5a8   : > { %4742 = vmatpush.bf16.msrb.mxu2 %v10325_v12  ;;  %4781 = vmatpush.bf16.msrb.mxu3 %v10329_v39 }
 0x5aa   : > { %6954 = vmatmul.bf16.vlgmr.msrb.gmra.mxu1 %v6849_v46  ;;  %6993 = vmatmul.bf16.vlgmr.msrb.gmra.mxu0 %v6849_v46  ;;  %v3296_v49 = vpop.f32.mrf.mxu2  ;;  %v3335_v57 = vpop.f32.mrf.mxu3  ;;  %v3139_v46 = vadd.f32 %v19076_v61, %v16028_v63  ;;  %v12243_v63 = vld [vmem:[#allocation2 + $0x28] sm:$0xff] }
 0x5ab   : > { %v16347_v33 = vadd.f32 %v3296_v49, %v3137_v2  ;;  %v16349_v30 = vadd.f32 %v3335_v57, %v3138_v17  ;;  %v19077_v17 = vld [vmem:[#allocation100_spill] sm:$0xff]  ;;  %v6850_v61 = vrot.slane %v12243_v63, 1  ;;  %v16377_v39 = vpop.f32.mrf.mxu1 }
 0x5ac   : > { %v3140_v25 = vadd.f32 %v19077_v17, %v16031_v60  ;;  %v10316_v57 = vld [vmem:[%s18601_s3 + $0x6a0] sm:$0xf]  ;;  %v19078_v60 = vld [vmem:[#allocation39_spill] sm:$0xff]  ;;  %19079 = vst [vmem:[#allocation92_spill] sm:$0xff] %v16377_v39 }
 0x5ad   : > { %v10317_v58 = vor.u32 %v11763_v8, %v10316_v57  ;;  %v6851_v17 = vsel %vm1933_vm8, %v6848_v62, %v6850_v61  ;;  %v10318_v62 = vld [vmem:[%s18601_s3 + $0x6a8] sm:$0xf0] }
 0x5af   : > { %4743 = vmatpush.bf16.msrb.mxu2 %v10317_v58 }
 0x5b2   : > { %v3298_v12 = vpop.f32.mrf.mxu2  ;;  %v3337_v2 = vpop.f32.mrf.mxu3 }
 0x5b3   : > { %v16365_v52 = vadd.f32 %v3298_v12, %v3139_v46  ;;  %v16367_v49 = vadd.f32 %v3337_v2, %v3140_v25  ;;  %v16379_v46 = vpop.f32.mrf.mxu0  ;;  %v19081_v25 = vld [vmem:[#allocation101_spill] sm:$0xff]  ;;  %v19082_v2 = vld [vmem:[#allocation102_spill] sm:$0xff] }
 0x5b4   : > { %19080 = vst [vmem:[#allocation93_spill] sm:$0xff] %v16379_v46  ;;  %v3587_v12 = vadd.f32 %v19081_v25, %v16047_v54  ;;  %v3588_v47 = vadd.f32 %v19082_v2, %v16049_v6  ;;  %v10308_v6 = vld [vmem:[%s18601_s3 + $0x690] sm:$0xf]  ;;  %v19083_v25 = vld [vmem:[#allocation103_spill] sm:$0xff]  ;;  %v19084_v2 = vld [vmem:[#allocation104_spill] sm:$0xff] }
 0x5b7   : > { %4288 = vmatmul.bf16.gmra.mxu2 %v19078_v60  ;;  %4327 = vmatmul.bf16.gmra.mxu3 %v19078_v60  ;;  %v11762_v60 = vld [vmem:[%s18601_s3 + $0x6a4] sm:$0xf] }
 0x5b8   : > { %v10321_v54 = vor.u32 %v11762_v60, %v10318_v62  ;;  %v16406_v60 = vpop.f32.mrf.mxu1 }
 0x5b9   : > { %19085 = vst [vmem:[#allocation94_spill] sm:$0xff] %v16406_v60 }
 0x5ba   : > { %6959 = vmatmul.bf16.gmra.mxu1 %v6851_v17  ;;  %6998 = vmatmul.bf16.gmra.mxu0 %v6851_v17  ;;  %v3729_v57 = vpop.f32.mrf.mxu2  ;;  %v3768_v8 = vpop.f32.mrf.mxu3  ;;  %v11761_v17 = vld [vmem:[%s18601_s3 + $0x694] sm:$0xf0] }
 0x5bb   : > { %v16386_v58 = vadd.f32 %v3729_v57, %v3587_v12  ;;  %v16388_v63 = vadd.f32 %v3768_v8, %v3588_v47  ;;  %4782 = vmatpush.bf16.msrb.mxu3 %v10321_v54  ;;  %v10309_v47 = vor.u32 %v11761_v17, %v10308_v6  ;;  %v3589_v12 = vadd.f32 %v19083_v25, %v16071_v11  ;;  %v16408_v62 = vpop.f32.mrf.mxu0  ;;  %v19087_v17 = vld [vmem:[#allocation44_spill] sm:$0xff]  ;;  %v11760_v11 = vld [vmem:[%s18601_s3 + $0x694] sm:$0xf]  ;;  %v19088_v25 = vld [vmem:[#allocation105_spill] sm:$0xff] }
 0x5bc   : > { %v3590_v57 = vadd.f32 %v19084_v2, %v16073_v22  ;;  %19086 = vst [vmem:[#allocation95_spill] sm:$0xff] %v16408_v62  ;;  %v18728_v6 = vrot.slane %v16414_v35, 1  ;;  %v10310_v22 = vld [vmem:[%s18601_s3 + $0x698] sm:$0xf0]  ;;  %v19089_v2 = vld [vmem:[#allocation106_spill] sm:$0xff] }
 0x5bd   : > { %4744 = vmatpush.bf16.msrb.mxu2 %v10309_v47  ;;  %v10313_v47 = vor.u32 %v11760_v11, %v10310_v22  ;;  %v11280_v11 = vld [vmem:[%s18601_s3 + $0xc70] sm:$0xf]  ;;  %v11282_v22 = vld [vmem:[%s18601_s3 + $0xc78] sm:$0xf0] }
 0x5bf   : > { %4783 = vmatpush.bf16.msrb.mxu3 %v10313_v47  ;;  %v10300_v47 = vld [vmem:[%s18601_s3 + $0x680] sm:$0xf] }
 0x5c2   : > { %v3731_v8 = vpop.f32.mrf.mxu2  ;;  %v3770_v46 = vpop.f32.mrf.mxu3 }
 0x5c3   : > { %v16410_v54 = vadd.f32 %v3731_v8, %v3589_v12  ;;  %v16412_v39 = vadd.f32 %v3770_v46, %v3590_v57  ;;  %v6853_v46 = vsel %vm1933_vm8, %v6850_v61, %v18728_v6  ;;  %v3591_v12 = vadd.f32 %v19088_v25, %v16089_v4  ;;  %v11960_v4 = vld [vmem:[%s18601_s3 + $0xc74] sm:$0xf0]  ;;  %v16454_v25 = vpop.f32.mrf.mxu1 }
 0x5c4   : > { %v3592_v57 = vadd.f32 %v19089_v2, %v16091_v26  ;;  %v11959_v26 = vld [vmem:[%s18601_s3 + $0xc74] sm:$0xf]  ;;  %v11281_v61 = vor.u32 %v11960_v4, %v11280_v11  ;;  %19090 = vst [vmem:[#allocation37_spill] sm:$0xff] %v16454_v25  ;;  %v11957_v11 = vld [vmem:[%s18601_s3 + $0xc64] sm:$0xf] }
 0x5c5   : > { %v11285_v2 = vor.u32 %v11959_v26, %v11282_v22  ;;  %v11274_v26 = vld [vmem:[%s18601_s3 + $0xc68] sm:$0xf0] }
 0x5c6   : > { %7414 = vmatpush.bf16.msra.mxu1 %v11281_v61  ;;  %v19092_v61 = vld [vmem:[#allocation107_spill] sm:$0xff] }
 0x5c7   : > { %4293 = vmatmul.bf16.gmra.mxu2 %v19087_v17  ;;  %4332 = vmatmul.bf16.gmra.mxu3 %v19087_v17  ;;  %v3593_v22 = vadd.f32 %v19092_v61, %v16131_v20  ;;  %v11264_v20 = vld [vmem:[%s18601_s3 + $0xc50] sm:$0xf] }
 0x5c8   : > { %7453 = vmatpush.bf16.msra.mxu0 %v11285_v2  ;;  %v11277_v2 = vor.u32 %v11957_v11, %v11274_v26  ;;  %v10302_v26 = vld [vmem:[%s18601_s3 + $0x688] sm:$0xf0] }
 0x5ca   : > { %6964 = vmatmul.bf16.gmra.mxu1 %v6853_v46  ;;  %7003 = vmatmul.bf16.gmra.mxu0 %v6853_v46  ;;  %v3734_v8 = vpop.f32.mrf.mxu2  ;;  %v3773_v17 = vpop.f32.mrf.mxu3  ;;  %v11759_v46 = vld [vmem:[%s18601_s3 + $0x684] sm:$0xf0] }
 0x5cb   : > { %v16432_v62 = vadd.f32 %v3734_v8, %v3591_v12  ;;  %v16434_v60 = vadd.f32 %v3773_v17, %v3592_v57  ;;  %v16456_v12 = vpop.f32.mrf.mxu0  ;;  %v10301_v57 = vor.u32 %v11759_v46, %v10300_v47  ;;  %v11272_v8 = vld [vmem:[%s18601_s3 + $0xc60] sm:$0xf]  ;;  %v11958_v17 = vld [vmem:[%s18601_s3 + $0xc64] sm:$0xf0] }
 0x5cc   : > { %19091 = vst [vmem:[#allocation43_spill] sm:$0xff] %v16456_v12  ;;  %v11273_v4 = vor.u32 %v11958_v17, %v11272_v8  ;;  %v19093_v47 = vld [vmem:[#allocation108_spill] sm:$0xff]  ;;  %v16474_v12 = vld [vmem:[#allocation2 + $0x38] sm:$0xff]  ;;  %7454 = vmatpush.bf16.msra.mxu0 %v11277_v2  ;;  %v11955_v17 = vld [vmem:[%s18601_s3 + $0xc54] sm:$0xf] }
 0x5cd   : > { %4745 = vmatpush.bf16.msrb.mxu2 %v10301_v57  ;;  %v3594_v46 = vadd.f32 %v19093_v47, %v16133_v44  ;;  %v18729_v25 = vrot.slane %v16474_v12, 1  ;;  %v11956_v44 = vld [vmem:[%s18601_s3 + $0xc54] sm:$0xf0]  ;;  %v16499_v47 = vpop.f32.mrf.mxu1 }
 0x5ce   : > { %7415 = vmatpush.bf16.msra.mxu1 %v11273_v4  ;;  %v11265_v11 = vor.u32 %v11956_v44, %v11264_v20  ;;  %v11266_v4 = vld [vmem:[%s18601_s3 + $0xc58] sm:$0xf0]  ;;  %19094 = vst [vmem:[#allocation97_spill] sm:$0xff] %v16499_v47  ;;  %v11954_v20 = vld [vmem:[%s18601_s3 + $0xc44] sm:$0xf0] }
 0x5cf   : > { %v11269_v61 = vor.u32 %v11955_v17, %v11266_v4  ;;  %v19096_v2 = vld [vmem:[#allocation51_spill] sm:$0xff]  ;;  %v11953_v44 = vld [vmem:[%s18601_s3 + $0xc44] sm:$0xf]  ;;  %v19097_v17 = vrot.slane %v16414_v35, 1 }
 0x5d1   : > { %7455 = vmatpush.bf16.msra.mxu0 %v11269_v61 }
 0x5d2   : > { %v3736_v57 = vpop.f32.mrf.mxu2  ;;  %v3775_v6 = vpop.f32.mrf.mxu3  ;;  %7416 = vmatpush.bf16.msra.mxu1 %v11265_v11  ;;  %v6855_v11 = vsel %vm1933_vm8, %v19097_v17, %v18729_v25  ;;  %v19099_v17 = vld [vmem:[#allocation110_spill] sm:$0xff] }
 0x5d3   : > { %v16477_v23 = vadd.f32 %v3736_v57, %v3593_v22  ;;  %v16479_v8 = vadd.f32 %v3775_v6, %v3594_v46  ;;  %v11758_v6 = vld [vmem:[%s18601_s3 + $0x684] sm:$0xf]  ;;  %v16501_v46 = vpop.f32.mrf.mxu0  ;;  %v11256_v57 = vld [vmem:[%s18601_s3 + $0xc40] sm:$0xf]  ;;  %v3596_v61 = vadd.f32 %v19099_v17, %v16177_v10  ;;  %v11952_v10 = vld [vmem:[%s18601_s3 + $0xc34] sm:$0xf0] }
 0x5d4   : > { %v10305_v22 = vor.u32 %v11758_v6, %v10302_v26  ;;  %19095 = vst [vmem:[#allocation98_spill] sm:$0xff] %v16501_v46  ;;  %v11257_v4 = vor.u32 %v11954_v20, %v11256_v57  ;;  %v11258_v6 = vld [vmem:[%s18601_s3 + $0xc48] sm:$0xf0]  ;;  %v10516_v26 = vld [vmem:[%s18601_s3 + $0x7f0] sm:$0xf] }
 0x5d5   : > { %v19098_v46 = vld [vmem:[#allocation109_spill] sm:$0xff]  ;;  %v16566_v17 = vpop.f32.mrf.mxu1 }
 0x5d6   : > { %4784 = vmatpush.bf16.msrb.mxu3 %v10305_v22  ;;  %v3595_v35 = vadd.f32 %v19098_v46, %v16175_v29  ;;  %v11261_v22 = vor.u32 %v11953_v44, %v11258_v6  ;;  %7417 = vmatpush.bf16.msra.mxu1 %v11257_v4  ;;  %v11951_v29 = vld [vmem:[%s18601_s3 + $0xc34] sm:$0xf]  ;;  %v11249_v46 = vor.u32 %v11952_v10, %v11248_v48  ;;  %v11950_v4 = vld [vmem:[%s18601_s3 + $0xc24] sm:$0xf0]  ;;  %v11949_v6 = vld [vmem:[%s18601_s3 + $0xc24] sm:$0xf] }
 0x5d7   : > { %4298 = vmatmul.bf16.gmra.mxu2 %v19096_v2  ;;  %4337 = vmatmul.bf16.gmra.mxu3 %v19096_v2  ;;  %v11805_v2 = vld [vmem:[%s18601_s3 + $0x7f4] sm:$0xf0]  ;;  %19100 = vst [vmem:[#allocation99_spill] sm:$0xff] %v16566_v17 }
 0x5d8   : > { %v10517_v57 = vor.u32 %v11805_v2, %v10516_v26  ;;  %7456 = vmatpush.bf16.msra.mxu0 %v11261_v22  ;;  %v11242_v26 = vld [vmem:[%s18601_s3 + $0xc28] sm:$0xf0]  ;;  %v11804_v2 = vld [vmem:[%s18601_s3 + $0x7f4] sm:$0xf]  ;;  %v19102_v22 = vld [vmem:[#allocation111_spill] sm:$0xff] }
 0x5da   : > { %6969 = vmatmul.bf16.gmra.mxu1 %v6855_v11  ;;  %7008 = vmatmul.bf16.gmra.mxu0 %v6855_v11  ;;  %v3739_v20 = vpop.f32.mrf.mxu2  ;;  %v3778_v25 = vpop.f32.mrf.mxu3  ;;  %v11240_v11 = vld [vmem:[%s18601_s3 + $0xc20] sm:$0xf] }
 0x5db   : > { %v16532_v47 = vadd.f32 %v3739_v20, %v3595_v35  ;;  %v16534_v36 = vadd.f32 %v3778_v25, %v3596_v61  ;;  %5224 = vmatpush.bf16.msra.mxu2 %v10517_v57  ;;  %v11250_v25 = vld [vmem:[%s18601_s3 + $0xc38] sm:$0xf0]  ;;  %7418 = vmatpush.bf16.msra.mxu1 %v11249_v46  ;;  %v11241_v48 = vor.u32 %v11950_v4, %v11240_v11  ;;  %v16568_v61 = vpop.f32.mrf.mxu0  ;;  %v19103_v20 = vld [vmem:[#allocation112_spill] sm:$0xff] }
 0x5dc   : > { %v11253_v44 = vor.u32 %v11951_v29, %v11250_v25  ;;  %v10518_v35 = vld [vmem:[%s18601_s3 + $0x7f8] sm:$0xf0]  ;;  %19101 = vst [vmem:[#allocation100_spill] sm:$0xff] %v16568_v61  ;;  %v3597_v57 = vadd.f32 %v19102_v22, %v16217_v16  ;;  %v3598_v10 = vadd.f32 %v19103_v20, %v16219_v32  ;;  %v11245_v29 = vor.u32 %v11949_v6, %v11242_v26  ;;  %v11232_v61 = vld [vmem:[%s18601_s3 + $0xc10] sm:$0xf] }
 0x5dd   : > { %v10521_v46 = vor.u32 %v11804_v2, %v10518_v35  ;;  %v11948_v16 = vld [vmem:[%s18601_s3 + $0xc14] sm:$0xf0]  ;;  %v11947_v32 = vld [vmem:[%s18601_s3 + $0xc14] sm:$0xf]  ;;  %v11234_v26 = vld [vmem:[%s18601_s3 + $0xc18] sm:$0xf0] }
 0x5de   : > { %7457 = vmatpush.bf16.msra.mxu0 %v11253_v44  ;;  %v11233_v6 = vor.u32 %v11948_v16, %v11232_v61  ;;  %v11803_v2 = vld [vmem:[%s18601_s3 + $0x7e4] sm:$0xf0]  ;;  %v12246_v35 = vld [vmem:[#allocation2 + $0x40] sm:$0xff]  ;;  %v19105_v16 = vrot.slane %v16474_v12, 1 }
 0x5df   : > { %7419 = vmatpush.bf16.msra.mxu1 %v11241_v48  ;;  %5263 = vmatpush.bf16.msra.mxu3 %v10521_v46  ;;  %v10508_v48 = vld [vmem:[%s18601_s3 + $0x7e0] sm:$0xf]  ;;  %v6856_v22 = vrot.slane %v12246_v35, 1  ;;  %v11945_v46 = vld [vmem:[%s18601_s3 + $0xc04] sm:$0xf] }
 0x5e0   : > { %v10509_v20 = vor.u32 %v11803_v2, %v10508_v48  ;;  %v11224_v61 = vld [vmem:[%s18601_s3 + $0xc00] sm:$0xf]  ;;  %v19107_v2 = vld [vmem:[#allocation114_spill] sm:$0xff] }
 0x5e1   : > { %v3600_v35 = vadd.f32 %v19107_v2, %v16263_v31  ;;  %v10510_v31 = vld [vmem:[%s18601_s3 + $0x7e8] sm:$0xf0] }
 0x5e2   : > { %v3741_v25 = vpop.f32.mrf.mxu2  ;;  %v3780_v44 = vpop.f32.mrf.mxu3  ;;  %7458 = vmatpush.bf16.msra.mxu0 %v11245_v29  ;;  %v11946_v29 = vld [vmem:[%s18601_s3 + $0xc04] sm:$0xf0]  ;;  %5225 = vmatpush.bf16.msra.mxu2 %v10509_v20 }
 0x5e3   : > { %v16574_v11 = vadd.f32 %v3741_v25, %v3597_v57  ;;  %v16576_v4 = vadd.f32 %v3780_v44, %v3598_v10  ;;  %v11237_v57 = vor.u32 %v11947_v32, %v11234_v26  ;;  %v19104_v10 = vld [vmem:[#allocation52_spill] sm:$0xff]  ;;  %7420 = vmatpush.bf16.msra.mxu1 %v11233_v6  ;;  %v11225_v25 = vor.u32 %v11946_v29, %v11224_v61  ;;  %v11226_v44 = vld [vmem:[%s18601_s3 + $0xc08] sm:$0xf0]  ;;  %v16617_v61 = vpop.f32.mrf.mxu1  ;;  %v16619_v29 = vpop.f32.mrf.mxu0 }
 0x5e4   : > { %v6857_v32 = vsel %vm1933_vm8, %v19105_v16, %v6856_v22  ;;  %v19106_v26 = vld [vmem:[#allocation113_spill] sm:$0xff]  ;;  %19108 = vst [vmem:[#allocation39_spill] sm:$0xff] %v16617_v61 }
 0x5e5   : > { %v3599_v48 = vadd.f32 %v19106_v26, %v16261_v9  ;;  %19109 = vst [vmem:[#allocation101_spill] sm:$0xff] %v16619_v29  ;;  %v11802_v9 = vld [vmem:[%s18601_s3 + $0x7e4] sm:$0xf]  ;;  %v19110_v20 = vld [vmem:[#allocation117_spill] sm:$0xff]  ;;  %v11801_v26 = vld [vmem:[%s18601_s3 + $0x7d4] sm:$0xf0] }
 0x5e6   : > { %7459 = vmatpush.bf16.msra.mxu0 %v11237_v57  ;;  %v10513_v16 = vor.u32 %v11802_v9, %v10510_v31 }
 0x5e7   : > { %4303 = vmatmul.bf16.gmra.mxu2 %v19104_v10  ;;  %4342 = vmatmul.bf16.gmra.mxu3 %v19104_v10  ;;  %v11229_v10 = vor.u32 %v11945_v46, %v11226_v44  ;;  %v4616_v46 = vshrl.u32 %v19110_v20, 16  ;;  %v4619_v44 = vshll.u32 %v19110_v20, 16  ;;  %v19112_v20 = vld [vmem:[#allocation116_spill] sm:$0xff] }
 0x5e8   : > { %7421 = vmatpush.bf16.msra.mxu1 %v11225_v25  ;;  %5264 = vmatpush.bf16.msra.mxu3 %v10513_v16  ;;  %v3602_v25 = vadd.f32 %v19112_v20, %v16287_v53  ;;  %v11800_v53 = vld [vmem:[%s18601_s3 + $0x7d4] sm:$0xf] }
 0x5e9   : > { %v4621_v2 = vrot.slane %v4619_v44, 2 }
 0x5ea   : > { %6974 = vmatmul.bf16.gmra.mxu1 %v6857_v32  ;;  %7013 = vmatmul.bf16.gmra.mxu0 %v6857_v32  ;;  %v3744_v6 = vpop.f32.mrf.mxu2  ;;  %v3783_v57 = vpop.f32.mrf.mxu3  ;;  %v10500_v32 = vld [vmem:[%s18601_s3 + $0x7d0] sm:$0xf] }
 0x5eb   : > { %v16621_v17 = vadd.f32 %v3744_v6, %v3599_v48  ;;  %v16623_v12 = vadd.f32 %v3783_v57, %v3600_v35  ;;  %7460 = vmatpush.bf16.msra.mxu0 %v11229_v10  ;;  %v4618_v48 = vrot.slane %v4616_v46, 1  ;;  %v10501_v35 = vor.u32 %v11801_v26, %v10500_v32  ;;  %v19111_v6 = vld [vmem:[#allocation115_spill] sm:$0xff]  ;;  %v16647_v61 = vpop.f32.mrf.mxu1  ;;  %v16649_v24 = vpop.f32.mrf.mxu0  ;;  %v19113_v46 = vld [vmem:[#allocation80_spill] sm:$0xff] }
 0x5ec   : > { %v3601_v57 = vadd.f32 %v19111_v6, %v16285_v7  ;;  %v6858_v44 = vrot.slane %v19113_v46, 1  ;;  %v19114_v32 = vld [vmem:[#allocation40_spill] sm:$0xff]  ;;  %v10502_v26 = vld [vmem:[%s18601_s3 + $0x7d8] sm:$0xf0] }
 0x5ed   : > { %5226 = vmatpush.bf16.msra.mxu2 %v10501_v35  ;;  %v4622_v29 = vor.u32 %v4621_v2, %v4618_v48  ;;  %v10505_v48 = vor.u32 %v11800_v53, %v10502_v26  ;;  %v19115_v35 = vld [vmem:[#allocation118_spill] sm:$0xff]  ;;  %v10492_v46 = vld [vmem:[%s18601_s3 + $0x7c0] sm:$0xf]  ;;  %v19118_v53 = vld [vmem:[#allocation121_spill] sm:$0xff] }
 0x5ee   : > { %v6859_v2 = vsel %vm1933_vm8, %v6856_v22, %v6858_v44  ;;  %v3603_v6 = vadd.f32 %v19115_v35, %v16305_v0  ;;  %v11799_v0 = vld [vmem:[%s18601_s3 + $0x7c4] sm:$0xf0]  ;;  %v3606_v26 = vadd.f32 %v19118_v53, %v16321_v21  ;;  %v10484_v21 = vld [vmem:[%s18601_s3 + $0x7b0] sm:$0xf] }
 0x5ef   : > { %v4626_v7 = vsel %vm2156_vm3, %v4622_v29, %v19114_v32  ;;  %5265 = vmatpush.bf16.msra.mxu3 %v10505_v48  ;;  %v10493_v22 = vor.u32 %v11799_v0, %v10492_v46  ;;  %v19117_v32 = vld [vmem:[#allocation120_spill] sm:$0xff] }
 0x5f1   : > { %5227 = vmatpush.bf16.msra.mxu2 %v10493_v22 }
 0x5f2   : > { %v3746_v10 = vpop.f32.mrf.mxu2  ;;  %v3785_v9 = vpop.f32.mrf.mxu3 }
 0x5f3   : > { %v16643_v31 = vadd.f32 %v3746_v10, %v3601_v57  ;;  %v16645_v16 = vadd.f32 %v3785_v9, %v3602_v25  ;;  %v19116_v57 = vld [vmem:[#allocation119_spill] sm:$0xff]  ;;  %v16677_v44 = vpop.f32.mrf.mxu0 }
 0x5f4   : > { %v3604_v20 = vadd.f32 %v19116_v57, %v16307_v40  ;;  %v16675_v40 = vpop.f32.mrf.mxu1  ;;  %v11798_v57 = vld [vmem:[%s18601_s3 + $0x7c4] sm:$0xf] }
 0x5f7   : > { %4746 = vmatmul.bf16.vlgmr.msrb.gmra.mxu2 %v4626_v7  ;;  %4785 = vmatmul.bf16.vlgmr.msrb.gmra.mxu3 %v4626_v7  ;;  %v3605_v7 = vadd.f32 %v19117_v32, %v16319_v27  ;;  %v19119_v27 = vld [vmem:[#allocation42_spill] sm:$0xff]  ;;  %v3607_v32 = vadd.f32 %v14615_v41, %v16347_v33  ;;  %v10486_v41 = vld [vmem:[%s18601_s3 + $0x7b8] sm:$0xf0]  ;;  %v19123_v33 = vld [vmem:[#allocation124_spill] sm:$0xff] }
 0x5fa   : > { %6979 = vmatmul.bf16.gmra.mxu1 %v6859_v2  ;;  %7018 = vmatmul.bf16.gmra.mxu0 %v6859_v2  ;;  %v3749_v29 = vpop.f32.mrf.mxu2  ;;  %v3788_v25 = vpop.f32.mrf.mxu3 }
 0x5fb   : > { %v16665_v10 = vadd.f32 %v3749_v29, %v3603_v6  ;;  %v16667_v9 = vadd.f32 %v3788_v25, %v3604_v20  ;;  %v10494_v20 = vld [vmem:[%s18601_s3 + $0x7c8] sm:$0xf0]  ;;  %v11797_v25 = vld [vmem:[%s18601_s3 + $0x7b4] sm:$0xf0]  ;;  %v16703_v22 = vpop.f32.mrf.mxu0 }
 0x5fc   : > { %v10497_v29 = vor.u32 %v11798_v57, %v10494_v20  ;;  %v10485_v46 = vor.u32 %v11797_v25, %v10484_v21  ;;  %v16701_v0 = vpop.f32.mrf.mxu1  ;;  %19120 = vst [vmem:[#allocation102_spill] sm:$0xff] %v16703_v22  ;;  %v19124_v21 = vld [vmem:[#allocation125_spill] sm:$0xff] }
 0x5fd   : > { %v3610_v25 = vadd.f32 %v19124_v21, %v16367_v49 }
 0x5fe   : > { %5266 = vmatpush.bf16.msra.mxu3 %v10497_v29  ;;  %5228 = vmatpush.bf16.msra.mxu2 %v10485_v46  ;;  %v11796_v29 = vld [vmem:[%s18601_s3 + $0x7b4] sm:$0xf] }
 0x602   : > { %v3751_v48 = vpop.f32.mrf.mxu2  ;;  %v3790_v2 = vpop.f32.mrf.mxu3 }
 0x603   : > { %v16683_v35 = vadd.f32 %v3751_v48, %v3605_v7  ;;  %v16685_v6 = vadd.f32 %v3790_v2, %v3606_v26  ;;  %v19121_v7 = vld [vmem:[#allocation123_spill] sm:$0xff]  ;;  %v19122_v26 = vld [vmem:[#allocation41_spill] sm:$0xff]  ;;  %v16727_v46 = vpop.f32.mrf.mxu0 }
 0x604   : > { %v3608_v53 = vadd.f32 %v19121_v7, %v16349_v30  ;;  %v10489_v30 = vor.u32 %v11796_v29, %v10486_v41  ;;  %v19125_v29 = vld [vmem:[#allocation47_spill] sm:$0xff]  ;;  %v4045_v41 = vadd.f32 %v14657_v34, %v16386_v58  ;;  %v10478_v34 = vld [vmem:[%s18601_s3 + $0x7a8] sm:$0xf0] }
 0x606   : > { %5267 = vmatpush.bf16.msra.mxu3 %v10489_v30  ;;  %v4046_v30 = vadd.f32 %v14659_v43, %v16388_v63 }
 0x607   : > { %4751 = vmatmul.bf16.gmra.mxu2 %v19119_v27  ;;  %4790 = vmatmul.bf16.gmra.mxu3 %v19119_v27  ;;  %v3609_v27 = vadd.f32 %v19123_v33, %v16365_v52  ;;  %v11795_v52 = vld [vmem:[%s18601_s3 + $0x7a4] sm:$0xf0] }
 0x608   : > { %v19126_v33 = vld [vmem:[#allocation45_spill] sm:$0xff] }
 0x60a   : > { %7422 = vmatmul.bf16.vlgmr.msra.gmra.mxu1 %v19122_v26  ;;  %7461 = vmatmul.bf16.vlgmr.msra.gmra.mxu0 %v19122_v26  ;;  %v3754_v48 = vpop.f32.mrf.mxu2  ;;  %v3793_v2 = vpop.f32.mrf.mxu3 }
 0x60b   : > { %v16711_v57 = vadd.f32 %v3754_v48, %v3607_v32  ;;  %v16713_v20 = vadd.f32 %v3793_v2, %v3608_v53  ;;  %v16725_v53 = vpop.f32.mrf.mxu1  ;;  %v10476_v2 = vld [vmem:[%s18601_s3 + $0x7a0] sm:$0xf]  ;;  %v16759_v63 = vpop.f32.mrf.mxu0 }
 0x60c   : > { %v10477_v49 = vor.u32 %v11795_v52, %v10476_v2  ;;  %v10468_v2 = vld [vmem:[%s18601_s3 + $0x790] sm:$0xf]  ;;  %v11793_v52 = vld [vmem:[%s18601_s3 + $0x794] sm:$0xf0] }
 0x60e   : > { %5229 = vmatpush.bf16.msra.mxu2 %v10477_v49  ;;  %v10469_v49 = vor.u32 %v11793_v52, %v10468_v2  ;;  %v19130_v2 = vld [vmem:[#allocation127_spill] sm:$0xff] }
 0x60f   : > { %v4049_v52 = vadd.f32 %v19130_v2, %v16432_v62  ;;  %v11791_v62 = vld [vmem:[%s18601_s3 + $0x784] sm:$0xf0] }
 0x612   : > { %v3756_v32 = vpop.f32.mrf.mxu2  ;;  %v3795_v7 = vpop.f32.mrf.mxu3  ;;  %5230 = vmatpush.bf16.msra.mxu2 %v10469_v49  ;;  %v19131_v49 = vld [vmem:[#allocation128_spill] sm:$0xff] }
 0x613   : > { %v16729_v26 = vadd.f32 %v3756_v32, %v3609_v27  ;;  %v16731_v48 = vadd.f32 %v3795_v7, %v3610_v25  ;;  %v11794_v7 = vld [vmem:[%s18601_s3 + $0x7a4] sm:$0xf]  ;;  %v16757_v43 = vpop.f32.mrf.mxu1 }
 0x614   : > { %v10481_v58 = vor.u32 %v11794_v7, %v10478_v34  ;;  %19127 = vst [vmem:[#allocation103_spill] sm:$0xff] %v16757_v43  ;;  %v19129_v43 = vld [vmem:[#allocation56_spill] sm:$0xff] }
 0x616   : > { %5268 = vmatpush.bf16.msra.mxu3 %v10481_v58  ;;  %v16777_v58 = vpop.f32.mrf.mxu0 }
 0x617   : > { %4756 = vmatmul.bf16.gmra.mxu2 %v19125_v29  ;;  %4795 = vmatmul.bf16.gmra.mxu3 %v19125_v29  ;;  %v4047_v29 = vadd.f32 %v14698_v37, %v16410_v54  ;;  %v11792_v37 = vld [vmem:[%s18601_s3 + $0x794] sm:$0xf] }
 0x61a   : > { %7427 = vmatmul.bf16.gmra.mxu1 %v19126_v33  ;;  %7466 = vmatmul.bf16.gmra.mxu0 %v19126_v33  ;;  %v4279_v27 = vpop.f32.mrf.mxu2  ;;  %v4318_v21 = vpop.f32.mrf.mxu3 }
 0x61b   : > { %v16747_v25 = vadd.f32 %v4279_v27, %v4045_v41  ;;  %v16749_v32 = vadd.f32 %v4318_v21, %v4046_v30  ;;  %v19128_v41 = vld [vmem:[#allocation126_spill] sm:$0xff]  ;;  %v16775_v34 = vpop.f32.mrf.mxu1 }
 0x61c   : > { %v4048_v30 = vadd.f32 %v19128_v41, %v16412_v39  ;;  %v10470_v39 = vld [vmem:[%s18601_s3 + $0x798] sm:$0xf0]  ;;  %v19132_v41 = vld [vmem:[#allocation53_spill] sm:$0xff] }
 0x61d   : > { %v10473_v54 = vor.u32 %v11792_v37, %v10470_v39  ;;  %v10460_v37 = vld [vmem:[%s18601_s3 + $0x780] sm:$0xf] }
 0x61e   : > { %v16805_v2 = vpop.f32.mrf.mxu0 }
 0x61f   : > { %5269 = vmatpush.bf16.msra.mxu3 %v10473_v54 }
 0x622   : > { %v4281_v33 = vpop.f32.mrf.mxu2  ;;  %v4320_v27 = vpop.f32.mrf.mxu3 }
 0x623   : > { %v16771_v21 = vadd.f32 %v4281_v33, %v4047_v29  ;;  %v16773_v7 = vadd.f32 %v4320_v27, %v4048_v30  ;;  %v4050_v29 = vadd.f32 %v19131_v49, %v16434_v60  ;;  %v10461_v60 = vor.u32 %v11791_v62, %v10460_v37  ;;  %v16803_v39 = vpop.f32.mrf.mxu1  ;;  %v19133_v49 = vld [vmem:[#allocation129_spill] sm:$0xff]  ;;  %v11790_v37 = vld [vmem:[%s18601_s3 + $0x784] sm:$0xf] }
 0x624   : > { %v4052_v54 = vadd.f32 %v19133_v49, %v16479_v8  ;;  %v10462_v62 = vld [vmem:[%s18601_s3 + $0x788] sm:$0xf0]  ;;  %v11837_v8 = vld [vmem:[%s18601_s3 + $0x8f4] sm:$0xf0]  ;;  %v4053_v49 = vadd.f32 %v14849_v14, %v16532_v47  ;;  %v11836_v47 = vld [vmem:[%s18601_s3 + $0x8f4] sm:$0xf] }
 0x625   : > { %5231 = vmatpush.bf16.msra.mxu2 %v10461_v60  ;;  %v10465_v60 = vor.u32 %v11790_v37, %v10462_v62  ;;  %v4644_v62 = vshrl.u32 %v15242_v51, 16 }
 0x626   : > { %v16839_v22 = vpop.f32.mrf.mxu0 }
 0x627   : > { %4761 = vmatmul.bf16.gmra.mxu2 %v19129_v43  ;;  %4800 = vmatmul.bf16.gmra.mxu3 %v19129_v43 }
 0x628   : > { %5270 = vmatpush.bf16.msra.mxu3 %v10465_v60  ;;  %v4647_v60 = vshll.u32 %v15242_v51, 16 }
 0x62a   : > { %7432 = vmatmul.bf16.gmra.mxu1 %v19132_v41  ;;  %7471 = vmatmul.bf16.gmra.mxu0 %v19132_v41  ;;  %v4284_v43 = vpop.f32.mrf.mxu2  ;;  %v4323_v30 = vpop.f32.mrf.mxu3 }
 0x62b   : > { %v16793_v33 = vadd.f32 %v4284_v43, %v4049_v52  ;;  %v16795_v27 = vadd.f32 %v4323_v30, %v4050_v29  ;;  %v4051_v52 = vadd.f32 %v14796_v13, %v16477_v23  ;;  %v19134_v13 = vld [vmem:[#allocation67_spill] sm:$0xff]  ;;  %v10676_v23 = vld [vmem:[%s18601_s3 + $0x8f0] sm:$0xf] }
 0x632   : > { %v4286_v29 = vpop.f32.mrf.mxu2  ;;  %v4325_v41 = vpop.f32.mrf.mxu3 }
 0x633   : > { %v16811_v43 = vadd.f32 %v4286_v29, %v4051_v52  ;;  %v16813_v30 = vadd.f32 %v4325_v41, %v4052_v54  ;;  %v10677_v52 = vor.u32 %v11837_v8, %v10676_v23  ;;  %v4054_v54 = vadd.f32 %v14851_v15, %v16534_v36  ;;  %v19135_v29 = vld [vmem:[#allocation65_spill] sm:$0xff]  ;;  %v10678_v8 = vld [vmem:[%s18601_s3 + $0x8f8] sm:$0xf0] }
 0x634   : > { %v4646_v15 = vrot.slane %v4644_v62, 1  ;;  %v4649_v36 = vrot.slane %v4647_v60, 2  ;;  %v10681_v51 = vor.u32 %v11836_v47, %v10678_v8  ;;  %v10668_v60 = vld [vmem:[%s18601_s3 + $0x8e0] sm:$0xf]  ;;  %v11835_v47 = vld [vmem:[%s18601_s3 + $0x8e4] sm:$0xf0]  ;;  %v4058_v8 = vadd.f32 %v14906_v38, %v16623_v12 }
 0x635   : > { %5717 = vmatpush.bf16.msrb.mxu2 %v10677_v52 }
 0x636   : > { %v4650_v52 = vor.u32 %v4649_v36, %v4646_v15  ;;  %5756 = vmatpush.bf16.msrb.mxu3 %v10681_v51  ;;  %v4057_v36 = vadd.f32 %v14904_v19, %v16621_v17  ;;  %v19137_v51 = vld [vmem:[#allocation77_spill] sm:$0xff] }
 0x637   : > { %4766 = vmatmul.bf16.gmra.mxu2 %v19134_v13  ;;  %4805 = vmatmul.bf16.gmra.mxu3 %v19134_v13  ;;  %v16837_v13 = vpop.f32.mrf.mxu1  ;;  %v10670_v19 = vld [vmem:[%s18601_s3 + $0x8e8] sm:$0xf0] }
 0x63a   : > { %7437 = vmatmul.bf16.gmra.mxu1 %v19135_v29  ;;  %7476 = vmatmul.bf16.gmra.mxu0 %v19135_v29  ;;  %v4289_v41 = vpop.f32.mrf.mxu2  ;;  %v4328_v37 = vpop.f32.mrf.mxu3  ;;  %v4055_v29 = vadd.f32 %v14882_v42, %v16574_v11  ;;  %v10669_v42 = vor.u32 %v11835_v47, %v10668_v60  ;;  %v10660_v60 = vld [vmem:[%s18601_s3 + $0x8d0] sm:$0xf]  ;;  %v11833_v47 = vld [vmem:[%s18601_s3 + $0x8d4] sm:$0xf0] }
 0x63b   : > { %v16841_v23 = vadd.f32 %v4289_v41, %v4053_v49  ;;  %v16843_v14 = vadd.f32 %v4328_v37, %v4054_v54  ;;  %v4056_v49 = vadd.f32 %v14884_v28, %v16576_v4  ;;  %v16867_v28 = vpop.f32.mrf.mxu0  ;;  %v19136_v4 = vld [vmem:[#allocation66_spill] sm:$0xff] }
 0x63c   : > { %v4651_v15 = vsel %vm2156_vm3, %v19136_v4, %v4650_v52  ;;  %5718 = vmatpush.bf16.msrb.mxu2 %v10669_v42  ;;  %v11834_v52 = vld [vmem:[%s18601_s3 + $0x8e4] sm:$0xf]  ;;  %v10661_v42 = vor.u32 %v11833_v47, %v10660_v60  ;;  %v4059_v4 = vadd.f32 %v14929_v18, %v16643_v31  ;;  %v10662_v31 = vld [vmem:[%s18601_s3 + $0x8d8] sm:$0xf0] }
 0x63d   : > { %v10673_v17 = vor.u32 %v11834_v52, %v10670_v19  ;;  %v5125_v19 = vrot.slane %v15275_v55, 2  ;;  %v19139_v55 = vld [vmem:[#allocation73_spill] sm:$0xff] }
 0x63f   : > { %v16865_v11 = vpop.f32.mrf.mxu1  ;;  %5757 = vmatpush.bf16.msrb.mxu3 %v10673_v17  ;;  %v19138_v17 = vld [vmem:[#allocation79_spill] sm:$0xff] }
 0x640   : > { %5719 = vmatpush.bf16.msrb.mxu2 %v10661_v42  ;;  %v7326_v60 = vrot.slane %v19138_v17, 2 }
 0x642   : > { %v4291_v54 = vpop.f32.mrf.mxu2  ;;  %v4330_v41 = vpop.f32.mrf.mxu3 }
 0x643   : > { %v16855_v37 = vadd.f32 %v4291_v54, %v4055_v29  ;;  %v16857_v62 = vadd.f32 %v4330_v41, %v4056_v49  ;;  %v16889_v12 = vpop.f32.mrf.mxu0 }
 0x647   : > { %4771 = vmatmul.bf16.gmra.mxu2 %v4651_v15  ;;  %4810 = vmatmul.bf16.gmra.mxu3 %v4651_v15  ;;  %v16887_v38 = vpop.f32.mrf.mxu1  ;;  %v4060_v15 = vadd.f32 %v14931_v5, %v16645_v16  ;;  %v11832_v5 = vld [vmem:[%s18601_s3 + $0x8d4] sm:$0xf] }
 0x648   : > { %v10665_v16 = vor.u32 %v11832_v5, %v10662_v31  ;;  %v10652_v31 = vld [vmem:[%s18601_s3 + $0x8c0] sm:$0xf] }
 0x64a   : > { %7442 = vmatmul.bf16.gmra.mxu1 %v19137_v51  ;;  %7481 = vmatmul.bf16.gmra.mxu0 %v19137_v51  ;;  %v4294_v29 = vpop.f32.mrf.mxu2  ;;  %v4333_v49 = vpop.f32.mrf.mxu3  ;;  %v16901_v51 = vld [vmem:[#allocation2 + $0x18] sm:$0xff]  }
 0x64b   : > { %v16877_v54 = vadd.f32 %v4294_v29, %v4057_v36  ;;  %v16879_v41 = vadd.f32 %v4333_v49, %v4058_v8  ;;  %v5126_v29 = vrot.slane %v16901_v51, 2  ;;  %v16919_v42 = vpop.f32.mrf.mxu0  ;;  %5758 = vmatpush.bf16.msrb.mxu3 %v10665_v16 }
 0x64d   : > { %v5127_v18 = vsel %vm2403_vm6, %v5125_v19, %v5126_v29 }
 0x64f   : > { %v16917_v47 = vpop.f32.mrf.mxu1 }
 0x652   : > { %v4296_v36 = vpop.f32.mrf.mxu2  ;;  %v4335_v8 = vpop.f32.mrf.mxu3 }
 0x653   : > { %v16904_v49 = vadd.f32 %v4296_v36, %v4059_v4  ;;  %v16906_v52 = vadd.f32 %v4335_v8, %v4060_v15  ;;  %v19140_v4 = vrot.slane %v19139_v55, 2  ;;  %v4061_v36 = vadd.f32 %v14948_v59, %v16665_v10  ;;  %v11831_v59 = vld [vmem:[%s18601_s3 + $0x8c4] sm:$0xf0] }
 0x654   : > { %v4062_v8 = vadd.f32 %v14950_v3, %v16667_v9  ;;  %v10653_v10 = vor.u32 %v11831_v59, %v10652_v31  ;;  %v4063_v3 = vadd.f32 %v14968_v1, %v16683_v35  ;;  %v4064_v9 = vadd.f32 %v14970_v56, %v16685_v6  ;;  %v10654_v1 = vld [vmem:[%s18601_s3 + $0x8c8] sm:$0xf0]  ;;  %v10644_v6 = vld [vmem:[%s18601_s3 + $0x8b0] sm:$0xf]  ;;  %v19141_v31 = vld [vmem:[#allocation96_spill] sm:$0xff] }
 0x655   : > { %v7327_v15 = vsel %vm2403_vm6, %v19140_v4, %v7326_v60  ;;  %v16942_v4 = vld [vmem:[#allocation2 + $0x20] sm:$0xff]   ;;  %v4065_v59 = vadd.f32 %v19141_v31, %v16711_v57  ;;  %v19143_v57 = vld [vmem:[#allocation22_spill] sm:$0xff] }
 0x656   : > { %5720 = vmatpush.bf16.msrb.mxu2 %v10653_v10  ;;  %v5128_v16 = vrot.slane %v16942_v4, 2  ;;  %v19142_v10 = vld [vmem:[#allocation122_spill] sm:$0xff] }
 0x657   : > { %5232 = vmatmul.bf16.vlgmr.msra.gmra.mxu2 %v5127_v18  ;;  %5271 = vmatmul.bf16.vlgmr.msra.gmra.mxu3 %v5127_v18 }
 0x658   : > { %v5129_v56 = vsel %vm2403_vm6, %v5126_v29, %v5128_v16 }
 0x65a   : > { %7447 = vmatmul.bf16.gmra.mxu1 %v7327_v15  ;;  %7486 = vmatmul.bf16.gmra.mxu0 %v7327_v15  ;;  %v4299_v19 = vpop.f32.mrf.mxu2  ;;  %v4338_v17 = vpop.f32.mrf.mxu3 }
 0x65b   : > { %v16928_v18 = vadd.f32 %v4299_v19, %v4061_v36  ;;  %v16930_v5 = vadd.f32 %v4338_v17, %v4062_v8  ;;  %v11830_v8 = vld [vmem:[%s18601_s3 + $0x8c4] sm:$0xf]  ;;  %v11829_v19 = vld [vmem:[%s18601_s3 + $0x8b4] sm:$0xf0] }
 0x65c   : > { %v10657_v35 = vor.u32 %v11830_v8, %v10654_v1  ;;  %v10645_v17 = vor.u32 %v11829_v19, %v10644_v6  ;;  %v11828_v8 = vld [vmem:[%s18601_s3 + $0x8b4] sm:$0xf]  ;;  %v10646_v1 = vld [vmem:[%s18601_s3 + $0x8b8] sm:$0xf0] }
 0x65e   : > { %5759 = vmatpush.bf16.msrb.mxu3 %v10657_v35  ;;  %5721 = vmatpush.bf16.msrb.mxu2 %v10645_v17  ;;  %v10649_v35 = vor.u32 %v11828_v8, %v10646_v1  ;;  %v19147_v8 = vld [vmem:[#allocation131_spill] sm:$0xff] }
 0x65f   : > { %v4570_v1 = vadd.f32 %v19147_v8, %v16747_v25  ;;  %v10628_v25 = vld [vmem:[%s18601_s3 + $0x890] sm:$0xf] }
 0x662   : > { %v4301_v60 = vpop.f32.mrf.mxu2  ;;  %v4340_v55 = vpop.f32.mrf.mxu3  ;;  %5760 = vmatpush.bf16.msrb.mxu3 %v10649_v35  ;;  %v19148_v35 = vld [vmem:[#allocation132_spill] sm:$0xff] }
 0x663   : > { %v16945_v15 = vadd.f32 %v4301_v60, %v4063_v3  ;;  %v16947_v36 = vadd.f32 %v4340_v55, %v4064_v9  ;;  %v4066_v3 = vadd.f32 %v19142_v10, %v16713_v20  ;;  %v19144_v20 = vld [vmem:[#allocation130_spill] sm:$0xff]  ;;  %v10636_v10 = vld [vmem:[%s18601_s3 + $0x8a0] sm:$0xf] }
 0x664   : > { %v4068_v6 = vadd.f32 %v19144_v20, %v16731_v48 }
 0x667   : > { %5237 = vmatmul.bf16.gmra.mxu2 %v5129_v56  ;;  %5276 = vmatmul.bf16.gmra.mxu3 %v5129_v56  ;;  %v4067_v56 = vadd.f32 %v19143_v57, %v16729_v26  ;;  %v19145_v26 = vld [vmem:[#allocation13_spill] sm:$0xff]  ;;  %v4571_v57 = vadd.f32 %v19148_v35, %v16749_v32  ;;  %v11825_v32 = vld [vmem:[%s18601_s3 + $0x894] sm:$0xf0] }
 0x66a   : > { %v4304_v9 = vpop.f32.mrf.mxu2  ;;  %v4343_v29 = vpop.f32.mrf.mxu3 }
 0x66b   : > { %v16966_v60 = vadd.f32 %v4304_v9, %v4065_v59  ;;  %v16968_v55 = vadd.f32 %v4343_v29, %v4066_v3  ;;  %v11827_v3 = vld [vmem:[%s18601_s3 + $0x8a4] sm:$0xf0]  ;;  %v19146_v29 = vrot.slane %v19145_v26, 2 }
 0x66c   : > { %v10637_v9 = vor.u32 %v11827_v3, %v10636_v10  ;;  %v10629_v3 = vor.u32 %v11825_v32, %v10628_v25  ;;  %v19153_v25 = vld [vmem:[#allocation135_spill] sm:$0xff] }
 0x66d   : > { %v5131_v48 = vsel %vm2403_vm6, %v5128_v16, %v19146_v29  ;;  %v10638_v16 = vld [vmem:[%s18601_s3 + $0x8a8] sm:$0xf0]  ;;  %v4575_v32 = vadd.f32 %v19153_v25, %v16795_v27  ;;  %v11822_v25 = vld [vmem:[%s18601_s3 + $0x884] sm:$0xf] }
 0x66e   : > { %5722 = vmatpush.bf16.msrb.mxu2 %v10637_v9  ;;  %v19149_v9 = vld [vmem:[#allocation28_spill] sm:$0xff] }
 0x66f   : > { %v4572_v29 = vadd.f32 %v19149_v9, %v16771_v21  ;;  %v10630_v21 = vld [vmem:[%s18601_s3 + $0x898] sm:$0xf0] }
 0x672   : > { %v4306_v19 = vpop.f32.mrf.mxu2  ;;  %v4345_v17 = vpop.f32.mrf.mxu3  ;;  %5723 = vmatpush.bf16.msrb.mxu2 %v10629_v3 }
 0x673   : > { %v16980_v31 = vadd.f32 %v4306_v19, %v4067_v56  ;;  %v16982_v59 = vadd.f32 %v4345_v17, %v4068_v6  ;;  %v11826_v17 = vld [vmem:[%s18601_s3 + $0x8a4] sm:$0xf] }
 0x674   : > { %v10641_v10 = vor.u32 %v11826_v17, %v10638_v16  ;;  %v11824_v17 = vld [vmem:[%s18601_s3 + $0x894] sm:$0xf] }
 0x675   : > { %v19152_v16 = vld [vmem:[#allocation134_spill] sm:$0xff] }
 0x676   : > { %5761 = vmatpush.bf16.msrb.mxu3 %v10641_v10  ;;  %v4574_v10 = vadd.f32 %v19152_v16, %v16793_v33  ;;  %v19154_v33 = vld [vmem:[#allocation8_spill] sm:$0xff] }
 0x677   : > { %5242 = vmatmul.bf16.gmra.mxu2 %v5131_v48  ;;  %5281 = vmatmul.bf16.gmra.mxu3 %v5131_v48  ;;  %v19150_v48 = vld [vmem:[#allocation133_spill] sm:$0xff]  ;;  %v4576_v27 = vadd.f32 %v19154_v33, %v16811_v43  ;;  %v19156_v43 = vld [vmem:[#allocation68_spill] sm:$0xff] }
 0x678   : > { %v4573_v8 = vadd.f32 %v19150_v48, %v16773_v7  ;;  %v10633_v7 = vor.u32 %v11824_v17, %v10630_v21 }
 0x67a   : > { %v4747_v56 = vpop.f32.mrf.mxu2  ;;  %v4786_v20 = vpop.f32.mrf.mxu3  ;;  %5762 = vmatpush.bf16.msrb.mxu3 %v10633_v7 }
 0x67b   : > { %v16997_v6 = vadd.f32 %v4747_v56, %v4570_v1  ;;  %v16999_v19 = vadd.f32 %v4786_v20, %v4571_v57  ;;  %v19151_v20 = vld [vmem:[#allocation57_spill] sm:$0xff] }
 0x682   : > { %v4749_v1 = vpop.f32.mrf.mxu2  ;;  %v4788_v35 = vpop.f32.mrf.mxu3 }
 0x683   : > { %v17017_v57 = vadd.f32 %v4749_v1, %v4572_v29  ;;  %v17019_v56 = vadd.f32 %v4788_v35, %v4573_v8  ;;  %v10620_v8 = vld [vmem:[%s18601_s3 + $0x880] sm:$0xf]  ;;  %v11823_v1 = vld [vmem:[%s18601_s3 + $0x884] sm:$0xf0] }
 0x684   : > { %v10621_v35 = vor.u32 %v11823_v1, %v10620_v8  ;;  %v11869_v8 = vld [vmem:[%s18601_s3 + $0x9f4] sm:$0xf0] }
 0x686   : > { %5724 = vmatpush.bf16.msrb.mxu2 %v10621_v35  ;;  %v19157_v35 = vld [vmem:[#allocation137_spill] sm:$0xff] }
 0x687   : > { %5247 = vmatmul.bf16.gmra.mxu2 %v19151_v20  ;;  %5286 = vmatmul.bf16.gmra.mxu3 %v19151_v20  ;;  %v19155_v20 = vld [vmem:[#allocation136_spill] sm:$0xff]  ;;  %v4578_v33 = vadd.f32 %v19157_v35, %v16841_v23  ;;  %v10838_v23 = vld [vmem:[%s18601_s3 + $0x9f8] sm:$0xf0] }
 0x688   : > { %v4577_v17 = vadd.f32 %v19155_v20, %v16813_v30  ;;  %v5074_v30 = vld [vmem:[#allocation2 + $0x40] sm:$0x3] }
 0x68a   : > { %v4752_v3 = vpop.f32.mrf.mxu2  ;;  %v4791_v9 = vpop.f32.mrf.mxu3 }
 0x68b   : > { %v17033_v29 = vadd.f32 %v4752_v3, %v4574_v10  ;;  %v17035_v48 = vadd.f32 %v4791_v9, %v4575_v32  ;;  %v10622_v32 = vld [vmem:[%s18601_s3 + $0x888] sm:$0xf0]  ;;  %v10836_v9 = vld [vmem:[%s18601_s3 + $0x9f0] sm:$0xf] }
 0x68c   : > { %v10625_v3 = vor.u32 %v11822_v25, %v10622_v32  ;;  %v10837_v1 = vor.u32 %v11869_v8, %v10836_v9 }
 0x68e   : > { %5763 = vmatpush.bf16.msrb.mxu3 %v10625_v3  ;;  %6174 = vmatpush.bf16.msra.mxu2 %v10837_v1 }
 0x692   : > { %v4754_v21 = vpop.f32.mrf.mxu2  ;;  %v4793_v7 = vpop.f32.mrf.mxu3 }
 0x693   : > { %v17047_v16 = vadd.f32 %v4754_v21, %v4576_v27  ;;  %v17049_v10 = vadd.f32 %v4793_v7, %v4577_v17  ;;  %v19158_v27 = vld [vmem:[#allocation138_spill] sm:$0xff]  ;;  %v5117_v7 = vunpack.c.l.b16 %v5074_v30  ;;  %v19160_v30 = vld [vmem:[#allocation139_spill] sm:$0xff] }
 0x694   : > { %v4579_v20 = vadd.f32 %v19158_v27, %v16843_v14  ;;  %v19159_v14 = vld [vmem:[#allocation15_spill] sm:$0xff]  ;;  %v4581_v1 = vadd.f32 %v19160_v30, %v16857_v62 }
 0x695   : > { %v5124_v3 = vpack.c.b16 %v5117_v7, %v5117_v7  ;;  %v4580_v8 = vadd.f32 %v19159_v14, %v16855_v37  ;;  %v11867_v7 = vld [vmem:[%s18601_s3 + $0x9e4] sm:$0xf0] }
 0x696   : > { %v19164_v14 = vld [vmem:[#allocation141_spill] sm:$0xff] }
 0x697   : > { %5252 = vmatmul.bf16.gmra.mxu2 %v19156_v43  ;;  %5291 = vmatmul.bf16.gmra.mxu3 %v19156_v43  ;;  %v11868_v43 = vld [vmem:[%s18601_s3 + $0x9f4] sm:$0xf]  ;;  %v5136_v27 = vrot.slane %v5124_v3, 2  ;;  %v19163_v3 = vld [vmem:[#allocation140_spill] sm:$0xff] }
 0x698   : > { %v10841_v9 = vor.u32 %v11868_v43, %v10838_v23  ;;  %v19161_v43 = vld [vmem:[#allocation29_spill] sm:$0xff] }
 0x699   : > { %v19162_v23 = vrot.slane %v19161_v43, 2 }
 0x69a   : > { %v4757_v17 = vpop.f32.mrf.mxu2  ;;  %v4796_v21 = vpop.f32.mrf.mxu3  ;;  %6213 = vmatpush.bf16.msra.mxu3 %v10841_v9  ;;  %v4582_v9 = vadd.f32 %v19163_v3, %v16877_v54  ;;  %v10820_v54 = vld [vmem:[%s18601_s3 + $0x9d0] sm:$0xf] }
 0x69b   : > { %v17069_v25 = vadd.f32 %v4757_v17, %v4578_v33  ;;  %v17071_v32 = vadd.f32 %v4796_v21, %v4579_v20  ;;  %v10828_v21 = vld [vmem:[%s18601_s3 + $0x9e0] sm:$0xf]  ;;  %v5137_v62 = vsel %vm2403_vm6, %v19162_v23, %v5136_v27  ;;  %v10830_v27 = vld [vmem:[%s18601_s3 + $0x9e8] sm:$0xf0]  ;;  %v19165_v23 = vld [vmem:[#allocation14_spill] sm:$0xff] }
 0x69c   : > { %v10829_v37 = vor.u32 %v11867_v7, %v10828_v21  ;;  %v11866_v21 = vld [vmem:[%s18601_s3 + $0x9e4] sm:$0xf]  ;;  %v19166_v3 = vld [vmem:[#allocation142_spill] sm:$0xff] }
 0x69d   : > { %v10833_v7 = vor.u32 %v11866_v21, %v10830_v27  ;;  %v5618_v27 = vrot.slane %v15643_v45, 3 }
 0x69e   : > { %6175 = vmatpush.bf16.msra.mxu2 %v10829_v37 }
 0x69f   : > { %6214 = vmatpush.bf16.msra.mxu3 %v10833_v7 }
 0x6a2   : > { %v4759_v35 = vpop.f32.mrf.mxu2  ;;  %v4798_v33 = vpop.f32.mrf.mxu3 }
 0x6a3   : > { %v17083_v20 = vadd.f32 %v4759_v35, %v4580_v8  ;;  %v17085_v17 = vadd.f32 %v4798_v33, %v4581_v1  ;;  %v4583_v8 = vadd.f32 %v19164_v14, %v16879_v41  ;;  %v11865_v41 = vld [vmem:[%s18601_s3 + $0x9d4] sm:$0xf0] }
 0x6a4   : > { %v10821_v37 = vor.u32 %v11865_v41, %v10820_v54  ;;  %v19167_v41 = vld [vmem:[#allocation18_spill] sm:$0xff] }
 0x6a6   : > { %6176 = vmatpush.bf16.msra.mxu2 %v10821_v37  ;;  %v4586_v37 = vadd.f32 %v19167_v41, %v16928_v18  ;;  %v19169_v18 = vld [vmem:[#allocation19_spill] sm:$0xff] }
 0x6a7   : > { %5257 = vmatmul.bf16.gmra.mxu2 %v5137_v62  ;;  %5296 = vmatmul.bf16.gmra.mxu3 %v5137_v62  ;;  %v4584_v62 = vadd.f32 %v19165_v23, %v16904_v49  ;;  %v11864_v49 = vld [vmem:[%s18601_s3 + $0x9d4] sm:$0xf]  ;;  %v19168_v23 = vld [vmem:[#allocation143_spill] sm:$0xff] }
 0x6aa   : > { %v4762_v30 = vpop.f32.mrf.mxu2  ;;  %v4801_v1 = vpop.f32.mrf.mxu3 }
 0x6ab   : > { %v17100_v35 = vadd.f32 %v4762_v30, %v4582_v9  ;;  %v17102_v33 = vadd.f32 %v4801_v1, %v4583_v8  ;;  %v4585_v9 = vadd.f32 %v19166_v3, %v16906_v52  ;;  %v5619_v30 = vrot.slane %v16901_v51, 3  ;;  %v10822_v52 = vld [vmem:[%s18601_s3 + $0x9d8] sm:$0xf0] }
 0x6ac   : > { %v10825_v54 = vor.u32 %v11864_v49, %v10822_v52  ;;  %v19170_v49 = vld [vmem:[#allocation144_spill] sm:$0xff] }
 0x6ad   : > { %v5620_v7 = vsel %vm3162_vm7, %v5618_v27, %v5619_v30  ;;  %v11863_v27 = vld [vmem:[%s18601_s3 + $0x9c4] sm:$0xf0]  ;;  %v4589_v52 = vadd.f32 %v19170_v49, %v16947_v36  ;;  %v11861_v36 = vld [vmem:[%s18601_s3 + $0x9b4] sm:$0xf0] }
 0x6ae   : > { %6215 = vmatpush.bf16.msra.mxu3 %v10825_v54 }
 0x6b2   : > { %v4764_v14 = vpop.f32.mrf.mxu2  ;;  %v4803_v8 = vpop.f32.mrf.mxu3 }
 0x6b3   : > { %v17121_v1 = vadd.f32 %v4764_v14, %v4584_v62  ;;  %v17123_v21 = vadd.f32 %v4803_v8, %v4585_v9  ;;  %v4587_v62 = vadd.f32 %v19168_v23, %v16930_v5  ;;  %v10812_v8 = vld [vmem:[%s18601_s3 + $0x9c0] sm:$0xf]  ;;  %v4588_v5 = vadd.f32 %v19169_v18, %v16945_v15 }
 0x6b7   : > { %5725 = vmatmul.bf16.vlgmr.msrb.gmra.mxu2 %v5620_v7  ;;  %5764 = vmatmul.bf16.vlgmr.msrb.gmra.mxu3 %v5620_v7  ;;  %v10813_v7 = vor.u32 %v11863_v27, %v10812_v8 }
 0x6b9   : > { %6177 = vmatpush.bf16.msra.mxu2 %v10813_v7  ;;  %v19171_v7 = vld [vmem:[#allocation23_spill] sm:$0xff] }
 0x6ba   : > { %v4767_v45 = vpop.f32.mrf.mxu2  ;;  %v4806_v3 = vpop.f32.mrf.mxu3  ;;  %v4590_v18 = vadd.f32 %v19171_v7, %v16966_v60  ;;  %v19173_v60 = vld [vmem:[#allocation24_spill] sm:$0xff] }
 0x6bb   : > { %v17137_v9 = vadd.f32 %v4767_v45, %v4586_v37  ;;  %v17139_v14 = vadd.f32 %v4806_v3, %v4587_v62  ;;  %v5621_v37 = vrot.slane %v16942_v4, 3  ;;  %v11862_v45 = vld [vmem:[%s18601_s3 + $0x9c4] sm:$0xf]  ;;  %v10814_v3 = vld [vmem:[%s18601_s3 + $0x9c8] sm:$0xf0] }
 0x6bc   : > { %v10817_v15 = vor.u32 %v11862_v45, %v10814_v3  ;;  %v10804_v4 = vld [vmem:[%s18601_s3 + $0x9b0] sm:$0xf]  ;;  %v11860_v45 = vld [vmem:[%s18601_s3 + $0x9b4] sm:$0xf]  ;;  %v10806_v3 = vld [vmem:[%s18601_s3 + $0x9b8] sm:$0xf0] }
 0x6bd   : > { %v5622_v8 = vsel %vm3162_vm7, %v5619_v30, %v5621_v37  ;;  %v10805_v27 = vor.u32 %v11861_v36, %v10804_v4 }
 0x6be   : > { %6216 = vmatpush.bf16.msra.mxu3 %v10817_v15  ;;  %v10809_v15 = vor.u32 %v11860_v45, %v10806_v3  ;;  %v19177_v3 = vld [vmem:[#allocation148_spill] sm:$0xff] }
 0x6bf   : > { %6178 = vmatpush.bf16.msra.mxu2 %v10805_v27 }
 0x6c2   : > { %v4769_v54 = vpop.f32.mrf.mxu2  ;;  %v4808_v41 = vpop.f32.mrf.mxu3  ;;  %6217 = vmatpush.bf16.msra.mxu3 %v10809_v15  ;;  %v5039_v15 = vadd.f32 %v19177_v3, %v16999_v19  ;;  %v11857_v19 = vld [vmem:[%s18601_s3 + $0x994] sm:$0xf0] }
 0x6c3   : > { %v17152_v23 = vadd.f32 %v4769_v54, %v4588_v5  ;;  %v17154_v62 = vadd.f32 %v4808_v41, %v4589_v52  ;;  %v19172_v5 = vld [vmem:[#allocation145_spill] sm:$0xff] }
 0x6c4   : > { %v4591_v49 = vadd.f32 %v19172_v5, %v16968_v55  ;;  %v4592_v55 = vadd.f32 %v19173_v60, %v16980_v31  ;;  %v10796_v5 = vld [vmem:[%s18601_s3 + $0x9a0] sm:$0xf]  ;;  %v19175_v31 = vrot.slane %v19145_v26, 3  ;;  %v11858_v26 = vld [vmem:[%s18601_s3 + $0x9a4] sm:$0xf] }
 0x6c7   : > { %5730 = vmatmul.bf16.gmra.mxu2 %v5622_v8  ;;  %5769 = vmatmul.bf16.gmra.mxu3 %v5622_v8  ;;  %v19174_v8 = vld [vmem:[#allocation146_spill] sm:$0xff] }
 0x6c8   : > { %v4593_v4 = vadd.f32 %v19174_v8, %v16982_v59  ;;  %v19176_v59 = vld [vmem:[#allocation147_spill] sm:$0xff] }
 0x6c9   : > { %v5038_v45 = vadd.f32 %v19176_v59, %v16997_v6  ;;  %v10788_v6 = vld [vmem:[%s18601_s3 + $0x990] sm:$0xf] }
 0x6ca   : > { %v4772_v52 = vpop.f32.mrf.mxu2  ;;  %v4811_v30 = vpop.f32.mrf.mxu3 }
 0x6cb   : > { %v17173_v54 = vadd.f32 %v4772_v52, %v4590_v18  ;;  %v17175_v41 = vadd.f32 %v4811_v30, %v4591_v49  ;;  %v11859_v49 = vld [vmem:[%s18601_s3 + $0x9a4] sm:$0xf0]  ;;  %v5624_v30 = vsel %vm3162_vm7, %v5621_v37, %v19175_v31  ;;  %v10798_v37 = vld [vmem:[%s18601_s3 + $0x9a8] sm:$0xf0] }
 0x6cc   : > { %v10797_v52 = vor.u32 %v11859_v49, %v10796_v5  ;;  %v19178_v5 = vld [vmem:[#allocation11_spill] sm:$0xff] }
 0x6cd   : > { %v5040_v49 = vadd.f32 %v19178_v5, %v17017_v57  ;;  %v10790_v57 = vld [vmem:[%s18601_s3 + $0x998] sm:$0xf0] }
 0x6ce   : > { %6179 = vmatpush.bf16.msra.mxu2 %v10797_v52  ;;  %v19179_v52 = vld [vmem:[#allocation149_spill] sm:$0xff] }
 0x6cf   : > { %v5041_v31 = vadd.f32 %v19179_v52, %v17019_v56  ;;  %v19181_v56 = vld [vmem:[#allocation9_spill] sm:$0xff] }
 0x6d0   : > { %v11855_v52 = vld [vmem:[%s18601_s3 + $0x984] sm:$0xf0] }
 0x6d2   : > { %v4774_v36 = vpop.f32.mrf.mxu2  ;;  %v4813_v27 = vpop.f32.mrf.mxu3 }
 0x6d3   : > { %v17187_v7 = vadd.f32 %v4774_v36, %v4592_v55  ;;  %v17189_v18 = vadd.f32 %v4813_v27, %v4593_v4  ;;  %v10801_v36 = vor.u32 %v11858_v26, %v10798_v37  ;;  %v10789_v27 = vor.u32 %v11857_v19, %v10788_v6  ;;  %v19182_v37 = vld [vmem:[#allocation150_spill] sm:$0xff] }
 0x6d4   : > { %v5042_v26 = vadd.f32 %v19181_v56, %v17033_v29  ;;  %v5043_v6 = vadd.f32 %v19182_v37, %v17035_v48  ;;  %v19183_v29 = vld [vmem:[#allocation12_spill] sm:$0xff] }
 0x6d5   : > { %6218 = vmatpush.bf16.msra.mxu3 %v10801_v36  ;;  %6180 = vmatpush.bf16.msra.mxu2 %v10789_v27  ;;  %v5044_v48 = vadd.f32 %v19183_v29, %v17047_v16  ;;  %v11854_v56 = vld [vmem:[%s18601_s3 + $0x984] sm:$0xf]  ;;  %v19185_v16 = vld [vmem:[#allocation69_spill] sm:$0xff] }
 0x6d7   : > { %5735 = vmatmul.bf16.gmra.mxu2 %v5624_v30  ;;  %5774 = vmatmul.bf16.gmra.mxu3 %v5624_v30 }
 0x6da   : > { %v5233_v60 = vpop.f32.mrf.mxu2  ;;  %v5272_v55 = vpop.f32.mrf.mxu3 }
 0x6db   : > { %v17204_v8 = vadd.f32 %v5233_v60, %v5038_v45  ;;  %v17206_v4 = vadd.f32 %v5272_v55, %v5039_v15  ;;  %v19180_v15 = vld [vmem:[#allocation58_spill] sm:$0xff] }
 0x6dc   : > { %v11856_v60 = vld [vmem:[%s18601_s3 + $0x994] sm:$0xf] }
 0x6dd   : > { %v10793_v55 = vor.u32 %v11856_v60, %v10790_v57 }
 0x6df   : > { %6219 = vmatpush.bf16.msra.mxu3 %v10793_v55 }
 0x6e2   : > { %v5235_v30 = vpop.f32.mrf.mxu2  ;;  %v5274_v59 = vpop.f32.mrf.mxu3 }
 0x6e3   : > { %v17224_v45 = vadd.f32 %v5235_v30, %v5040_v49  ;;  %v17226_v3 = vadd.f32 %v5274_v59, %v5041_v31  ;;  %v10780_v49 = vld [vmem:[%s18601_s3 + $0x980] sm:$0xf]  ;;  %v19184_v30 = vld [vmem:[#allocation151_spill] sm:$0xff] }
 0x6e4   : > { %v10781_v31 = vor.u32 %v11855_v52, %v10780_v49  ;;  %v5045_v59 = vadd.f32 %v19184_v30, %v17049_v10  ;;  %v11040_v10 = vld [vmem:[%s18601_s3 + $0xaf0] sm:$0xf] }
 0x6e5   : > { %v19186_v49 = vld [vmem:[#allocation10_spill] sm:$0xff] }
 0x6e6   : > { %6181 = vmatpush.bf16.msra.mxu2 %v10781_v31  ;;  %v5047_v52 = vadd.f32 %v19186_v49, %v17071_v32  ;;  %v19188_v32 = vld [vmem:[#allocation154_spill] sm:$0xff]  ;;  %v11910_v49 = vld [vmem:[%s18601_s3 + $0xae4] sm:$0xf0] }
 0x6e7   : > { %5740 = vmatmul.bf16.gmra.mxu2 %v19180_v15  ;;  %5779 = vmatmul.bf16.gmra.mxu3 %v19180_v15 }
 0x6ea   : > { %v5238_v36 = vpop.f32.mrf.mxu2  ;;  %v5277_v19 = vpop.f32.mrf.mxu3 }
 0x6eb   : > { %v17240_v27 = vadd.f32 %v5238_v36, %v5042_v26  ;;  %v17242_v5 = vadd.f32 %v5277_v19, %v5043_v6  ;;  %v10782_v26 = vld [vmem:[%s18601_s3 + $0x988] sm:$0xf0]  ;;  %v11912_v6 = vld [vmem:[%s18601_s3 + $0xaf4] sm:$0xf0]  ;;  %v5046_v19 = vadd.f32 %v15573_v50, %v17069_v25 }
 0x6ec   : > { %v10785_v37 = vor.u32 %v11854_v56, %v10782_v26  ;;  %v11041_v36 = vor.u32 %v11912_v6, %v11040_v10  ;;  %v19187_v50 = vld [vmem:[#allocation153_spill] sm:$0xff]  ;;  %v5049_v56 = vadd.f32 %v19188_v32, %v17085_v17 }
 0x6ed   : > { %v5048_v25 = vadd.f32 %v19187_v50, %v17083_v20 }
 0x6ee   : > { %6220 = vmatpush.bf16.msra.mxu3 %v10785_v37  ;;  %6724 = vmatpush.bf16.msrb.mxu2 %v11041_v36 }
 0x6f2   : > { %v5240_v15 = vpop.f32.mrf.mxu2  ;;  %v5279_v60 = vpop.f32.mrf.mxu3 }
 0x6f3   : > { %v17254_v57 = vadd.f32 %v5240_v15, %v5044_v48  ;;  %v17256_v55 = vadd.f32 %v5279_v60, %v5045_v59  ;;  %v11911_v59 = vld [vmem:[%s18601_s3 + $0xaf4] sm:$0xf]  ;;  %v11042_v15 = vld [vmem:[%s18601_s3 + $0xaf8] sm:$0xf0] }
 0x6f4   : > { %v11045_v60 = vor.u32 %v11911_v59, %v11042_v15  ;;  %v19192_v59 = vld [vmem:[#allocation156_spill] sm:$0xff] }
 0x6f5   : > { %v5051_v15 = vadd.f32 %v19192_v59, %v17102_v33  ;;  %v11908_v33 = vld [vmem:[%s18601_s3 + $0xad4] sm:$0xf0]  ;;  %v19195_v59 = vld [vmem:[#allocation16_spill] sm:$0xff] }
 0x6f6   : > { %6763 = vmatpush.bf16.msrb.mxu3 %v11045_v60 }
 0x6f7   : > { %5745 = vmatmul.bf16.gmra.mxu2 %v19185_v16  ;;  %5784 = vmatmul.bf16.gmra.mxu3 %v19185_v16  ;;  %v19189_v16 = vld [vmem:[#allocation152_spill] sm:$0xff] }
 0x6f8   : > { %v5629_v10 = vrot.slane %v19189_v16, 3  ;;  %v19193_v16 = vld [vmem:[#allocation17_spill] sm:$0xff] }
 0x6fa   : > { %v5243_v31 = vpop.f32.mrf.mxu2  ;;  %v5282_v29 = vpop.f32.mrf.mxu3 }
 0x6fb   : > { %v17276_v48 = vadd.f32 %v5243_v31, %v5046_v19  ;;  %v17278_v30 = vadd.f32 %v5282_v29, %v5047_v52  ;;  %v11032_v19 = vld [vmem:[%s18601_s3 + $0xae0] sm:$0xf]  ;;  %v19190_v52 = vrot.slane %v19161_v43, 3  ;;  %v19191_v31 = vld [vmem:[#allocation155_spill] sm:$0xff]  ;;  %v11909_v43 = vld [vmem:[%s18601_s3 + $0xae4] sm:$0xf] }
 0x6fc   : > { %v11033_v20 = vor.u32 %v11910_v49, %v11032_v19  ;;  %v5050_v29 = vadd.f32 %v19191_v31, %v17100_v35  ;;  %v11024_v35 = vld [vmem:[%s18601_s3 + $0xad0] sm:$0xf]  ;;  %v19194_v19 = vld [vmem:[#allocation157_spill] sm:$0xff] }
 0x6fd   : > { %v5630_v17 = vsel %vm3162_vm7, %v19190_v52, %v5629_v10  ;;  %v5052_v10 = vadd.f32 %v19193_v16, %v17121_v1  ;;  %v5053_v49 = vadd.f32 %v19194_v19, %v17123_v21  ;;  %v11026_v1 = vld [vmem:[%s18601_s3 + $0xad8] sm:$0xf0]  ;;  %v11016_v16 = vld [vmem:[%s18601_s3 + $0xac0] sm:$0xf] }
 0x6fe   : > { %6725 = vmatpush.bf16.msrb.mxu2 %v11033_v20  ;;  %v12077_v20 = vunpack.c.l.b16 %v16901_v51  ;;  %v19196_v51 = vld [vmem:[#allocation158_spill] sm:$0xff] }
 0x702   : > { %v5245_v26 = vpop.f32.mrf.mxu2  ;;  %v5284_v37 = vpop.f32.mrf.mxu3 }
 0x703   : > { %v17291_v6 = vadd.f32 %v5245_v26, %v5048_v25  ;;  %v17293_v36 = vadd.f32 %v5284_v37, %v5049_v56  ;;  %v11034_v56 = vld [vmem:[%s18601_s3 + $0xae8] sm:$0xf0]  ;;  %v11025_v37 = vor.u32 %v11908_v33, %v11024_v35 }
 0x704   : > { %v11037_v26 = vor.u32 %v11909_v43, %v11034_v56  ;;  %v19197_v43 = vld [vmem:[#allocation159_spill] sm:$0xff] }
 0x705   : > { %6726 = vmatpush.bf16.msrb.mxu2 %v11025_v37  ;;  %v5055_v56 = vadd.f32 %v19197_v43, %v17139_v14  ;;  %v19200_v43 = vld [vmem:[#allocation160_spill] sm:$0xff] }
 0x706   : > { %6764 = vmatpush.bf16.msrb.mxu3 %v11037_v26 }
 0x707   : > { %5750 = vmatmul.bf16.gmra.mxu2 %v5630_v17  ;;  %5789 = vmatmul.bf16.gmra.mxu3 %v5630_v17 }
 0x70a   : > { %v5248_v60 = vpop.f32.mrf.mxu2  ;;  %v5287_v50 = vpop.f32.mrf.mxu3 }
 0x70b   : > { %v17308_v25 = vadd.f32 %v5248_v60, %v5050_v29  ;;  %v17310_v32 = vadd.f32 %v5287_v50, %v5051_v15  ;;  %v6082_v15 = vpack.c.b16 %v12077_v20, %v19195_v59  ;;  %v11907_v60 = vld [vmem:[%s18601_s3 + $0xad4] sm:$0xf]  ;;  %v5054_v50 = vadd.f32 %v19196_v51, %v17137_v9  ;;  %v19198_v9 = vld [vmem:[#allocation20_spill] sm:$0xff] }
 0x70c   : > { %v11029_v21 = vor.u32 %v11907_v60, %v11026_v1  ;;  %v5056_v14 = vadd.f32 %v19198_v9, %v17152_v23  ;;  %v11905_v60 = vld [vmem:[%s18601_s3 + $0xac4] sm:$0xf]  ;;  %v11018_v1 = vld [vmem:[%s18601_s3 + $0xac8] sm:$0xf0]  ;;  %v12161_v51 = vld [vmem:[#allocation2 + $0x1c] sm:$0xff]  }
 0x70d   : > { %v11008_v23 = vld [vmem:[%s18601_s3 + $0xab0] sm:$0xf] }
 0x70e   : > { %6765 = vmatpush.bf16.msrb.mxu3 %v11029_v21  ;;  %v11021_v21 = vor.u32 %v11905_v60, %v11018_v1 }
 0x712   : > { %v5250_v52 = vpop.f32.mrf.mxu2  ;;  %v5289_v17 = vpop.f32.mrf.mxu3  ;;  %6766 = vmatpush.bf16.msrb.mxu3 %v11021_v21 }
 0x713   : > { %v17329_v31 = vadd.f32 %v5250_v52, %v5052_v10  ;;  %v17331_v29 = vadd.f32 %v5289_v17, %v5053_v49  ;;  %v11906_v10 = vld [vmem:[%s18601_s3 + $0xac4] sm:$0xf0] }
 0x714   : > { %v11017_v19 = vor.u32 %v11906_v10, %v11016_v16  ;;  %v19199_v49 = vld [vmem:[#allocation21_spill] sm:$0xff] }
 0x715   : > { %v5057_v20 = vadd.f32 %v19199_v49, %v17154_v62  ;;  %v11904_v62 = vld [vmem:[%s18601_s3 + $0xab4] sm:$0xf0]  ;;  %v11010_v49 = vld [vmem:[%s18601_s3 + $0xab8] sm:$0xf0] }
 0x716   : > { %6727 = vmatpush.bf16.msrb.mxu2 %v11017_v19 }
 0x717   : > { %6182 = vmatmul.bf16.vlgmr.msra.gmra.mxu2 %v6082_v15  ;;  %6221 = vmatmul.bf16.vlgmr.msra.gmra.mxu3 %v6082_v15 }
 0x71a   : > { %v5253_v35 = vpop.f32.mrf.mxu2  ;;  %v5292_v26 = vpop.f32.mrf.mxu3 }
 0x71b   : > { %v17344_v33 = vadd.f32 %v5253_v35, %v5054_v50  ;;  %v17346_v37 = vadd.f32 %v5292_v26, %v5055_v56  ;;  %v11009_v50 = vor.u32 %v11904_v62, %v11008_v23  ;;  %v5058_v56 = vadd.f32 %v19200_v43, %v17173_v54  ;;  %v19201_v35 = vld [vmem:[#allocation161_spill] sm:$0xff]  ;;  %v11000_v23 = vld [vmem:[%s18601_s3 + $0xaa0] sm:$0xf] }
 0x71c   : > { %v5059_v26 = vadd.f32 %v19201_v35, %v17175_v41  ;;  %v19202_v54 = vld [vmem:[#allocation25_spill] sm:$0xff] }
 0x71d   : > { %6728 = vmatpush.bf16.msrb.mxu2 %v11009_v50  ;;  %v5060_v41 = vadd.f32 %v19202_v54, %v17187_v7  ;;  %v11902_v62 = vld [vmem:[%s18601_s3 + $0xaa4] sm:$0xf0]  ;;  %v19204_v7 = vld [vmem:[#allocation162_spill] sm:$0xff] }
 0x71e   : > { %v11001_v50 = vor.u32 %v11902_v62, %v11000_v23  ;;  %v12163_v43 = vld [vmem:[#allocation2 + $0x24] sm:$0xff]  }
 0x721   : > { %6729 = vmatpush.bf16.msrb.mxu2 %v11001_v50 }
 0x722   : > { %v5255_v52 = vpop.f32.mrf.mxu2  ;;  %v5294_v17 = vpop.f32.mrf.mxu3 }
 0x723   : > { %v17358_v59 = vadd.f32 %v5255_v52, %v5056_v14  ;;  %v17360_v15 = vadd.f32 %v5294_v17, %v5057_v20  ;;  %v11903_v14 = vld [vmem:[%s18601_s3 + $0xab4] sm:$0xf]  ;;  %v19203_v52 = vld [vmem:[#allocation27_spill] sm:$0xff] }
 0x724   : > { %v11013_v20 = vor.u32 %v11903_v14, %v11010_v49  ;;  %v5061_v17 = vadd.f32 %v19203_v52, %v17189_v18  ;;  %v5573_v18 = vadd.f32 %v19204_v7, %v17204_v8  ;;  %v11901_v49 = vld [vmem:[%s18601_s3 + $0xaa4] sm:$0xf]  ;;  %v10992_v8 = vld [vmem:[%s18601_s3 + $0xa90] sm:$0xf]  ;;  %v19206_v52 = vld [vmem:[#allocation31_spill] sm:$0xff] }
 0x725   : > { %v12165_v7 = vld [vmem:[#allocation2 + $0x2c] sm:$0xff]  }
 0x726   : > { %6767 = vmatpush.bf16.msrb.mxu3 %v11013_v20  ;;  %v11002_v20 = vld [vmem:[%s18601_s3 + $0xaa8] sm:$0xf0] }
 0x727   : > { %6187 = vmatmul.bf16.gmra.mxu2 %v12161_v51  ;;  %6226 = vmatmul.bf16.gmra.mxu3 %v12161_v51  ;;  %v11005_v54 = vor.u32 %v11901_v49, %v11002_v20 }
 0x72a   : > { %v5258_v16 = vpop.f32.mrf.mxu2  ;;  %v5297_v10 = vpop.f32.mrf.mxu3  ;;  %6768 = vmatpush.bf16.msrb.mxu3 %v11005_v54 }
 0x72b   : > { %v17378_v19 = vadd.f32 %v5258_v16, %v5058_v56  ;;  %v17380_v9 = vadd.f32 %v5297_v10, %v5059_v26  ;;  %v19205_v56 = vld [vmem:[#allocation163_spill] sm:$0xff] }
 0x72c   : > { %v5574_v35 = vadd.f32 %v19205_v56, %v17206_v4  ;;  %v11900_v4 = vld [vmem:[%s18601_s3 + $0xa94] sm:$0xf0] }
 0x732   : > { %v5260_v60 = vpop.f32.mrf.mxu2  ;;  %v5299_v1 = vpop.f32.mrf.mxu3 }
 0x733   : > { %v17392_v21 = vadd.f32 %v5260_v60, %v5060_v41  ;;  %v17394_v51 = vadd.f32 %v5299_v1, %v5061_v17  ;;  %v10993_v41 = vor.u32 %v11900_v4, %v10992_v8  ;;  %v5575_v17 = vadd.f32 %v19206_v52, %v17224_v45  ;;  %v19207_v60 = vld [vmem:[#allocation33_spill] sm:$0xff]  ;;  %v10994_v45 = vld [vmem:[%s18601_s3 + $0xa98] sm:$0xf0]  ;;  %v10984_v4 = vld [vmem:[%s18601_s3 + $0xa80] sm:$0xf] }
 0x734   : > { %v5576_v1 = vadd.f32 %v19207_v60, %v17226_v3  ;;  %v19208_v3 = vld [vmem:[#allocation164_spill] sm:$0xff] }
 0x735   : > { %6730 = vmatpush.bf16.msrb.mxu2 %v10993_v41  ;;  %v11898_v41 = vld [vmem:[%s18601_s3 + $0xa84] sm:$0xf0] }
 0x736   : > { %v10985_v52 = vor.u32 %v11898_v41, %v10984_v4 }
 0x737   : > { %6192 = vmatmul.bf16.gmra.mxu2 %v12163_v43  ;;  %6231 = vmatmul.bf16.gmra.mxu3 %v12163_v43 }
 0x739   : > { %6731 = vmatpush.bf16.msrb.mxu2 %v10985_v52 }
 0x73a   : > { %v5726_v26 = vpop.f32.mrf.mxu2  ;;  %v5765_v16 = vpop.f32.mrf.mxu3 }
 0x73b   : > { %v17406_v10 = vadd.f32 %v5726_v26, %v5573_v18  ;;  %v17408_v14 = vadd.f32 %v5765_v16, %v5574_v35  ;;  %v11899_v18 = vld [vmem:[%s18601_s3 + $0xa94] sm:$0xf]  ;;  %v5577_v35 = vadd.f32 %v19208_v3, %v17240_v27  ;;  %v19209_v26 = vld [vmem:[#allocation165_spill] sm:$0xff]  ;;  %v19210_v27 = vld [vmem:[#allocation32_spill] sm:$0xff] }
 0x73c   : > { %v10997_v56 = vor.u32 %v11899_v18, %v10994_v45  ;;  %v5578_v16 = vadd.f32 %v19209_v26, %v17242_v5  ;;  %v5579_v5 = vadd.f32 %v19210_v27, %v17254_v57  ;;  %v11897_v18 = vld [vmem:[%s18601_s3 + $0xa84] sm:$0xf]  ;;  %v10986_v45 = vld [vmem:[%s18601_s3 + $0xa88] sm:$0xf0]  ;;  %v12166_v3 = vld [vmem:[#allocation2 + $0x34] sm:$0xff]  }
 0x73d   : > { %v11200_v57 = vld [vmem:[%s18601_s3 + $0xbf0] sm:$0xf] }
 0x73e   : > { %6769 = vmatpush.bf16.msrb.mxu3 %v10997_v56  ;;  %v10989_v56 = vor.u32 %v11897_v18, %v10986_v45  ;;  %v19212_v26 = vld [vmem:[#allocation166_spill] sm:$0xff] }
 0x742   : > { %v5728_v23 = vpop.f32.mrf.mxu2  ;;  %v5767_v62 = vpop.f32.mrf.mxu3  ;;  %6770 = vmatpush.bf16.msrb.mxu3 %v10989_v56 }
 0x743   : > { %v17426_v50 = vadd.f32 %v5728_v23, %v5575_v17  ;;  %v17428_v43 = vadd.f32 %v5767_v62, %v5576_v1  ;;  %v19211_v17 = vld [vmem:[#allocation36_spill] sm:$0xff] }
 0x744   : > { %v5580_v60 = vadd.f32 %v19211_v17, %v17256_v55  ;;  %v11944_v55 = vld [vmem:[%s18601_s3 + $0xbf4] sm:$0xf0]  ;;  %v11202_v17 = vld [vmem:[%s18601_s3 + $0xbf8] sm:$0xf0] }
 0x747   : > { %6197 = vmatmul.bf16.gmra.mxu2 %v12165_v7  ;;  %6236 = vmatmul.bf16.gmra.mxu3 %v12165_v7 }
 0x74a   : > { %v5731_v49 = vpop.f32.mrf.mxu2  ;;  %v5770_v20 = vpop.f32.mrf.mxu3 }
 0x74b   : > { %v17440_v8 = vadd.f32 %v5731_v49, %v5577_v35  ;;  %v17442_v54 = vadd.f32 %v5770_v20, %v5578_v16  ;;  %v11201_v35 = vor.u32 %v11944_v55, %v11200_v57  ;;  %v5581_v16 = vadd.f32 %v19212_v26, %v17276_v48  ;;  %v19213_v49 = vld [vmem:[#allocation167_spill] sm:$0xff]  ;;  %v19214_v48 = vld [vmem:[#allocation34_spill] sm:$0xff]  ;;  %v11192_v57 = vld [vmem:[%s18601_s3 + $0xbe0] sm:$0xf] }
 0x74c   : > { %v5582_v20 = vadd.f32 %v19213_v49, %v17278_v30  ;;  %v5583_v30 = vadd.f32 %v19214_v48, %v17291_v6  ;;  %v11942_v55 = vld [vmem:[%s18601_s3 + $0xbe4] sm:$0xf0]  ;;  %v12249_v48 = vld [vmem:[#allocation2 + $0x18] sm:$0xff]  }
 0x74d   : > { %7192 = vmatpush.bf16.msra.mxu2 %v11201_v35  ;;  %v11193_v35 = vor.u32 %v11942_v55, %v11192_v57  ;;  %v19216_v6 = vld [vmem:[#allocation81_spill] sm:$0xff] }
 0x74e   : > { %v19220_v55 = vld [vmem:[#allocation169_spill] sm:$0xff] }
 0x751   : > { %7193 = vmatpush.bf16.msra.mxu2 %v11193_v35  ;;  %v5588_v35 = vadd.f32 %v19220_v55, %v17331_v29  ;;  %v11186_v29 = vld [vmem:[%s18601_s3 + $0xbd8] sm:$0xf0]  ;;  %v11938_v55 = vld [vmem:[%s18601_s3 + $0xbc4] sm:$0xf0] }
 0x752   : > { %v5733_v1 = vpop.f32.mrf.mxu2  ;;  %v5772_v23 = vpop.f32.mrf.mxu3 }
 0x753   : > { %v17454_v62 = vadd.f32 %v5733_v1, %v5579_v5  ;;  %v17456_v7 = vadd.f32 %v5772_v23, %v5580_v60  ;;  %v11943_v5 = vld [vmem:[%s18601_s3 + $0xbf4] sm:$0xf] }
 0x754   : > { %v11205_v60 = vor.u32 %v11943_v5, %v11202_v17  ;;  %v19215_v1 = vld [vmem:[#allocation78_spill] sm:$0xff]  ;;  %v11941_v17 = vld [vmem:[%s18601_s3 + $0xbe4] sm:$0xf] }
 0x755   : > { %v5584_v23 = vadd.f32 %v19215_v1, %v17293_v36  ;;  %v19217_v36 = vld [vmem:[#allocation38_spill] sm:$0xff]  ;;  %v11940_v1 = vld [vmem:[%s18601_s3 + $0xbd4] sm:$0xf0] }
 0x756   : > { %7231 = vmatpush.bf16.msra.mxu3 %v11205_v60  ;;  %v5585_v26 = vadd.f32 %v19217_v36, %v17308_v25  ;;  %v11194_v60 = vld [vmem:[%s18601_s3 + $0xbe8] sm:$0xf0]  ;;  %v11184_v25 = vld [vmem:[%s18601_s3 + $0xbd0] sm:$0xf] }
 0x757   : > { %6202 = vmatmul.bf16.gmra.mxu2 %v12166_v3  ;;  %6241 = vmatmul.bf16.gmra.mxu3 %v12166_v3 }
 0x75a   : > { %v5736_v4 = vpop.f32.mrf.mxu2  ;;  %v5775_v41 = vpop.f32.mrf.mxu3 }
 0x75b   : > { %v17474_v52 = vadd.f32 %v5736_v4, %v5581_v16  ;;  %v17476_v27 = vadd.f32 %v5775_v41, %v5582_v20  ;;  %v19218_v16 = vld [vmem:[#allocation168_spill] sm:$0xff] }
 0x75c   : > { %v5586_v49 = vadd.f32 %v19218_v16, %v17310_v32  ;;  %v6589_v32 = vshll.u32 %v12249_v48, 16 }
 0x762   : > { %v5738_v18 = vpop.f32.mrf.mxu2  ;;  %v5777_v45 = vpop.f32.mrf.mxu3 }
 0x763   : > { %v17488_v56 = vadd.f32 %v5738_v18, %v5583_v30  ;;  %v17490_v3 = vadd.f32 %v5777_v45, %v5584_v23  ;;  %v11197_v30 = vor.u32 %v11941_v17, %v11194_v60  ;;  %v11185_v23 = vor.u32 %v11940_v1, %v11184_v25  ;;  %v19219_v45 = vld [vmem:[#allocation35_spill] sm:$0xff]  ;;  %v19222_v25 = vld [vmem:[#allocation170_spill] sm:$0xff] }
 0x764   : > { %v6591_v18 = vrot.slane %v6589_v32, 1  ;;  %v5587_v57 = vadd.f32 %v19219_v45, %v17329_v31  ;;  %v11939_v31 = vld [vmem:[%s18601_s3 + $0xbd4] sm:$0xf]  ;;  %v19223_v32 = vld [vmem:[#allocation171_spill] sm:$0xff] }
 0x765   : > { %7232 = vmatpush.bf16.msra.mxu3 %v11197_v30  ;;  %7194 = vmatpush.bf16.msra.mxu2 %v11185_v23  ;;  %v11189_v60 = vor.u32 %v11939_v31, %v11186_v29  ;;  %v5590_v30 = vadd.f32 %v19223_v32, %v17346_v37  ;;  %v11937_v31 = vld [vmem:[%s18601_s3 + $0xbc4] sm:$0xf]  ;;  %v11178_v29 = vld [vmem:[%s18601_s3 + $0xbc8] sm:$0xf0]  ;;  %v19227_v32 = vld [vmem:[#allocation54_spill] sm:$0xff] }
 0x767   : > { %6207 = vmatmul.bf16.gmra.mxu2 %v19216_v6  ;;  %6246 = vmatmul.bf16.gmra.mxu3 %v19216_v6 }
 0x769   : > { %7233 = vmatpush.bf16.msra.mxu3 %v11189_v60  ;;  %v11181_v60 = vor.u32 %v11937_v31, %v11178_v29 }
 0x76a   : > { %v5741_v20 = vpop.f32.mrf.mxu2  ;;  %v5780_v4 = vpop.f32.mrf.mxu3 }
 0x76b   : > { %v17504_v41 = vadd.f32 %v5741_v20, %v5585_v26  ;;  %v17506_v5 = vadd.f32 %v5780_v4, %v5586_v49  ;;  %v6587_v26 = vshrl.u32 %v12249_v48, 16  ;;  %v19221_v4 = vld [vmem:[#allocation46_spill] sm:$0xff]  ;;  %v5589_v48 = vadd.f32 %v19222_v25, %v17344_v33  ;;  %v19224_v33 = vld [vmem:[#allocation172_spill] sm:$0xff]  ;;  %v11936_v25 = vld [vmem:[%s18601_s3 + $0xbb4] sm:$0xf0] }
 0x76c   : > { %v5591_v37 = vadd.f32 %v19224_v33, %v17358_v59  ;;  %v19226_v59 = vld [vmem:[#allocation49_spill] sm:$0xff] }
 0x76d   : > { %v6592_v20 = vor.u32 %v6591_v18, %v6587_v26  ;;  %7234 = vmatpush.bf16.msra.mxu3 %v11181_v60 }
 0x76f   : > { %v6597_v17 = vsel %vm1531_vm2, %v6592_v20, %v19221_v4 }
 0x772   : > { %v5743_v6 = vpop.f32.mrf.mxu2  ;;  %v5782_v36 = vpop.f32.mrf.mxu3 }
 0x773   : > { %v17524_v16 = vadd.f32 %v5743_v6, %v5587_v57  ;;  %v17526_v49 = vadd.f32 %v5782_v36, %v5588_v35  ;;  %v11176_v57 = vld [vmem:[%s18601_s3 + $0xbc0] sm:$0xf]  ;;  %v19225_v6 = vld [vmem:[#allocation173_spill] sm:$0xff] }
 0x774   : > { %v11177_v35 = vor.u32 %v11938_v55, %v11176_v57  ;;  %v5592_v36 = vadd.f32 %v19225_v6, %v17360_v15  ;;  %v11168_v15 = vld [vmem:[%s18601_s3 + $0xbb0] sm:$0xf]  ;;  %v11170_v6 = vld [vmem:[%s18601_s3 + $0xbb8] sm:$0xf0] }
 0x776   : > { %7195 = vmatpush.bf16.msra.mxu2 %v11177_v35 }
 0x777   : > { %6732 = vmatmul.bf16.vlgmr.msrb.gmra.mxu2 %v6597_v17  ;;  %6771 = vmatmul.bf16.vlgmr.msrb.gmra.mxu3 %v6597_v17 }
 0x77a   : > { %v5746_v1 = vpop.f32.mrf.mxu2  ;;  %v5785_v23 = vpop.f32.mrf.mxu3 }
 0x77b   : > { %v17540_v18 = vadd.f32 %v5746_v1, %v5589_v48  ;;  %v17542_v45 = vadd.f32 %v5785_v23, %v5590_v30  ;;  %v11169_v48 = vor.u32 %v11936_v25, %v11168_v15  ;;  %v5593_v30 = vadd.f32 %v19227_v32, %v17378_v19  ;;  %v19228_v1 = vld [vmem:[#allocation55_spill] sm:$0xff]  ;;  %v11160_v15 = vld [vmem:[%s18601_s3 + $0xba0] sm:$0xf]  ;;  %v11934_v25 = vld [vmem:[%s18601_s3 + $0xba4] sm:$0xf0] }
 0x77c   : > { %v5594_v23 = vadd.f32 %v19228_v1, %v17380_v9  ;;  %v19229_v19 = vld [vmem:[#allocation59_spill] sm:$0xff] }
 0x77d   : > { %7196 = vmatpush.bf16.msra.mxu2 %v11169_v48  ;;  %v5595_v9 = vadd.f32 %v19229_v19, %v17392_v21  ;;  %v11161_v48 = vor.u32 %v11934_v25, %v11160_v15  ;;  %v19231_v21 = vld [vmem:[#allocation61_spill] sm:$0xff] }
 0x781   : > { %7197 = vmatpush.bf16.msra.mxu2 %v11161_v48 }
 0x782   : > { %v5748_v26 = vpop.f32.mrf.mxu2  ;;  %v5787_v20 = vpop.f32.mrf.mxu3 }
 0x783   : > { %v17554_v4 = vadd.f32 %v5748_v26, %v5591_v37  ;;  %v17556_v17 = vadd.f32 %v5787_v20, %v5592_v36  ;;  %v11935_v37 = vld [vmem:[%s18601_s3 + $0xbb4] sm:$0xf]  ;;  %v19230_v26 = vld [vmem:[#allocation60_spill] sm:$0xff] }
 0x784   : > { %v11173_v36 = vor.u32 %v11935_v37, %v11170_v6  ;;  %v5596_v20 = vadd.f32 %v19230_v26, %v17394_v51  ;;  %v19232_v51 = vld [vmem:[#allocation63_spill] sm:$0xff]  ;;  %v11933_v6 = vld [vmem:[%s18601_s3 + $0xba4] sm:$0xf]  ;;  %v19234_v26 = vld [vmem:[#allocation70_spill] sm:$0xff] }
 0x785   : > { %v6041_v32 = vadd.f32 %v19232_v51, %v17406_v10  ;;  %v11152_v10 = vld [vmem:[%s18601_s3 + $0xb90] sm:$0xf]  ;;  %v19236_v51 = vld [vmem:[#allocation72_spill] sm:$0xff] }
 0x786   : > { %7235 = vmatpush.bf16.msra.mxu3 %v11173_v36  ;;  %v11162_v36 = vld [vmem:[%s18601_s3 + $0xba8] sm:$0xf0] }
 0x787   : > { %6737 = vmatmul.bf16.gmra.mxu2 %v19226_v59  ;;  %6776 = vmatmul.bf16.gmra.mxu3 %v19226_v59  ;;  %v11165_v19 = vor.u32 %v11933_v6, %v11162_v36 }
 0x78a   : > { %v5751_v57 = vpop.f32.mrf.mxu2  ;;  %v5790_v55 = vpop.f32.mrf.mxu3  ;;  %7236 = vmatpush.bf16.msra.mxu3 %v11165_v19 }
 0x78b   : > { %v17576_v35 = vadd.f32 %v5751_v57, %v5593_v30  ;;  %v17578_v33 = vadd.f32 %v5790_v55, %v5594_v23  ;;  %v19233_v30 = vld [vmem:[#allocation64_spill] sm:$0xff] }
 0x78c   : > { %v6042_v1 = vadd.f32 %v19233_v30, %v17408_v14  ;;  %v11932_v14 = vld [vmem:[%s18601_s3 + $0xb94] sm:$0xf0] }
 0x792   : > { %v5753_v31 = vpop.f32.mrf.mxu2  ;;  %v5792_v29 = vpop.f32.mrf.mxu3 }
 0x793   : > { %v17590_v60 = vadd.f32 %v5753_v31, %v5595_v9  ;;  %v17592_v59 = vadd.f32 %v5792_v29, %v5596_v20  ;;  %v11153_v9 = vor.u32 %v11932_v14, %v11152_v10  ;;  %v6043_v20 = vadd.f32 %v19234_v26, %v17426_v50  ;;  %v19235_v31 = vld [vmem:[#allocation71_spill] sm:$0xff]  ;;  %v11144_v14 = vld [vmem:[%s18601_s3 + $0xb80] sm:$0xf] }
 0x794   : > { %v6044_v29 = vadd.f32 %v19235_v31, %v17428_v43  ;;  %v11154_v50 = vld [vmem:[%s18601_s3 + $0xb98] sm:$0xf0] }
 0x795   : > { %7198 = vmatpush.bf16.msra.mxu2 %v11153_v9  ;;  %v19237_v43 = vld [vmem:[#allocation75_spill] sm:$0xff]  ;;  %v11930_v9 = vld [vmem:[%s18601_s3 + $0xb84] sm:$0xf0] }
 0x796   : > { %v11145_v26 = vor.u32 %v11930_v9, %v11144_v14  ;;  %v19244_v9 = vld [vmem:[#allocation89_spill] sm:$0xff] }
 0x797   : > { %6742 = vmatmul.bf16.gmra.mxu2 %v19231_v21  ;;  %6781 = vmatmul.bf16.gmra.mxu3 %v19231_v21 }
 0x799   : > { %7199 = vmatpush.bf16.msra.mxu2 %v11145_v26  ;;  %v6051_v26 = vadd.f32 %v19244_v9, %v17488_v56 }
 0x79a   : > { %v6183_v23 = vpop.f32.mrf.mxu2  ;;  %v6222_v57 = vpop.f32.mrf.mxu3 }
 0x79b   : > { %v17606_v55 = vadd.f32 %v6183_v23, %v6041_v32  ;;  %v17608_v37 = vadd.f32 %v6222_v57, %v6042_v1  ;;  %v11931_v32 = vld [vmem:[%s18601_s3 + $0xb94] sm:$0xf]  ;;  %v6045_v1 = vadd.f32 %v19237_v43, %v17440_v8  ;;  %v19238_v23 = vld [vmem:[#allocation76_spill] sm:$0xff] }
 0x79c   : > { %v11157_v30 = vor.u32 %v11931_v32, %v11154_v50  ;;  %v6046_v57 = vadd.f32 %v19238_v23, %v17442_v54  ;;  %v19239_v8 = vld [vmem:[#allocation82_spill] sm:$0xff]  ;;  %v11929_v32 = vld [vmem:[%s18601_s3 + $0xb84] sm:$0xf]  ;;  %v11146_v50 = vld [vmem:[%s18601_s3 + $0xb88] sm:$0xf0] }
 0x79d   : > { %v6047_v54 = vadd.f32 %v19239_v8, %v17454_v62  ;;  %v19241_v62 = vld [vmem:[#allocation84_spill] sm:$0xff]  ;;  %v19245_v8 = vld [vmem:[#allocation90_spill] sm:$0xff] }
 0x79e   : > { %7237 = vmatpush.bf16.msra.mxu3 %v11157_v30  ;;  %v11149_v30 = vor.u32 %v11929_v32, %v11146_v50  ;;  %v19249_v50 = vld [vmem:[#allocation26_spill] sm:$0xff] }
 0x7a2   : > { %v6185_v15 = vpop.f32.mrf.mxu2  ;;  %v6224_v25 = vpop.f32.mrf.mxu3  ;;  %7238 = vmatpush.bf16.msra.mxu3 %v11149_v30  ;;  %v6054_v30 = vadd.f32 %v19249_v50, %v17506_v5 }
 0x7a3   : > { %v17626_v48 = vadd.f32 %v6185_v15, %v6043_v20  ;;  %v17628_v21 = vadd.f32 %v6224_v25, %v6044_v29  ;;  %v19240_v20 = vld [vmem:[#allocation83_spill] sm:$0xff] }
 0x7a4   : > { %v6048_v31 = vadd.f32 %v19240_v20, %v17456_v7  ;;  %v19242_v7 = vld [vmem:[#allocation30_spill] sm:$0xff] }
 0x7a5   : > { %v6049_v43 = vadd.f32 %v19242_v7, %v17474_v52 }
 0x7a7   : > { %6747 = vmatmul.bf16.gmra.mxu2 %v19236_v51  ;;  %6786 = vmatmul.bf16.gmra.mxu3 %v19236_v51 }
 0x7aa   : > { %v6188_v6 = vpop.f32.mrf.mxu2  ;;  %v6227_v36 = vpop.f32.mrf.mxu3 }
 0x7ab   : > { %v17642_v10 = vadd.f32 %v6188_v6, %v6045_v1  ;;  %v17644_v19 = vadd.f32 %v6227_v36, %v6046_v57  ;;  %v19243_v1 = vld [vmem:[#allocation88_spill] sm:$0xff] }
 0x7ac   : > { %v6050_v23 = vadd.f32 %v19243_v1, %v17476_v27  ;;  %v19248_v27 = vld [vmem:[#allocation91_spill] sm:$0xff]  ;;  %v17696_v1 = vpop.f32.mrf.mxu0 }
 0x7ad   : > { %v6053_v32 = vadd.f32 %v19248_v27, %v17504_v41  ;;  %v19254_v27 = vld [vmem:[#allocation95_spill] sm:$0xff] }
 0x7b2   : > { %v6190_v29 = vpop.f32.mrf.mxu2  ;;  %v6229_v15 = vpop.f32.mrf.mxu3 }
 0x7b3   : > { %v17656_v25 = vadd.f32 %v6190_v29, %v6047_v54  ;;  %v17658_v51 = vadd.f32 %v6229_v15, %v6048_v31  ;;  %v6052_v54 = vadd.f32 %v19245_v8, %v17490_v3  ;;  %v19247_v15 = vld [vmem:[#allocation85_spill] sm:$0xff] }
 0x7b7   : > { %6752 = vmatmul.bf16.gmra.mxu2 %v19241_v62  ;;  %6791 = vmatmul.bf16.gmra.mxu3 %v19241_v62 }
 0x7ba   : > { %v6193_v57 = vpop.f32.mrf.mxu2  ;;  %v6232_v6 = vpop.f32.mrf.mxu3 }
 0x7bb   : > { %v17672_v36 = vadd.f32 %v6193_v57, %v6049_v43  ;;  %v17674_v14 = vadd.f32 %v6232_v6, %v6050_v23  ;;  %v17694_v43 = vpop.f32.mrf.mxu1  ;;  %v19250_v23 = vld [vmem:[#allocation92_spill] sm:$0xff]  ;;  %v19251_v6 = vld [vmem:[#allocation93_spill] sm:$0xff] }
 0x7bc   : > { %v6055_v57 = vadd.f32 %v19250_v23, %v17524_v16  ;;  %v6056_v9 = vadd.f32 %v19251_v6, %v17526_v49  ;;  %v6058_v49 = vadd.f32 %v19254_v27, %v17542_v45 }
 0x7c2   : > { %v6195_v20 = vpop.f32.mrf.mxu2  ;;  %v6234_v31 = vpop.f32.mrf.mxu3 }
 0x7c3   : > { %v17680_v29 = vadd.f32 %v6195_v20, %v6051_v26  ;;  %v17682_v52 = vadd.f32 %v6234_v31, %v6052_v54  ;;  %v17706_v54 = vpop.f32.mrf.mxu1  ;;  %v17708_v20 = vpop.f32.mrf.mxu0  ;;  %v19252_v31 = vld [vmem:[#allocation48_spill] sm:$0xff] }
 0x7c5   : > { %19246 = vst [vmem:[#allocation104_spill] sm:$0xff] %v17680_v29 }
 0x7c7   : > { %6757 = vmatmul.bf16.gmra.mxu2 %v19247_v15  ;;  %6796 = vmatmul.bf16.gmra.mxu3 %v19247_v15  ;;  %v19253_v15 = vld [vmem:[#allocation94_spill] sm:$0xff] }
 0x7c8   : > { %v6057_v16 = vadd.f32 %v19253_v15, %v17540_v18  ;;  %v19257_v15 = vld [vmem:[#allocation50_spill] sm:$0xff] }
 0x7ca   : > { %v6198_v56 = vpop.f32.mrf.mxu2  ;;  %v6237_v62 = vpop.f32.mrf.mxu3 }
 0x7cb   : > { %v17690_v7 = vadd.f32 %v6198_v56, %v6053_v32  ;;  %v17692_v3 = vadd.f32 %v6237_v62, %v6054_v30  ;;  %v17720_v62 = vpop.f32.mrf.mxu1  ;;  %v17722_v23 = vpop.f32.mrf.mxu0 }
 0x7d2   : > { %v6200_v41 = vpop.f32.mrf.mxu2  ;;  %v6239_v26 = vpop.f32.mrf.mxu3 }
 0x7d3   : > { %v17702_v8 = vadd.f32 %v6200_v41, %v6055_v57  ;;  %v17704_v5 = vadd.f32 %v6239_v26, %v6056_v9  ;;  %v19255_v57 = vld [vmem:[#allocation37_spill] sm:$0xff]  ;;  %v19256_v9 = vld [vmem:[#allocation43_spill] sm:$0xff] }
 0x7d4   : > { %v6059_v6 = vadd.f32 %v19255_v57, %v17554_v4  ;;  %v6060_v41 = vadd.f32 %v19256_v9, %v17556_v17  ;;  %v17738_v57 = vpop.f32.mrf.mxu1  ;;  %v17740_v17 = vpop.f32.mrf.mxu0 }
 0x7d5   : > { %19260 = vst [vmem:[#allocation44_spill] sm:$0xff] %v17738_v57 }
 0x7d7   : > { %7200 = vmatmul.bf16.vlgmr.msra.gmra.mxu2 %v19252_v31  ;;  %7239 = vmatmul.bf16.vlgmr.msra.gmra.mxu3 %v19252_v31 }
 0x7da   : > { %v6203_v32 = vpop.f32.mrf.mxu2  ;;  %v6242_v50 = vpop.f32.mrf.mxu3 }
 0x7db   : > { %v17716_v30 = vadd.f32 %v6203_v32, %v6057_v16  ;;  %v17718_v56 = vadd.f32 %v6242_v50, %v6058_v49  ;;  %v19258_v16 = vld [vmem:[#allocation97_spill] sm:$0xff]  ;;  %v19259_v49 = vld [vmem:[#allocation98_spill] sm:$0xff] }
 0x7dc   : > { %v6061_v27 = vadd.f32 %v19258_v16, %v17576_v35  ;;  %v6062_v32 = vadd.f32 %v19259_v49, %v17578_v33  ;;  %v17754_v49 = vpop.f32.mrf.mxu1  ;;  %v17756_v57 = vpop.f32.mrf.mxu0 }
 0x7dd   : > { %19263 = vst [vmem:[#allocation105_spill] sm:$0xff] %v17756_v57 }
 0x7e2   : > { %v6205_v18 = vpop.f32.mrf.mxu2  ;;  %v6244_v26 = vpop.f32.mrf.mxu3 }
 0x7e3   : > { %v17728_v31 = vadd.f32 %v6205_v18, %v6059_v6  ;;  %v17730_v45 = vadd.f32 %v6244_v26, %v6060_v41  ;;  %v19261_v41 = vld [vmem:[#allocation99_spill] sm:$0xff]  ;;  %v19262_v26 = vld [vmem:[#allocation100_spill] sm:$0xff] }
 0x7e4   : > { %v6063_v18 = vadd.f32 %v19261_v41, %v17590_v60 }
 0x7e7   : > { %7205 = vmatmul.bf16.gmra.mxu2 %v19257_v15  ;;  %7244 = vmatmul.bf16.gmra.mxu3 %v19257_v15  ;;  %v6064_v15 = vadd.f32 %v19262_v26, %v17592_v59 }
 0x7ea   : > { %v6208_v4 = vpop.f32.mrf.mxu2  ;;  %v6247_v50 = vpop.f32.mrf.mxu3 }
 0x7eb   : > { %v17742_v6 = vadd.f32 %v6208_v4, %v6061_v27  ;;  %v17744_v9 = vadd.f32 %v6247_v50, %v6062_v32  ;;  %v19264_v27 = vld [vmem:[#allocation62_spill] sm:$0xff]  ;;  %v19265_v32 = vld [vmem:[#allocation39_spill] sm:$0xff]  ;;  %v19266_v4 = vld [vmem:[#allocation101_spill] sm:$0xff] }
 0x7ec   : > { %v6499_v60 = vadd.f32 %v19265_v32, %v17606_v55  ;;  %v6500_v59 = vadd.f32 %v19266_v4, %v17608_v37  ;;  %v6503_v32 = vadd.f32 %v16675_v40, %v17642_v10  ;;  %v6507_v40 = vadd.f32 %v16725_v53, %v17672_v36 }
 0x7f2   : > { %v6210_v35 = vpop.f32.mrf.mxu2  ;;  %v6249_v16 = vpop.f32.mrf.mxu3 }
 0x7f3   : > { %v17750_v29 = vadd.f32 %v6210_v35, %v6063_v18  ;;  %v17752_v33 = vadd.f32 %v6249_v16, %v6064_v15  ;;  %v17768_v15 = vpop.f32.mrf.mxu1  ;;  %v17770_v35 = vpop.f32.mrf.mxu0 }
 0x7f4   : > { %19267 = vst [vmem:[#allocation106_spill] sm:$0xff] %v17768_v15 }
 0x7f5   : > { %19268 = vst [vmem:[#allocation107_spill] sm:$0xff] %v17770_v35 }
 0x7f7   : > { %7210 = vmatmul.bf16.gmra.mxu2 %v19264_v27  ;;  %7249 = vmatmul.bf16.gmra.mxu3 %v19264_v27  ;;  %v19269_v27 = vld [vmem:[#allocation74_spill] sm:$0xff] }
 0x7fa   : > { %v6733_v50 = vpop.f32.mrf.mxu2  ;;  %v6772_v41 = vpop.f32.mrf.mxu3 }
 0x7fb   : > { %v17764_v18 = vadd.f32 %v6733_v50, %v6499_v60  ;;  %v17766_v26 = vadd.f32 %v6772_v41, %v6500_v59  ;;  %v17778_v55 = vpop.f32.mrf.mxu1  ;;  %v17780_v37 = vpop.f32.mrf.mxu0  ;;  %v6504_v60 = vadd.f32 %v16677_v44, %v17644_v19  ;;  %v6508_v44 = vadd.f32 %v16727_v46, %v17674_v14  ;;  %v19277_v14 = vld [vmem:[#allocation87_spill] sm:$0xff] }
 0x7fc   : > { %19270 = vst [vmem:[#allocation108_spill] sm:$0xff] %v17778_v55 }
 0x7fd   : > { %19271 = vst [vmem:[#allocation51_spill] sm:$0xff] %v17780_v37  ;;  %v19274_v37 = vld [vmem:[#allocation86_spill] sm:$0xff] }
 0x802   : > { %v17772_v16 = vpop.f32.mrf.mxu2  ;;  %v17774_v57 = vpop.f32.mrf.mxu3 }
 0x803   : > { %v17796_v55 = vpop.f32.mrf.mxu0 }
 0x804   : > { %19273 = vst [vmem:[#allocation110_spill] sm:$0xff] %v17796_v55  ;;  %v6510_v55 = vadd.f32 %v16759_v63, %v17682_v52 }
 0x807   : > { %7215 = vmatmul.bf16.gmra.mxu2 %v19269_v27  ;;  %7254 = vmatmul.bf16.gmra.mxu3 %v19269_v27  ;;  %v17794_v27 = vpop.f32.mrf.mxu1 }
 0x808   : > { %19272 = vst [vmem:[#allocation109_spill] sm:$0xff] %v17794_v27 }
 0x80a   : > { %v6738_v4 = vpop.f32.mrf.mxu2  ;;  %v6777_v59 = vpop.f32.mrf.mxu3 }
 0x80b   : > { %v17786_v50 = vadd.f32 %v6738_v4, %v6503_v32  ;;  %v17788_v41 = vadd.f32 %v6777_v59, %v6504_v60  ;;  %v17810_v59 = vpop.f32.mrf.mxu0 }
 0x80f   : > { %v17808_v4 = vpop.f32.mrf.mxu1 }
 0x812   : > { %v17790_v35 = vpop.f32.mrf.mxu2  ;;  %v17792_v15 = vpop.f32.mrf.mxu3 }
 0x813   : > { %v17820_v46 = vpop.f32.mrf.mxu0 }
 0x814   : > { %19276 = vst [vmem:[#allocation112_spill] sm:$0xff] %v17820_v46  ;;  %v6513_v46 = vadd.f32 %v16803_v39, %v17702_v8 }
 0x817   : > { %7220 = vmatmul.bf16.gmra.mxu2 %v19274_v37  ;;  %7259 = vmatmul.bf16.gmra.mxu3 %v19274_v37  ;;  %v17818_v36 = vpop.f32.mrf.mxu1 }
 0x818   : > { %19275 = vst [vmem:[#allocation111_spill] sm:$0xff] %v17818_v36 }
 0x81a   : > { %v6743_v10 = vpop.f32.mrf.mxu2  ;;  %v6782_v19 = vpop.f32.mrf.mxu3 }
 0x81b   : > { %v17804_v32 = vadd.f32 %v6743_v10, %v6507_v40  ;;  %v17806_v60 = vadd.f32 %v6782_v19, %v6508_v44  ;;  %v6511_v40 = vadd.f32 %v16775_v34, %v17690_v7  ;;  %v6512_v44 = vadd.f32 %v16777_v58, %v17692_v3  ;;  %v17834_v19 = vpop.f32.mrf.mxu0 }
 0x81c   : > { %v6515_v3 = vadd.f32 %v16837_v13, %v17716_v30 }
 0x822   : > { %v17814_v37 = vpop.f32.mrf.mxu2  ;;  %v6784_v27 = vpop.f32.mrf.mxu3 }
 0x823   : > { %v17816_v53 = vadd.f32 %v6784_v27, %v6510_v55  ;;  %v17832_v27 = vpop.f32.mrf.mxu1  ;;  %v17850_v39 = vpop.f32.mrf.mxu0 }
 0x827   : > { %7225 = vmatmul.bf16.gmra.mxu2 %v19277_v14  ;;  %7264 = vmatmul.bf16.gmra.mxu3 %v19277_v14  ;;  %v6514_v14 = vadd.f32 %v16805_v2, %v17704_v5  ;;  %v6517_v5 = vadd.f32 %v16865_v11, %v17728_v31 }
 0x82a   : > { %v6748_v63 = vpop.f32.mrf.mxu2  ;;  %v6787_v52 = vpop.f32.mrf.mxu3 }
 0x82b   : > { %v17828_v10 = vadd.f32 %v6748_v63, %v6511_v40  ;;  %v17830_v55 = vadd.f32 %v6787_v52, %v6512_v44  ;;  %v6516_v40 = vadd.f32 %v16839_v22, %v17718_v56  ;;  %v17848_v52 = vpop.f32.mrf.mxu1 }
 0x832   : > { %v6750_v34 = vpop.f32.mrf.mxu2  ;;  %v6789_v7 = vpop.f32.mrf.mxu3 }
 0x833   : > { %v17840_v36 = vadd.f32 %v6750_v34, %v6513_v46  ;;  %v17842_v58 = vadd.f32 %v6789_v7, %v6514_v14  ;;  %v6518_v46 = vadd.f32 %v16867_v28, %v17730_v45  ;;  %v7423_v56 = vpop.f32.mrf.mxu1  ;;  %v7462_v34 = vpop.f32.mrf.mxu0  ;;  %v6519_v7 = vadd.f32 %v16887_v38, %v17742_v6 }
 0x83a   : > { %v6753_v44 = vpop.f32.mrf.mxu2  ;;  %v6792_v63 = vpop.f32.mrf.mxu3 }
 0x83b   : > { %v17852_v8 = vadd.f32 %v6753_v44, %v6515_v3  ;;  %v17854_v2 = vadd.f32 %v6792_v63, %v6516_v40  ;;  %v6520_v3 = vadd.f32 %v16889_v12, %v17744_v9  ;;  %v7425_v28 = vpop.f32.mrf.mxu1  ;;  %v7464_v45 = vpop.f32.mrf.mxu0  ;;  %v6521_v63 = vadd.f32 %v16917_v47, %v17750_v29 }
 0x83c   : > { %v7024_v47 = vadd.f32 %v17694_v43, %v17764_v18 }
 0x842   : > { %v6755_v13 = vpop.f32.mrf.mxu2  ;;  %v6794_v30 = vpop.f32.mrf.mxu3 }
 0x843   : > { %v17860_v14 = vadd.f32 %v6755_v13, %v6517_v5  ;;  %v17862_v22 = vadd.f32 %v6794_v30, %v6518_v46  ;;  %v6522_v5 = vadd.f32 %v16919_v42, %v17752_v33  ;;  %v7428_v12 = vpop.f32.mrf.mxu1  ;;  %v7467_v9 = vpop.f32.mrf.mxu0  ;;  %v7025_v42 = vadd.f32 %v17696_v1, %v17766_v26 }
 0x84a   : > { %v6758_v40 = vpop.f32.mrf.mxu2  ;;  %v6797_v44 = vpop.f32.mrf.mxu3 }
 0x84b   : > { %v17868_v11 = vadd.f32 %v6758_v40, %v6519_v7  ;;  %v17870_v31 = vadd.f32 %v6797_v44, %v6520_v3  ;;  %v6501_v3 = vadd.f32 %v16647_v61, %v17626_v48  ;;  %v6502_v40 = vadd.f32 %v16649_v24, %v17628_v21  ;;  %v17892_v21 = vpop.f32.mrf.mxu1  ;;  %v17894_v43 = vpop.f32.mrf.mxu0 }
 0x84d   : > { %v6804_v29 = vadd.f32 %v17772_v16, %v6501_v3  ;;  %v6805_v33 = vadd.f32 %v17774_v57, %v6502_v40  ;;  %v7029_v40 = vadd.f32 %v17722_v23, %v17788_v41  ;;  %v19278_v23 = vld [vmem:[#allocation102_spill] sm:$0xff] }
 0x852   : > { %v6760_v46 = vpop.f32.mrf.mxu2  ;;  %v6799_v13 = vpop.f32.mrf.mxu3 }
 0x853   : > { %v17876_v38 = vadd.f32 %v6760_v46, %v6521_v63  ;;  %v17878_v6 = vadd.f32 %v6799_v13, %v6522_v5  ;;  %v7026_v5 = vadd.f32 %v17706_v54, %v6804_v29  ;;  %v7027_v46 = vadd.f32 %v17708_v20, %v6805_v33  ;;  %v7540_v54 = vld [vmem:[%s18602_s4] sm:$0x3] }
 0x854   : > { %v7543_v29 = vperm.slane %v7540_v54, 1  ;;  %v7542_v33 = vperm.slane %v7540_v54, 0 }
 0x85a   : > { %v7201_v30 = vpop.f32.mrf.mxu2  ;;  %v7240_v7 = vpop.f32.mrf.mxu3 }
 0x85b   : > { %v7270_v44 = vadd.f32 %v7201_v30, %v7024_v47  ;;  %v7271_v63 = vadd.f32 %v7240_v7, %v7025_v42 }
 0x85d   : > { %v7492_v61 = vadd.f32 %v7423_v56, %v7270_v44  ;;  %v7493_v48 = vadd.f32 %v7462_v34, %v7271_v63  ;;  %v7028_v34 = vadd.f32 %v17720_v62, %v17786_v50  ;;  %v6505_v62 = vadd.f32 %v16701_v0, %v17656_v25  ;;  %v7579_v0 = vld [vmem:[%s18602_s4] sm:$0x3] }
 0x85e   : > { %v6506_v50 = vadd.f32 %v19278_v23, %v17658_v51 }
 0x85f   : > { %v7518_v3 = vrot.slane %v7492_v61, 1  ;;  %v7519_v57 = vrot.slane %v7493_v48, 1 }
 0x861   : > { %v7522_v47 = vmax.f32 %v7492_v61, %v7518_v3  ;;  %v7523_v42 = vmax.f32 %v7493_v48, %v7519_v57  ;;  %v6808_v57 = vadd.f32 %v17790_v35, %v6505_v62  ;;  %v19282_v62 = vld [vmem:[#allocation103_spill] sm:$0xff] }
 0x862   : > { %v7203_v13 = vpop.f32.mrf.mxu2  ;;  %v7242_v24 = vpop.f32.mrf.mxu3 }
 0x863   : > { %v7272_v18 = vadd.f32 %v7203_v13, %v7026_v5  ;;  %v7273_v1 = vadd.f32 %v7242_v24, %v7027_v46  ;;  %v7433_v13 = vpop.f32.mrf.mxu1  ;;  %v7472_v24 = vpop.f32.mrf.mxu0 }
 0x865   : > { %v7494_v26 = vadd.f32 %v7425_v28, %v7272_v18  ;;  %v7495_v16 = vadd.f32 %v7464_v45, %v7273_v1 }
 0x867   : > { %v7526_v30 = vrot.slane %v7494_v26, 1  ;;  %v7527_v7 = vrot.slane %v7495_v16, 1 }
 0x869   : > { %v7530_v20 = vmax.f32 %v7494_v26, %v7526_v30  ;;  %v7531_v56 = vmax.f32 %v7495_v16, %v7527_v7  ;;  %v6809_v30 = vadd.f32 %v17792_v15, %v6506_v50  ;;  %v19279_v15 = vld [vmem:[#allocation44_spill] sm:$0xff] }
 0x86a   : > { %v7206_v28 = vpop.f32.mrf.mxu2  ;;  %v7245_v45 = vpop.f32.mrf.mxu3  ;;  %v7030_v35 = vadd.f32 %v19279_v15, %v6808_v57 }
 0x86b   : > { %v7534_v44 = vrot.slane %v7530_v20, 4  ;;  %v7535_v63 = vrot.slane %v7531_v56, 4  ;;  %v7274_v5 = vadd.f32 %v7206_v28, %v7028_v34  ;;  %v7275_v46 = vadd.f32 %v7245_v45, %v7029_v40 }
 0x86c   : > { %v7031_v34 = vadd.f32 %v17740_v17, %v6809_v30  ;;  %v7581_v45 = vperm.slane %v7579_v0, 0 }
 0x86d   : > { %v7538_v18 = vmax.f32 %v7522_v47, %v7534_v44  ;;  %v7539_v1 = vmax.f32 %v7523_v42, %v7535_v63  ;;  %v7496_v26 = vadd.f32 %v7428_v12, %v7274_v5  ;;  %v7497_v16 = vadd.f32 %v7467_v9, %v7275_v46  ;;  %v7435_v44 = vpop.f32.mrf.mxu1  ;;  %v7474_v63 = vpop.f32.mrf.mxu0  ;;  %v19280_v46 = vld [vmem:[#allocation105_spill] sm:$0xff] }
 0x86e   : > { %v7032_v5 = vadd.f32 %v17754_v49, %v17804_v32  ;;  %v7582_v32 = vperm.slane %v7579_v0, 1 }
 0x86f   : > { %v7624_v41 = vrot.slane %v7496_v26, 1  ;;  %v7625_v61 = vrot.slane %v7497_v16, 1  ;;  %v7547_v48 = vadd.f32 %v7543_v29, %v7539_v1  ;;  %v7546_v3 = vadd.f32 %v7542_v33, %v7538_v18 }
 0x870   : > { %v7585_v17 = vadd.f32 %v7581_v45, %v7538_v18 }
 0x871   : > { %v7628_v7 = vmax.f32 %v7496_v26, %v7624_v41  ;;  %v7629_v54 = vmax.f32 %v7497_v16, %v7625_v61  ;;  %v17909_v20 = vmax.f32 %v7547_v48, 0.0  ;;  %v17911_v12 = vmax.f32 %v7546_v3, 0.0  ;;  %v19281_v16 = vld [vmem:[#allocation104_spill] sm:$0xff] }
 0x872   : > { %v7208_v9 = vpop.f32.mrf.mxu2  ;;  %v7247_v56 = vpop.f32.mrf.mxu3  ;;  %v7033_v26 = vadd.f32 %v19280_v46, %v17806_v60  ;;  %v6509_v23 = vadd.f32 %v19282_v62, %v19281_v16  ;;  %v7587_v18 = vmax.f32 %v7585_v17, 0.0 }
 0x873   : > { %v7632_v25 = vrot.slane %v7628_v7, 4  ;;  %v7633_v51 = vrot.slane %v7629_v54, 4  ;;  %7571 = vrot.lane.b32.xlu2 %v17909_v20, %s12315_s25  ;;  %7561 = vrot.lane.b32.xlu1 %v17911_v12, %s12316_s26  ;;  %v7276_v29 = vadd.f32 %v7208_v9, %v7030_v35  ;;  %v7277_v33 = vadd.f32 %v7247_v56, %v7031_v34  ;;  %v19283_v7 = vld [vmem:[#allocation106_spill] sm:$0xff]  ;;  %7551 = vst.msk [vmem:[#allocation3] sm:$0x1] %vm7550_vm9, %v17911_v12 }
 0x874   : > { %7553 = vrot.lane.b32.xlu0 %v17911_v12, %s12317_s27  ;;  %v6812_v49 = vadd.f32 %v17814_v37, %v6509_v23  ;;  %v7586_v9 = vadd.f32 %v7582_v32, %v7539_v1  ;;  %v19284_v37 = vld [vmem:[#allocation107_spill] sm:$0xff]  ;;  %v17946_v34 = vrot.slane %v7587_v18, 2  ;;  %7565 = vst.msk [vmem:[#allocation3 + $0x4] sm:$0x1] %vm7550_vm9, %v17909_v20 }
 0x875   : > { %v17924_v40 = vmax.f32 %v7522_v47, %v7632_v25  ;;  %v17926_v28 = vmax.f32 %v7523_v42, %v7633_v51  ;;  %v7498_v47 = vadd.f32 %v17892_v21, %v7276_v29  ;;  %v7499_v42 = vadd.f32 %v17894_v43, %v7277_v33  ;;  %v7438_v56 = vpop.f32.mrf.mxu1  ;;  %v7477_v25 = vpop.f32.mrf.mxu0 }
 0x876   : > { %v7034_v54 = vadd.f32 %v19283_v7, %v6812_v49  ;;  %v7035_v35 = vadd.f32 %v19284_v37, %v17816_v53  ;;  %v7588_v53 = vmax.f32 %v7586_v9, 0.0  ;;  %v19287_v37 = vld [vmem:[#allocation109_spill] sm:$0xff] }
 0x877   : > { %v7726_v43 = vrot.slane %v7498_v47, 1  ;;  %v7727_v3 = vrot.slane %v7499_v42, 1 }
 0x879   : > { %v7731_v0 = vmax.f32 %v7499_v42, %v7727_v3  ;;  %v19286_v3 = vld [vmem:[#allocation51_spill] sm:$0xff] }
 0x87a   : > { %v7211_v50 = vpop.f32.mrf.mxu2  ;;  %v7250_v41 = vpop.f32.mrf.mxu3 }
 0x87b   : > { %v7278_v61 = vadd.f32 %v7211_v50, %v7032_v5  ;;  %v7279_v48 = vadd.f32 %v7250_v41, %v7033_v26  ;;  %7575 = vrot.lane.b32.xlu2 %v17909_v20, %s12316_s26  ;;  %7567 = vrot.lane.b32.xlu1 %v17909_v20, %s12317_s27 }
 0x87c   : > { %7557 = vrot.lane.b32.xlu0 %v17911_v12, %s12315_s25  ;;  %v7786_v12 = vld [vmem:[%s18602_s4] sm:$0x3] }
 0x87d   : > { %v7500_v60 = vadd.f32 %v7433_v13, %v7278_v61  ;;  %v7501_v21 = vadd.f32 %v7472_v24, %v7279_v48  ;;  %v7638_v13 = vld [vmem:[%s18602_s4] sm:$0x3]  ;;  %v7730_v24 = vmax.f32 %v7498_v47, %v7726_v43  ;;  %v17961_v61 = vrot.slane %v7588_v53, 2 }
 0x87e   : > { %v7640_v26 = vperm.slane %v7638_v13, 0  ;;  %v7641_v9 = vperm.slane %v7638_v13, 1 }
 0x87f   : > { %v7734_v57 = vrot.slane %v7500_v60, 1  ;;  %v7735_v30 = vrot.slane %v7501_v21, 1 }
 0x880   : > { %v7644_v48 = vadd.f32 %v7640_v26, %v17924_v40 }
 0x881   : > { %v7738_v51 = vmax.f32 %v7500_v60, %v7734_v57  ;;  %v7739_v15 = vmax.f32 %v7501_v21, %v7735_v30  ;;  %v7440_v60 = vpop.f32.mrf.mxu1  ;;  %v7479_v21 = vpop.f32.mrf.mxu0  ;;  %v7037_v57 = vadd.f32 %v19286_v3, %v17830_v55  ;;  %v7645_v55 = vadd.f32 %v7641_v9, %v17926_v28 }
 0x882   : > { %v7213_v45 = vpop.f32.mrf.mxu2  ;;  %v7252_v29 = vpop.f32.mrf.mxu3 }
 0x883   : > { %v7742_v33 = vrot.slane %v7738_v51, 4  ;;  %v7743_v5 = vrot.slane %v7739_v15, 4  ;;  %v7280_v1 = vadd.f32 %v7213_v45, %v7034_v54  ;;  %v7281_v46 = vadd.f32 %v7252_v29, %v7035_v35  ;;  %7602 = vrot.lane.b32.xlu2 %v17946_v34, %s12315_s25  ;;  %7598 = vrot.lane.b32.xlu1 %v17946_v34, %s12317_s27  ;;  %v19288_v45 = vld [vmem:[#allocation110_spill] sm:$0xff] }
 0x884   : > { %7591 = vrot.lane.b32.xlu0 %v17946_v34, %s12316_s26  ;;  %v7646_v54 = vmax.f32 %v7644_v48, 0.0  ;;  %v7038_v35 = vadd.f32 %v19287_v37, %v17840_v36 }
 0x885   : > { %v17957_v17 = vmax.f32 %v7730_v24, %v7742_v33  ;;  %v17959_v16 = vmax.f32 %v7731_v0, %v7743_v5  ;;  %v7502_v62 = vadd.f32 %v7435_v44, %v7280_v1  ;;  %v7503_v23 = vadd.f32 %v7474_v63, %v7281_v46  ;;  %v19285_v44 = vld [vmem:[#allocation108_spill] sm:$0xff] }
 0x886   : > { %v7036_v63 = vadd.f32 %v19285_v44, %v17828_v10  ;;  %v7039_v10 = vadd.f32 %v19288_v45, %v17842_v58  ;;  %v17982_v29 = vrot.slane %v7646_v54, 4  ;;  %v7748_v45 = vld [vmem:[%s18602_s4] sm:$0x3] }
 0x887   : > { %v7830_v47 = vrot.slane %v7502_v62, 1  ;;  %v7831_v42 = vrot.slane %v7503_v23, 1 }
 0x889   : > { %v7834_v50 = vmax.f32 %v7502_v62, %v7830_v47  ;;  %v7835_v41 = vmax.f32 %v7503_v23, %v7831_v42  ;;  %v7443_v58 = vpop.f32.mrf.mxu1  ;;  %v7482_v53 = vpop.f32.mrf.mxu0 }
 0x88a   : > { %v7216_v49 = vpop.f32.mrf.mxu2  ;;  %v7255_v32 = vpop.f32.mrf.mxu3 }
 0x88b   : > { %v7838_v18 = vrot.slane %v7834_v50, 4  ;;  %v7839_v43 = vrot.slane %v7835_v41, 4  ;;  %7618 = vrot.lane.b32.xlu2 %v17961_v61, %s12315_s25  ;;  %7614 = vrot.lane.b32.xlu1 %v17961_v61, %s12317_s27  ;;  %v7282_v51 = vadd.f32 %v7216_v49, %v7036_v63  ;;  %v7283_v15 = vadd.f32 %v7255_v32, %v7037_v57 }
 0x88c   : > { %7608 = vrot.lane.b32.xlu0 %v17961_v61, %s12316_s26  ;;  %v7040_v50 = vadd.f32 %v17808_v4, %v17852_v8  ;;  %v7041_v32 = vadd.f32 %v17810_v59, %v17854_v2 }
 0x88d   : > { %v17974_v30 = vmax.f32 %v7730_v24, %v7838_v18  ;;  %v17976_v7 = vmax.f32 %v7731_v0, %v7839_v43  ;;  %v7681_v24 = vld [vmem:[%s18602_s4] sm:$0x3]  ;;  %v7504_v0 = vadd.f32 %v7438_v56, %v7282_v51  ;;  %v7505_v33 = vadd.f32 %v7477_v25, %v7283_v15 }
 0x88e   : > { %v7683_v36 = vperm.slane %v7681_v24, 0  ;;  %v7647_v56 = vmax.f32 %v7645_v55, 0.0  ;;  %v7684_v59 = vperm.slane %v7681_v24, 1 }
 0x88f   : > { %v7930_v25 = vrot.slane %v7504_v0, 1  ;;  %v7931_v23 = vrot.slane %v7505_v33, 1 }
 0x890   : > { %v7687_v41 = vadd.f32 %v7683_v36, %v17924_v40  ;;  %v17999_v18 = vrot.slane %v7647_v56, 4  ;;  %v7688_v24 = vadd.f32 %v7684_v59, %v17926_v28  ;;  %v19289_v36 = vld [vmem:[#allocation111_spill] sm:$0xff]  ;;  %v7751_v28 = vperm.slane %v7748_v45, 1 }
 0x891   : > { %v7934_v43 = vmax.f32 %v7504_v0, %v7930_v25  ;;  %v7445_v51 = vpop.f32.mrf.mxu1  ;;  %v7484_v15 = vpop.f32.mrf.mxu0 }
 0x892   : > { %v7218_v5 = vpop.f32.mrf.mxu2  ;;  %v7257_v13 = vpop.f32.mrf.mxu3  ;;  %v7689_v4 = vmax.f32 %v7687_v41, 0.0  ;;  %v7690_v25 = vmax.f32 %v7688_v24, 0.0 }
 0x893   : > { %v7284_v1 = vadd.f32 %v7218_v5, %v7038_v35  ;;  %v7285_v46 = vadd.f32 %v7257_v13, %v7039_v10  ;;  %7661 = vrot.lane.b32.xlu2 %v17982_v29, %s12317_s27  ;;  %7655 = vrot.lane.b32.xlu1 %v17982_v29, %s12316_s26 }
 0x894   : > { %7650 = vrot.lane.b32.xlu0 %v17982_v29, %s12315_s25  ;;  %v18014_v0 = vrot.slane %v7689_v4, 6 }
 0x895   : > { %v7506_v26 = vadd.f32 %v7440_v60, %v7284_v1  ;;  %v7507_v62 = vadd.f32 %v7479_v21, %v7285_v46  ;;  %v7935_v60 = vmax.f32 %v7505_v33, %v7931_v23  ;;  %v7750_v46 = vperm.slane %v7748_v45, 0 }
 0x897   : > { %v7938_v47 = vrot.slane %v7506_v26, 1  ;;  %v7939_v42 = vrot.slane %v7507_v62, 1 }
 0x899   : > { %v7942_v48 = vmax.f32 %v7506_v26, %v7938_v47  ;;  %v7943_v49 = vmax.f32 %v7507_v62, %v7939_v42  ;;  %v7754_v42 = vadd.f32 %v7750_v46, %v17957_v17  ;;  %v7448_v41 = vpop.f32.mrf.mxu1 }
 0x89a   : > { %v7221_v21 = vpop.f32.mrf.mxu2  ;;  %v7260_v44 = vpop.f32.mrf.mxu3 }
 0x89b   : > { %v7946_v63 = vrot.slane %v7942_v48, 4  ;;  %v7947_v3 = vrot.slane %v7943_v49, 4  ;;  %v7286_v57 = vadd.f32 %v7221_v21, %v7040_v50  ;;  %v7287_v54 = vadd.f32 %v7260_v44, %v7041_v32  ;;  %7677 = vrot.lane.b32.xlu2 %v17999_v18, %s12317_s27  ;;  %7671 = vrot.lane.b32.xlu1 %v17999_v18, %s12316_s26 }
 0x89c   : > { %7667 = vrot.lane.b32.xlu0 %v17999_v18, %s12315_s25  ;;  %v7755_v50 = vadd.f32 %v7751_v28, %v17959_v16  ;;  %v7045_v48 = vadd.f32 %v17834_v19, %v17870_v31  ;;  %v18037_v49 = vrot.slane %v7690_v25, 6 }
 0x89d   : > { %v18007_v8 = vmax.f32 %v7934_v43, %v7946_v63  ;;  %v18009_v2 = vmax.f32 %v7935_v60, %v7947_v3  ;;  %v7508_v40 = vadd.f32 %v7443_v58, %v7286_v57  ;;  %v7509_v9 = vadd.f32 %v7482_v53, %v7287_v54  ;;  %v19290_v53 = vld [vmem:[#allocation112_spill] sm:$0xff] }
 0x89e   : > { %v7042_v58 = vadd.f32 %v19289_v36, %v17860_v14  ;;  %v7043_v26 = vadd.f32 %v19290_v53, %v17862_v22  ;;  %v7487_v14 = vpop.f32.mrf.mxu0  ;;  %v7044_v22 = vadd.f32 %v17832_v27, %v17868_v11  ;;  %v7756_v3 = vmax.f32 %v7754_v42, 0.0 }
 0x89f   : > { %v8034_v37 = vrot.slane %v7508_v40, 1  ;;  %v8035_v35 = vrot.slane %v7509_v9, 1  ;;  %v7757_v27 = vmax.f32 %v7755_v50, 0.0  ;;  %v7789_v42 = vperm.slane %v7786_v12, 1 }
 0x8a0   : > { %7758 = vst.msk [vmem:[#allocation3 + $0x8] sm:$0x1] %vm7550_vm9, %v7756_v3 }
 0x8a1   : > { %v8038_v10 = vmax.f32 %v7508_v40, %v8034_v37  ;;  %v8039_v55 = vmax.f32 %v7509_v9, %v8035_v35  ;;  %7772 = vst.msk [vmem:[#allocation3 + $0xc] sm:$0x1] %vm7550_vm9, %v7757_v27  ;;  %v7046_v9 = vadd.f32 %v17848_v52, %v17876_v38  ;;  %v7450_v52 = vpop.f32.mrf.mxu1 }
 0x8a2   : > { %v7223_v33 = vpop.f32.mrf.mxu2  ;;  %v7262_v5 = vpop.f32.mrf.mxu3 }
 0x8a3   : > { %v8042_v13 = vrot.slane %v8038_v10, 4  ;;  %v8043_v1 = vrot.slane %v8039_v55, 4  ;;  %7702 = vrot.lane.b32.xlu2 %v18014_v0, %s12316_s26  ;;  %7698 = vrot.lane.b32.xlu1 %v18014_v0, %s12315_s25  ;;  %v7288_v23 = vadd.f32 %v7223_v33, %v7042_v58  ;;  %v7289_v47 = vadd.f32 %v7262_v5, %v7043_v26 }
 0x8a4   : > { %7693 = vrot.lane.b32.xlu0 %v18014_v0, %s12317_s27 }
 0x8a5   : > { %v18027_v62 = vmax.f32 %v7934_v43, %v8042_v13  ;;  %v18029_v56 = vmax.f32 %v7935_v60, %v8043_v1  ;;  %v7510_v32 = vadd.f32 %v7445_v51, %v7288_v23  ;;  %v7511_v43 = vadd.f32 %v7484_v15, %v7289_v47 }
 0x8a6   : > { %v7047_v51 = vadd.f32 %v17850_v39, %v17878_v6  ;;  %v7489_v38 = vpop.f32.mrf.mxu0  ;;  %v7788_v39 = vperm.slane %v7786_v12, 0 }
 0x8a7   : > { %v8134_v31 = vrot.slane %v7510_v32, 1  ;;  %v8135_v57 = vrot.slane %v7511_v43, 1 }
 0x8a8   : > { %v7792_v53 = vadd.f32 %v7788_v39, %v17957_v17  ;;  %v7844_v17 = vld [vmem:[%s18602_s4] sm:$0x3] }
 0x8a9   : > { %v8138_v15 = vmax.f32 %v7510_v32, %v8134_v31  ;;  %v8139_v20 = vmax.f32 %v7511_v43, %v8135_v57 }
 0x8aa   : > { %v7226_v60 = vpop.f32.mrf.mxu2  ;;  %v7265_v21 = vpop.f32.mrf.mxu3  ;;  %v7794_v47 = vmax.f32 %v7792_v53, 0.0 }
 0x8ab   : > { %v7290_v44 = vadd.f32 %v7226_v60, %v7044_v22  ;;  %v7291_v63 = vadd.f32 %v7265_v21, %v7045_v48  ;;  %7718 = vrot.lane.b32.xlu2 %v18037_v49, %s12316_s26  ;;  %7714 = vrot.lane.b32.xlu1 %v18037_v49, %s12315_s25  ;;  %v7846_v22 = vperm.slane %v7844_v17, 0  ;;  %v7847_v60 = vperm.slane %v7844_v17, 1 }
 0x8ac   : > { %7710 = vrot.lane.b32.xlu0 %v18037_v49, %s12317_s27  ;;  %v18073_v50 = vrot.slane %v7794_v47, 2 }
 0x8ad   : > { %v7512_v19 = vadd.f32 %v7448_v41, %v7290_v44  ;;  %v7513_v11 = vadd.f32 %v7487_v14, %v7291_v63  ;;  %v7793_v41 = vadd.f32 %v7789_v42, %v17959_v16  ;;  %v7850_v32 = vadd.f32 %v7846_v22, %v17974_v30  ;;  %v7886_v63 = vld [vmem:[%s18602_s4] sm:$0x3] }
 0x8ae   : > { %v7851_v44 = vadd.f32 %v7847_v60, %v17976_v7  ;;  %v7888_v31 = vperm.slane %v7886_v63, 0 }
 0x8af   : > { %v8142_v54 = vrot.slane %v7512_v19, 1  ;;  %v8143_v4 = vrot.slane %v7513_v11, 1  ;;  %v7795_v14 = vmax.f32 %v7793_v41, 0.0  ;;  %v7852_v43 = vmax.f32 %v7850_v32, 0.0  ;;  %v11962_v32 = vld [vmem:[%s18603_s5 + $0x8] sm:$0xff] }
 0x8b1   : > { %v8146_v59 = vmax.f32 %v7512_v19, %v8142_v54  ;;  %v8147_v40 = vmax.f32 %v7513_v11, %v8143_v4  ;;  %v18085_v48 = vrot.slane %v7795_v14, 2  ;;  %v18095_v21 = vrot.slane %v7852_v43, 4 }
 0x8b2   : > { %v7228_v37 = vpop.f32.mrf.mxu2  ;;  %v7267_v35 = vpop.f32.mrf.mxu3  ;;  %v7853_v11 = vmax.f32 %v7851_v44, 0.0 }
 0x8b3   : > { %v8150_v45 = vrot.slane %v8146_v59, 4  ;;  %v8151_v10 = vrot.slane %v8147_v40, 4  ;;  %v7292_v55 = vadd.f32 %v7228_v37, %v7046_v9  ;;  %v7293_v24 = vadd.f32 %v7267_v35, %v7047_v51  ;;  %7768 = vrot.lane.b32.xlu2 %v7756_v3, %s12316_s26  ;;  %7764 = vrot.lane.b32.xlu1 %v7756_v3, %s12315_s25 }
 0x8b4   : > { %7760 = vrot.lane.b32.xlu0 %v7756_v3, %s12317_s27  ;;  %v7952_v3 = vld [vmem:[%s18602_s4] sm:$0x3]  ;;  %v18112_v4 = vrot.slane %v7853_v11, 4  ;;  %v7892_v59 = vadd.f32 %v7888_v31, %v17974_v30 }
 0x8b5   : > { %v18061_v6 = vmax.f32 %v8138_v15, %v8150_v45  ;;  %v18063_v33 = vmax.f32 %v8139_v20, %v8151_v10  ;;  %v7514_v5 = vadd.f32 %v7450_v52, %v7292_v55  ;;  %v7515_v13 = vadd.f32 %v7489_v38, %v7293_v24  ;;  %v11967_v52 = vld [vmem:[%s18603_s5 + $0x30] sm:$0xff] }
 0x8b6   : > { %v7955_v40 = vperm.slane %v7952_v3, 1  ;;  %v7894_v12 = vmax.f32 %v7892_v59, 0.0 }
 0x8b7   : > { %v8238_v1 = vrot.slane %v7514_v5, 1  ;;  %v8239_v46 = vrot.slane %v7515_v13, 1 }
 0x8b8   : > { %v7959_v9 = vadd.f32 %v7955_v40, %v18009_v2  ;;  %v18124_v30 = vrot.slane %v7894_v12, 6 }
 0x8b9   : > { %v8242_v36 = vmax.f32 %v7514_v5, %v8238_v1  ;;  %v8243_v58 = vmax.f32 %v7515_v13, %v8239_v46  ;;  %v7990_v13 = vld [vmem:[%s18602_s4] sm:$0x3] }
 0x8ba   : > { %v7993_v42 = vperm.slane %v7990_v13, 1 }
 0x8bb   : > { %v8246_v26 = vrot.slane %v8242_v36, 4  ;;  %v8247_v28 = vrot.slane %v8243_v58, 4  ;;  %7782 = vrot.lane.b32.xlu2 %v7757_v27, %s12316_s26  ;;  %7778 = vrot.lane.b32.xlu1 %v7757_v27, %s12315_s25  ;;  %v7992_v36 = vperm.slane %v7990_v13, 0  ;;  %v11964_v58 = vld [vmem:[%s18603_s5 + $0x18] sm:$0xff] }
 0x8bc   : > { %7774 = vrot.lane.b32.xlu0 %v7757_v27, %s12317_s27  ;;  %v7954_v27 = vperm.slane %v7952_v3, 0  ;;  %v7997_v43 = vadd.f32 %v7993_v42, %v18009_v2  ;;  %v11961_v2 = vld [vmem:[%s18603_s5] sm:$0xff] }
 0x8bd   : > { %v18069_v25 = vmax.f32 %v8138_v15, %v8246_v26  ;;  %v18071_v23 = vmax.f32 %v8139_v20, %v8247_v28  ;;  %v7889_v15 = vperm.slane %v7886_v63, 1  ;;  %v7961_v20 = vmax.f32 %v7959_v9, 0.0  ;;  %v8156_v26 = vld [vmem:[%s18602_s4] sm:$0x3] }
 0x8be   : > { %v7958_v57 = vadd.f32 %v7954_v27, %v18007_v8  ;;  %v7996_v53 = vadd.f32 %v7992_v36, %v18007_v8  ;;  %v8159_v41 = vperm.slane %v8156_v26, 1  ;;  %v7999_v27 = vmax.f32 %v7997_v43, 0.0  ;;  %v8194_v42 = vld [vmem:[%s18602_s4] sm:$0x3] }
 0x8bf   : > { %7976 = vst.msk [vmem:[#allocation3 + $0x14] sm:$0x1] %vm7550_vm9, %v7961_v20  ;;  %v7893_v37 = vadd.f32 %v7889_v15, %v17976_v7  ;;  %v11968_v7 = vld [vmem:[%s18603_s5 + $0x38] sm:$0xff] }
 0x8c0   : > { %v7960_v54 = vmax.f32 %v7958_v57, 0.0  ;;  %8604 = vmatpush.bf16.msrb.mxu2 %v11968_v7  ;;  %v7998_v47 = vmax.f32 %v7996_v53, 0.0  ;;  %v8163_v22 = vadd.f32 %v8159_v41, %v18063_v33  ;;  %v18228_v31 = vrot.slane %v7999_v27, 2 }
 0x8c1   : > { %v7895_v10 = vmax.f32 %v7893_v37, 0.0  ;;  %v8196_v41 = vperm.slane %v8194_v42, 0 }
 0x8c2   : > { %7962 = vst.msk [vmem:[#allocation3 + $0x10] sm:$0x1] %vm7550_vm9, %v7960_v54  ;;  %v18207_v44 = vmax.f32 %v8163_v22, 0.0 }
 0x8c3   : > { %7808 = vrot.lane.b32.xlu2 %v18073_v50, %s12315_s25  ;;  %7804 = vrot.lane.b32.xlu1 %v18073_v50, %s12317_s27  ;;  %v18140_v24 = vrot.slane %v7895_v10, 6  ;;  %v8200_v22 = vadd.f32 %v8196_v41, %v18061_v6 }
 0x8c4   : > { %7798 = vrot.lane.b32.xlu0 %v18073_v50, %s12316_s26  ;;  %8605 = vmatpush.bf16.msrb.mxu2 %v11967_v52  ;;  %8180 = vst.msk [vmem:[#allocation3 + $0x1c] sm:$0x1] %vm7550_vm9, %v18207_v44 }
 0x8cb   : > { %7824 = vrot.lane.b32.xlu2 %v18085_v48, %s12315_s25  ;;  %7820 = vrot.lane.b32.xlu1 %v18085_v48, %s12317_s27 }
 0x8cc   : > { %7814 = vrot.lane.b32.xlu0 %v18085_v48, %s12316_s26 }
 0x8cd   : > { %v7572_v16 = vpop.permute.xlu2 %7571 }
 0x8ce   : > { %7574 = vst.msk [vmem:[#allocation3 + $0x6] sm:$0x1] %vm7550_vm9, %v7572_v16  ;;  %v18202_v16 = vrot.slane %v7998_v47, 2  ;;  %v11974_v47 = vld [vmem:[%s18603_s5 + $0x68] sm:$0xff] }
 0x8d3   : > { %7866 = vrot.lane.b32.xlu2 %v18095_v21, %s12317_s27  ;;  %7860 = vrot.lane.b32.xlu1 %v18095_v21, %s12316_s26 }
 0x8d4   : > { %7856 = vrot.lane.b32.xlu0 %v18095_v21, %s12315_s25 }
 0x8d5   : > { %v7576_v19 = vpop.permute.xlu2 %7575 }
 0x8d6   : > { %7578 = vst.msk [vmem:[#allocation3 + $0x7] sm:$0x1] %vm7550_vm9, %v7576_v19 }
 0x8db   : > { %7882 = vrot.lane.b32.xlu2 %v18112_v4, %s12317_s27  ;;  %7876 = vrot.lane.b32.xlu1 %v18112_v4, %s12316_s26 }
 0x8dc   : > { %7872 = vrot.lane.b32.xlu0 %v18112_v4, %s12315_s25 }
 0x8dd   : > { %v7603_v51 = vpop.permute.xlu2 %7602 }
 0x8e3   : > { %7906 = vrot.lane.b32.xlu2 %v18124_v30, %s12316_s26  ;;  %7902 = vrot.lane.b32.xlu1 %v18124_v30, %s12315_s25 }
 0x8e4   : > { %7898 = vrot.lane.b32.xlu0 %v18124_v30, %s12317_s27 }
 0x8e5   : > { %v7619_v35 = vpop.permute.xlu2 %7618  ;;  %v7562_v45 = vpop.permute.xlu1 %7561 }
 0x8e6   : > { %7621 = vst.msk [vmem:[#allocation3 + $0x7] sm:$0x1] %vm7594_vm10, %v7619_v35  ;;  %v7554_v55 = vpop.permute.xlu0 %7553 }
 0x8e7   : > { %7564 = vst.msk [vmem:[#allocation3 + $0x3] sm:$0x1] %vm7550_vm9, %v7562_v45 }
 0x8e8   : > { %7605 = vst.msk [vmem:[#allocation3 + $0x3] sm:$0x1] %vm7594_vm10, %v7603_v51 }
 0x8e9   : > { %7556 = vst.msk [vmem:[#allocation3 + $0x1] sm:$0x1] %vm7550_vm9, %v7554_v55 }
 0x8ea   : > { %7597 = vst.msk [vmem:[#allocation3 + $0x1] sm:$0x1] %vm7594_vm10, %v17946_v34  ;;  %v11966_v34 = vld [vmem:[%s18603_s5 + $0x28] sm:$0xff] }
 0x8eb   : > { %7922 = vrot.lane.b32.xlu2 %v18140_v24, %s12316_s26  ;;  %7918 = vrot.lane.b32.xlu1 %v18140_v24, %s12315_s25 }
 0x8ec   : > { %7914 = vrot.lane.b32.xlu0 %v18140_v24, %s12317_s27  ;;  %8606 = vmatpush.bf16.msrb.mxu2 %v11966_v34 }
 0x8ed   : > { %v7568_v38 = vpop.permute.xlu1 %7567  ;;  %v7662_v39 = vpop.permute.xlu2 %7661 }
 0x8ee   : > { %7570 = vst.msk [vmem:[#allocation3 + $0x5] sm:$0x1] %vm7550_vm9, %v7568_v38  ;;  %v7558_v5 = vpop.permute.xlu0 %7557 }
 0x8ef   : > { %7613 = vst.msk [vmem:[#allocation3 + $0x5] sm:$0x1] %vm7594_vm10, %v17961_v61  ;;  %v11965_v61 = vld [vmem:[%s18603_s5 + $0x20] sm:$0xff] }
 0x8f0   : > { %7560 = vst.msk [vmem:[#allocation3 + $0x2] sm:$0x1] %vm7550_vm9, %v7558_v5  ;;  %8607 = vmatpush.bf16.msrb.mxu2 %v11965_v61 }
 0x8f1   : > { %7664 = vst.msk [vmem:[#allocation3 + $0x3] sm:$0x1] %vm7653_vm11, %v7662_v39 }
 0x8f2   : > { %7707 = vst.msk [vmem:[#allocation3 + $0x3] sm:$0x1] %vm7696_vm12, %v18014_v0 }
 0x8f3   : > { %7972 = vrot.lane.b32.xlu2 %v7960_v54, %s12316_s26  ;;  %7968 = vrot.lane.b32.xlu1 %v7960_v54, %s12315_s25 }
 0x8f4   : > { %7964 = vrot.lane.b32.xlu0 %v7960_v54, %s12317_s27  ;;  %8608 = vmatpush.bf16.msrb.mxu2 %v11964_v58 }
 0x8f5   : > { %v7599_v1 = vpop.permute.xlu1 %7598  ;;  %v7678_v46 = vpop.permute.xlu2 %7677 }
 0x8f6   : > { %7601 = vst.msk [vmem:[#allocation3 + $0x2] sm:$0x1] %vm7594_vm10, %v7599_v1  ;;  %v7592_v0 = vpop.permute.xlu0 %7591 }
 0x8f7   : > { %7660 = vst.msk [vmem:[#allocation3 + $0x2] sm:$0x1] %vm7653_vm11, %v17982_v29  ;;  %v11963_v29 = vld [vmem:[%s18603_s5 + $0x10] sm:$0xff] }
 0x8f8   : > { %7595 = vst.msk [vmem:[#allocation3] sm:$0x1] %vm7594_vm10, %v7592_v0  ;;  %8609 = vmatpush.bf16.msrb.mxu2 %v11963_v29 }
 0x8f9   : > { %7680 = vst.msk [vmem:[#allocation3 + $0x7] sm:$0x1] %vm7653_vm11, %v7678_v46 }
 0x8fa   : > { %7723 = vst.msk [vmem:[#allocation3 + $0x7] sm:$0x1] %vm7696_vm12, %v18037_v49  ;;  %v8158_v49 = vperm.slane %v8156_v26, 0  ;;  %v11975_v26 = vld [vmem:[%s18603_s5 + $0x70] sm:$0xff] }
 0x8fb   : > { %7986 = vrot.lane.b32.xlu2 %v7961_v20, %s12316_s26  ;;  %7982 = vrot.lane.b32.xlu1 %v7961_v20, %s12315_s25 }
 0x8fc   : > { %7978 = vrot.lane.b32.xlu0 %v7961_v20, %s12317_s27  ;;  %v8162_v14 = vadd.f32 %v8158_v49, %v18061_v6  ;;  %8610 = vmatpush.bf16.msrb.mxu2 %v11962_v32  ;;  %v8090_v20 = vld [vmem:[%s18602_s4] sm:$0x3]  ;;  %v8202_v6 = vmax.f32 %v8200_v22, 0.0 }
 0x8fd   : > { %v7615_v28 = vpop.permute.xlu1 %7614  ;;  %v7703_v8 = vpop.permute.xlu2 %7702  ;;  %v8092_v10 = vperm.slane %v8090_v20, 0  ;;  %v8093_v34 = vperm.slane %v8090_v20, 1 }
 0x8fe   : > { %7617 = vst.msk [vmem:[#allocation3 + $0x6] sm:$0x1] %vm7594_vm10, %v7615_v28  ;;  %v7609_v17 = vpop.permute.xlu0 %7608  ;;  %v18205_v60 = vmax.f32 %v8162_v14, 0.0  ;;  %v11972_v14 = vld [vmem:[%s18603_s5 + $0x58] sm:$0xff] }
 0x8ff   : > { %7676 = vst.msk [vmem:[#allocation3 + $0x6] sm:$0x1] %vm7653_vm11, %v17999_v18  ;;  %v8048_v18 = vld [vmem:[%s18602_s4] sm:$0x3]  ;;  %v8096_v52 = vadd.f32 %v8092_v10, %v18027_v62  ;;  %v8097_v61 = vadd.f32 %v8093_v34, %v18029_v56 }
 0x900   : > { %7611 = vst.msk [vmem:[#allocation3 + $0x4] sm:$0x1] %vm7594_vm10, %v7609_v17  ;;  %v8050_v19 = vperm.slane %v8048_v18, 0  ;;  %8611 = vmatpush.bf16.msrb.mxu2 %v11961_v2  ;;  %v8051_v9 = vperm.slane %v8048_v18, 1  ;;  %v18345_v18 = vrot.slane %v8202_v6, 2 }
 0x901   : > { %7705 = vst.msk [vmem:[#allocation3 + $0x2] sm:$0x1] %vm7696_vm12, %v7703_v8  ;;  %v8098_v5 = vmax.f32 %v8096_v52, 0.0  ;;  %v8099_v36 = vmax.f32 %v8097_v61, 0.0 }
 0x902   : > { %8166 = vst.msk [vmem:[#allocation3 + $0x18] sm:$0x1] %vm7550_vm9, %v18205_v60  ;;  %v8054_v57 = vadd.f32 %v8050_v19, %v18027_v62  ;;  %v8055_v15 = vadd.f32 %v8051_v9, %v18029_v56  ;;  %v11976_v56 = vld [vmem:[%s18603_s5 + $0x78] sm:$0xff] }
 0x903   : > { %8012 = vrot.lane.b32.xlu2 %v18202_v16, %s12315_s25  ;;  %8008 = vrot.lane.b32.xlu1 %v18202_v16, %s12317_s27  ;;  %v18267_v62 = vrot.slane %v8098_v5, 6  ;;  %v18284_v29 = vrot.slane %v8099_v36, 6 }
 0x904   : > { %8002 = vrot.lane.b32.xlu0 %v18202_v16, %s12316_s26  ;;  %v8056_v40 = vmax.f32 %v8054_v57, 0.0  ;;  %v8057_v45 = vmax.f32 %v8055_v15, 0.0  ;;  %8617 = vmatpush.bf16.msrb.mxu3 %v11976_v56 }
 0x905   : > { %v7719_v63 = vpop.permute.xlu2 %7718  ;;  %v7656_v3 = vpop.permute.xlu1 %7655 }
 0x906   : > { %7721 = vst.msk [vmem:[#allocation3 + $0x6] sm:$0x1] %vm7696_vm12, %v7719_v63  ;;  %v7651_v11 = vpop.permute.xlu0 %7650  ;;  %v18240_v12 = vrot.slane %v8056_v40, 4  ;;  %v18255_v7 = vrot.slane %v8057_v45, 4  ;;  %v8252_v63 = vld [vmem:[%s18602_s4] sm:$0x3] }
 0x907   : > { %7658 = vst.msk [vmem:[#allocation3 + $0x1] sm:$0x1] %vm7653_vm11, %v7656_v3  ;;  %v8254_v19 = vperm.slane %v8252_v63, 0 }
 0x908   : > { %7654 = vst.msk [vmem:[#allocation3] sm:$0x1] %vm7653_vm11, %v7651_v11  ;;  %8618 = vmatpush.bf16.msrb.mxu3 %v11975_v26 }
 0x90b   : > { %8028 = vrot.lane.b32.xlu2 %v18228_v31, %s12315_s25  ;;  %8024 = vrot.lane.b32.xlu1 %v18228_v31, %s12317_s27 }
 0x90c   : > { %8018 = vrot.lane.b32.xlu0 %v18228_v31, %s12316_s26  ;;  %8619 = vmatpush.bf16.msrb.mxu3 %v11974_v47 }
 0x90d   : > { %v7672_v54 = vpop.permute.xlu1 %7671  ;;  %v7769_v59 = vpop.permute.xlu2 %7768 }
 0x90e   : > { %7674 = vst.msk [vmem:[#allocation3 + $0x5] sm:$0x1] %vm7653_vm11, %v7672_v54  ;;  %v7668_v51 = vpop.permute.xlu0 %7667  ;;  %v8258_v54 = vadd.f32 %v8254_v19, %v18069_v25 }
 0x90f   : > { %7670 = vst.msk [vmem:[#allocation3 + $0x4] sm:$0x1] %vm7653_vm11, %v7668_v51  ;;  %v8255_v51 = vperm.slane %v8252_v63, 1 }
 0x910   : > { %7771 = vst.msk [vmem:[#allocation3 + $0xb] sm:$0x1] %vm7550_vm9, %v7769_v59  ;;  %v8260_v9 = vmax.f32 %v8258_v54, 0.0 }
 0x912   : > { %v18375_v20 = vrot.slane %v8260_v9, 4  ;;  %v11991_v9 = vld [vmem:[%s18603_s5 + $0xf0] sm:$0xff] }
 0x913   : > { %8070 = vrot.lane.b32.xlu2 %v18240_v12, %s12317_s27  ;;  %8064 = vrot.lane.b32.xlu1 %v18240_v12, %s12316_s26 }
 0x914   : > { %8060 = vrot.lane.b32.xlu0 %v18240_v12, %s12315_s25 }
 0x915   : > { %v7699_v37 = vpop.permute.xlu1 %7698  ;;  %v7783_v35 = vpop.permute.xlu2 %7782 }
 0x916   : > { %7701 = vst.msk [vmem:[#allocation3 + $0x1] sm:$0x1] %vm7696_vm12, %v7699_v37  ;;  %v7694_v55 = vpop.permute.xlu0 %7693  ;;  %v8259_v37 = vadd.f32 %v8255_v51, %v18071_v23 }
 0x917   : > { %7697 = vst.msk [vmem:[#allocation3] sm:$0x1] %vm7696_vm12, %v7694_v55 }
 0x918   : > { %7785 = vst.msk [vmem:[#allocation3 + $0xf] sm:$0x1] %vm7550_vm9, %v7783_v35  ;;  %v8294_v35 = vld [vmem:[%s18602_s4] sm:$0x3]  ;;  %v8261_v55 = vmax.f32 %v8259_v37, 0.0 }
 0x919   : > { %v8296_v52 = vperm.slane %v8294_v35, 0 }
 0x91b   : > { %8086 = vrot.lane.b32.xlu2 %v18255_v7, %s12317_s27  ;;  %8080 = vrot.lane.b32.xlu1 %v18255_v7, %s12316_s26  ;;  %v8300_v5 = vadd.f32 %v8296_v52, %v18069_v25 }
 0x91c   : > { %8076 = vrot.lane.b32.xlu0 %v18255_v7, %s12315_s25 }
 0x91d   : > { %v7715_v38 = vpop.permute.xlu1 %7714  ;;  %v7809_v39 = vpop.permute.xlu2 %7808  ;;  %v8302_v61 = vmax.f32 %v8300_v5, 0.0  ;;  %v11987_v5 = vld [vmem:[%s18603_s5 + $0xd0] sm:$0xff] }
 0x91e   : > { %7717 = vst.msk [vmem:[#allocation3 + $0x5] sm:$0x1] %vm7696_vm12, %v7715_v38  ;;  %v7711_v13 = vpop.permute.xlu0 %7710 }
 0x91f   : > { %7713 = vst.msk [vmem:[#allocation3 + $0x4] sm:$0x1] %vm7696_vm12, %v7711_v13  ;;  %v18402_v25 = vrot.slane %v8302_v61, 6  ;;  %v11986_v61 = vld [vmem:[%s18603_s5 + $0xc8] sm:$0xff] }
 0x920   : > { %7811 = vst.msk [vmem:[#allocation3 + $0xb] sm:$0x1] %vm7594_vm10, %v7809_v39  ;;  %v18390_v39 = vrot.slane %v8261_v55, 4 }
 0x923   : > { %8110 = vrot.lane.b32.xlu2 %v18267_v62, %s12316_s26  ;;  %8106 = vrot.lane.b32.xlu1 %v18267_v62, %s12315_s25 }
 0x924   : > { %8102 = vrot.lane.b32.xlu0 %v18267_v62, %s12317_s27 }
 0x925   : > { %v7825_v1 = vpop.permute.xlu2 %7824  ;;  %v7765_v46 = vpop.permute.xlu1 %7764 }
 0x926   : > { %7827 = vst.msk [vmem:[#allocation3 + $0xf] sm:$0x1] %vm7594_vm10, %v7825_v1  ;;  %v7761_v0 = vpop.permute.xlu0 %7760  ;;  %v8336_v58 = vld [vmem:[#allocation3] sm:$0xff]  ;;  %v8297_v1 = vperm.slane %v8294_v35, 1 }
 0x927   : > { %7767 = vst.msk [vmem:[#allocation3 + $0xa] sm:$0x1] %vm7550_vm9, %v7765_v46  ;;  %v8340_v53 = vpack.c.bf16 %v8336_v58, %v8336_v58 }
 0x928   : > { %7763 = vst.msk [vmem:[#allocation3 + $0x9] sm:$0x1] %vm7550_vm9, %v7761_v0  ;;  %v8301_v36 = vadd.f32 %v8297_v1, %v18071_v23  ;;  %v11984_v23 = vld [vmem:[%s18603_s5 + $0xb8] sm:$0xff]  ;;  %v11985_v1 = vld [vmem:[%s18603_s5 + $0xc0] sm:$0xff] }
 0x929   : > { %7803 = vst.msk [vmem:[#allocation3 + $0x9] sm:$0x1] %vm7594_vm10, %v18073_v50  ;;  %8612 = vmatmul.bf16.vlgmr.msrb.gmra.mxu2 %v8340_v53 }
 0x92a   : > { %v8303_v53 = vmax.f32 %v8301_v36, 0.0  ;;  %8630 = vmatpush.bf16.msra.mxu2 %v11984_v23  ;;  %v12220_v23 = vld [vmem:[%s18604_s6] ss:$0 sm:$0xff] }
 0x92b   : > { %8126 = vrot.lane.b32.xlu2 %v18284_v29, %s12316_s26  ;;  %8122 = vrot.lane.b32.xlu1 %v18284_v29, %s12315_s25 }
 0x92c   : > { %8118 = vrot.lane.b32.xlu0 %v18284_v29, %s12317_s27 }
 0x92d   : > { %v7779_v28 = vpop.permute.xlu1 %7778  ;;  %v7867_v8 = vpop.permute.xlu2 %7866 }
 0x92e   : > { %7781 = vst.msk [vmem:[#allocation3 + $0xe] sm:$0x1] %vm7550_vm9, %v7779_v28  ;;  %v7775_v50 = vpop.permute.xlu0 %7774 }
 0x92f   : > { %7777 = vst.msk [vmem:[#allocation3 + $0xd] sm:$0x1] %vm7550_vm9, %v7775_v50  ;;  %v11983_v50 = vld [vmem:[%s18603_s5 + $0xb0] sm:$0xff] }
 0x930   : > { %7819 = vst.msk [vmem:[#allocation3 + $0xd] sm:$0x1] %vm7594_vm10, %v18085_v48  ;;  %v11973_v48 = vld [vmem:[%s18603_s5 + $0x60] sm:$0xff]  ;;  %8631 = vmatpush.bf16.msra.mxu2 %v11983_v50 }
 0x931   : > { %7869 = vst.msk [vmem:[#allocation3 + $0xb] sm:$0x1] %vm7653_vm11, %v7867_v8  ;;  %8620 = vmatpush.bf16.msrb.mxu3 %v11973_v48  ;;  %v18419_v8 = vrot.slane %v8303_v53, 6  ;;  %v11982_v48 = vld [vmem:[%s18603_s5 + $0xa8] sm:$0xff] }
 0x932   : > { %7911 = vst.msk [vmem:[#allocation3 + $0xb] sm:$0x1] %vm7696_vm12, %v18124_v30 }
 0x933   : > { %8176 = vrot.lane.b32.xlu2 %v18205_v60, %s12316_s26  ;;  %8172 = vrot.lane.b32.xlu1 %v18205_v60, %s12315_s25 }
 0x934   : > { %8168 = vrot.lane.b32.xlu0 %v18205_v60, %s12317_s27  ;;  %v8197_v60 = vperm.slane %v8194_v42, 1  ;;  %8632 = vmatpush.bf16.msra.mxu2 %v11982_v48  ;;  %v12000_v48 = vld [vmem:[%s18605_s7 + $0x38] sm:$0xff] }
 0x935   : > { %v7805_v49 = vpop.permute.xlu1 %7804  ;;  %v7883_v30 = vpop.permute.xlu2 %7882  ;;  %8621 = vmatpush.bf16.msrb.mxu3 %v11972_v14 }
 0x936   : > { %7807 = vst.msk [vmem:[#allocation3 + $0xa] sm:$0x1] %vm7594_vm10, %v7805_v49  ;;  %v7799_v17 = vpop.permute.xlu0 %7798  ;;  %v8201_v2 = vadd.f32 %v8197_v60, %v18063_v33  ;;  %v11981_v49 = vld [vmem:[%s18603_s5 + $0xa0] sm:$0xff] }
 0x937   : > { %7865 = vst.msk [vmem:[#allocation3 + $0xa] sm:$0x1] %vm7653_vm11, %v18095_v21  ;;  %v11971_v21 = vld [vmem:[%s18603_s5 + $0x50] sm:$0xff] }
 0x938   : > { %7801 = vst.msk [vmem:[#allocation3 + $0x8] sm:$0x1] %vm7594_vm10, %v7799_v17  ;;  %v8203_v27 = vmax.f32 %v8201_v2, 0.0  ;;  %8633 = vmatpush.bf16.msra.mxu2 %v11981_v49  ;;  %v11999_v49 = vld [vmem:[%s18605_s7 + $0x30] sm:$0xff] }
 0x939   : > { %7885 = vst.msk [vmem:[#allocation3 + $0xf] sm:$0x1] %vm7653_vm11, %v7883_v30  ;;  %8622 = vmatpush.bf16.msrb.mxu3 %v11971_v21  ;;  %v11977_v21 = vld [vmem:[%s18603_s5 + $0x80] sm:$0xff] }
 0x93a   : > { %7927 = vst.msk [vmem:[#allocation3 + $0xf] sm:$0x1] %vm7696_vm12, %v18140_v24  ;;  %v18363_v57 = vrot.slane %v8203_v27, 2 }
 0x93b   : > { %8190 = vrot.lane.b32.xlu2 %v18207_v44, %s12316_s26  ;;  %8186 = vrot.lane.b32.xlu1 %v18207_v44, %s12315_s25 }
 0x93c   : > { %8182 = vrot.lane.b32.xlu0 %v18207_v44, %s12317_s27  ;;  %v11970_v44 = vld [vmem:[%s18603_s5 + $0x48] sm:$0xff] }
 0x93d   : > { %v7821_v32 = vpop.permute.xlu1 %7820  ;;  %v7907_v43 = vpop.permute.xlu2 %7906  ;;  %8623 = vmatpush.bf16.msrb.mxu3 %v11970_v44 }
 0x93e   : > { %7823 = vst.msk [vmem:[#allocation3 + $0xe] sm:$0x1] %vm7594_vm10, %v7821_v32  ;;  %v7815_v24 = vpop.permute.xlu0 %7814 }
 0x93f   : > { %7881 = vst.msk [vmem:[#allocation3 + $0xe] sm:$0x1] %vm7653_vm11, %v18112_v4  ;;  %v11969_v4 = vld [vmem:[%s18603_s5 + $0x40] sm:$0xff] }
 0x940   : > { %7817 = vst.msk [vmem:[#allocation3 + $0xc] sm:$0x1] %vm7594_vm10, %v7815_v24 }
 0x941   : > { %7909 = vst.msk [vmem:[#allocation3 + $0xa] sm:$0x1] %vm7696_vm12, %v7907_v43  ;;  %8624 = vmatpush.bf16.msrb.mxu3 %v11969_v4 }
 0x943   : > { %8216 = vrot.lane.b32.xlu2 %v18345_v18, %s12315_s25  ;;  %8212 = vrot.lane.b32.xlu1 %v18345_v18, %s12317_s27 }
 0x944   : > { %8206 = vrot.lane.b32.xlu0 %v18345_v18, %s12316_s26 }
 0x945   : > { %v7923_v3 = vpop.permute.xlu2 %7922  ;;  %v7861_v33 = vpop.permute.xlu1 %7860 }
 0x946   : > { %7925 = vst.msk [vmem:[#allocation3 + $0xe] sm:$0x1] %vm7696_vm12, %v7923_v3  ;;  %v7857_v11 = vpop.permute.xlu0 %7856 }
 0x947   : > { %7863 = vst.msk [vmem:[#allocation3 + $0x9] sm:$0x1] %vm7653_vm11, %v7861_v33 }
 0x948   : > { %7859 = vst.msk [vmem:[#allocation3 + $0x8] sm:$0x1] %vm7653_vm11, %v7857_v11 }
 0x94b   : > { %8232 = vrot.lane.b32.xlu2 %v18363_v57, %s12315_s25  ;;  %8228 = vrot.lane.b32.xlu1 %v18363_v57, %s12317_s27 }
 0x94c   : > { %8222 = vrot.lane.b32.xlu0 %v18363_v57, %s12316_s26 }
 0x94d   : > { %v7877_v59 = vpop.permute.xlu1 %7876  ;;  %v7973_v40 = vpop.permute.xlu2 %7972 }
 0x94e   : > { %7879 = vst.msk [vmem:[#allocation3 + $0xd] sm:$0x1] %vm7653_vm11, %v7877_v59  ;;  %v7873_v15 = vpop.permute.xlu0 %7872 }
 0x94f   : > { %7875 = vst.msk [vmem:[#allocation3 + $0xc] sm:$0x1] %vm7653_vm11, %v7873_v15 }
 0x950   : > { %7975 = vst.msk [vmem:[#allocation3 + $0x13] sm:$0x1] %vm7550_vm9, %v7973_v40  ;;  %v11992_v40 = vld [vmem:[%s18603_s5 + $0xf8] sm:$0xff] }
 0x951   : > { %8643 = vmatpush.bf16.msra.mxu3 %v11992_v40 }
 0x953   : > { %8274 = vrot.lane.b32.xlu2 %v18375_v20, %s12317_s27  ;;  %8268 = vrot.lane.b32.xlu1 %v18375_v20, %s12316_s26 }
 0x954   : > { %8264 = vrot.lane.b32.xlu0 %v18375_v20, %s12315_s25 }
 0x955   : > { %v7903_v45 = vpop.permute.xlu1 %7902  ;;  %v7987_v10 = vpop.permute.xlu2 %7986  ;;  %8644 = vmatpush.bf16.msra.mxu3 %v11991_v9 }
 0x956   : > { %7905 = vst.msk [vmem:[#allocation3 + $0x9] sm:$0x1] %vm7696_vm12, %v7903_v45  ;;  %v7899_v38 = vpop.permute.xlu0 %7898  ;;  %v11990_v45 = vld [vmem:[%s18603_s5 + $0xe8] sm:$0xff] }
 0x957   : > { %7901 = vst.msk [vmem:[#allocation3 + $0x8] sm:$0x1] %vm7696_vm12, %v7899_v38 }
 0x958   : > { %7989 = vst.msk [vmem:[#allocation3 + $0x17] sm:$0x1] %vm7550_vm9, %v7987_v10 }
 0x959   : > { %8645 = vmatpush.bf16.msra.mxu3 %v11990_v45 }
 0x95b   : > { %8290 = vrot.lane.b32.xlu2 %v18390_v39, %s12317_s27  ;;  %8284 = vrot.lane.b32.xlu1 %v18390_v39, %s12316_s26 }
 0x95c   : > { %8280 = vrot.lane.b32.xlu0 %v18390_v39, %s12315_s25 }
 0x95d   : > { %v7919_v34 = vpop.permute.xlu1 %7918  ;;  %v8013_v13 = vpop.permute.xlu2 %8012 }
 0x95e   : > { %7921 = vst.msk [vmem:[#allocation3 + $0xd] sm:$0x1] %vm7696_vm12, %v7919_v34  ;;  %v7915_v46 = vpop.permute.xlu0 %7914 }
 0x95f   : > { %7917 = vst.msk [vmem:[#allocation3 + $0xc] sm:$0x1] %vm7696_vm12, %v7915_v46 }
 0x960   : > { %8015 = vst.msk [vmem:[#allocation3 + $0x13] sm:$0x1] %vm7594_vm10, %v8013_v13 }
 0x963   : > { %8314 = vrot.lane.b32.xlu2 %v18402_v25, %s12316_s26  ;;  %8310 = vrot.lane.b32.xlu1 %v18402_v25, %s12315_s25 }
 0x964   : > { %8306 = vrot.lane.b32.xlu0 %v18402_v25, %s12317_s27 }
 0x965   : > { %v8029_v0 = vpop.permute.xlu2 %8028  ;;  %v7969_v58 = vpop.permute.xlu1 %7968 }
 0x966   : > { %8031 = vst.msk [vmem:[#allocation3 + $0x17] sm:$0x1] %vm7594_vm10, %v8029_v0  ;;  %v7965_v56 = vpop.permute.xlu0 %7964  ;;  %v8337_v26 = vld [vmem:[#allocation3 + $0x8] sm:$0xff] }
 0x967   : > { %7971 = vst.msk [vmem:[#allocation3 + $0x12] sm:$0x1] %vm7550_vm9, %v7969_v58  ;;  %v8341_v28 = vpack.c.bf16 %v8337_v26, %v8337_v26 }
 0x968   : > { %7967 = vst.msk [vmem:[#allocation3 + $0x11] sm:$0x1] %vm7550_vm9, %v7965_v56 }
 0x969   : > { %8007 = vst.msk [vmem:[#allocation3 + $0x11] sm:$0x1] %vm7594_vm10, %v18202_v16  ;;  %8625 = vmatmul.bf16.vlgmr.msrb.gmra.mxu3 %v8341_v28 }
 0x96b   : > { %8330 = vrot.lane.b32.xlu2 %v18419_v8, %s12316_s26  ;;  %8326 = vrot.lane.b32.xlu1 %v18419_v8, %s12315_s25  ;;  %s325_s25 = scalar_lea.vmem [#allocation4], %s8820_s28  ;;  %s12270_s28 = scalar_lea.hbm %s18607_s9, 16 }
 0x96c   : > { %8322 = vrot.lane.b32.xlu0 %v18419_v8, %s12317_s27  ;;  %s8754_s26 = sshll.u32 %s325_s25, 4  ;;  %s8756_s27 = sshll.u32 %s8752_s14, 4  ;;  %s8755_s26 = int_to_ptr.vmem [resolvable:$true] %s8754_s26  ;;  %s8757_s27 = int_to_ptr.hbm [resolvable:$true] %s8756_s27 }
 0x96d   : > { %v7983_v47 = vpop.permute.xlu1 %7982  ;;  %v8071_v42 = vpop.permute.xlu2 %8070  ;;  %s12264_s22 = sshra.s32 %s8757_s27, 4  ;;  %s12265_s22 = int_to_ptr.hbm [resolvable:$true] %s12264_s22 }
 0x96e   : > { %7985 = vst.msk [vmem:[#allocation3 + $0x16] sm:$0x1] %vm7550_vm9, %v7983_v47  ;;  %v7979_v16 = vpop.permute.xlu0 %7978  ;;  %s12266_s18 = scalar_lea.hbm %s12265_s22, 8  ;;  %p12271_p0 = scmp.lt.s32.totalorder %s12265_s22, %s18607_s9 }
 0x96f   : > { %7981 = vst.msk [vmem:[#allocation3 + $0x15] sm:$0x1] %vm7550_vm9, %v7979_v16  ;;  %p12267_p11 = scmp.ne.s32.totalorder %s12265_s22, %s12266_s18  ;;  %p12272_p1 = scmp.lt.s32.totalorder %s12270_s28, %s12266_s18 }
 0x970   : > { %8023 = vst.msk [vmem:[#allocation3 + $0x15] sm:$0x1] %vm7594_vm10, %v18228_v31  ;;  %v11980_v31 = vld [vmem:[%s18603_s5 + $0x98] sm:$0xff] }
 0x971   : > { %8073 = vst.msk [vmem:[#allocation3 + $0x13] sm:$0x1] %vm7653_vm11, %v8071_v42  ;;  %8634 = vmatpush.bf16.msra.mxu2 %v11980_v31  ;;  %v11995_v31 = vld [vmem:[%s18605_s7 + $0x10] sm:$0xff]  ;;  %p12268_p12 = pnand %p12267_p11, %p12406_p5  ;;  %p12273_p2 = por %p12272_p1, %p12271_p0 }
 0x972   : > { %8115 = vst.msk [vmem:[#allocation3 + $0x13] sm:$0x1] %vm7696_vm12, %v18267_v62  ;;  %v11979_v62 = vld [vmem:[%s18603_s5 + $0x90] sm:$0xff] }
 0x973   : > { %p12269_p13 = pneg %p12268_p12 }
 0x975   : > { %v8009_v30 = vpop.permute.xlu1 %8008  ;;  %v8087_v41 = vpop.permute.xlu2 %8086  ;;  %8635 = vmatpush.bf16.msra.mxu2 %v11979_v62  ;;  %p12274_p3 = pnand %p12273_p2, %p12269_p13 }
 0x976   : > { %8011 = vst.msk [vmem:[#allocation3 + $0x12] sm:$0x1] %vm7594_vm10, %v8009_v30  ;;  %v8003_v17 = vpop.permute.xlu0 %8002  ;;  %v11998_v30 = vld [vmem:[%s18605_s7 + $0x28] sm:$0xff] }
 0x977   : > { %8069 = vst.msk [vmem:[#allocation3 + $0x12] sm:$0x1] %vm7653_vm11, %v18240_v12 }
 0x978   : > { %8005 = vst.msk [vmem:[#allocation3 + $0x10] sm:$0x1] %vm7594_vm10, %v8003_v17  ;;  %v11996_v17 = vld [vmem:[%s18605_s7 + $0x18] sm:$0xff] }
 0x979   : > { %8089 = vst.msk [vmem:[#allocation3 + $0x17] sm:$0x1] %vm7653_vm11, %v8087_v41  ;;  %v11997_v41 = vld [vmem:[%s18605_s7 + $0x20] sm:$0xff] }
 0x97a   : > { %8131 = vst.msk [vmem:[#allocation3 + $0x17] sm:$0x1] %vm7696_vm12, %v18284_v29  ;;  %v11978_v29 = vld [vmem:[%s18603_s5 + $0x88] sm:$0xff] }
 0x97b   : > { %8636 = vmatpush.bf16.msra.mxu2 %v11978_v29 }
 0x97d   : > { %v8025_v14 = vpop.permute.xlu1 %8024  ;;  %v8111_v22 = vpop.permute.xlu2 %8110 }
 0x97e   : > { %8027 = vst.msk [vmem:[#allocation3 + $0x16] sm:$0x1] %vm7594_vm10, %v8025_v14  ;;  %v8019_v12 = vpop.permute.xlu0 %8018 }
 0x97f   : > { %8085 = vst.msk [vmem:[#allocation3 + $0x16] sm:$0x1] %vm7653_vm11, %v18255_v7  ;;  %8637 = vmatpush.bf16.msra.mxu2 %v11977_v21 }
 0x980   : > { %8021 = vst.msk [vmem:[#allocation3 + $0x14] sm:$0x1] %vm7594_vm10, %v8019_v12  ;;  %v11993_v12 = vld [vmem:[%s18605_s7] sm:$0xff] }
 0x981   : > { %8113 = vst.msk [vmem:[#allocation3 + $0x12] sm:$0x1] %vm7696_vm12, %v8111_v22  ;;  %v11994_v22 = vld [vmem:[%s18605_s7 + $0x8] sm:$0xff] }
 0x983   : > { %8726 = vmatpush.bf16.msrb.mxu2 %v12000_v48 }
 0x985   : > { %v8127_v32 = vpop.permute.xlu2 %8126  ;;  %v8065_v43 = vpop.permute.xlu1 %8064 }
 0x986   : > { %8129 = vst.msk [vmem:[#allocation3 + $0x16] sm:$0x1] %vm7696_vm12, %v8127_v32  ;;  %v8061_v6 = vpop.permute.xlu0 %8060 }
 0x987   : > { %8067 = vst.msk [vmem:[#allocation3 + $0x11] sm:$0x1] %vm7653_vm11, %v8065_v43  ;;  %8727 = vmatpush.bf16.msrb.mxu2 %v11999_v49 }
 0x988   : > { %8063 = vst.msk [vmem:[#allocation3 + $0x10] sm:$0x1] %vm7653_vm11, %v8061_v6 }
 0x98b   : > { %8728 = vmatpush.bf16.msrb.mxu2 %v11998_v30 }
 0x98d   : > { %v8081_v7 = vpop.permute.xlu1 %8080  ;;  %v8177_v60 = vpop.permute.xlu2 %8176 }
 0x98e   : > { %8083 = vst.msk [vmem:[#allocation3 + $0x15] sm:$0x1] %vm7653_vm11, %v8081_v7  ;;  %v8077_v24 = vpop.permute.xlu0 %8076 }
 0x98f   : > { %8079 = vst.msk [vmem:[#allocation3 + $0x14] sm:$0x1] %vm7653_vm11, %v8077_v24  ;;  %8729 = vmatpush.bf16.msrb.mxu2 %v11997_v41 }
 0x990   : > { %8179 = vst.msk [vmem:[#allocation3 + $0x1b] sm:$0x1] %vm7550_vm9, %v8177_v60  ;;  %v12221_v60 = vld [vmem:[%s18606_s8] ss:$0 sm:$0xff] }
 0x993   : > { %8730 = vmatpush.bf16.msrb.mxu2 %v11996_v17 }
 0x995   : > { %v8107_v44 = vpop.permute.xlu1 %8106  ;;  %v8191_v2 = vpop.permute.xlu2 %8190 }
 0x996   : > { %8109 = vst.msk [vmem:[#allocation3 + $0x11] sm:$0x1] %vm7696_vm12, %v8107_v44  ;;  %v8103_v63 = vpop.permute.xlu0 %8102 }
 0x997   : > { %8105 = vst.msk [vmem:[#allocation3 + $0x10] sm:$0x1] %vm7696_vm12, %v8103_v63  ;;  %8731 = vmatpush.bf16.msrb.mxu2 %v11995_v31 }
 0x998   : > { %8193 = vst.msk [vmem:[#allocation3 + $0x1f] sm:$0x1] %vm7550_vm9, %v8191_v2 }
 0x99b   : > { %8732 = vmatpush.bf16.msrb.mxu2 %v11994_v22 }
 0x99d   : > { %v8123_v4 = vpop.permute.xlu1 %8122  ;;  %v8217_v3 = vpop.permute.xlu2 %8216 }
 0x99e   : > { %8125 = vst.msk [vmem:[#allocation3 + $0x15] sm:$0x1] %vm7696_vm12, %v8123_v4  ;;  %v8119_v33 = vpop.permute.xlu0 %8118 }
 0x99f   : > { %8121 = vst.msk [vmem:[#allocation3 + $0x14] sm:$0x1] %vm7696_vm12, %v8119_v33  ;;  %8733 = vmatpush.bf16.msrb.mxu2 %v11993_v12 }
 0x9a0   : > { %8219 = vst.msk [vmem:[#allocation3 + $0x1b] sm:$0x1] %vm7594_vm10, %v8217_v3 }
 0x9a5   : > { %v8233_v27 = vpop.permute.xlu2 %8232  ;;  %v8173_v19 = vpop.permute.xlu1 %8172 }
 0x9a6   : > { %8235 = vst.msk [vmem:[#allocation3 + $0x1f] sm:$0x1] %vm7594_vm10, %v8233_v27  ;;  %v8169_v11 = vpop.permute.xlu0 %8168  ;;  %v8338_v54 = vld [vmem:[#allocation3 + $0x10] sm:$0xff] }
 0x9a7   : > { %8175 = vst.msk [vmem:[#allocation3 + $0x1a] sm:$0x1] %vm7550_vm9, %v8173_v19  ;;  %v8342_v59 = vpack.c.bf16 %v8338_v54, %v8338_v54 }
 0x9a8   : > { %8171 = vst.msk [vmem:[#allocation3 + $0x19] sm:$0x1] %vm7550_vm9, %v8169_v11 }
 0x9a9   : > { %8211 = vst.msk [vmem:[#allocation3 + $0x19] sm:$0x1] %vm7594_vm10, %v18345_v18  ;;  %8638 = vmatmul.bf16.vlgmr.msra.gmra.mxu2 %v8342_v59  ;;  %v11989_v18 = vld [vmem:[%s18603_s5 + $0xe0] sm:$0xff] }
 0x9aa   : > { %8646 = vmatpush.bf16.msra.mxu3 %v11989_v18 }
 0x9ac   : > { %v8613_v51 = vpop.f32.mrf.mxu2 }
 0x9ad   : > { %v8187_v15 = vpop.permute.xlu1 %8186  ;;  %v8275_v37 = vpop.permute.xlu2 %8274  ;;  %v8614_v50 = vadd.f32 %v12220_v23, %v8613_v51 }
 0x9ae   : > { %8189 = vst.msk [vmem:[#allocation3 + $0x1e] sm:$0x1] %vm7550_vm9, %v8187_v15  ;;  %v8183_v35 = vpop.permute.xlu0 %8182 }
 0x9af   : > { %8185 = vst.msk [vmem:[#allocation3 + $0x1d] sm:$0x1] %vm7550_vm9, %v8183_v35 }
 0x9b0   : > { %8227 = vst.msk [vmem:[#allocation3 + $0x1d] sm:$0x1] %vm7594_vm10, %v18363_v57  ;;  %v11988_v57 = vld [vmem:[%s18603_s5 + $0xd8] sm:$0xff] }
 0x9b1   : > { %8277 = vst.msk [vmem:[#allocation3 + $0x1b] sm:$0x1] %vm7653_vm11, %v8275_v37  ;;  %8647 = vmatpush.bf16.msra.mxu3 %v11988_v57 }
 0x9b2   : > { %8319 = vst.msk [vmem:[#allocation3 + $0x1b] sm:$0x1] %vm7696_vm12, %v18402_v25 }
 0x9b4   : > { %v8615_v10 = vpop.f32.mrf.mxu2 }
 0x9b5   : > { %v8213_v55 = vpop.permute.xlu1 %8212  ;;  %v8291_v52 = vpop.permute.xlu2 %8290  ;;  %8648 = vmatpush.bf16.msra.mxu3 %v11987_v5 }
 0x9b6   : > { %8215 = vst.msk [vmem:[#allocation3 + $0x1a] sm:$0x1] %vm7594_vm10, %v8213_v55  ;;  %v8207_v38 = vpop.permute.xlu0 %8206 }
 0x9b7   : > { %8273 = vst.msk [vmem:[#allocation3 + $0x1a] sm:$0x1] %vm7653_vm11, %v18375_v20 }
 0x9b8   : > { %8209 = vst.msk [vmem:[#allocation3 + $0x18] sm:$0x1] %vm7594_vm10, %v8207_v38 }
 0x9b9   : > { %8293 = vst.msk [vmem:[#allocation3 + $0x1f] sm:$0x1] %vm7653_vm11, %v8291_v52  ;;  %8649 = vmatpush.bf16.msra.mxu3 %v11986_v61 }
 0x9ba   : > { %8335 = vst.msk [vmem:[#allocation3 + $0x1f] sm:$0x1] %vm7696_vm12, %v18419_v8 }
 0x9bd   : > { %v8229_v34 = vpop.permute.xlu1 %8228  ;;  %v8315_v13 = vpop.permute.xlu2 %8314  ;;  %8650 = vmatpush.bf16.msra.mxu3 %v11985_v1 }
 0x9be   : > { %8231 = vst.msk [vmem:[#allocation3 + $0x1e] sm:$0x1] %vm7594_vm10, %v8229_v34  ;;  %v8223_v20 = vpop.permute.xlu0 %8222 }
 0x9bf   : > { %8289 = vst.msk [vmem:[#allocation3 + $0x1e] sm:$0x1] %vm7653_vm11, %v18390_v39 }
 0x9c0   : > { %8225 = vst.msk [vmem:[#allocation3 + $0x1c] sm:$0x1] %vm7594_vm10, %v8223_v20 }
 0x9c1   : > { %8317 = vst.msk [vmem:[#allocation3 + $0x1a] sm:$0x1] %vm7696_vm12, %v8315_v13 }
 0x9c5   : > { %v8331_v46 = vpop.permute.xlu2 %8330  ;;  %v8269_v25 = vpop.permute.xlu1 %8268 }
 0x9c6   : > { %8333 = vst.msk [vmem:[#allocation3 + $0x1e] sm:$0x1] %vm7696_vm12, %v8331_v46  ;;  %v8265_v36 = vpop.permute.xlu0 %8264 }
 0x9c7   : > { %8271 = vst.msk [vmem:[#allocation3 + $0x19] sm:$0x1] %vm7653_vm11, %v8269_v25 }
 0x9c8   : > { %8267 = vst.msk [vmem:[#allocation3 + $0x18] sm:$0x1] %vm7653_vm11, %v8265_v36 }
 0x9cd   : > { %v8285_v39 = vpop.permute.xlu1 %8284 }
 0x9ce   : > { %8287 = vst.msk [vmem:[#allocation3 + $0x1d] sm:$0x1] %vm7653_vm11, %v8285_v39  ;;  %v8281_v0 = vpop.permute.xlu0 %8280 }
 0x9cf   : > { %8283 = vst.msk [vmem:[#allocation3 + $0x1c] sm:$0x1] %vm7653_vm11, %v8281_v0 }
 0x9d5   : > { %v8311_v58 = vpop.permute.xlu1 %8310 }
 0x9d6   : > { %8313 = vst.msk [vmem:[#allocation3 + $0x19] sm:$0x1] %vm7696_vm12, %v8311_v58  ;;  %v8307_v53 = vpop.permute.xlu0 %8306 }
 0x9d7   : > { %8309 = vst.msk [vmem:[#allocation3 + $0x18] sm:$0x1] %vm7696_vm12, %v8307_v53 }
 0x9dd   : > { %v8327_v56 = vpop.permute.xlu1 %8326 }
 0x9de   : > { %8329 = vst.msk [vmem:[#allocation3 + $0x1d] sm:$0x1] %vm7696_vm12, %v8327_v56  ;;  %v8323_v26 = vpop.permute.xlu0 %8322 }
 0x9df   : > { %8325 = vst.msk [vmem:[#allocation3 + $0x1c] sm:$0x1] %vm7696_vm12, %v8323_v26 }
 0x9e6   : > { %v8339_v28 = vld [vmem:[#allocation3 + $0x18] sm:$0xff] }
 0x9e7   : > { %v8343_v8 = vpack.c.bf16 %v8339_v28, %v8339_v28 }
 0x9e9   : > { %8651 = vmatmul.bf16.vlgmr.msra.gmra.mxu3 %v8343_v8 }
 0x9ec   : > { %v8626_v47 = vpop.f32.mrf.mxu3 }
 0x9ed   : > { %v8627_v42 = vadd.f32 %v8626_v47, %v8614_v50 }
 0x9f4   : > { %v8628_v16 = vpop.f32.mrf.mxu3 }
 0xa2c   : > { %v8639_v62 = vpop.f32.mrf.mxu2 }
 0xa2d   : > { %v8640_v29 = vadd.f32 %v8639_v62, %v8627_v42 }
 0xa34   : > { %v8641_v14 = vpop.f32.mrf.mxu2 }
 0xa6c   : > { %v8652_v21 = vpop.f32.mrf.mxu3 }
 0xa6d   : > { %v8653_v32 = vadd.f32 %v8652_v21, %v8640_v29 }
 0xa6f   : > { %v8656_v43 = vmax.f32 %v8653_v32, 0.0 }
 0xa71   : > { %v8657_v6 = vpack.c.bf16 %v8656_v43, %v8656_v43 }
 0xa73   : > { %8734 = vmatmul.bf16.vlgmr.msrb.gmra.mxu2 %v8657_v6 }
 0xa74   : > { %v8654_v7 = vpop.f32.mrf.mxu3 }
 0xaf6   : > { %v8735_v24 = vpop.f32.mrf.mxu2 }
 0xaf7   : > { %v8736_v44 = vadd.f32 %v12221_v60, %v8735_v24 }
 0xaf9   : > { %8740 = vst.msk [vmem:[%s325_s25] sm:$0xff] %vm8739_vm13, %v8736_v44 }
 0xafa   : > { %12277 = shalt.err (!%p12274_p3)
}
 0xafb   : > { %12176 = dma.vmem_to_hbm [thread:$0]  (%p12406_p5), %s8755_s26, 128, %s8757_s27, %s8742_s13  }
 0xafe   : > { %v8737_v2 = vpop.f32.mrf.mxu2 }
 0xaff PF: > { %p12182_p4 = scmp.ge.s32.totalorder %s12312_s12, 2  ;;  %s8768_s23 = sand.u32 1, %s12300_s30  }
 0xb00   : > { %s8769_s21 = scalar_lea.sflag [#allocation5], %s8768_s23 }
 0xb01   : > { %p12179_p7 = pnand %p12182_p4, %p12410_p6 }
 0xb03   : > { %p12180_p8 = pneg %p12179_p7 }
 0xb05   : > { %12295 = dma.done.wait (%p12180_p8), %s8769_s21, 128  }
 0xb06   : > { %12297 = vsyncadd (%p12180_p8), %s8769_s21, 4294967168  ;;  %s19291_s16 = sld [smem:[#allocation7_spill]]  ;;  %p19_p9 = scmp.ge.s32.totalorder %s12393_s15, 4  }
 0xb07   : > { %s19292_s30 = smov %s12304_s10  ;;  %s19293_s10 = smov %s12308_s11 }
 0xb08   : > { %s19295_s12 = smov %s12393_s15  ;;  %21 = sbr.rel (!%p19_p9) target bundleno = 3 (0x3), region = 115 }
 0xb0c   : > { %s19294_s11 = smov %s19291_s16 }
 0xb0d   :  { %8775 = vsyncpa [#allocation5], 1 }
 0xb0e   :  { %8777 = vsyncpa [#allocation5 + $0x1], 1 }

</bundles_post_ra>
